<compile_context>
chip_gen: v5e
topology: v5e:2x2
jax: 0.10.0
libtpu: 0.0.40
codegen_flags: <defaults>
</compile_context>

<pallas_src>
import jax
import jax.numpy as jnp
from jax.experimental import pallas as pl
from jax.experimental.pallas import tpu as pltpu

EPS = 1e-5


def _bn_add_relu_conv_kernel(x294_ref, x281_ref, gamma_ref, beta_ref, w_ref,
                             o_ref):
    # x294_ref, x281_ref : (Cin, P)    f32  (channels on sublanes, pixels on lanes)
    # gamma_ref, beta_ref: (Cin, 1)    f32
    # w_ref              : (tCout, Cin) bf16 (1x1 conv weight tile, no transpose)
    # o_ref              : (tCout, P)  f32
    x = x294_ref[...]                                   # (Cin, P)
    inv_p = 1.0 / x.shape[1]

    # --- BatchNorm2d, training-mode batch stats, one pass ------------------
    s = jnp.sum(x, axis=-1, keepdims=True)              # (Cin, 1)
    ss = jnp.sum(x * x, axis=-1, keepdims=True)         # (Cin, 1)
    mean = s * inv_p
    var = ss * inv_p - mean * mean                      # biased variance
    inv_std = jax.lax.rsqrt(var + EPS)
    scale = inv_std * gamma_ref[...]                    # (Cin, 1)
    shift = beta_ref[...] - mean * scale                # (Cin, 1)

    # --- add + relu, cast to bf16 for the MXU -------------------------------
    h = jnp.maximum(x281_ref[...] + x * scale + shift, 0.0).astype(jnp.bfloat16)

    # --- 1x1 conv == (tCout, Cin) @ (Cin, P), f32 accumulation --------------
    o_ref[...] = jnp.dot(w_ref[...], h, preferred_element_type=jnp.float32)


def bn_add_relu_conv1x1(x294_nchw, x281_nchw, gamma, beta, conv_w):
    """x294/x281: (N, C, H, W) f32; gamma/beta: (C,); conv_w: (Cout, Cin, 1, 1)."""
    n, c, hh, ww = x294_nchw.shape
    p = n * hh * ww
    cout = conv_w.shape[0]

    # NCHW -> (C, P).  Free (pure reshape) when N == 1 (the module's case).
    if n == 1:
        x294 = x294_nchw.reshape(c, p)
        x281 = x281_nchw.reshape(c, p)
    else:
        x294 = jnp.transpose(x294_nchw, (1, 0, 2, 3)).reshape(c, p)
        x281 = jnp.transpose(x281_nchw, (1, 0, 2, 3)).reshape(c, p)

    # (Cout, Cin) weight, bf16 for the MXU — no transpose needed in (C,P) layout.
    w2d = conv_w.reshape(cout, c).astype(jnp.bfloat16)
    g2 = gamma.reshape(c, 1).astype(jnp.float32)
    b2 = beta.reshape(c, 1).astype(jnp.float32)

    # Split the output channels into 2 column blocks so v7x's two TensorCores
    # each take half the matmul ("parallel" grid axis); on v5e/v6e the two
    # steps run back-to-back and the resident inputs are not re-DMA'd.
    cout_tile = cout // 2 if (cout % 2 == 0 and (cout // 2) % 16 == 0) else cout
    grid = (cout // cout_tile,)

    out_flat = pl.pallas_call(
        _bn_add_relu_conv_kernel,
        out_shape=jax.ShapeDtypeStruct((cout, p), jnp.float32),
        grid=grid,
        in_specs=[
            pl.BlockSpec((c, p), lambda i: (0, 0)),          # x294 (resident)
            pl.BlockSpec((c, p), lambda i: (0, 0)),          # x281 (resident)
            pl.BlockSpec((c, 1), lambda i: (0, 0)),          # gamma
            pl.BlockSpec((c, 1), lambda i: (0, 0)),          # beta
            pl.BlockSpec((cout_tile, c), lambda i: (i, 0)),  # weight tile
        ],
        out_specs=pl.BlockSpec((cout_tile, p), lambda i: (i, 0)),
        compiler_params=pltpu.CompilerParams(
            dimension_semantics=("parallel",)),
    )(x294, x281, g2, b2, w2d)

    # (Cout, P) -> NCHW.  Free reshape for N == 1.
    if n == 1:
        return out_flat.reshape(1, cout, hh, ww)
    return jnp.transpose(out_flat.reshape(cout, n, hh, ww), (1, 0, 2, 3))


def _reference(x294_nchw, x281_nchw, gamma, beta, conv_w):
    # Pure-JAX f32 reference for sanity checking.
    mean = jnp.mean(x294_nchw, axis=(0, 2, 3), keepdims=True)
    var = jnp.mean((x294_nchw - mean) ** 2, axis=(0, 2, 3), keepdims=True)
    bn = (x294_nchw - mean) * jax.lax.rsqrt(var + EPS)
    bn = bn * gamma[None, :, None, None] + beta[None, :, None, None]
    hrelu = jnp.maximum(x281_nchw + bn, 0.0)
    w2d = conv_w.reshape(conv_w.shape[0], conv_w.shape[1])
    return jnp.einsum('nchw,oc->nohw', hrelu, w2d)


if __name__ == "__main__":
    key = jax.random.PRNGKey(0)
    k1, k2, k3, k4, k5 = jax.random.split(key, 5)

    # Shapes from the module spec (already small).
    N, C, H, W = 1, 576, 14, 14

    x294 = jax.random.normal(k1, (N, C, H, W), dtype=jnp.float32)
    x281 = jax.random.normal(k2, (N, C, H, W), dtype=jnp.float32)

    gamma = 1.0 + 0.1 * jax.random.normal(k3, (C,), dtype=jnp.float32)
    beta = 0.1 * jax.random.normal(k4, (C,), dtype=jnp.float32)
    conv_w = (jax.random.normal(k5, (C, C, 1, 1), dtype=jnp.float32)
              * (1.0 / jnp.sqrt(C)))

    fn = jax.jit(bn_add_relu_conv1x1)
    out = fn(x294, x281, gamma, beta, conv_w)
    out = jax.block_until_ready(out)

    ref = _reference(x294, x281, gamma, beta, conv_w)
    assert out.shape == (N, C, H, W)
    # bf16 MXU operands (f32 accumulation) -> slightly relaxed tolerance vs
    # the pure-f32 reference.
    max_err = float(jnp.max(jnp.abs(out - ref)))
    assert jnp.allclose(out, ref, atol=2e-2, rtol=2e-2), max_err

    print("KERNEL_OK")
</pallas_src>

<mosaic_0001>
module attributes {stable_mosaic.version = 11 : i64} {
  func.func @_bn_add_relu_conv_kernel(%arg0: i32, %arg1: memref<576x196xf32, #tpu.memory_space<vmem>>, %arg2: memref<576x196xf32, #tpu.memory_space<vmem>>, %arg3: memref<576x1xf32, #tpu.memory_space<vmem>>, %arg4: memref<576x1xf32, #tpu.memory_space<vmem>>, %arg5: memref<288x576xbf16, #tpu.memory_space<vmem>>, %arg6: memref<288x196xf32, #tpu.memory_space<vmem>>) attributes {dimension_semantics = [#tpu.dimension_semantics<parallel>], iteration_bounds = array<i64: 2>, scalar_prefetch = 0 : i64, scratch_operands = 0 : i64, tpu.core_type = #tpu.core_type<tc>, window_params = [{pipeline_mode = #tpu.pipeline_mode<synchronous>, transform_indices = @transform_0, window_bounds = array<i64: 576, 196>}, {pipeline_mode = #tpu.pipeline_mode<synchronous>, transform_indices = @transform_1, window_bounds = array<i64: 576, 196>}, {pipeline_mode = #tpu.pipeline_mode<synchronous>, transform_indices = @transform_2, window_bounds = array<i64: 576, 1>}, {pipeline_mode = #tpu.pipeline_mode<synchronous>, transform_indices = @transform_3, window_bounds = array<i64: 576, 1>}, {transform_indices = @transform_4, window_bounds = array<i64: 288, 576>}, {transform_indices = @transform_5, window_bounds = array<i64: 288, 196>}]} {
    %c0 = arith.constant 0 : index
    %c0_0 = arith.constant 0 : index
    %0 = vector.load %arg1[%c0, %c0_0] : memref<576x196xf32, #tpu.memory_space<vmem>>, vector<576x196xf32>
    %cst = arith.constant dense<0.000000e+00> : vector<576xf32>
    %1 = vector.multi_reduction <add>, %0, %cst [1] : vector<576x196xf32> to vector<576xf32>
    %2 = vector.shape_cast %1 : vector<576xf32> to vector<576x1xf32>
    %3 = arith.mulf %0, %0 : vector<576x196xf32>
    %cst_1 = arith.constant dense<0.000000e+00> : vector<576xf32>
    %4 = vector.multi_reduction <add>, %3, %cst_1 [1] : vector<576x196xf32> to vector<576xf32>
    %5 = vector.shape_cast %4 : vector<576xf32> to vector<576x1xf32>
    %cst_2 = arith.constant 0.00510204071 : f32
    %6 = vector.broadcast %cst_2 : f32 to vector<576x1xf32>
    %7 = arith.mulf %2, %6 : vector<576x1xf32>
    %cst_3 = arith.constant 0.00510204071 : f32
    %8 = vector.broadcast %cst_3 : f32 to vector<576x1xf32>
    %9 = arith.mulf %5, %8 : vector<576x1xf32>
    %10 = arith.mulf %7, %7 : vector<576x1xf32>
    %11 = arith.subf %9, %10 : vector<576x1xf32>
    %cst_4 = arith.constant 9.99999974E-6 : f32
    %12 = vector.broadcast %cst_4 : f32 to vector<576x1xf32>
    %13 = arith.addf %11, %12 : vector<576x1xf32>
    %14 = math.rsqrt %13 : vector<576x1xf32>
    %c0_5 = arith.constant 0 : index
    %c0_6 = arith.constant 0 : index
    %15 = vector.load %arg3[%c0_5, %c0_6] : memref<576x1xf32, #tpu.memory_space<vmem>>, vector<576x1xf32>
    %16 = arith.mulf %14, %15 : vector<576x1xf32>
    %c0_7 = arith.constant 0 : index
    %c0_8 = arith.constant 0 : index
    %17 = vector.load %arg4[%c0_7, %c0_8] : memref<576x1xf32, #tpu.memory_space<vmem>>, vector<576x1xf32>
    %18 = arith.mulf %7, %16 : vector<576x1xf32>
    %19 = arith.subf %17, %18 : vector<576x1xf32>
    %c0_9 = arith.constant 0 : index
    %c0_10 = arith.constant 0 : index
    %20 = vector.load %arg2[%c0_9, %c0_10] : memref<576x196xf32, #tpu.memory_space<vmem>>, vector<576x196xf32>
    %21 = vector.broadcast %16 : vector<576x1xf32> to vector<576x196xf32>
    %22 = arith.mulf %0, %21 : vector<576x196xf32>
    %23 = arith.addf %20, %22 : vector<576x196xf32>
    %24 = vector.broadcast %19 : vector<576x1xf32> to vector<576x196xf32>
    %25 = arith.addf %23, %24 : vector<576x196xf32>
    %cst_11 = arith.constant 0.000000e+00 : f32
    %26 = vector.broadcast %cst_11 : f32 to vector<576x196xf32>
    %27 = arith.maximumf %25, %26 : vector<576x196xf32>
    %28 = arith.truncf %27 : vector<576x196xf32> to vector<576x196xbf16>
    %c0_12 = arith.constant 0 : index
    %c0_13 = arith.constant 0 : index
    %29 = vector.load %arg5[%c0_12, %c0_13] : memref<288x576xbf16, #tpu.memory_space<vmem>>, vector<288x576xbf16>
    %cst_14 = arith.constant dense<0.000000e+00> : vector<288x196xf32>
    %30 = tpu.matmul %29, %28, %cst_14 {dimension_numbers = #tpu.dot_dimension_numbers<[1], [0], [0], [1], [0, 0, 1, 1], [], []>} : vector<288x576xbf16>, vector<576x196xbf16>, vector<288x196xf32> -> vector<288x196xf32>
    %c0_15 = arith.constant 0 : index
    %c0_16 = arith.constant 0 : index
    %31 = vector.load %arg6[%c0_15, %c0_16] : memref<288x196xf32, #tpu.memory_space<vmem>>, vector<288x196xf32>
    tpu.vector_store %arg6[%c0_15, %c0_16], %30 {strides = array<i32>} : memref<288x196xf32, #tpu.memory_space<vmem>>, vector<288x196xf32>,
    return
  }
  func.func @transform_0(%arg0: i32) -> (i32, i32) {
    %c0_i32 = arith.constant 0 : i32
    %c0_i32_0 = arith.constant 0 : i32
    %c0_i32_1 = arith.constant 0 : i32
    return %c0_i32, %c0_i32_0 : i32, i32
  }
  func.func @transform_1(%arg0: i32) -> (i32, i32) {
    %c0_i32 = arith.constant 0 : i32
    %c0_i32_0 = arith.constant 0 : i32
    %c0_i32_1 = arith.constant 0 : i32
    return %c0_i32, %c0_i32_0 : i32, i32
  }
  func.func @transform_2(%arg0: i32) -> (i32, i32) {
    %c0_i32 = arith.constant 0 : i32
    %c0_i32_0 = arith.constant 0 : i32
    %c0_i32_1 = arith.constant 0 : i32
    return %c0_i32, %c0_i32_0 : i32, i32
  }
  func.func @transform_3(%arg0: i32) -> (i32, i32) {
    %c0_i32 = arith.constant 0 : i32
    %c0_i32_0 = arith.constant 0 : i32
    %c0_i32_1 = arith.constant 0 : i32
    return %c0_i32, %c0_i32_0 : i32, i32
  }
  func.func @transform_4(%arg0: i32) -> (i32, i32) {
    %c0_i32 = arith.constant 0 : i32
    %c0_i32_0 = arith.constant 0 : i32
    return %arg0, %c0_i32 : i32, i32
  }
  func.func @transform_5(%arg0: i32) -> (i32, i32) {
    %c0_i32 = arith.constant 0 : i32
    %c0_i32_0 = arith.constant 0 : i32
    return %arg0, %c0_i32 : i32, i32
  }
}

</mosaic_0001>

<bundles_post_ra>
// kernel: bn_add_relu_conv1x1.1
= control target key start
LH: loop header
LB: loop body
LE: loop exit
PB: predicated region body
PF: predicated region fallthrough
CT: control target
= control target key end

     0   :  { %s6637_s18 = smov 0   ;;  %s13673_s0 = inlined_call_operand.vmem [shape: f32[576,196], index: 0, kind: input, shape index: {}]   ;;  %s13674_s1 = inlined_call_operand.vmem [shape: f32[576,196], index: 1, kind: input, shape index: {}]   ;;  %s13675_s2 = inlined_call_operand.vmem [shape: f32[576,1], index: 2, kind: input, shape index: {}]   ;;  %s13676_s3 = inlined_call_operand.vmem [shape: f32[576,1], index: 3, kind: input, shape index: {}]   ;;  %s13677_s4 = inlined_call_operand.vmem [shape: bf16[576,576], index: 4, kind: input, shape index: {}]   ;;  %s13678_s5 = inlined_call_operand.vmem [shape: f32[576,196], index: 5, kind: output, shape index: {}]  }
   0x1 LB: > { %s5784_s19 = sadd.s32 4294967295, %s6604_s18   ;;  %p5788_p0 = scmp.ge.s32.totalorder %s6604_s18, 1  ;;  %s6604_s18 = sphi %s6637_s18, %s15_s18  }
   0x2   : > { %p189_p1 = scmp.lt.s32.totalorder %s6604_s18, 3 }
   0x4   : > { %p190_p2 = pnand %p5788_p0, %p189_p1 }
   0x6   : > { %193 = sbr.rel (%p190_p2) target bundleno = 1668 (0x684), region = 40 }
   0xb   : > { %v6648_v0 = vld [vmem:[%s13673_s0 + $0x40] sm:$0xff]  ;;  %v6653_v1 = vld [vmem:[%s13673_s0 + $0x48] sm:$0xff]  ;;  %vm378_vm0 = vcmask 556032   ;;  %v6685_v10 = vld [vmem:[%s13673_s0 + $0x58] sm:$0xff]  ;;  %s11285_s30 = smul.u32 36, %s5784_s19 }
   0xc   : > { %v6658_v2 = vld [vmem:[%s13673_s0 + $0x20] sm:$0xff]  ;;  %v395_v3 = vsel %vm378_vm0, %v6653_v1, 0.0  ;;  %v6665_v4 = vld [vmem:[%s13673_s0 + $0x28] sm:$0xff]  ;;  %v6692_v13 = vld [vmem:[%s13673_s0 + $0x38] sm:$0xff]  ;;  %v399_v16 = vsel %vm378_vm0, %v6685_v10, 0.0 }
   0xd   : > { %v6670_v5 = vld [vmem:[%s13673_s0] sm:$0xff]  ;;  %v6675_v6 = vld [vmem:[%s13673_s0 + $0x8] sm:$0xff]  ;;  %v396_v7 = vadd.f32 %v395_v3, %v6648_v0  ;;  %v387_v8 = vsel %vm378_vm0, %v6665_v4, 0.0  ;;  %v6697_v14 = vld [vmem:[%s13673_s0 + $0x18] sm:$0xff]  ;;  %v391_v18 = vsel %vm378_vm0, %v6692_v13, 0.0  ;;  %p220_p3 = scmp.lt.s32.totalorder %s11285_s30, 71 }
   0xe   : > { %v379_v9 = vsel %vm378_vm0, %v6675_v6, 0.0  ;;  %v388_v11 = vadd.f32 %v387_v8, %v6658_v2  ;;  %v6702_v15 = vld [vmem:[%s13673_s0 + $0x50] sm:$0xff]  ;;  %v383_v20 = vsel %vm378_vm0, %v6697_v14, 0.0  ;;  %v6726_v24 = vld [vmem:[%s13673_s0 + $0x88] sm:$0xff]  ;;  %v6731_v25 = vld [vmem:[%s13673_s0 + $0x78] sm:$0xff] }
   0xf   : > { %v380_v12 = vadd.f32 %v379_v9, %v6670_v5  ;;  %397 = vadd.xlane.f32.xlu2 %v396_v7  ;;  %v6709_v17 = vld [vmem:[%s13673_s0 + $0x30] sm:$0xff]  ;;  %v400_v21 = vadd.f32 %v399_v16, %v6702_v15  ;;  %v6736_v26 = vld [vmem:[%s13673_s0 + $0x68] sm:$0xff]  ;;  %v6741_v27 = vld [vmem:[%s13673_s0 + $0x80] sm:$0xff]  ;;  %v411_v28 = vsel %vm378_vm0, %v6726_v24, 0.0  ;;  %v407_v30 = vsel %vm378_vm0, %v6731_v25, 0.0  ;;  %s14923_s30 = smov (!%p220_p3, %s11285_s30), 71 }
  0x10   : > { %389 = vadd.xlane.f32.xlu1 %v388_v11  ;;  %v6716_v19 = vld [vmem:[%s13673_s0 + $0x10] sm:$0xff]  ;;  %v392_v22 = vadd.f32 %v391_v18, %v6709_v17  ;;  %v6755_v31 = vld [vmem:[%s13673_s0 + $0x60] sm:$0xff]  ;;  %v403_v32 = vsel %vm378_vm0, %v6736_v26, 0.0  ;;  %v412_v33 = vadd.f32 %v411_v28, %v6741_v27  ;;  %v6765_v36 = vld [vmem:[%s13673_s0 + $0xb8] sm:$0xff]  ;;  %s6297_s23 = smul.u32 20, %s14923_s30  ;;  %s6190_s20 = sshll.u32 %s14923_s30, 4 }
  0x11   : > { %381 = vadd.xlane.f32.xlu0 %v380_v12  ;;  %v384_v23 = vadd.f32 %v383_v20, %v6716_v19  ;;  %v6748_v29 = vld [vmem:[%s13673_s0 + $0x70] sm:$0xff]  ;;  %v404_v35 = vadd.f32 %v403_v32, %v6755_v31  ;;  %v6770_v37 = vld [vmem:[%s13673_s0 + $0xa8] sm:$0xff]  ;;  %v6775_v38 = vld [vmem:[%s13673_s0 + $0x98] sm:$0xff]  ;;  %v423_v40 = vsel %vm378_vm0, %v6765_v36, 0.0 }
  0x12   : > { %v408_v34 = vadd.f32 %v407_v30, %v6748_v29  ;;  %v6780_v39 = vld [vmem:[%s13673_s0 + $0xb0] sm:$0xff]  ;;  %v6787_v41 = vld [vmem:[%s13673_s0 + $0xa0] sm:$0xff]  ;;  %v419_v42 = vsel %vm378_vm0, %v6770_v37, 0.0  ;;  %v415_v44 = vsel %vm378_vm0, %v6775_v38, 0.0  ;;  %v6804_v48 = vld [vmem:[%s13673_s0 + $0xe8] sm:$0xff]  ;;  %s11461_s9 = scalar_lea.vmem %s13677_s4, %s6297_s23  ;;  %s13175_s23 = scalar_lea.vmem %s13678_s5, %s6190_s20 }
  0x13   : > { %v6794_v43 = vld [vmem:[%s13673_s0 + $0x90] sm:$0xff]  ;;  %v424_v45 = vadd.f32 %v423_v40, %v6780_v39  ;;  %v420_v46 = vadd.f32 %v419_v42, %v6787_v41  ;;  %v6809_v49 = vld [vmem:[%s13673_s0 + $0xd8] sm:$0xff]  ;;  %v6814_v50 = vld [vmem:[%s13673_s0 + $0xc8] sm:$0xff]  ;;  %v435_v52 = vsel %vm378_vm0, %v6804_v48, 0.0 }
  0x14   : > { %v416_v47 = vadd.f32 %v415_v44, %v6794_v43  ;;  %v6819_v51 = vld [vmem:[%s13673_s0 + $0xe0] sm:$0xff]  ;;  %v6826_v53 = vld [vmem:[%s13673_s0 + $0xd0] sm:$0xff]  ;;  %v431_v54 = vsel %vm378_vm0, %v6809_v49, 0.0  ;;  %v427_v56 = vsel %vm378_vm0, %v6814_v50, 0.0  ;;  %v6843_v60 = vld [vmem:[%s13673_s0 + $0x118] sm:$0xff] }
  0x15   : > { %v6833_v55 = vld [vmem:[%s13673_s0 + $0xc0] sm:$0xff]  ;;  %v436_v57 = vadd.f32 %v435_v52, %v6819_v51  ;;  %v432_v58 = vadd.f32 %v431_v54, %v6826_v53  ;;  %v6848_v61 = vld [vmem:[%s13673_s0 + $0x108] sm:$0xff]  ;;  %v6853_v62 = vld [vmem:[%s13673_s0 + $0xf8] sm:$0xff]  ;;  %v447_v3 = vsel %vm378_vm0, %v6843_v60, 0.0 }
  0x16   : > { %v428_v59 = vadd.f32 %v427_v56, %v6833_v55  ;;  %v6858_v63 = vld [vmem:[%s13673_s0 + $0x110] sm:$0xff]  ;;  %v6865_v7 = vld [vmem:[%s13673_s0 + $0x100] sm:$0xff]  ;;  %v443_v8 = vsel %vm378_vm0, %v6848_v61, 0.0  ;;  %v439_v11 = vsel %vm378_vm0, %v6853_v62, 0.0  ;;  %v6882_v20 = vld [vmem:[%s13673_s0 + $0x148] sm:$0xff] }
  0x17   : > { %401 = vadd.xlane.f32.xlu2 %v400_v21  ;;  %v6872_v9 = vld [vmem:[%s13673_s0 + $0xf0] sm:$0xff]  ;;  %v448_v12 = vadd.f32 %v447_v3, %v6858_v63  ;;  %v444_v16 = vadd.f32 %v443_v8, %v6865_v7  ;;  %v6887_v21 = vld [vmem:[%s13673_s0 + $0x138] sm:$0xff]  ;;  %v459_v28 = vsel %vm378_vm0, %v6882_v20, 0.0  ;;  %v6943_v54 = vld [vmem:[%s13673_s0 + $0x160] sm:$0xff] }
  0x18   : > { %393 = vadd.xlane.f32.xlu1 %v392_v22  ;;  %v440_v18 = vadd.f32 %v439_v11, %v6872_v9  ;;  %v6892_v22 = vld [vmem:[%s13673_s0 + $0x128] sm:$0xff]  ;;  %v6904_v30 = vld [vmem:[%s13673_s0 + $0x130] sm:$0xff]  ;;  %v455_v32 = vsel %vm378_vm0, %v6887_v21, 0.0  ;;  %v6921_v44 = vld [vmem:[%s13673_s0 + $0x178] sm:$0xff] }
  0x19   : > { %385 = vadd.xlane.f32.xlu0 %v384_v23  ;;  %v6897_v23 = vld [vmem:[%s13673_s0 + $0x140] sm:$0xff]  ;;  %v456_v40 = vadd.f32 %v455_v32, %v6904_v30  ;;  %v471_v52 = vsel %vm378_vm0, %v6921_v44, 0.0  ;;  %v6960_v11 = vld [vmem:[%s13673_s0 + $0x1a8] sm:$0xff]  ;;  %v6982_v32 = vld [vmem:[%s13673_s0 + $0x190] sm:$0xff] }
  0x1a   : > { %13930 = vst [vmem:[#allocation5_spill] sm:$0xff] %v6982_v32 }
  0x1f   : > { %413 = vadd.xlane.f32.xlu2 %v412_v33  ;;  %v6911_v33 = vld [vmem:[%s13673_s0 + $0x120] sm:$0xff] }
  0x20   : > { %409 = vadd.xlane.f32.xlu1 %v408_v34  ;;  %v451_v34 = vsel %vm378_vm0, %v6892_v22, 0.0 }
  0x21   : > { %405 = vadd.xlane.f32.xlu0 %v404_v35  ;;  %v460_v35 = vadd.f32 %v459_v28, %v6897_v23  ;;  %v452_v42 = vadd.f32 %v451_v34, %v6911_v33  ;;  %v483_v28 = vsel %vm378_vm0, %v6960_v11, 0.0 }
  0x27   : > { %425 = vadd.xlane.f32.xlu2 %v424_v45  ;;  %v6926_v45 = vld [vmem:[%s13673_s0 + $0x168] sm:$0xff] }
  0x28   : > { %421 = vadd.xlane.f32.xlu1 %v420_v46  ;;  %v6931_v46 = vld [vmem:[%s13673_s0 + $0x158] sm:$0xff]  ;;  %v467_v56 = vsel %vm378_vm0, %v6926_v45, 0.0 }
  0x29   : > { %417 = vadd.xlane.f32.xlu0 %v416_v47  ;;  %v6936_v47 = vld [vmem:[%s13673_s0 + $0x170] sm:$0xff]  ;;  %v468_v3 = vadd.f32 %v467_v56, %v6943_v54 }
  0x2f   : > { %437 = vadd.xlane.f32.xlu2 %v436_v57  ;;  %v6950_v57 = vld [vmem:[%s13673_s0 + $0x150] sm:$0xff] }
  0x30   : > { %433 = vadd.xlane.f32.xlu1 %v432_v58  ;;  %v463_v58 = vsel %vm378_vm0, %v6931_v46, 0.0 }
  0x31   : > { %429 = vadd.xlane.f32.xlu0 %v428_v59  ;;  %v472_v59 = vadd.f32 %v471_v52, %v6936_v47  ;;  %v464_v8 = vadd.f32 %v463_v58, %v6950_v57  ;;  %v6999_v58 = vld [vmem:[%s13673_s0 + $0x1d8] sm:$0xff] }
  0x32   : > { %13932 = vst [vmem:[#allocation7_spill] sm:$0xff] %v6999_v58 }
  0x37   : > { %449 = vadd.xlane.f32.xlu2 %v448_v12  ;;  %v6965_v12 = vld [vmem:[%s13673_s0 + $0x198] sm:$0xff] }
  0x38   : > { %445 = vadd.xlane.f32.xlu1 %v444_v16  ;;  %13927 = vst [vmem:[#allocation2_spill] sm:$0xff] %v6965_v12  ;;  %v6970_v16 = vld [vmem:[%s13673_s0 + $0x188] sm:$0xff]  ;;  %v479_v34 = vsel %vm378_vm0, %v6965_v12, 0.0  ;;  %v670_v12 = vmul.f32 %v6697_v14, %v6697_v14 }
  0x39   : > { %441 = vadd.xlane.f32.xlu0 %v440_v18  ;;  %13928 = vst [vmem:[#allocation3_spill] sm:$0xff] %v6970_v16  ;;  %v6975_v18 = vld [vmem:[%s13673_s0 + $0x1a0] sm:$0xff]  ;;  %v480_v52 = vadd.f32 %v479_v34, %v6982_v32  ;;  %v7038_v32 = vld [vmem:[%s13673_s0 + $0x208] sm:$0xff] }
  0x3a   : > { %13929 = vst [vmem:[#allocation4_spill] sm:$0xff] %v6975_v18  ;;  %v7021_v34 = vld [vmem:[%s13673_s0 + $0x1c0] sm:$0xff] }
  0x3b   : > { %13936 = vst [vmem:[#allocation11_spill] sm:$0xff] %v7021_v34 }
  0x3c   : > { %13938 = vst [vmem:[#allocation13_spill] sm:$0xff] %v7038_v32 }
  0x3f   : > { %461 = vadd.xlane.f32.xlu2 %v460_v35  ;;  %v6989_v35 = vld [vmem:[%s13673_s0 + $0x180] sm:$0xff] }
  0x40   : > { %457 = vadd.xlane.f32.xlu1 %v456_v40  ;;  %13931 = vst [vmem:[#allocation6_spill] sm:$0xff] %v6989_v35  ;;  %v475_v40 = vsel %vm378_vm0, %v6970_v16, 0.0  ;;  %v7278_v16 = vld [vmem:[%s13673_s0 + $0x328] sm:$0xff] }
  0x41   : > { %453 = vadd.xlane.f32.xlu0 %v452_v42  ;;  %v484_v42 = vadd.f32 %v483_v28, %v6975_v18  ;;  %v476_v56 = vadd.f32 %v475_v40, %v6989_v35  ;;  %v495_v28 = vsel %vm378_vm0, %v6999_v58, 0.0  ;;  %13977 = vst [vmem:[#allocation52_spill] sm:$0xff] %v7278_v16 }
  0x47   : > { %473 = vadd.xlane.f32.xlu2 %v472_v59  ;;  %v7004_v59 = vld [vmem:[%s13673_s0 + $0x1c8] sm:$0xff] }
  0x48   : > { %469 = vadd.xlane.f32.xlu1 %v468_v3  ;;  %13933 = vst [vmem:[#allocation8_spill] sm:$0xff] %v7004_v59  ;;  %v7009_v3 = vld [vmem:[%s13673_s0 + $0x1b8] sm:$0xff]  ;;  %v491_v40 = vsel %vm378_vm0, %v7004_v59, 0.0 }
  0x49   : > { %465 = vadd.xlane.f32.xlu0 %v464_v8  ;;  %13934 = vst [vmem:[#allocation9_spill] sm:$0xff] %v7009_v3  ;;  %v7014_v8 = vld [vmem:[%s13673_s0 + $0x1d0] sm:$0xff]  ;;  %v492_v58 = vadd.f32 %v491_v40, %v7021_v34  ;;  %v7043_v59 = vld [vmem:[%s13673_s0 + $0x1f8] sm:$0xff]  ;;  %v507_v40 = vsel %vm378_vm0, %v7038_v32, 0.0 }
  0x4a   : > { %13935 = vst [vmem:[#allocation10_spill] sm:$0xff] %v7014_v8 }
  0x4b   : > { %13939 = vst [vmem:[#allocation14_spill] sm:$0xff] %v7043_v59 }
  0x4f   : > { %485 = vadd.xlane.f32.xlu2 %v484_v42  ;;  %v7028_v42 = vld [vmem:[%s13673_s0 + $0x1b0] sm:$0xff] }
  0x50   : > { %481 = vadd.xlane.f32.xlu1 %v480_v52  ;;  %13937 = vst [vmem:[#allocation12_spill] sm:$0xff] %v7028_v42  ;;  %v487_v52 = vsel %vm378_vm0, %v7009_v3, 0.0  ;;  %v7048_v3 = vld [vmem:[%s13673_s0 + $0x1e8] sm:$0xff] }
  0x51   : > { %477 = vadd.xlane.f32.xlu0 %v476_v56  ;;  %v496_v56 = vadd.f32 %v495_v28, %v7014_v8  ;;  %v488_v35 = vadd.f32 %v487_v52, %v7028_v42  ;;  %13940 = vst [vmem:[#allocation15_spill] sm:$0xff] %v7048_v3  ;;  %v7053_v28 = vld [vmem:[%s13673_s0 + $0x200] sm:$0xff]  ;;  %v7060_v52 = vld [vmem:[%s13673_s0 + $0x1f0] sm:$0xff]  ;;  %v503_v42 = vsel %vm378_vm0, %v7043_v59, 0.0  ;;  %v7077_v8 = vld [vmem:[%s13673_s0 + $0x238] sm:$0xff] }
  0x52   : > { %13941 = vst [vmem:[#allocation16_spill] sm:$0xff] %v7053_v28  ;;  %v504_v32 = vadd.f32 %v503_v42, %v7060_v52  ;;  %v7082_v59 = vld [vmem:[%s13673_s0 + $0x228] sm:$0xff]  ;;  %v7092_v42 = vld [vmem:[%s13673_s0 + $0x230] sm:$0xff] }
  0x53   : > { %13942 = vst [vmem:[#allocation17_spill] sm:$0xff] %v7060_v52 }
  0x54   : > { %13944 = vst [vmem:[#allocation19_spill] sm:$0xff] %v7077_v8 }
  0x55   : > { %13945 = vst [vmem:[#allocation20_spill] sm:$0xff] %v7082_v59 }
  0x56   : > { %13947 = vst [vmem:[#allocation22_spill] sm:$0xff] %v7092_v42 }
  0x57   : > { %497 = vadd.xlane.f32.xlu2 %v496_v56  ;;  %v508_v56 = vadd.f32 %v507_v40, %v7053_v28  ;;  %v519_v40 = vsel %vm378_vm0, %v7077_v8, 0.0  ;;  %v7116_v28 = vld [vmem:[%s13673_s0 + $0x268] sm:$0xff] }
  0x58   : > { %493 = vadd.xlane.f32.xlu1 %v492_v58  ;;  %v499_v58 = vsel %vm378_vm0, %v7048_v3, 0.0  ;;  %v7087_v3 = vld [vmem:[%s13673_s0 + $0x218] sm:$0xff]  ;;  %13950 = vst [vmem:[#allocation25_spill] sm:$0xff] %v7116_v28 }
  0x59   : > { %489 = vadd.xlane.f32.xlu0 %v488_v35  ;;  %v7067_v35 = vld [vmem:[%s13673_s0 + $0x1e0] sm:$0xff]  ;;  %13946 = vst [vmem:[#allocation21_spill] sm:$0xff] %v7087_v3 }
  0x5a   : > { %13943 = vst [vmem:[#allocation18_spill] sm:$0xff] %v7067_v35  ;;  %v500_v34 = vadd.f32 %v499_v58, %v7067_v35  ;;  %v7099_v58 = vld [vmem:[%s13673_s0 + $0x220] sm:$0xff]  ;;  %v515_v35 = vsel %vm378_vm0, %v7082_v59, 0.0  ;;  %v7121_v59 = vld [vmem:[%s13673_s0 + $0x258] sm:$0xff] }
  0x5b   : > { %13948 = vst [vmem:[#allocation23_spill] sm:$0xff] %v7099_v58  ;;  %v516_v8 = vadd.f32 %v515_v35, %v7099_v58  ;;  %v7131_v35 = vld [vmem:[%s13673_s0 + $0x260] sm:$0xff] }
  0x5c   : > { %13951 = vst [vmem:[#allocation26_spill] sm:$0xff] %v7121_v59 }
  0x5d   : > { %13953 = vst [vmem:[#allocation28_spill] sm:$0xff] %v7131_v35 }
  0x5f   : > { %509 = vadd.xlane.f32.xlu2 %v508_v56  ;;  %v520_v56 = vadd.f32 %v519_v40, %v7092_v42  ;;  %v531_v40 = vsel %vm378_vm0, %v7116_v28, 0.0  ;;  %v7155_v42 = vld [vmem:[%s13673_s0 + $0x298] sm:$0xff] }
  0x60   : > { %505 = vadd.xlane.f32.xlu1 %v504_v32  ;;  %v7106_v32 = vld [vmem:[%s13673_s0 + $0x210] sm:$0xff]  ;;  %13956 = vst [vmem:[#allocation31_spill] sm:$0xff] %v7155_v42 }
  0x61   : > { %501 = vadd.xlane.f32.xlu0 %v500_v34  ;;  %13949 = vst [vmem:[#allocation24_spill] sm:$0xff] %v7106_v32  ;;  %v511_v34 = vsel %vm378_vm0, %v7087_v3, 0.0  ;;  %v7126_v3 = vld [vmem:[%s13673_s0 + $0x248] sm:$0xff] }
  0x62   : > { %v512_v52 = vadd.f32 %v511_v34, %v7106_v32  ;;  %13952 = vst [vmem:[#allocation27_spill] sm:$0xff] %v7126_v3  ;;  %v7138_v34 = vld [vmem:[%s13673_s0 + $0x250] sm:$0xff]  ;;  %v527_v32 = vsel %vm378_vm0, %v7121_v59, 0.0  ;;  %v7160_v59 = vld [vmem:[%s13673_s0 + $0x288] sm:$0xff] }
  0x63   : > { %13954 = vst [vmem:[#allocation29_spill] sm:$0xff] %v7138_v34  ;;  %v528_v28 = vadd.f32 %v527_v32, %v7138_v34  ;;  %v7170_v32 = vld [vmem:[%s13673_s0 + $0x290] sm:$0xff] }
  0x64   : > { %13957 = vst [vmem:[#allocation32_spill] sm:$0xff] %v7160_v59 }
  0x65   : > { %13959 = vst [vmem:[#allocation34_spill] sm:$0xff] %v7170_v32 }
  0x67   : > { %521 = vadd.xlane.f32.xlu2 %v520_v56  ;;  %v532_v56 = vadd.f32 %v531_v40, %v7131_v35  ;;  %v543_v40 = vsel %vm378_vm0, %v7155_v42, 0.0  ;;  %v7194_v35 = vld [vmem:[%s13673_s0 + $0x2c8] sm:$0xff] }
  0x68   : > { %517 = vadd.xlane.f32.xlu1 %v516_v8  ;;  %v7145_v8 = vld [vmem:[%s13673_s0 + $0x240] sm:$0xff]  ;;  %13962 = vst [vmem:[#allocation37_spill] sm:$0xff] %v7194_v35 }
  0x69   : > { %513 = vadd.xlane.f32.xlu0 %v512_v52  ;;  %13955 = vst [vmem:[#allocation30_spill] sm:$0xff] %v7145_v8  ;;  %v523_v52 = vsel %vm378_vm0, %v7126_v3, 0.0  ;;  %v7165_v3 = vld [vmem:[%s13673_s0 + $0x278] sm:$0xff] }
  0x6a   : > { %v524_v58 = vadd.f32 %v523_v52, %v7145_v8  ;;  %13958 = vst [vmem:[#allocation33_spill] sm:$0xff] %v7165_v3  ;;  %v7177_v52 = vld [vmem:[%s13673_s0 + $0x280] sm:$0xff]  ;;  %v539_v8 = vsel %vm378_vm0, %v7160_v59, 0.0  ;;  %v7199_v59 = vld [vmem:[%s13673_s0 + $0x2b8] sm:$0xff] }
  0x6b   : > { %13960 = vst [vmem:[#allocation35_spill] sm:$0xff] %v7177_v52  ;;  %v540_v42 = vadd.f32 %v539_v8, %v7177_v52  ;;  %v7209_v8 = vld [vmem:[%s13673_s0 + $0x2c0] sm:$0xff] }
  0x6c   : > { %13963 = vst [vmem:[#allocation38_spill] sm:$0xff] %v7199_v59 }
  0x6d   : > { %13965 = vst [vmem:[#allocation40_spill] sm:$0xff] %v7209_v8 }
  0x6f   : > { %533 = vadd.xlane.f32.xlu2 %v532_v56  ;;  %v544_v56 = vadd.f32 %v543_v40, %v7170_v32  ;;  %v555_v40 = vsel %vm378_vm0, %v7194_v35, 0.0  ;;  %v7233_v32 = vld [vmem:[%s13673_s0 + $0x2f8] sm:$0xff] }
  0x70   : > { %529 = vadd.xlane.f32.xlu1 %v528_v28  ;;  %v7184_v28 = vld [vmem:[%s13673_s0 + $0x270] sm:$0xff]  ;;  %13968 = vst [vmem:[#allocation43_spill] sm:$0xff] %v7233_v32 }
  0x71   : > { %525 = vadd.xlane.f32.xlu0 %v524_v58  ;;  %13961 = vst [vmem:[#allocation36_spill] sm:$0xff] %v7184_v28  ;;  %v535_v58 = vsel %vm378_vm0, %v7165_v3, 0.0  ;;  %v7204_v3 = vld [vmem:[%s13673_s0 + $0x2a8] sm:$0xff] }
  0x72   : > { %v536_v34 = vadd.f32 %v535_v58, %v7184_v28  ;;  %13964 = vst [vmem:[#allocation39_spill] sm:$0xff] %v7204_v3  ;;  %v7216_v58 = vld [vmem:[%s13673_s0 + $0x2b0] sm:$0xff]  ;;  %v551_v28 = vsel %vm378_vm0, %v7199_v59, 0.0  ;;  %v7238_v59 = vld [vmem:[%s13673_s0 + $0x2e8] sm:$0xff] }
  0x73   : > { %13966 = vst [vmem:[#allocation41_spill] sm:$0xff] %v7216_v58  ;;  %v552_v35 = vadd.f32 %v551_v28, %v7216_v58  ;;  %v7248_v28 = vld [vmem:[%s13673_s0 + $0x2f0] sm:$0xff] }
  0x74   : > { %13969 = vst [vmem:[#allocation44_spill] sm:$0xff] %v7238_v59 }
  0x75   : > { %13971 = vst [vmem:[#allocation46_spill] sm:$0xff] %v7248_v28 }
  0x77   : > { %545 = vadd.xlane.f32.xlu2 %v544_v56  ;;  %v556_v56 = vadd.f32 %v555_v40, %v7209_v8  ;;  %v567_v40 = vsel %vm378_vm0, %v7233_v32, 0.0 }
  0x78   : > { %541 = vadd.xlane.f32.xlu1 %v540_v42  ;;  %v7223_v42 = vld [vmem:[%s13673_s0 + $0x2a0] sm:$0xff]  ;;  %v568_v8 = vadd.f32 %v567_v40, %v7248_v28  ;;  %v579_v40 = vsel %vm378_vm0, %v7278_v16, 0.0  ;;  %v7323_v28 = vld [vmem:[%s13673_s0 + $0x358] sm:$0xff] }
  0x79   : > { %537 = vadd.xlane.f32.xlu0 %v536_v34  ;;  %13967 = vst [vmem:[#allocation42_spill] sm:$0xff] %v7223_v42  ;;  %v547_v34 = vsel %vm378_vm0, %v7204_v3, 0.0  ;;  %v7243_v3 = vld [vmem:[%s13673_s0 + $0x2d8] sm:$0xff] }
  0x7a   : > { %v548_v52 = vadd.f32 %v547_v34, %v7223_v42  ;;  %13970 = vst [vmem:[#allocation45_spill] sm:$0xff] %v7243_v3  ;;  %v7255_v34 = vld [vmem:[%s13673_s0 + $0x2e0] sm:$0xff]  ;;  %v563_v42 = vsel %vm378_vm0, %v7238_v59, 0.0 }
  0x7b   : > { %13972 = vst [vmem:[#allocation47_spill] sm:$0xff] %v7255_v34  ;;  %v564_v18 = vadd.f32 %v563_v42, %v7255_v34  ;;  %v7293_v42 = vld [vmem:[%s13673_s0 + $0x320] sm:$0xff] }
  0x7c   : > { %13980 = vst [vmem:[#allocation55_spill] sm:$0xff] %v7293_v42 }
  0x7d   : > { %13986 = vst [vmem:[#allocation61_spill] sm:$0xff] %v7323_v28 }
  0x7f   : > { %557 = vadd.xlane.f32.xlu2 %v556_v56 }
  0x80   : > { %553 = vadd.xlane.f32.xlu1 %v552_v35  ;;  %v7262_v35 = vld [vmem:[%s13673_s0 + $0x2d0] sm:$0xff] }
  0x81   : > { %549 = vadd.xlane.f32.xlu0 %v548_v52  ;;  %13973 = vst [vmem:[#allocation48_spill] sm:$0xff] %v7262_v35  ;;  %v559_v52 = vsel %vm378_vm0, %v7243_v3, 0.0  ;;  %v7283_v3 = vld [vmem:[%s13673_s0 + $0x318] sm:$0xff] }
  0x82   : > { %v7266_v56 = vpop.xlane.xlu2 %397  ;;  %v560_v59 = vadd.f32 %v559_v52, %v7262_v35  ;;  %13978 = vst [vmem:[#allocation53_spill] sm:$0xff] %v7283_v3  ;;  %v7300_v52 = vld [vmem:[%s13673_s0 + $0x310] sm:$0xff]  ;;  %v580_v35 = vadd.f32 %v579_v40, %v7293_v42  ;;  %v591_v40 = vsel %vm378_vm0, %v7323_v28, 0.0  ;;  %v7368_v42 = vld [vmem:[%s13673_s0 + $0x388] sm:$0xff] }
  0x83   : > { %13974 = vst [vmem:[#allocation49_spill] sm:$0xff] %v7266_v56  ;;  %v7268_v58 = vpop.xlane.xlu1 %389 }
  0x84   : > { %13975 = vst [vmem:[#allocation50_spill] sm:$0xff] %v7268_v58  ;;  %v7270_v32 = vpop.xlane.xlu0 %381  ;;  %v575_v58 = vsel %vm378_vm0, %v7283_v3, 0.0 }
  0x85   : > { %13976 = vst [vmem:[#allocation51_spill] sm:$0xff] %v7270_v32  ;;  %v7288_v32 = vld [vmem:[%s13673_s0 + $0x308] sm:$0xff]  ;;  %v576_v34 = vadd.f32 %v575_v58, %v7300_v52  ;;  %v7338_v58 = vld [vmem:[%s13673_s0 + $0x350] sm:$0xff] }
  0x86   : > { %13979 = vst [vmem:[#allocation54_spill] sm:$0xff] %v7288_v32 }
  0x87   : > { %569 = vadd.xlane.f32.xlu2 %v568_v8  ;;  %13981 = vst [vmem:[#allocation56_spill] sm:$0xff] %v7300_v52 }
  0x88   : > { %565 = vadd.xlane.f32.xlu1 %v564_v18  ;;  %v7307_v18 = vld [vmem:[%s13673_s0 + $0x300] sm:$0xff]  ;;  %13989 = vst [vmem:[#allocation64_spill] sm:$0xff] %v7338_v58 }
  0x89   : > { %561 = vadd.xlane.f32.xlu0 %v560_v59  ;;  %13982 = vst [vmem:[#allocation57_spill] sm:$0xff] %v7307_v18  ;;  %v571_v59 = vsel %vm378_vm0, %v7288_v32, 0.0  ;;  %v7328_v32 = vld [vmem:[%s13673_s0 + $0x348] sm:$0xff] }
  0x8a   : > { %v7311_v8 = vpop.xlane.xlu2 %401  ;;  %v572_v3 = vadd.f32 %v571_v59, %v7307_v18  ;;  %13987 = vst [vmem:[#allocation62_spill] sm:$0xff] %v7328_v32  ;;  %v7345_v59 = vld [vmem:[%s13673_s0 + $0x340] sm:$0xff]  ;;  %v592_v18 = vadd.f32 %v591_v40, %v7338_v58  ;;  %v603_v40 = vsel %vm378_vm0, %v7368_v42, 0.0 }
  0x8b   : > { %13983 = vst [vmem:[#allocation58_spill] sm:$0xff] %v7311_v8  ;;  %v7313_v56 = vpop.xlane.xlu1 %393 }
  0x8c   : > { %13984 = vst [vmem:[#allocation59_spill] sm:$0xff] %v7313_v56  ;;  %v7315_v16 = vpop.xlane.xlu0 %385  ;;  %v587_v56 = vsel %vm378_vm0, %v7328_v32, 0.0 }
  0x8d   : > { %13985 = vst [vmem:[#allocation60_spill] sm:$0xff] %v7315_v16  ;;  %v7333_v16 = vld [vmem:[%s13673_s0 + $0x338] sm:$0xff]  ;;  %v588_v52 = vadd.f32 %v587_v56, %v7345_v59  ;;  %v7383_v56 = vld [vmem:[%s13673_s0 + $0x380] sm:$0xff] }
  0x8e   : > { %13988 = vst [vmem:[#allocation63_spill] sm:$0xff] %v7333_v16 }
  0x8f   : > { %581 = vadd.xlane.f32.xlu2 %v580_v35  ;;  %13990 = vst [vmem:[#allocation65_spill] sm:$0xff] %v7345_v59  ;;  %v604_v59 = vadd.f32 %v603_v40, %v7383_v56 }
  0x90   : > { %577 = vadd.xlane.f32.xlu1 %v576_v34  ;;  %v583_v34 = vsel %vm378_vm0, %v7333_v16, 0.0  ;;  %13995 = vst [vmem:[#allocation70_spill] sm:$0xff] %v7368_v42  ;;  %v7373_v16 = vld [vmem:[%s13673_s0 + $0x378] sm:$0xff] }
  0x91   : > { %573 = vadd.xlane.f32.xlu0 %v572_v3  ;;  %v7352_v3 = vld [vmem:[%s13673_s0 + $0x330] sm:$0xff]  ;;  %13996 = vst [vmem:[#allocation71_spill] sm:$0xff] %v7373_v16 }
  0x92   : > { %13991 = vst [vmem:[#allocation66_spill] sm:$0xff] %v7352_v3  ;;  %v7356_v35 = vpop.xlane.xlu2 %413  ;;  %v584_v32 = vadd.f32 %v583_v34, %v7352_v3  ;;  %v7390_v34 = vld [vmem:[%s13673_s0 + $0x370] sm:$0xff]  ;;  %v7413_v3 = vld [vmem:[%s13673_s0 + $0x3b8] sm:$0xff] }
  0x93   : > { %13992 = vst [vmem:[#allocation67_spill] sm:$0xff] %v7356_v35  ;;  %v7358_v8 = vpop.xlane.xlu1 %409  ;;  %v615_v40 = vsel %vm378_vm0, %v7413_v3, 0.0 }
  0x94   : > { %13993 = vst [vmem:[#allocation68_spill] sm:$0xff] %v7358_v8  ;;  %v7360_v28 = vpop.xlane.xlu0 %405  ;;  %v599_v8 = vsel %vm378_vm0, %v7373_v16, 0.0 }
  0x95   : > { %13994 = vst [vmem:[#allocation69_spill] sm:$0xff] %v7360_v28  ;;  %v7378_v28 = vld [vmem:[%s13673_s0 + $0x368] sm:$0xff]  ;;  %v600_v42 = vadd.f32 %v599_v8, %v7390_v34  ;;  %v7428_v8 = vld [vmem:[%s13673_s0 + $0x3b0] sm:$0xff] }
  0x96   : > { %13997 = vst [vmem:[#allocation72_spill] sm:$0xff] %v7378_v28 }
  0x97   : > { %593 = vadd.xlane.f32.xlu2 %v592_v18  ;;  %13998 = vst [vmem:[#allocation73_spill] sm:$0xff] %v7383_v56 }
  0x98   : > { %589 = vadd.xlane.f32.xlu1 %v588_v52  ;;  %13999 = vst [vmem:[#allocation74_spill] sm:$0xff] %v7390_v34  ;;  %v595_v52 = vsel %vm378_vm0, %v7378_v28, 0.0  ;;  %v7418_v28 = vld [vmem:[%s13673_s0 + $0x3a8] sm:$0xff] }
  0x99   : > { %585 = vadd.xlane.f32.xlu0 %v584_v32  ;;  %v7397_v32 = vld [vmem:[%s13673_s0 + $0x360] sm:$0xff]  ;;  %14004 = vst [vmem:[#allocation79_spill] sm:$0xff] %v7413_v3 }
  0x9a   : > { %14000 = vst [vmem:[#allocation75_spill] sm:$0xff] %v7397_v32  ;;  %v7401_v18 = vpop.xlane.xlu2 %425  ;;  %v596_v16 = vadd.f32 %v595_v52, %v7397_v32  ;;  %v7435_v52 = vld [vmem:[%s13673_s0 + $0x3a0] sm:$0xff]  ;;  %v616_v32 = vadd.f32 %v615_v40, %v7428_v8 }
  0x9b   : > { %14001 = vst [vmem:[#allocation76_spill] sm:$0xff] %v7401_v18  ;;  %v7403_v35 = vpop.xlane.xlu1 %421  ;;  %v611_v18 = vsel %vm378_vm0, %v7418_v28, 0.0 }
  0x9c   : > { %14002 = vst [vmem:[#allocation77_spill] sm:$0xff] %v7403_v35  ;;  %v7405_v58 = vpop.xlane.xlu0 %417  ;;  %v612_v56 = vadd.f32 %v611_v18, %v7435_v52  ;;  %v7473_v18 = vld [vmem:[%s13673_s0 + $0x3e0] sm:$0xff] }
  0x9d   : > { %14003 = vst [vmem:[#allocation78_spill] sm:$0xff] %v7405_v58  ;;  %v7423_v58 = vld [vmem:[%s13673_s0 + $0x398] sm:$0xff] }
  0x9e   : > { %14005 = vst [vmem:[#allocation80_spill] sm:$0xff] %v7418_v28  ;;  %v7458_v28 = vld [vmem:[%s13673_s0 + $0x3e8] sm:$0xff] }
  0x9f   : > { %14006 = vst [vmem:[#allocation81_spill] sm:$0xff] %v7423_v58  ;;  %605 = vadd.xlane.f32.xlu2 %v604_v59  ;;  %v627_v40 = vsel %vm378_vm0, %v7458_v28, 0.0 }
  0xa0   : > { %601 = vadd.xlane.f32.xlu1 %v600_v42  ;;  %14007 = vst [vmem:[#allocation82_spill] sm:$0xff] %v7428_v8  ;;  %v607_v42 = vsel %vm378_vm0, %v7423_v58, 0.0  ;;  %v7463_v58 = vld [vmem:[%s13673_s0 + $0x3d8] sm:$0xff]  ;;  %v628_v8 = vadd.f32 %v627_v40, %v7473_v18 }
  0xa1   : > { %597 = vadd.xlane.f32.xlu0 %v596_v16  ;;  %14008 = vst [vmem:[#allocation83_spill] sm:$0xff] %v7435_v52  ;;  %v7442_v16 = vld [vmem:[%s13673_s0 + $0x390] sm:$0xff] }
  0xa2   : > { %14009 = vst [vmem:[#allocation84_spill] sm:$0xff] %v7442_v16  ;;  %v7446_v59 = vpop.xlane.xlu2 %437  ;;  %v608_v3 = vadd.f32 %v607_v42, %v7442_v16  ;;  %v7480_v42 = vld [vmem:[%s13673_s0 + $0x3d0] sm:$0xff] }
  0xa3   : > { %14010 = vst [vmem:[#allocation85_spill] sm:$0xff] %v7446_v59  ;;  %v7448_v35 = vpop.xlane.xlu1 %433 }
  0xa4   : > { %14011 = vst [vmem:[#allocation86_spill] sm:$0xff] %v7448_v35  ;;  %v7450_v34 = vpop.xlane.xlu0 %429  ;;  %v7468_v35 = vld [vmem:[%s13673_s0 + $0x3c8] sm:$0xff] }
  0xa5   : > { %14012 = vst [vmem:[#allocation87_spill] sm:$0xff] %v7450_v34  ;;  %v623_v34 = vsel %vm378_vm0, %v7463_v58, 0.0 }
  0xa6   : > { %14013 = vst [vmem:[#allocation88_spill] sm:$0xff] %v7458_v28  ;;  %v624_v52 = vadd.f32 %v623_v34, %v7480_v42  ;;  %v7503_v28 = vld [vmem:[%s13673_s0 + $0x418] sm:$0xff]  ;;  %v7518_v34 = vld [vmem:[%s13673_s0 + $0x410] sm:$0xff] }
  0xa7   : > { %14014 = vst [vmem:[#allocation89_spill] sm:$0xff] %v7463_v58  ;;  %617 = vadd.xlane.f32.xlu2 %v616_v32  ;;  %v639_v40 = vsel %vm378_vm0, %v7503_v28, 0.0 }
  0xa8   : > { %14015 = vst [vmem:[#allocation90_spill] sm:$0xff] %v7468_v35  ;;  %613 = vadd.xlane.f32.xlu1 %v612_v56  ;;  %v619_v56 = vsel %vm378_vm0, %v7468_v35, 0.0  ;;  %v7508_v35 = vld [vmem:[%s13673_s0 + $0x408] sm:$0xff] }
  0xa9   : > { %609 = vadd.xlane.f32.xlu0 %v608_v3  ;;  %14016 = vst [vmem:[#allocation91_spill] sm:$0xff] %v7473_v18  ;;  %v7487_v3 = vld [vmem:[%s13673_s0 + $0x3c0] sm:$0xff]  ;;  %v7548_v18 = vld [vmem:[%s13673_s0 + $0x448] sm:$0xff] }
  0xaa   : > { %14017 = vst [vmem:[#allocation92_spill] sm:$0xff] %v7480_v42  ;;  %v7491_v32 = vpop.xlane.xlu2 %449  ;;  %v620_v58 = vadd.f32 %v619_v56, %v7487_v3  ;;  %v7525_v56 = vld [vmem:[%s13673_s0 + $0x400] sm:$0xff] }
  0xab   : > { %14018 = vst [vmem:[#allocation93_spill] sm:$0xff] %v7487_v3  ;;  %v7493_v59 = vpop.xlane.xlu1 %445  ;;  %v640_v3 = vadd.f32 %v639_v40, %v7518_v34  ;;  %v651_v40 = vsel %vm378_vm0, %v7548_v18, 0.0 }
  0xac   : > { %14019 = vst [vmem:[#allocation94_spill] sm:$0xff] %v7491_v32  ;;  %v7495_v16 = vpop.xlane.xlu0 %441  ;;  %v635_v32 = vsel %vm378_vm0, %v7508_v35, 0.0 }
  0xad   : > { %14020 = vst [vmem:[#allocation95_spill] sm:$0xff] %v7493_v59  ;;  %v7513_v59 = vld [vmem:[%s13673_s0 + $0x3f8] sm:$0xff]  ;;  %v636_v42 = vadd.f32 %v635_v32, %v7525_v56  ;;  %v7563_v32 = vld [vmem:[%s13673_s0 + $0x440] sm:$0xff] }
  0xae   : > { %14021 = vst [vmem:[#allocation96_spill] sm:$0xff] %v7495_v16 }
  0xaf   : > { %14022 = vst [vmem:[#allocation97_spill] sm:$0xff] %v7503_v28  ;;  %629 = vadd.xlane.f32.xlu2 %v628_v8  ;;  %v631_v8 = vsel %vm378_vm0, %v7513_v59, 0.0 }
  0xb0   : > { %14023 = vst [vmem:[#allocation98_spill] sm:$0xff] %v7508_v35  ;;  %625 = vadd.xlane.f32.xlu1 %v624_v52 }
  0xb1   : > { %14024 = vst [vmem:[#allocation99_spill] sm:$0xff] %v7513_v59  ;;  %621 = vadd.xlane.f32.xlu0 %v620_v58  ;;  %v7532_v58 = vld [vmem:[%s13673_s0 + $0x3f0] sm:$0xff]  ;;  %v7553_v59 = vld [vmem:[%s13673_s0 + $0x438] sm:$0xff] }
  0xb2   : > { %14025 = vst [vmem:[#allocation100_spill] sm:$0xff] %v7518_v34  ;;  %v7536_v52 = vpop.xlane.xlu2 %461  ;;  %v632_v35 = vadd.f32 %v631_v8, %v7532_v58  ;;  %v7570_v8 = vld [vmem:[%s13673_s0 + $0x430] sm:$0xff]  ;;  %v652_v34 = vadd.f32 %v651_v40, %v7563_v32 }
  0xb3   : > { %14026 = vst [vmem:[#allocation101_spill] sm:$0xff] %v7525_v56  ;;  %v7538_v16 = vpop.xlane.xlu1 %457 }
  0xb4   : > { %14027 = vst [vmem:[#allocation102_spill] sm:$0xff] %v7532_v58  ;;  %v7540_v28 = vpop.xlane.xlu0 %453  ;;  %v7593_v58 = vld [vmem:[%s13673_s0 + $0x478] sm:$0xff] }
  0xb5   : > { %14028 = vst [vmem:[#allocation103_spill] sm:$0xff] %v7536_v52  ;;  %v663_v40 = vsel %vm378_vm0, %v7593_v58, 0.0 }
  0xb6   : > { %14029 = vst [vmem:[#allocation104_spill] sm:$0xff] %v7538_v16  ;;  %v647_v16 = vsel %vm378_vm0, %v7553_v59, 0.0 }
  0xb7   : > { %14030 = vst [vmem:[#allocation105_spill] sm:$0xff] %v7540_v28  ;;  %v7558_v28 = vld [vmem:[%s13673_s0 + $0x428] sm:$0xff]  ;;  %641 = vadd.xlane.f32.xlu2 %v640_v3 }
  0xb8   : > { %14031 = vst [vmem:[#allocation106_spill] sm:$0xff] %v7548_v18  ;;  %637 = vadd.xlane.f32.xlu1 %v636_v42  ;;  %v643_v42 = vsel %vm378_vm0, %v7558_v28, 0.0  ;;  %v648_v18 = vadd.f32 %v647_v16, %v7570_v8  ;;  %v7608_v16 = vld [vmem:[%s13673_s0 + $0x470] sm:$0xff] }
  0xb9   : > { %14032 = vst [vmem:[#allocation107_spill] sm:$0xff] %v7553_v59  ;;  %633 = vadd.xlane.f32.xlu0 %v632_v35  ;;  %v7577_v35 = vld [vmem:[%s13673_s0 + $0x420] sm:$0xff] }
  0xba   : > { %14033 = vst [vmem:[#allocation108_spill] sm:$0xff] %v7558_v28  ;;  %v7581_v3 = vpop.xlane.xlu2 %473  ;;  %v644_v59 = vadd.f32 %v643_v42, %v7577_v35  ;;  %v7598_v28 = vld [vmem:[%s13673_s0 + $0x468] sm:$0xff]  ;;  %v7615_v42 = vld [vmem:[%s13673_s0 + $0x460] sm:$0xff] }
  0xbb   : > { %14034 = vst [vmem:[#allocation109_spill] sm:$0xff] %v7563_v32  ;;  %v7583_v52 = vpop.xlane.xlu1 %469 }
  0xbc   : > { %14035 = vst [vmem:[#allocation110_spill] sm:$0xff] %v7570_v8  ;;  %v7585_v56 = vpop.xlane.xlu0 %465 }
  0xbd   : > { %14036 = vst [vmem:[#allocation111_spill] sm:$0xff] %v7577_v35  ;;  %v664_v35 = vadd.f32 %v663_v40, %v7608_v16 }
  0xbe   : > { %14037 = vst [vmem:[#allocation112_spill] sm:$0xff] %v7581_v3 }
  0xbf   : > { %14038 = vst [vmem:[#allocation113_spill] sm:$0xff] %v7583_v52  ;;  %653 = vadd.xlane.f32.xlu2 %v652_v34  ;;  %v659_v52 = vsel %vm378_vm0, %v7598_v28, 0.0 }
  0xc0   : > { %14039 = vst [vmem:[#allocation114_spill] sm:$0xff] %v7585_v56  ;;  %v7603_v56 = vld [vmem:[%s13673_s0 + $0x458] sm:$0xff]  ;;  %649 = vadd.xlane.f32.xlu1 %v648_v18  ;;  %v660_v32 = vadd.f32 %v659_v52, %v7615_v42  ;;  %v669_v52 = vmul.f32 %v6716_v19, %v6716_v19  ;;  %v676_v19 = vmul.f32 %v6653_v1, %v6653_v1 }
  0xc1   : > { %14040 = vst [vmem:[#allocation115_spill] sm:$0xff] %v7593_v58  ;;  %645 = vadd.xlane.f32.xlu0 %v644_v59  ;;  %v7622_v59 = vld [vmem:[%s13673_s0 + $0x450] sm:$0xff]  ;;  %v655_v18 = vsel %vm378_vm0, %v7603_v56, 0.0  ;;  %v672_v58 = vmul.f32 %v6665_v4, %v6665_v4  ;;  %v667_v4 = vmul.f32 %v6670_v5, %v6670_v5  ;;  %v674_v5 = vmul.f32 %v6692_v13, %v6692_v13 }
  0xc2   : > { %14041 = vst [vmem:[#allocation116_spill] sm:$0xff] %v7598_v28  ;;  %v7626_v34 = vpop.xlane.xlu2 %485  ;;  %v656_v28 = vadd.f32 %v655_v18, %v7622_v59  ;;  %v815_v18 = vsel %vm378_vm0, %v670_v12, 0.0  ;;  %v677_v12 = vmul.f32 %v6702_v15, %v6702_v15 }
  0xc3   : > { %14042 = vst [vmem:[#allocation117_spill] sm:$0xff] %v7603_v56  ;;  %v7628_v3 = vpop.xlane.xlu1 %481  ;;  %v668_v56 = vmul.f32 %v6675_v6, %v6675_v6  ;;  %v819_v40 = vsel %vm378_vm0, %v672_v58, 0.0  ;;  %v678_v58 = vmul.f32 %v6685_v10, %v6685_v10  ;;  %v673_v10 = vmul.f32 %v6709_v17, %v6709_v17 }
  0xc4   : > { %14043 = vst [vmem:[#allocation118_spill] sm:$0xff] %v7628_v3  ;;  %v7630_v8 = vpop.xlane.xlu0 %477  ;;  %v671_v3 = vmul.f32 %v6658_v2, %v6658_v2  ;;  %v823_v1 = vsel %vm378_vm0, %v674_v5, 0.0  ;;  %v680_v17 = vmul.f32 %v6736_v26, %v6736_v26 }
  0xc5   : > { %14044 = vst [vmem:[#allocation119_spill] sm:$0xff] %v7630_v8  ;;  %v811_v14 = vsel %vm378_vm0, %v668_v56, 0.0  ;;  %v831_v56 = vsel %vm378_vm0, %v678_v58, 0.0  ;;  %v681_v58 = vmul.f32 %v6748_v29, %v6748_v29  ;;  %v688_v29 = vmul.f32 %v6770_v37, %v6770_v37 }
  0xc6   : > { %v820_v2 = vadd.f32 %v819_v40, %v671_v3  ;;  %v675_v3 = vmul.f32 %v6648_v0, %v6648_v0  ;;  %v827_v40 = vsel %vm378_vm0, %v676_v19, 0.0  ;;  %v832_v15 = vadd.f32 %v831_v56, %v677_v12 }
  0xc7   : > { %665 = vadd.xlane.f32.xlu2 %v664_v35  ;;  %v682_v0 = vmul.f32 %v6731_v25, %v6731_v25  ;;  %v835_v25 = vsel %vm378_vm0, %v680_v17, 0.0 }
  0xc8   : > { %661 = vadd.xlane.f32.xlu1 %v660_v32  ;;  %v812_v32 = vadd.f32 %v811_v14, %v667_v4  ;;  %v824_v14 = vadd.f32 %v823_v1, %v673_v10  ;;  %v690_v10 = vmul.f32 %v6765_v36, %v6765_v36  ;;  %v685_v36 = vmul.f32 %v6794_v43, %v6794_v43 }
  0xc9   : > { %657 = vadd.xlane.f32.xlu0 %v656_v28  ;;  %v816_v28 = vadd.f32 %v815_v18, %v669_v52  ;;  %v828_v18 = vadd.f32 %v827_v40, %v675_v3  ;;  %v839_v19 = vsel %vm378_vm0, %v682_v0, 0.0  ;;  %v689_v40 = vmul.f32 %v6780_v39, %v6780_v39 }
  0xca   : > { %v7650_v8 = vpop.xlane.xlu2 %497  ;;  %v840_v56 = vadd.f32 %v839_v19, %v681_v58  ;;  %v855_v1 = vsel %vm378_vm0, %v690_v10, 0.0  ;;  %v692_v43 = vmul.f32 %v6814_v50, %v6814_v50  ;;  %v702_v10 = vmul.f32 %v6843_v60, %v6843_v60 }
  0xcb   : > { %v7652_v6 = vpop.xlane.xlu1 %493  ;;  %v856_v39 = vadd.f32 %v855_v1, %v689_v40  ;;  %v699_v40 = vmul.f32 %v6865_v7, %v6865_v7  ;;  %v697_v60 = vmul.f32 %v6872_v9, %v6872_v9  ;;  %v706_v7 = vmul.f32 %v6887_v21, %v6887_v21 }
  0xcc   : > { %v7654_v35 = vpop.xlane.xlu0 %489  ;;  %v704_v9 = vmul.f32 %v6892_v22, %v6892_v22 }
  0xce   : > { %v883_v21 = vsel %vm378_vm0, %v704_v9, 0.0 }
  0xcf   : > { %821 = vadd.xlane.f32.xlu2 %v820_v2  ;;  %v684_v2 = vmul.f32 %v6726_v24, %v6726_v24  ;;  %v679_v24 = vmul.f32 %v6755_v31, %v6755_v31  ;;  %v686_v31 = vmul.f32 %v6775_v38, %v6775_v38 }
  0xd0   : > { %817 = vadd.xlane.f32.xlu1 %v816_v28  ;;  %v683_v28 = vmul.f32 %v6741_v27, %v6741_v27 }
  0xd1   : > { %813 = vadd.xlane.f32.xlu0 %v812_v32  ;;  %v843_v32 = vsel %vm378_vm0, %v684_v2, 0.0  ;;  %v836_v3 = vadd.f32 %v835_v25, %v679_v24  ;;  %v847_v37 = vsel %vm378_vm0, %v686_v31, 0.0  ;;  %v693_v24 = vmul.f32 %v6826_v53, %v6826_v53 }
  0xd2   : > { %v7671_v52 = vpop.xlane.xlu2 %509  ;;  %v844_v27 = vadd.f32 %v843_v32, %v683_v28  ;;  %v848_v17 = vadd.f32 %v847_v37, %v685_v36  ;;  %v696_v28 = vmul.f32 %v6804_v48, %v6804_v48  ;;  %v695_v32 = vmul.f32 %v6819_v51, %v6819_v51 }
  0xd3   : > { %v7673_v13 = vpop.xlane.xlu1 %505  ;;  %v691_v48 = vmul.f32 %v6833_v55, %v6833_v55  ;;  %v700_v53 = vmul.f32 %v6848_v61, %v6848_v61  ;;  %v698_v55 = vmul.f32 %v6853_v62, %v6853_v62  ;;  %v879_v31 = vsel %vm378_vm0, %v702_v10, 0.0 }
  0xd4   : > { %v7675_v4 = vpop.xlane.xlu0 %501  ;;  %v867_v58 = vsel %vm378_vm0, %v696_v28, 0.0  ;;  %v705_v28 = vmul.f32 %v6904_v30, %v6904_v30  ;;  %v712_v30 = vmul.f32 %v6926_v45, %v6926_v45 }
  0xd5   : > { %v868_v51 = vadd.f32 %v867_v58, %v695_v32  ;;  %v875_v1 = vsel %vm378_vm0, %v700_v53, 0.0  ;;  %v871_v61 = vsel %vm378_vm0, %v698_v55, 0.0 }
  0xd6   : > { %v872_v37 = vadd.f32 %v871_v61, %v697_v60  ;;  %v14053_v60 = vld [vmem:[#allocation4_spill] sm:$0xff] }
  0xd7   : > { %833 = vadd.xlane.f32.xlu2 %v832_v15  ;;  %v687_v15 = vmul.f32 %v6787_v41, %v6787_v41  ;;  %v694_v41 = vmul.f32 %v6809_v49, %v6809_v49  ;;  %v859_v49 = vsel %vm378_vm0, %v692_v43, 0.0 }
  0xd8   : > { %829 = vadd.xlane.f32.xlu1 %v828_v18  ;;  %v851_v18 = vsel %vm378_vm0, %v688_v29, 0.0  ;;  %v701_v29 = vmul.f32 %v6858_v63, %v6858_v63 }
  0xd9   : > { %825 = vadd.xlane.f32.xlu0 %v824_v14  ;;  %v852_v0 = vadd.f32 %v851_v18, %v687_v15  ;;  %v863_v19 = vsel %vm378_vm0, %v694_v41, 0.0  ;;  %v876_v18 = vadd.f32 %v875_v1, %v699_v40  ;;  %v887_v41 = vsel %vm378_vm0, %v706_v7, 0.0 }
  0xda   : > { %v7692_v5 = vpop.xlane.xlu2 %521  ;;  %v880_v63 = vadd.f32 %v879_v31, %v701_v29  ;;  %v888_v58 = vadd.f32 %v887_v41, %v705_v28  ;;  %v720_v29 = vmul.f32 %v6960_v11, %v6960_v11  ;;  %v719_v1 = vmul.f32 %v14053_v60, %v14053_v60  ;;  %v14068_v60 = vld [vmem:[#allocation13_spill] sm:$0xff] }
  0xdb   : > { %v7694_v26 = vpop.xlane.xlu1 %517 }
  0xdc   : > { %v7696_v12 = vpop.xlane.xlu0 %513  ;;  %v915_v61 = vsel %vm378_vm0, %v720_v29, 0.0 }
  0xdd   : > { %v916_v28 = vadd.f32 %v915_v61, %v719_v1  ;;  %v732_v1 = vmul.f32 %v14068_v60, %v14068_v60  ;;  %v14069_v61 = vld [vmem:[#allocation14_spill] sm:$0xff]  ;;  %v14081_v60 = vld [vmem:[#allocation23_spill] sm:$0xff] }
  0xdf   : > { %845 = vadd.xlane.f32.xlu2 %v844_v27 }
  0xe0   : > { %841 = vadd.xlane.f32.xlu1 %v840_v56  ;;  %v864_v56 = vadd.f32 %v863_v19, %v693_v24  ;;  %v713_v19 = vmul.f32 %v6936_v47, %v6936_v47 }
  0xe1   : > { %837 = vadd.xlane.f32.xlu0 %v836_v3  ;;  %v860_v3 = vadd.f32 %v859_v49, %v691_v48  ;;  %v714_v48 = vmul.f32 %v6921_v44, %v6921_v44  ;;  %v709_v44 = vmul.f32 %v6950_v57, %v6950_v57  ;;  %v14052_v57 = vld [vmem:[#allocation3_spill] sm:$0xff] }
  0xe2   : > { %v7713_v14 = vpop.xlane.xlu2 %533  ;;  %v716_v40 = vmul.f32 %v14052_v57, %v14052_v57 }
  0xe3   : > { %v7715_v38 = vpop.xlane.xlu1 %529  ;;  %v903_v49 = vsel %vm378_vm0, %v714_v48, 0.0  ;;  %v14061_v48 = vld [vmem:[#allocation9_spill] sm:$0xff] }
  0xe4   : > { %v7717_v2 = vpop.xlane.xlu0 %525  ;;  %v904_v47 = vadd.f32 %v903_v49, %v713_v19  ;;  %v907_v7 = vsel %vm378_vm0, %v716_v40, 0.0 }
  0xe7   : > { %857 = vadd.xlane.f32.xlu2 %v856_v39  ;;  %v708_v39 = vmul.f32 %v6882_v20, %v6882_v20  ;;  %v703_v20 = vmul.f32 %v6911_v33, %v6911_v33  ;;  %v710_v33 = vmul.f32 %v6931_v46, %v6931_v46 }
  0xe8   : > { %853 = vadd.xlane.f32.xlu1 %v852_v0  ;;  %v707_v0 = vmul.f32 %v6897_v23, %v6897_v23 }
  0xe9   : > { %849 = vadd.xlane.f32.xlu0 %v848_v17  ;;  %v891_v17 = vsel %vm378_vm0, %v708_v39, 0.0  ;;  %v884_v24 = vadd.f32 %v883_v21, %v703_v20  ;;  %v895_v45 = vsel %vm378_vm0, %v710_v33, 0.0  ;;  %v14059_v21 = vld [vmem:[#allocation7_spill] sm:$0xff]  ;;  %v14062_v33 = vld [vmem:[#allocation10_spill] sm:$0xff] }
  0xea   : > { %v7734_v25 = vpop.xlane.xlu2 %545  ;;  %v892_v23 = vadd.f32 %v891_v17, %v707_v0  ;;  %v896_v55 = vadd.f32 %v895_v45, %v709_v44  ;;  %v725_v19 = vmul.f32 %v14062_v33, %v14062_v33 }
  0xeb   : > { %v7736_v50 = vpop.xlane.xlu1 %541 }
  0xec   : > { %v7738_v27 = vpop.xlane.xlu0 %537 }
  0xef   : > { %869 = vadd.xlane.f32.xlu2 %v868_v51  ;;  %v711_v51 = vmul.f32 %v6943_v54, %v6943_v54  ;;  %v14051_v54 = vld [vmem:[#allocation2_spill] sm:$0xff] }
  0xf0   : > { %865 = vadd.xlane.f32.xlu1 %v864_v56  ;;  %v899_v56 = vsel %vm378_vm0, %v712_v30, 0.0  ;;  %v718_v31 = vmul.f32 %v14051_v54, %v14051_v54  ;;  %v722_v30 = vmul.f32 %v14061_v48, %v14061_v48 }
  0xf1   : > { %861 = vadd.xlane.f32.xlu0 %v860_v3  ;;  %v900_v53 = vadd.f32 %v899_v56, %v711_v51  ;;  %v14063_v51 = vld [vmem:[#allocation11_spill] sm:$0xff]  ;;  %v14064_v56 = vld [vmem:[#allocation12_spill] sm:$0xff] }
  0xf2   : > { %v7755_v15 = vpop.xlane.xlu2 %557  ;;  %v911_v39 = vsel %vm378_vm0, %v718_v31, 0.0  ;;  %v723_v44 = vmul.f32 %v14063_v51, %v14063_v51  ;;  %v721_v45 = vmul.f32 %v14064_v56, %v14064_v56  ;;  %v14077_v51 = vld [vmem:[#allocation19_spill] sm:$0xff]  ;;  %v14078_v56 = vld [vmem:[#allocation20_spill] sm:$0xff] }
  0xf3   : > { %v7757_v62 = vpop.xlane.xlu1 %553 }
  0xf4   : > { %v7759_v36 = vpop.xlane.xlu0 %549 }
  0xf7   : > { %881 = vadd.xlane.f32.xlu2 %v880_v63  ;;  %v14054_v63 = vld [vmem:[#allocation5_spill] sm:$0xff] }
  0xf8   : > { %877 = vadd.xlane.f32.xlu1 %v876_v18  ;;  %v717_v18 = vmul.f32 %v14054_v63, %v14054_v63  ;;  %v730_v63 = vmul.f32 %v14069_v61, %v14069_v61  ;;  %v14082_v61 = vld [vmem:[#allocation24_spill] sm:$0xff] }
  0xf9   : > { %873 = vadd.xlane.f32.xlu0 %v872_v37  ;;  %v14055_v37 = vld [vmem:[#allocation6_spill] sm:$0xff] }
  0xfa   : > { %v7776_v43 = vpop.xlane.xlu2 %569  ;;  %v715_v11 = vmul.f32 %v14055_v37, %v14055_v37  ;;  %v912_v20 = vadd.f32 %v911_v39, %v717_v18  ;;  %v14070_v18 = vld [vmem:[#allocation15_spill] sm:$0xff] }
  0xfb   : > { %14045 = vst [vmem:[#allocation120_spill] sm:$0xff] %v7776_v43  ;;  %v7778_v22 = vpop.xlane.xlu1 %565  ;;  %v728_v37 = vmul.f32 %v14070_v18, %v14070_v18 }
  0xfc   : > { %14046 = vst [vmem:[#allocation121_spill] sm:$0xff] %v7778_v22  ;;  %v7780_v32 = vpop.xlane.xlu0 %561  ;;  %v908_v41 = vadd.f32 %v907_v7, %v715_v11  ;;  %v14071_v11 = vld [vmem:[#allocation16_spill] sm:$0xff]  ;;  %v939_v7 = vsel %vm378_vm0, %v732_v1, 0.0  ;;  %v735_v1 = vmul.f32 %v14081_v60, %v14081_v60 }
  0xfd   : > { %14047 = vst [vmem:[#allocation122_spill] sm:$0xff] %v7780_v32  ;;  %v731_v39 = vmul.f32 %v14071_v11, %v14071_v11 }
  0xff   : > { %893 = vadd.xlane.f32.xlu2 %v892_v23  ;;  %v726_v23 = vmul.f32 %v14059_v21, %v14059_v21  ;;  %v940_v33 = vadd.f32 %v939_v7, %v731_v39 }
 0x100   : > { %889 = vadd.xlane.f32.xlu1 %v888_v58  ;;  %v14060_v58 = vld [vmem:[#allocation8_spill] sm:$0xff] }
 0x101   : > { %885 = vadd.xlane.f32.xlu0 %v884_v24  ;;  %v724_v24 = vmul.f32 %v14060_v58, %v14060_v58  ;;  %v927_v49 = vsel %vm378_vm0, %v726_v23, 0.0  ;;  %v935_v23 = vsel %vm378_vm0, %v730_v63, 0.0  ;;  %v931_v58 = vsel %vm378_vm0, %v728_v37, 0.0 }
 0x102   : > { %v7797_v3 = vpop.xlane.xlu2 %581  ;;  %v928_v31 = vadd.f32 %v927_v49, %v725_v19  ;;  %v733_v63 = vmul.f32 %v14082_v61, %v14082_v61 }
 0x103   : > { %14048 = vst [vmem:[#allocation123_spill] sm:$0xff] %v7797_v3  ;;  %v7799_v46 = vpop.xlane.xlu1 %577 }
 0x104   : > { %14049 = vst [vmem:[#allocation124_spill] sm:$0xff] %v7799_v46  ;;  %v7801_v10 = vpop.xlane.xlu0 %573 }
 0x105   : > { %14050 = vst [vmem:[#allocation125_spill] sm:$0xff] %v7801_v10 }
 0x107   : > { %905 = vadd.xlane.f32.xlu2 %v904_v47  ;;  %v923_v47 = vsel %vm378_vm0, %v724_v24, 0.0 }
 0x108   : > { %901 = vadd.xlane.f32.xlu1 %v900_v53  ;;  %v919_v53 = vsel %vm378_vm0, %v722_v30, 0.0  ;;  %v924_v57 = vadd.f32 %v923_v47, %v723_v44  ;;  %v738_v44 = vmul.f32 %v14077_v51, %v14077_v51  ;;  %v14079_v47 = vld [vmem:[#allocation21_spill] sm:$0xff]  ;;  %v14089_v51 = vld [vmem:[#allocation28_spill] sm:$0xff] }
 0x109   : > { %897 = vadd.xlane.f32.xlu0 %v896_v55  ;;  %v920_v40 = vadd.f32 %v919_v53, %v721_v45  ;;  %v736_v45 = vmul.f32 %v14078_v56, %v14078_v56  ;;  %v734_v53 = vmul.f32 %v14079_v47, %v14079_v47 }
 0x10a   : > { %v7818_v9 = vpop.xlane.xlu2 %593 }
 0x10b   : > { %14056 = vst [vmem:[#allocation2_spill] sm:$0xff] %v7818_v9  ;;  %v7820_v0 = vpop.xlane.xlu1 %589  ;;  %v947_v18 = vsel %vm378_vm0, %v736_v45, 0.0  ;;  %v943_v37 = vsel %vm378_vm0, %v734_v53, 0.0  ;;  %v14090_v45 = vld [vmem:[#allocation29_spill] sm:$0xff]  ;;  %v14091_v53 = vld [vmem:[#allocation30_spill] sm:$0xff] }
 0x10c   : > { %14057 = vst [vmem:[#allocation3_spill] sm:$0xff] %v7820_v0  ;;  %v7822_v17 = vpop.xlane.xlu0 %585  ;;  %v741_v47 = vmul.f32 %v14090_v45, %v14090_v45 }
 0x10d   : > { %14058 = vst [vmem:[#allocation4_spill] sm:$0xff] %v7822_v17 }
 0x10f   : > { %917 = vadd.xlane.f32.xlu2 %v916_v28  ;;  %v14072_v28 = vld [vmem:[#allocation17_spill] sm:$0xff] }
 0x110   : > { %913 = vadd.xlane.f32.xlu1 %v912_v20  ;;  %v729_v20 = vmul.f32 %v14072_v28, %v14072_v28 }
 0x111   : > { %909 = vadd.xlane.f32.xlu0 %v908_v41  ;;  %v14073_v41 = vld [vmem:[#allocation18_spill] sm:$0xff] }
 0x112   : > { %v7839_v55 = vpop.xlane.xlu2 %605  ;;  %v727_v21 = vmul.f32 %v14073_v41, %v14073_v41  ;;  %v936_v19 = vadd.f32 %v935_v23, %v729_v20  ;;  %v948_v20 = vadd.f32 %v947_v18, %v735_v1  ;;  %v944_v41 = vadd.f32 %v943_v37, %v733_v63 }
 0x113   : > { %14065 = vst [vmem:[#allocation5_spill] sm:$0xff] %v7839_v55  ;;  %v7841_v29 = vpop.xlane.xlu1 %601 }
 0x114   : > { %14066 = vst [vmem:[#allocation6_spill] sm:$0xff] %v7841_v29  ;;  %v7843_v54 = vpop.xlane.xlu0 %597  ;;  %v932_v49 = vadd.f32 %v931_v58, %v727_v21  ;;  %v14086_v21 = vld [vmem:[#allocation25_spill] sm:$0xff]  ;;  %v14087_v58 = vld [vmem:[#allocation26_spill] sm:$0xff] }
 0x115   : > { %14067 = vst [vmem:[#allocation7_spill] sm:$0xff] %v7843_v54  ;;  %v744_v23 = vmul.f32 %v14086_v21, %v14086_v21 }
 0x117   : > { %929 = vadd.xlane.f32.xlu2 %v928_v31  ;;  %v14080_v31 = vld [vmem:[#allocation22_spill] sm:$0xff]  ;;  %v963_v56 = vsel %vm378_vm0, %v744_v23, 0.0  ;;  %v14097_v23 = vld [vmem:[#allocation33_spill] sm:$0xff] }
 0x118   : > { %925 = vadd.xlane.f32.xlu1 %v924_v57  ;;  %v737_v57 = vmul.f32 %v14080_v31, %v14080_v31  ;;  %v739_v31 = vmul.f32 %v14091_v53, %v14091_v53 }
 0x119   : > { %921 = vadd.xlane.f32.xlu0 %v920_v40  ;;  %v951_v40 = vsel %vm378_vm0, %v738_v44, 0.0  ;;  %v743_v44 = vmul.f32 %v14089_v51, %v14089_v51  ;;  %v14099_v51 = vld [vmem:[#allocation35_spill] sm:$0xff] }
 0x11a   : > { %v7860_v24 = vpop.xlane.xlu2 %617  ;;  %v952_v28 = vadd.f32 %v951_v40, %v737_v57 }
 0x11b   : > { %14074 = vst [vmem:[#allocation8_spill] sm:$0xff] %v7860_v24  ;;  %v7862_v48 = vpop.xlane.xlu1 %613  ;;  %v964_v63 = vadd.f32 %v963_v56, %v743_v44  ;;  %v747_v44 = vmul.f32 %v14099_v51, %v14099_v51  ;;  %v14100_v56 = vld [vmem:[#allocation36_spill] sm:$0xff] }
 0x11c   : > { %14075 = vst [vmem:[#allocation9_spill] sm:$0xff] %v7862_v48  ;;  %v7864_v30 = vpop.xlane.xlu0 %609  ;;  %v745_v45 = vmul.f32 %v14100_v56, %v14100_v56  ;;  %v14158_v48 = vld [vmem:[#allocation115_spill] sm:$0xff] }
 0x11d   : > { %14076 = vst [vmem:[#allocation10_spill] sm:$0xff] %v7864_v30 }
 0x11f   : > { %941 = vadd.xlane.f32.xlu2 %v940_v33  ;;  %v742_v33 = vmul.f32 %v14087_v58, %v14087_v58  ;;  %v746_v58 = vmul.f32 %v14097_v23, %v14097_v23 }
 0x120   : > { %937 = vadd.xlane.f32.xlu1 %v936_v19  ;;  %v14088_v19 = vld [vmem:[#allocation27_spill] sm:$0xff] }
 0x121   : > { %933 = vadd.xlane.f32.xlu0 %v932_v49  ;;  %v740_v49 = vmul.f32 %v14088_v19, %v14088_v19  ;;  %v959_v57 = vsel %vm378_vm0, %v742_v33, 0.0  ;;  %v14098_v33 = vld [vmem:[#allocation34_spill] sm:$0xff]  ;;  %v967_v53 = vsel %vm378_vm0, %v746_v58, 0.0  ;;  %v14107_v58 = vld [vmem:[#allocation40_spill] sm:$0xff] }
 0x122   : > { %v7881_v11 = vpop.xlane.xlu2 %629  ;;  %v960_v18 = vadd.f32 %v959_v57, %v741_v47  ;;  %v749_v19 = vmul.f32 %v14098_v33, %v14098_v33  ;;  %v14106_v33 = vld [vmem:[#allocation39_spill] sm:$0xff]  ;;  %v755_v51 = vmul.f32 %v14107_v58, %v14107_v58 }
 0x123   : > { %14083 = vst [vmem:[#allocation11_spill] sm:$0xff] %v7881_v11  ;;  %v7883_v39 = vpop.xlane.xlu1 %625  ;;  %v955_v40 = vsel %vm378_vm0, %v740_v49, 0.0 }
 0x124   : > { %14084 = vst [vmem:[#allocation12_spill] sm:$0xff] %v7883_v39  ;;  %v7885_v7 = vpop.xlane.xlu0 %621  ;;  %v956_v37 = vadd.f32 %v955_v40, %v739_v31 }
 0x125   : > { %14085 = vst [vmem:[#allocation13_spill] sm:$0xff] %v7885_v7 }
 0x127   : > { %953 = vadd.xlane.f32.xlu2 %v952_v28  ;;  %v14095_v28 = vld [vmem:[#allocation31_spill] sm:$0xff] }
 0x128   : > { %949 = vadd.xlane.f32.xlu1 %v948_v20  ;;  %v750_v20 = vmul.f32 %v14095_v28, %v14095_v28  ;;  %v14104_v28 = vld [vmem:[#allocation37_spill] sm:$0xff] }
 0x129   : > { %945 = vadd.xlane.f32.xlu0 %v944_v41  ;;  %v14096_v41 = vld [vmem:[#allocation32_spill] sm:$0xff] }
 0x12a   : > { %v7902_v60 = vpop.xlane.xlu2 %641  ;;  %v748_v21 = vmul.f32 %v14096_v41, %v14096_v41  ;;  %v975_v49 = vsel %vm378_vm0, %v750_v20, 0.0  ;;  %v756_v20 = vmul.f32 %v14104_v28, %v14104_v28  ;;  %v14105_v41 = vld [vmem:[#allocation38_spill] sm:$0xff] }
 0x12b   : > { %14092 = vst [vmem:[#allocation14_spill] sm:$0xff] %v7902_v60  ;;  %v7904_v1 = vpop.xlane.xlu1 %637  ;;  %v754_v23 = vmul.f32 %v14105_v41, %v14105_v41 }
 0x12c   : > { %14093 = vst [vmem:[#allocation15_spill] sm:$0xff] %v7904_v1  ;;  %v7906_v61 = vpop.xlane.xlu0 %633  ;;  %v971_v47 = vsel %vm378_vm0, %v748_v21, 0.0  ;;  %v752_v21 = vmul.f32 %v14106_v33, %v14106_v33  ;;  %v987_v56 = vsel %vm378_vm0, %v756_v20, 0.0  ;;  %v14113_v20 = vld [vmem:[#allocation43_spill] sm:$0xff] }
 0x12d   : > { %14094 = vst [vmem:[#allocation16_spill] sm:$0xff] %v7906_v61  ;;  %v762_v58 = vmul.f32 %v14113_v20, %v14113_v20 }
 0x12f   : > { %965 = vadd.xlane.f32.xlu2 %v964_v63  ;;  %v976_v63 = vadd.f32 %v975_v49, %v749_v19  ;;  %v14108_v19 = vld [vmem:[#allocation41_spill] sm:$0xff] }
 0x130   : > { %961 = vadd.xlane.f32.xlu1 %v960_v18  ;;  %v972_v18 = vadd.f32 %v971_v47, %v747_v44  ;;  %v753_v49 = vmul.f32 %v14108_v19, %v14108_v19  ;;  %v14109_v44 = vld [vmem:[#allocation42_spill] sm:$0xff]  ;;  %v983_v47 = vsel %vm378_vm0, %v754_v23, 0.0  ;;  %v14114_v19 = vld [vmem:[#allocation44_spill] sm:$0xff] }
 0x131   : > { %957 = vadd.xlane.f32.xlu0 %v956_v37  ;;  %v968_v37 = vadd.f32 %v967_v53, %v745_v45  ;;  %v751_v45 = vmul.f32 %v14109_v44, %v14109_v44  ;;  %v979_v53 = vsel %vm378_vm0, %v752_v21, 0.0  ;;  %v14115_v44 = vld [vmem:[#allocation45_spill] sm:$0xff]  ;;  %v14116_v21 = vld [vmem:[#allocation46_spill] sm:$0xff] }
 0x132   : > { %v7923_v31 = vpop.xlane.xlu2 %653  ;;  %v758_v23 = vmul.f32 %v14115_v44, %v14115_v44 }
 0x133   : > { %14101 = vst [vmem:[#allocation17_spill] sm:$0xff] %v7923_v31  ;;  %v7925_v57 = vpop.xlane.xlu1 %649  ;;  %v980_v33 = vadd.f32 %v979_v53, %v751_v45 }
 0x134   : > { %14102 = vst [vmem:[#allocation18_spill] sm:$0xff] %v7925_v57  ;;  %v7927_v40 = vpop.xlane.xlu0 %645  ;;  %v991_v53 = vsel %vm378_vm0, %v758_v23, 0.0  ;;  %v14125_v23 = vld [vmem:[#allocation55_spill] sm:$0xff] }
 0x135   : > { %14103 = vst [vmem:[#allocation19_spill] sm:$0xff] %v7927_v40  ;;  %v760_v40 = vmul.f32 %v14114_v19, %v14114_v19  ;;  %v767_v57 = vmul.f32 %v14125_v23, %v14125_v23 }
 0x137   : > { %977 = vadd.xlane.f32.xlu2 %v976_v63 }
 0x138   : > { %973 = vadd.xlane.f32.xlu1 %v972_v18  ;;  %v988_v18 = vadd.f32 %v987_v56, %v755_v51  ;;  %v14117_v51 = vld [vmem:[#allocation47_spill] sm:$0xff] }
 0x139   : > { %969 = vadd.xlane.f32.xlu0 %v968_v37  ;;  %v984_v37 = vadd.f32 %v983_v47, %v753_v49  ;;  %v759_v56 = vmul.f32 %v14117_v51, %v14117_v51  ;;  %v14118_v49 = vld [vmem:[#allocation48_spill] sm:$0xff]  ;;  %v995_v47 = vsel %vm378_vm0, %v760_v40, 0.0  ;;  %v14123_v51 = vld [vmem:[#allocation53_spill] sm:$0xff] }
 0x13a   : > { %v7944_v28 = vpop.xlane.xlu2 %665  ;;  %v757_v45 = vmul.f32 %v14118_v49, %v14118_v49  ;;  %v14124_v49 = vld [vmem:[#allocation54_spill] sm:$0xff] }
 0x13b   : > { %14110 = vst [vmem:[#allocation20_spill] sm:$0xff] %v7944_v28  ;;  %v7946_v63 = vpop.xlane.xlu1 %661  ;;  %v761_v28 = vmul.f32 %v14116_v21, %v14116_v21  ;;  %v764_v40 = vmul.f32 %v14124_v49, %v14124_v49 }
 0x13c   : > { %14111 = vst [vmem:[#allocation21_spill] sm:$0xff] %v7946_v63  ;;  %v7948_v41 = vpop.xlane.xlu0 %657  ;;  %v992_v44 = vadd.f32 %v991_v53, %v757_v45  ;;  %v766_v63 = vmul.f32 %v14123_v51, %v14123_v51 }
 0x13d   : > { %14112 = vst [vmem:[#allocation22_spill] sm:$0xff] %v7948_v41  ;;  %v999_v41 = vsel %vm378_vm0, %v762_v58, 0.0  ;;  %v14122_v58 = vld [vmem:[#allocation52_spill] sm:$0xff]  ;;  %v1003_v53 = vsel %vm378_vm0, %v764_v40, 0.0  ;;  %v14134_v40 = vld [vmem:[#allocation91_spill] sm:$0xff] }
 0x13e   : > { %v768_v21 = vmul.f32 %v14122_v58, %v14122_v58  ;;  %v791_v1 = vmul.f32 %v14134_v40, %v14134_v40 }
 0x13f   : > { %989 = vadd.xlane.f32.xlu2 %v988_v18 }
 0x140   : > { %985 = vadd.xlane.f32.xlu1 %v984_v37  ;;  %v1000_v37 = vadd.f32 %v999_v41, %v761_v28  ;;  %v1011_v31 = vsel %vm378_vm0, %v768_v21, 0.0  ;;  %v14126_v28 = vld [vmem:[#allocation56_spill] sm:$0xff] }
 0x141   : > { %981 = vadd.xlane.f32.xlu0 %v980_v33  ;;  %v996_v33 = vadd.f32 %v995_v47, %v759_v56  ;;  %v765_v41 = vmul.f32 %v14126_v28, %v14126_v28  ;;  %v14127_v56 = vld [vmem:[#allocation57_spill] sm:$0xff]  ;;  %v1007_v47 = vsel %vm378_vm0, %v766_v63, 0.0  ;;  %v14131_v21 = vld [vmem:[#allocation88_spill] sm:$0xff]  ;;  %v14132_v28 = vld [vmem:[#allocation99_spill] sm:$0xff] }
 0x142   : > { %v7965_v20 = vpop.xlane.xlu2 %821  ;;  %v763_v45 = vmul.f32 %v14127_v56, %v14127_v56  ;;  %v792_v23 = vmul.f32 %v14131_v21, %v14131_v21  ;;  %v794_v61 = vmul.f32 %v14132_v28, %v14132_v28  ;;  %v14133_v56 = vld [vmem:[#allocation63_spill] sm:$0xff] }
 0x143   : > { %14119 = vst [vmem:[#allocation23_spill] sm:$0xff] %v7965_v20  ;;  %v7967_v18 = vpop.xlane.xlu1 %817  ;;  %v770_v63 = vmul.f32 %v14133_v56, %v14133_v56 }
 0x144   : > { %14120 = vst [vmem:[#allocation24_spill] sm:$0xff] %v7967_v18  ;;  %v7969_v19 = vpop.xlane.xlu0 %813  ;;  %v1004_v49 = vadd.f32 %v1003_v53, %v763_v45  ;;  %v1059_v60 = vsel %vm378_vm0, %v792_v23, 0.0  ;;  %v14137_v23 = vld [vmem:[#allocation89_spill] sm:$0xff] }
 0x145   : > { %14121 = vst [vmem:[#allocation25_spill] sm:$0xff] %v7969_v19  ;;  %v1015_v53 = vsel %vm378_vm0, %v770_v63, 0.0  ;;  %v790_v40 = vmul.f32 %v14137_v23, %v14137_v23  ;;  %v14140_v63 = vld [vmem:[#allocation92_spill] sm:$0xff] }
 0x146   : > { %v789_v19 = vmul.f32 %v14140_v63, %v14140_v63 }
 0x147   : > { %1001 = vadd.xlane.f32.xlu2 %v1000_v37 }
 0x148   : > { %997 = vadd.xlane.f32.xlu1 %v996_v33  ;;  %v1012_v33 = vadd.f32 %v1011_v31, %v767_v57  ;;  %v14135_v31 = vld [vmem:[#allocation102_spill] sm:$0xff] }
 0x149   : > { %993 = vadd.xlane.f32.xlu0 %v992_v44  ;;  %v1008_v44 = vadd.f32 %v1007_v47, %v765_v41  ;;  %v793_v57 = vmul.f32 %v14135_v31, %v14135_v31  ;;  %v14136_v41 = vld [vmem:[#allocation66_spill] sm:$0xff]  ;;  %v1063_v47 = vsel %vm378_vm0, %v794_v61, 0.0  ;;  %v14138_v31 = vld [vmem:[#allocation80_spill] sm:$0xff] }
 0x14a   : > { %v7986_v58 = vpop.xlane.xlu2 %833  ;;  %v769_v45 = vmul.f32 %v14136_v41, %v14136_v41  ;;  %v14139_v41 = vld [vmem:[#allocation90_spill] sm:$0xff] }
 0x14b   : > { %14128 = vst [vmem:[#allocation26_spill] sm:$0xff] %v7986_v58  ;;  %v7988_v37 = vpop.xlane.xlu1 %829  ;;  %v788_v61 = vmul.f32 %v14139_v41, %v14139_v41  ;;  %v1055_v58 = vsel %vm378_vm0, %v790_v40, 0.0  ;;  %v14143_v40 = vld [vmem:[#allocation79_spill] sm:$0xff] }
 0x14c   : > { %14129 = vst [vmem:[#allocation27_spill] sm:$0xff] %v7988_v37  ;;  %v7990_v51 = vpop.xlane.xlu0 %825  ;;  %v1016_v56 = vadd.f32 %v1015_v53, %v769_v45  ;;  %v786_v63 = vmul.f32 %v14143_v40, %v14143_v40 }
 0x14d   : > { %14130 = vst [vmem:[#allocation28_spill] sm:$0xff] %v7990_v51  ;;  %v784_v51 = vmul.f32 %v14138_v31, %v14138_v31  ;;  %v1051_v53 = vsel %vm378_vm0, %v788_v61, 0.0  ;;  %v14146_v61 = vld [vmem:[#allocation82_spill] sm:$0xff] }
 0x14e   : > { %v785_v7 = vmul.f32 %v14146_v61, %v14146_v61  ;;  %v1047_v39 = vsel %vm378_vm0, %v786_v63, 0.0  ;;  %v14149_v63 = vld [vmem:[#allocation72_spill] sm:$0xff] }
 0x14f   : > { %1013 = vadd.xlane.f32.xlu2 %v1012_v33  ;;  %v776_v61 = vmul.f32 %v14149_v63, %v14149_v63 }
 0x150   : > { %1009 = vadd.xlane.f32.xlu1 %v1008_v44  ;;  %v1060_v44 = vadd.f32 %v1059_v60, %v791_v1  ;;  %v14141_v60 = vld [vmem:[#allocation83_spill] sm:$0xff] }
 0x151   : > { %1005 = vadd.xlane.f32.xlu0 %v1004_v49  ;;  %v1064_v49 = vadd.f32 %v1063_v47, %v793_v57  ;;  %v783_v1 = vmul.f32 %v14141_v60, %v14141_v60  ;;  %v14142_v57 = vld [vmem:[#allocation93_spill] sm:$0xff]  ;;  %v1043_v47 = vsel %vm378_vm0, %v784_v51, 0.0  ;;  %v1027_v30 = vsel %vm378_vm0, %v776_v61, 0.0 }
 0x152   : > { %v8007_v21 = vpop.xlane.xlu2 %845  ;;  %v787_v45 = vmul.f32 %v14142_v57, %v14142_v57  ;;  %v14144_v60 = vld [vmem:[#allocation81_spill] sm:$0xff]  ;;  %v14145_v57 = vld [vmem:[#allocation70_spill] sm:$0xff] }
 0x153   : > { %v8009_v33 = vpop.xlane.xlu1 %841  ;;  %v782_v18 = vmul.f32 %v14144_v60, %v14144_v60  ;;  %v780_v51 = vmul.f32 %v14145_v57, %v14145_v57 }
 0x154   : > { %v8011_v28 = vpop.xlane.xlu0 %837  ;;  %v1052_v41 = vadd.f32 %v1051_v53, %v787_v45 }
 0x155   : > { %v1035_v53 = vsel %vm378_vm0, %v780_v51, 0.0  ;;  %v14152_v51 = vld [vmem:[#allocation75_spill] sm:$0xff] }
 0x156   : > { %v775_v11 = vmul.f32 %v14152_v51, %v14152_v51  ;;  %v14157_v51 = vld [vmem:[#allocation61_spill] sm:$0xff] }
 0x157   : > { %1061 = vadd.xlane.f32.xlu2 %v1060_v44  ;;  %v774_v61 = vmul.f32 %v14157_v51, %v14157_v51 }
 0x158   : > { %1065 = vadd.xlane.f32.xlu1 %v1064_v49  ;;  %v1056_v49 = vadd.f32 %v1055_v58, %v789_v19  ;;  %v14147_v19 = vld [vmem:[#allocation84_spill] sm:$0xff] }
 0x159   : > { %1017 = vadd.xlane.f32.xlu0 %v1016_v56  ;;  %v1044_v56 = vadd.f32 %v1043_v47, %v783_v1  ;;  %v781_v58 = vmul.f32 %v14147_v19, %v14147_v19  ;;  %v14148_v1 = vld [vmem:[#allocation73_spill] sm:$0xff]  ;;  %v1039_v47 = vsel %vm378_vm0, %v782_v18, 0.0  ;;  %v14150_v19 = vld [vmem:[#allocation62_spill] sm:$0xff] }
 0x15a   : > { %v8028_v23 = vpop.xlane.xlu2 %857  ;;  %v779_v45 = vmul.f32 %v14148_v1, %v14148_v1  ;;  %v772_v20 = vmul.f32 %v14150_v19, %v14150_v19  ;;  %v14151_v1 = vld [vmem:[#allocation71_spill] sm:$0xff] }
 0x15b   : > { %v8030_v44 = vpop.xlane.xlu1 %853  ;;  %v778_v18 = vmul.f32 %v14151_v1, %v14151_v1  ;;  %v1028_v1 = vadd.f32 %v1027_v30, %v775_v11 }
 0x15c   : > { %v8032_v31 = vpop.xlane.xlu0 %849  ;;  %v1036_v57 = vadd.f32 %v1035_v53, %v779_v45  ;;  %v1181_v3 = vmul.f32 0.0051020407, %v8030_v44  ;;  %v2194_v44 = vld [vmem:[%s13675_s2 + $0x78] sm:$0xff] }
 0x15d   : > { %v1031_v53 = vsel %vm378_vm0, %v778_v18, 0.0  ;;  %v1023_v18 = vsel %vm378_vm0, %v774_v61, 0.0 }
 0x15f   : > { %1057 = vadd.xlane.f32.xlu2 %v1056_v49 }
 0x160   : > { %1045 = vadd.xlane.f32.xlu1 %v1044_v56  ;;  %v1048_v56 = vadd.f32 %v1047_v39, %v785_v7  ;;  %v14153_v39 = vld [vmem:[#allocation65_spill] sm:$0xff] }
 0x161   : > { %1053 = vadd.xlane.f32.xlu0 %v1052_v41  ;;  %v1040_v41 = vadd.f32 %v1039_v47, %v781_v58  ;;  %v771_v7 = vmul.f32 %v14153_v39, %v14153_v39  ;;  %v14154_v58 = vld [vmem:[#allocation74_spill] sm:$0xff]  ;;  %v1019_v47 = vsel %vm378_vm0, %v772_v20, 0.0  ;;  %v810_v39 = vmul.f32 %v14158_v48, %v14158_v48 }
 0x162   : > { %v8049_v40 = vpop.xlane.xlu2 %869  ;;  %v777_v45 = vmul.f32 %v14154_v58, %v14154_v58  ;;  %v14159_v58 = vld [vmem:[#allocation64_spill] sm:$0xff] }
 0x163   : > { %v8051_v49 = vpop.xlane.xlu1 %865  ;;  %v773_v20 = vmul.f32 %v14159_v58, %v14159_v58  ;;  %v1095_v30 = vsel %vm378_vm0, %v810_v39, 0.0  ;;  %v14166_v58 = vld [vmem:[#allocation106_spill] sm:$0xff] }
 0x164   : > { %v8053_v60 = vpop.xlane.xlu0 %861 }
 0x165   : > { %v1024_v48 = vadd.f32 %v1023_v18, %v773_v20  ;;  %v14167_v20 = vld [vmem:[#allocation96_spill] sm:$0xff] }
 0x166   : > { %v8104_v18 = vmul.f32 0.0051020407, %v14167_v20  ;;  %v14170_v20 = vld [vmem:[#allocation108_spill] sm:$0xff] }
 0x167   : > { %1049 = vadd.xlane.f32.xlu2 %v1048_v56 }
 0x168   : > { %1041 = vadd.xlane.f32.xlu1 %v1040_v41  ;;  %v1020_v41 = vadd.f32 %v1019_v47, %v771_v7 }
 0x169   : > { %1037 = vadd.xlane.f32.xlu0 %v1036_v57  ;;  %v1032_v57 = vadd.f32 %v1031_v53, %v777_v45  ;;  %v14163_v53 = vld [vmem:[#allocation116_spill] sm:$0xff] }
 0x16a   : > { %v8070_v63 = vpop.xlane.xlu2 %881 }
 0x16b   : > { %14155 = vst [vmem:[#allocation29_spill] sm:$0xff] %v8070_v63  ;;  %v8072_v56 = vpop.xlane.xlu1 %877  ;;  %v14172_v63 = vld [vmem:[#allocation85_spill] sm:$0xff] }
 0x16c   : > { %14156 = vst [vmem:[#allocation30_spill] sm:$0xff] %v8072_v56  ;;  %v874_v19 = vpop.xlane.xlu0 %873  ;;  %v809_v56 = vmul.f32 %v7608_v16, %v7608_v16 }
 0x16e   : > { %v1096_v47 = vadd.f32 %v1095_v30, %v809_v56  ;;  %v804_v56 = vmul.f32 %v14166_v58, %v14166_v58  ;;  %v14168_v30 = vld [vmem:[#allocation109_spill] sm:$0xff] }
 0x16f   : > { %1029 = vadd.xlane.f32.xlu2 %v1028_v1  ;;  %v808_v1 = vmul.f32 %v14163_v53, %v14163_v53  ;;  %v1186_v53 = vmul.f32 0.0051020407, %v874_v19 }
 0x170   : > { %1021 = vadd.xlane.f32.xlu1 %v1020_v41  ;;  %v807_v41 = vmul.f32 %v7615_v42, %v7615_v42  ;;  %v1083_v42 = vsel %vm378_vm0, %v804_v56, 0.0  ;;  %v805_v56 = vmul.f32 %v7622_v59, %v7622_v59 }
 0x171   : > { %1033 = vadd.xlane.f32.xlu0 %v1032_v57  ;;  %v1091_v16 = vsel %vm378_vm0, %v808_v1, 0.0 }
 0x172   : > { %v8084_v11 = vpop.xlane.xlu2 %893  ;;  %v1092_v39 = vadd.f32 %v1091_v16, %v807_v41  ;;  %v1258_v41 = vmul.f32 %v8104_v18, %v8104_v18 }
 0x173   : > { %14160 = vst [vmem:[#allocation31_spill] sm:$0xff] %v8084_v11  ;;  %v8086_v7 = vpop.xlane.xlu1 %889  ;;  %v8126_v11 = vmul.f32 0.0051020407, %v14172_v63 }
 0x174   : > { %14161 = vst [vmem:[#allocation32_spill] sm:$0xff] %v8086_v7  ;;  %v8088_v45 = vpop.xlane.xlu0 %885 }
 0x175   : > { %14162 = vst [vmem:[#allocation33_spill] sm:$0xff] %v8088_v45  ;;  %v800_v45 = vmul.f32 %v14170_v20, %v14170_v20  ;;  %v14173_v20 = vld [vmem:[#allocation87_spill] sm:$0xff] }
 0x176   : > { %v8132_v29 = vmul.f32 0.0051020407, %v14173_v20 }
 0x177   : > { %1025 = vadd.xlane.f32.xlu2 %v1024_v48  ;;  %v803_v48 = vmul.f32 %v14168_v30, %v14168_v30  ;;  %v14171_v30 = vld [vmem:[#allocation117_spill] sm:$0xff]  ;;  %v1075_v24 = vsel %vm378_vm0, %v800_v45, 0.0 }
 0x178   : > { %1097 = vadd.xlane.f32.xlu1 %v1096_v47  ;;  %v806_v19 = vmul.f32 %v14171_v30, %v14171_v30  ;;  %v1257_v30 = vmul.f32 %v8126_v11, %v8126_v11 }
 0x179   : > { %1093 = vadd.xlane.f32.xlu0 %v1092_v39  ;;  %v1084_v16 = vadd.f32 %v1083_v42, %v803_v48  ;;  %v14169_v39 = vld [vmem:[#allocation111_spill] sm:$0xff]  ;;  %v1185_v42 = vmul.f32 0.0051020407, %v8049_v40 }
 0x17a   : > { %v8095_v57 = vpop.xlane.xlu2 %905  ;;  %v799_v58 = vmul.f32 %v14169_v39, %v14169_v39  ;;  %v1087_v48 = vsel %vm378_vm0, %v806_v19, 0.0  ;;  %v14174_v40 = vld [vmem:[#allocation107_spill] sm:$0xff]  ;;  %v14176_v19 = vld [vmem:[#allocation97_spill] sm:$0xff] }
 0x17b   : > { %v8097_v51 = vpop.xlane.xlu1 %901  ;;  %v1088_v54 = vadd.f32 %v1087_v48, %v805_v56  ;;  %v798_v48 = vmul.f32 %v14176_v19, %v14176_v19  ;;  %v14178_v19 = vld [vmem:[#allocation101_spill] sm:$0xff] }
 0x17c   : > { %14164 = vst [vmem:[#allocation34_spill] sm:$0xff] %v8097_v51  ;;  %v8099_v61 = vpop.xlane.xlu0 %897  ;;  %v1076_v39 = vadd.f32 %v1075_v24, %v799_v58  ;;  %v802_v24 = vmul.f32 %v14174_v40, %v14174_v40  ;;  %v14175_v58 = vld [vmem:[#allocation110_spill] sm:$0xff]  ;;  %v8159_v40 = vmul.f32 0.0051020407, %v7673_v13  ;;  %v795_v17 = vmul.f32 %v14178_v19, %v14178_v19 }
 0x17d   : > { %14165 = vst [vmem:[#allocation35_spill] sm:$0xff] %v8099_v61  ;;  %v1330_v61 = vsub.f32 %v1186_v53, %v1258_v41  ;;  %v1183_v41 = vmul.f32 0.0051020407, %v8053_v60  ;;  %v801_v56 = vmul.f32 %v14175_v58, %v14175_v58  ;;  %v1184_v19 = vmul.f32 0.0051020407, %v8051_v49 }
 0x17e   : > { %v1079_v60 = vsel %vm378_vm0, %v802_v24, 0.0 }
 0x17f   : > { %1085 = vadd.xlane.f32.xlu2 %v1084_v16  ;;  %v8138_v63 = vadd.f32 1e-05, %v1330_v61  ;;  %v1329_v16 = vsub.f32 %v1185_v42, %v1257_v30  ;;  %v1255_v61 = vmul.f32 %v8132_v29, %v8132_v29  ;;  %v1080_v42 = vadd.f32 %v1079_v60, %v801_v56 }
 0x180   : > { %1077 = vadd.xlane.f32.xlu1 %v1076_v39  ;;  %v14177_v39 = vld [vmem:[#allocation100_spill] sm:$0xff]  ;;  %v1071_v30 = vsel %vm378_vm0, %v798_v48, 0.0  ;;  %v14181_v48 = vld [vmem:[#allocation86_spill] sm:$0xff] }
 0x181   : > { %1089 = vadd.xlane.f32.xlu0 %v1088_v54  ;;  %v797_v54 = vmul.f32 %v14177_v39, %v14177_v39  ;;  %6310 = vrsqrt.f32 %v8138_v63  ;;  %v1327_v20 = vsub.f32 %v1183_v41, %v1255_v61  ;;  %v8155_v55 = vadd.f32 1e-05, %v1329_v16  ;;  %v14180_v39 = vld [vmem:[#allocation98_spill] sm:$0xff] }
 0x182   : > { %v8109_v47 = vpop.xlane.xlu2 %917  ;;  %v796_v41 = vmul.f32 %v14180_v39, %v14180_v39  ;;  %v8172_v13 = vmul.f32 0.0051020407, %v14181_v48  ;;  %vm1615_vm1 = vweird.f32 %v8138_v63 }
 0x183   : > { %v8111_v1 = vpop.xlane.xlu1 %913  ;;  %v1072_v58 = vadd.f32 %v1071_v30, %v797_v54  ;;  %v8167_v24 = vadd.f32 1e-05, %v1327_v20  ;;  %6312 = vrsqrt.f32 %v8155_v55  ;;  %v6606_v30 = vmov 0  }
 0x184   : > { %v8113_v7 = vpop.xlane.xlu0 %909  ;;  %v1067_v54 = vsel %vm378_vm0, %v796_v41, 0.0  ;;  %6307 = vset.pattern.permute.xlu2 %v6606_v30  ;;  %6309 = vset.pattern.permute.xlu1 %v6606_v30  ;;  %v8179_v20 = vmul.f32 0.0051020407, %v7675_v4  ;;  %v1256_v48 = vmul.f32 %v8172_v13, %v8172_v13  ;;  %vm1605_vm5 = vweird.f32 %v8155_v55 }
 0x185   : > { %6308 = vset.pattern.permute.xlu0 %v6606_v30  ;;  %6314 = vrsqrt.f32 %v8167_v24  ;;  %vm1585_vm9 = vweird.f32 %v8167_v24 }
 0x187   : > { %1081 = vadd.xlane.f32.xlu2 %v1080_v42  ;;  %v8169_v56 = vpop.eup %6310  ;;  %v1274_v42 = vmul.f32 %v8159_v40, %v8159_v40 }
 0x188   : > { %1073 = vadd.xlane.f32.xlu1 %v1072_v58  ;;  %v1068_v58 = vadd.f32 %v1067_v54, %v795_v17  ;;  %v1610_v39 = vmul.f32 %v8169_v56, %v8138_v63  ;;  %v1328_v54 = vsub.f32 %v1184_v19, %v1256_v48  ;;  %vm1616_vm2 = vweird.f32 %v8169_v56 }
 0x189   : > { %v8191_v17 = vpop.eup %6312  ;;  %vm1617_vm3 = vmor %vm1615_vm1, %vm1616_vm2 }
 0x18a   : > { %v8134_v59 = vpop.xlane.xlu2 %929  ;;  %1069 = vadd.xlane.f32.xlu0 %v1068_v58  ;;  %v1611_v49 = vmul.f32 %v8169_v56, %v1610_v39  ;;  %v8206_v58 = vmul.f32 0.0051020407, %v7652_v6  ;;  %vm1606_vm4 = vweird.f32 %v8191_v17 }
 0x18b   : > { %v926_v53 = vpop.xlane.xlu1 %925  ;;  %v8196_v10 = vpop.eup %6314  ;;  %vm1607_vm6 = vmor %vm1605_vm5, %vm1606_vm4 }
 0x18c   : > { %v8140_v45 = vpop.xlane.xlu0 %921  ;;  %v1612_v19 = vmul.f32 0.5, %v1611_v49  ;;  %v1580_v39 = vmul.f32 %v8196_v10, %v8167_v24  ;;  %v14185_v49 = vld [vmem:[#allocation77_spill] sm:$0xff]  ;;  %vm1586_vm7 = vweird.f32 %v8196_v10 }
 0x18d   : > { %vm8290_vm10 = vmor %vm1585_vm9, %vm1586_vm7 }
 0x192   : > { %v8163_v0 = vpop.xlane.xlu2 %941 }
 0x193   : > { %14179 = vst [vmem:[#allocation36_spill] sm:$0xff] %v8163_v0  ;;  %v938_v61 = vpop.xlane.xlu1 %937  ;;  %v1273_v0 = vmul.f32 %v8179_v20, %v8179_v20 }
 0x194   : > { %v1202_v16 = vmul.f32 0.0051020407, %v938_v61  ;;  %v934_v60 = vpop.xlane.xlu0 %933 }
 0x195   : > { %v1201_v61 = vmul.f32 0.0051020407, %v934_v60  ;;  %v1600_v60 = vmul.f32 %v8191_v17, %v8155_v55 }
 0x196   : > { %v1346_v41 = vsub.f32 %v1202_v16, %v1274_v42  ;;  %v8199_v16 = vmul.f32 0.0051020407, %v7650_v8  ;;  %v1199_v8 = vmul.f32 0.0051020407, %v926_v53  ;;  %v8226_v53 = vmul.f32 0.0051020407, %v14185_v49 }
 0x197   : > { %v1345_v9 = vsub.f32 %v1201_v61, %v1273_v0  ;;  %v1200_v0 = vmul.f32 0.0051020407, %v8134_v59  ;;  %v1271_v61 = vmul.f32 %v8206_v58, %v8206_v58  ;;  %v1613_v59 = vsub.f32 1.5, %v1612_v19 }
 0x198   : > { %v8194_v30 = vadd.f32 1e-05, %v1346_v41  ;;  %14183 = vst [vmem:[#allocation38_spill] sm:$0xff] %v8199_v16  ;;  %v1272_v41 = vmul.f32 %v8199_v16, %v8199_v16  ;;  %v1581_v16 = vmul.f32 %v8196_v10, %v1580_v39  ;;  %v1253_v39 = vmul.f32 %v8226_v53, %v8226_v53 }
 0x199   : > { %v8203_v42 = vadd.f32 1e-05, %v1345_v9  ;;  %v1601_v9 = vmul.f32 %v8191_v17, %v1600_v60  ;;  %14186 = vst [vmem:[#allocation40_spill] sm:$0xff] %v8226_v53  ;;  %v1343_v46 = vsub.f32 %v1199_v8, %v1271_v61 }
 0x19a   : > { %v8189_v4 = vpop.xlane.xlu2 %953  ;;  %6316 = vrsqrt.f32 %v8194_v30  ;;  %v1344_v48 = vsub.f32 %v1200_v0, %v1272_v41  ;;  %v1614_v41 = vmul.f32 %v8169_v56, %v1613_v59  ;;  %v1582_v8 = vmul.f32 0.5, %v1581_v16 }
 0x19b   : > { %14182 = vst [vmem:[#allocation37_spill] sm:$0xff] %v8189_v4  ;;  %v8208_v4 = vadd.f32 1e-05, %v1328_v54  ;;  %6318 = vrsqrt.f32 %v8203_v42  ;;  %v8229_v60 = vpop.xlane.xlu1 %949  ;;  %v1602_v37 = vmul.f32 0.5, %v1601_v9  ;;  %v8244_v9 = vadd.f32 1e-05, %v1343_v46 }
 0x19c   : > { %14187 = vst [vmem:[#allocation41_spill] sm:$0xff] %v8229_v60  ;;  %v8236_v0 = vadd.f32 1e-05, %v1344_v48  ;;  %v1325_v59 = vsub.f32 %v1181_v3, %v1253_v39  ;;  %v1618_v63 = vsel %vm1617_vm3, %v8169_v56, %v1614_v41  ;;  %v1583_v3 = vsub.f32 1.5, %v1582_v8  ;;  %v2193_v39 = vld [vmem:[%s13675_s2 + $0x70] sm:$0xff] }
 0x19d   : > { %6320 = vrsqrt.f32 %v8208_v4  ;;  %v8260_v16 = vmul.f32 %v2194_v44, %v1618_v63  ;;  %vm1775_vm11 = vweird.f32 %v8194_v30  ;;  %vm1765_vm14 = vweird.f32 %v8203_v42 }
 0x19e   : > { %6322 = vrsqrt.f32 %v8236_v0  ;;  %vm1595_vm2 = vweird.f32 %v8208_v4 }
 0x19f   : > { %6324 = vrsqrt.f32 %v8244_v9  ;;  %2760 = vperm.xlu2 %6307, %v8260_v16  }
 0x1a0   : > { %v8223_v54 = vpop.eup %6316 }
 0x1a1   : > { %v8234_v32 = vpop.eup %6318  ;;  %vm1776_vm8 = vweird.f32 %v8223_v54 }
 0x1a2   : > { %v8218_v6 = vpop.xlane.xlu2 %965  ;;  %v1760_v60 = vmul.f32 %v8234_v32, %v8203_v42  ;;  %vm1777_vm12 = vmor %vm1775_vm11, %vm1776_vm8  ;;  %vm1766_vm13 = vweird.f32 %v8234_v32  ;;  %vm1745_vm8 = vweird.f32 %v8244_v9 }
 0x1a3   : > { %14184 = vst [vmem:[#allocation39_spill] sm:$0xff] %v8218_v6  ;;  %v1770_v6 = vmul.f32 %v8223_v54, %v8194_v30  ;;  %v8240_v49 = vpop.eup %6320  ;;  %v8272_v41 = vpop.xlane.xlu1 %961  ;;  %vm1767_vm1 = vmor %vm1765_vm14, %vm1766_vm13 }
 0x1a4   : > { %v1590_v46 = vmul.f32 %v8240_v49, %v8208_v4  ;;  %v1761_v56 = vmul.f32 %v8234_v32, %v1760_v60  ;;  %14189 = vst [vmem:[#allocation43_spill] sm:$0xff] %v8272_v41  ;;  %vm1596_vm15 = vweird.f32 %v8240_v49  ;;  %v1180_v4 = vmul.f32 0.0051020407, %v8032_v31 }
 0x1a5   : > { %v1771_v19 = vmul.f32 %v8223_v54, %v1770_v6  ;;  %v1603_v6 = vsub.f32 1.5, %v1602_v37  ;;  %vm8382_vm3 = vmor %vm1595_vm2, %vm1596_vm15 }
 0x1a6   : > { %v1591_v8 = vmul.f32 %v8240_v49, %v1590_v46  ;;  %v8288_v46 = vpop.xlane.xlu0 %945 }
 0x1a7   : > { %v1772_v61 = vmul.f32 0.5, %v1771_v19  ;;  %v1604_v37 = vmul.f32 %v8191_v17, %v1603_v6  ;;  %v1584_v6 = vmul.f32 %v8196_v10, %v1583_v3  ;;  %14191 = vst [vmem:[#allocation45_spill] sm:$0xff] %v8288_v46  ;;  %v2210_v3 = vld [vmem:[%s13675_s2 + $0xf8] sm:$0xff] }
 0x1a9   : > { %v1773_v19 = vsub.f32 1.5, %v1772_v61  ;;  %v1608_v44 = vsel %vm1607_vm6, %v8191_v17, %v1604_v37  ;;  %v8277_v61 = vpop.eup %6322  ;;  %v1762_v17 = vmul.f32 0.5, %v1761_v56  ;;  %v1588_v30 = vsel %vm8290_vm10, %v8196_v10, %v1584_v6 }
 0x1aa   : > { %v8251_v48 = vpop.xlane.xlu2 %977  ;;  %v2265_v55 = vmul.f32 %v2193_v39, %v1608_v44  ;;  %v8284_v63 = vpop.eup %6324  ;;  %v1592_v44 = vmul.f32 0.5, %v1591_v8  ;;  %v1750_v24 = vmul.f32 %v8277_v61, %v8236_v0  ;;  %v1182_v8 = vmul.f32 0.0051020407, %v8028_v23 }
 0x1ab   : > { %14188 = vst [vmem:[#allocation42_spill] sm:$0xff] %v8251_v48  ;;  %v8268_v48 = vadd.f32 1e-05, %v1325_v59  ;;  %v1774_v60 = vmul.f32 %v8223_v54, %v1773_v19  ;;  %v14194_v19 = vld [vmem:[#allocation76_spill] sm:$0xff]  ;;  %v1740_v56 = vmul.f32 %v8284_v63, %v8244_v9  ;;  %v1763_v46 = vsub.f32 1.5, %v1762_v17  ;;  %v8323_v10 = vpop.xlane.xlu1 %973 }
 0x1ac   : > { %2755 = vperm.xlu1 %6309, %v2265_v55   ;;  %v8299_v39 = vmul.f32 0.0051020407, %v14194_v19  ;;  %v1593_v22 = vsub.f32 1.5, %v1592_v44  ;;  %14195 = vst [vmem:[#allocation46_spill] sm:$0xff] %v8323_v10  ;;  %v1751_v6 = vmul.f32 %v8277_v61, %v1750_v24  ;;  %v8333_v17 = vmul.f32 0.0051020407, %v7654_v35 }
 0x1ad   : > { %6326 = vrsqrt.f32 %v8268_v48  ;;  %v1778_v19 = vsel %vm1777_vm12, %v8223_v54, %v1774_v60  ;;  %v1741_v54 = vmul.f32 %v8284_v63, %v1740_v56  ;;  %v1764_v23 = vmul.f32 %v8234_v32, %v1763_v46  ;;  %v2209_v46 = vld [vmem:[%s13675_s2 + $0xf0] sm:$0xff]  ;;  %v14199_v24 = vld [vmem:[#allocation50_spill] sm:$0xff] }
 0x1ae   : > { %v8315_v41 = vmul.f32 %v2210_v3, %v1778_v19  ;;  %v1254_v51 = vmul.f32 %v8299_v39, %v8299_v39  ;;  %v8346_v56 = vmul.f32 0.0051020407, %v14199_v24  ;;  %v1198_v35 = vmul.f32 0.0051020407, %v8140_v45 }
 0x1af   : > { %v1752_v19 = vmul.f32 0.5, %v1751_v6  ;;  %v1768_v42 = vsel %vm1767_vm1, %v8234_v32, %v1764_v23  ;;  %v1594_v24 = vmul.f32 %v8240_v49, %v1593_v22  ;;  %v1270_v10 = vmul.f32 %v8333_v17, %v8333_v17  ;;  %v14204_v6 = vld [vmem:[#allocation78_spill] sm:$0xff] }
 0x1b0   : > { %2840 = vperm.xlu2 %6307, %v8315_v41   ;;  %v1326_v37 = vsub.f32 %v1182_v8, %v1254_v51  ;;  %14200 = vst [vmem:[#allocation52_spill] sm:$0xff] %v8346_v56  ;;  %v2409_v51 = vmul.f32 %v2265_v55, %v8126_v11  ;;  %v1742_v8 = vmul.f32 0.5, %v1741_v54  ;;  %v8362_v45 = vmul.f32 %v2209_v46, %v1768_v42  ;;  %v14202_v11 = vld [vmem:[#allocation51_spill] sm:$0xff] }
 0x1b1   : > { %v8365_v55 = vmul.f32 0.0051020407, %v14202_v11  ;;  %v8368_v54 = vmul.f32 0.0051020407, %v14204_v6  ;;  %v8378_v23 = vmul.f32 %v8346_v56, %v8346_v56  ;;  %v1342_v46 = vsub.f32 %v1198_v35, %v1270_v10  ;;  %v2192_v56 = vld [vmem:[%s13675_s2 + $0x68] sm:$0xff] }
 0x1b2   : > { %v8282_v59 = vpop.xlane.xlu2 %989  ;;  %2835 = vperm.xlu0 %6308, %v8362_v45   ;;  %v1753_v42 = vsub.f32 1.5, %v1752_v19  ;;  %v1743_v11 = vsub.f32 1.5, %v1742_v8  ;;  %v1598_v6 = vsel %vm8382_vm3, %v8240_v49, %v1594_v24  ;;  %v8400_v10 = vmul.f32 0.0051020407, %v7626_v34  ;;  %v14212_v49 = vld [vmem:[#allocation58_spill] sm:$0xff] }
 0x1b3   : > { %14190 = vst [vmem:[#allocation44_spill] sm:$0xff] %v8282_v59  ;;  %v2191_v59 = vld [vmem:[%s13675_s2 + $0x60] sm:$0xff]  ;;  %v8317_v53 = vpop.eup %6326  ;;  %vm1756_vm4 = vweird.f32 %v8277_v61  ;;  %v8404_v31 = vpop.xlane.xlu1 %985  ;;  %v8407_v35 = vmul.f32 0.0051020407, %v14212_v49  ;;  %vm1746_vm5 = vweird.f32 %v8284_v63  ;;  %vm1755_vm6 = vweird.f32 %v8236_v0  ;;  %v14216_v0 = vld [vmem:[#allocation59_spill] sm:$0xff] }
 0x1b4   : > { %v8321_v43 = vmul.f32 %v2191_v59, %v1588_v30  ;;  %v14197_v59 = vld [vmem:[#allocation49_spill] sm:$0xff]  ;;  %v1560_v44 = vmul.f32 %v8317_v53, %v8268_v48  ;;  %v8351_v30 = vpop.xlane.xlu0 %957  ;;  %14203 = vst [vmem:[#allocation54_spill] sm:$0xff] %v8365_v55  ;;  %v8414_v34 = vadd.f32 1e-05, %v1342_v46  ;;  %v8416_v8 = vmul.f32 %v2192_v56, %v1598_v6  ;;  %vm8418_vm7 = vmor %vm1755_vm6, %vm1756_vm4  ;;  %v14221_v6 = vld [vmem:[#allocation119_spill] sm:$0xff] }
 0x1b5   : > { %v8337_v3 = vmul.f32 0.0051020407, %v14197_v59  ;;  %14201 = vst [vmem:[#allocation53_spill] sm:$0xff] %v8351_v30  ;;  %v2337_v59 = vld [vmem:[%s13676_s3 + $0x70] sm:$0xff]  ;;  %v14210_v30 = vld [vmem:[#allocation67_spill] sm:$0xff]  ;;  %vm8438_vm9 = vmor %vm1745_vm8, %vm1746_vm5  ;;  %vm1566_vm10 = vweird.f32 %v8317_v53  ;;  %vm1565_vm11 = vweird.f32 %v8268_v48 }
 0x1b6   : > { %2745 = vperm.xlu1 %6309, %v8321_v43   ;;  %14205 = vst [vmem:[#allocation55_spill] sm:$0xff] %v8368_v54  ;;  %v1561_v32 = vmul.f32 %v8317_v53, %v1560_v44  ;;  %v2481_v44 = vsub.f32 %v2337_v59, %v2409_v51  ;;  %v1252_v51 = vmul.f32 %v8368_v54, %v8368_v54  ;;  %v8429_v46 = vmul.f32 0.0051020407, %v14216_v0  ;;  %vm1567_vm12 = vmor %vm1565_vm11, %vm1566_vm10 }
 0x1b7   : > { %14198 = vst [vmem:[#allocation48_spill] sm:$0xff] %v8337_v3  ;;  %v8374_v22 = vmul.f32 %v8337_v3, %v8337_v3  ;;  %v8449_v49 = vmul.f32 0.0051020407, %v14221_v6  ;;  %vm1735_vm2 = vweird.f32 %v8414_v34 }
 0x1b8   : > { %14206 = vst [vmem:[#allocation56_spill] sm:$0xff] %v8378_v23  ;;  %v8397_v23 = vmul.f32 0.0051020407, %v14210_v30  ;;  %v1562_v19 = vmul.f32 0.5, %v1561_v32  ;;  %v1197_v30 = vmul.f32 0.0051020407, %v8109_v47  ;;  %v1324_v59 = vsub.f32 %v1180_v4, %v1252_v51  ;;  %2750 = vperm.xlu2 %6307, %v8416_v8  }
 0x1b9   : > { %14211 = vst [vmem:[#allocation88_spill] sm:$0xff] %v8404_v31  ;;  %v2208_v32 = vld [vmem:[%s13675_s2 + $0xe8] sm:$0xff]  ;;  %v1744_v47 = vmul.f32 %v8284_v63, %v1743_v11  ;;  %v1179_v4 = vmul.f32 0.0051020407, %v8007_v21  ;;  %v2207_v11 = vld [vmem:[%s13675_s2 + $0xe0] sm:$0xff]  ;;  %v2410_v31 = vmul.f32 %v8260_v16, %v8104_v18  ;;  %v14226_v16 = vld [vmem:[#allocation68_spill] sm:$0xff] }
 0x1ba   : > { %v8330_v60 = vpop.xlane.xlu2 %1001  ;;  %14213 = vst [vmem:[#allocation99_spill] sm:$0xff] %v8407_v35  ;;  %v1251_v56 = vmul.f32 %v8397_v23, %v8397_v23  ;;  %v1563_v51 = vsub.f32 1.5, %v1562_v19  ;;  %v8466_v19 = vmul.f32 %v8365_v55, %v8365_v55  ;;  %v8468_v24 = vadd.f32 1e-05, %v1324_v59 }
 0x1bb   : > { %14196 = vst [vmem:[#allocation47_spill] sm:$0xff] %v8330_v60  ;;  %v8360_v60 = vadd.f32 1e-05, %v1326_v37  ;;  %v1754_v37 = vmul.f32 %v8277_v61, %v1753_v42  ;;  %v1748_v0 = vsel %vm8438_vm9, %v8284_v63, %v1744_v47  ;;  %v2338_v63 = vld [vmem:[%s13676_s3 + $0x78] sm:$0xff]  ;;  %v14224_v47 = vld [vmem:[#allocation60_spill] sm:$0xff] }
 0x1bc   : > { %14217 = vst [vmem:[#allocation63_spill] sm:$0xff] %v8429_v46  ;;  %v8442_v42 = vpop.xlane.xlu0 %969  ;;  %v8479_v18 = vmul.f32 0.0051020407, %v14224_v47  ;;  %v1323_v59 = vsub.f32 %v1179_v4, %v1251_v56  ;;  %v1564_v6 = vmul.f32 %v8317_v53, %v1563_v51  ;;  %v8504_v47 = vpop.xlane.xlu1 %997  ;;  %v2426_v51 = vmul.f32 %v8315_v41, %v8159_v40  ;;  %v2189_v40 = vld [vmem:[%s13675_s2 + $0x50] sm:$0xff]  ;;  %v2354_v41 = vld [vmem:[%s13676_s3 + $0xf8] sm:$0xff] }
 0x1bd   : > { %6328 = vrsqrt.f32 %v8360_v60  ;;  %14220 = vst [vmem:[#allocation91_spill] sm:$0xff] %v8442_v42  ;;  %v1758_v21 = vsel %vm8418_vm7, %v8277_v61, %v1754_v37  ;;  %v1195_v61 = vmul.f32 0.0051020407, %v8113_v7  ;;  %v8471_v37 = vmul.f32 %v2207_v11, %v1748_v0  ;;  %v14230_v0 = vld [vmem:[#allocation94_spill] sm:$0xff] }
 0x1be   : > { %3403 = vperm.xlu1 %6309, %v2481_v44   ;;  %v1269_v44 = vmul.f32 %v8400_v10, %v8400_v10  ;;  %14222 = vst [vmem:[#allocation102_spill] sm:$0xff] %v8449_v49  ;;  %6330 = vrsqrt.f32 %v8414_v34  ;;  %v8462_v54 = vmul.f32 %v2208_v32, %v1758_v21  ;;  %v8482_v32 = vmul.f32 0.0051020407, %v14226_v16 }
 0x1bf   : > { %14225 = vst [vmem:[#allocation89_spill] sm:$0xff] %v8479_v18  ;;  %v1267_v7 = vmul.f32 %v8449_v49, %v8449_v49  ;;  %v8497_v21 = vmul.f32 %v8407_v35, %v8407_v35  ;;  %v8500_v56 = vmul.f32 0.0051020407, %v14230_v0  ;;  %v2482_v16 = vsub.f32 %v2338_v63, %v2410_v31  ;;  %v14234_v63 = vld [vmem:[#allocation95_spill] sm:$0xff]  ;;  %v14242_v49 = vld [vmem:[#allocation105_spill] sm:$0xff] }
 0x1c0   : > { %v1341_v42 = vsub.f32 %v1197_v30, %v1269_v44  ;;  %14227 = vst [vmem:[#allocation80_spill] sm:$0xff] %v8482_v32  ;;  %v14228_v44 = vld [vmem:[#allocation69_spill] sm:$0xff]  ;;  %2830 = vperm.xlu0 %6308, %v8462_v54   ;;  %6332 = vrsqrt.f32 %v8468_v24  ;;  %v8522_v31 = vmul.f32 %v8482_v32, %v8482_v32  ;;  %v8524_v48 = vadd.f32 1e-05, %v1323_v59 }
 0x1c1   : > { %v8485_v9 = vmul.f32 0.0051020407, %v14228_v44  ;;  %14231 = vst [vmem:[#allocation92_spill] sm:$0xff] %v8500_v56  ;;  %v1339_v44 = vsub.f32 %v1195_v61, %v1267_v7  ;;  %3408 = vperm.xlu2 %6307, %v2482_v16   ;;  %v8539_v7 = vmul.f32 0.0051020407, %v14234_v63  ;;  %v1568_v0 = vsel %vm1567_vm12, %v8317_v53, %v1564_v6 }
 0x1c2   : > { %v8394_v3 = vpop.xlane.xlu2 %1013  ;;  %v8502_v4 = vadd.f32 1e-05, %v1341_v42  ;;  %14232 = vst [vmem:[#allocation83_spill] sm:$0xff] %v8504_v47  ;;  %v8518_v42 = vmul.f32 %v8479_v18, %v8479_v18  ;;  %v8545_v16 = vmul.f32 %v8500_v56, %v8500_v56  ;;  %v14237_v18 = vld [vmem:[#allocation103_spill] sm:$0xff]  ;;  %v2425_v47 = vmul.f32 %v8362_v45, %v8179_v20  ;;  %v14240_v56 = vld [vmem:[#allocation104_spill] sm:$0xff] }
 0x1c3   : > { %14209 = vst [vmem:[#allocation57_spill] sm:$0xff] %v8394_v3  ;;  %v8457_v3 = vpop.eup %6328  ;;  %v8536_v61 = vmul.f32 %v8485_v9, %v8485_v9  ;;  %v8555_v63 = vadd.f32 1e-05, %v1339_v44  ;;  %v8559_v53 = vmul.f32 %v2189_v40, %v1568_v0  ;;  %v2498_v6 = vsub.f32 %v2354_v41, %v2426_v51  ;;  %v14244_v20 = vld [vmem:[#allocation112_spill] sm:$0xff]  ;;  %v14246_v40 = vld [vmem:[#allocation113_spill] sm:$0xff]  ;;  %v14248_v0 = vld [vmem:[#allocation114_spill] sm:$0xff] }
 0x1c4   : > { %14229 = vst [vmem:[#allocation90_spill] sm:$0xff] %v8485_v9  ;;  %v1570_v11 = vmul.f32 %v8457_v3, %v8360_v60  ;;  %v8510_v55 = vpop.eup %6330  ;;  %6334 = vrsqrt.f32 %v8502_v4  ;;  %v8553_v35 = vpop.xlane.xlu0 %981  ;;  %v8565_v9 = vmul.f32 0.0051020407, %v14240_v56  ;;  %v8568_v32 = vmul.f32 0.0051020407, %v14242_v49 }
 0x1c5   : > { %14235 = vst [vmem:[#allocation79_spill] sm:$0xff] %v8539_v7  ;;  %v8571_v45 = vmul.f32 0.0051020407, %v14244_v20  ;;  %6336 = vrsqrt.f32 %v8524_v48  ;;  %v8578_v51 = vmul.f32 %v8539_v7, %v8539_v7  ;;  %v8581_v41 = vmul.f32 0.0051020407, %v14246_v40 }
 0x1c6   : > { %2825 = vperm.xlu1 %6309, %v8471_v37   ;;  %v1571_v59 = vmul.f32 %v8457_v3, %v1570_v11  ;;  %14236 = vst [vmem:[#allocation81_spill] sm:$0xff] %v8545_v16  ;;  %v1730_v11 = vmul.f32 %v8510_v55, %v8414_v34  ;;  %v8574_v44 = vpop.eup %6332  ;;  %v8584_v56 = vmul.f32 0.0051020407, %v14248_v0  ;;  %v14251_v16 = vld [vmem:[#allocation118_spill] sm:$0xff]  ;;  %v8597_v7 = vmul.f32 0.0051020407, %v7671_v52 }
 0x1c7   : > { %14239 = vst [vmem:[#allocation82_spill] sm:$0xff] %v8553_v35  ;;  %6338 = vrsqrt.f32 %v8555_v63  ;;  %v2407_v0 = vmul.f32 %v8321_v43, %v8132_v29  ;;  %v8613_v52 = vmul.f32 %v8568_v32, %v8568_v32  ;;  %v2336_v43 = vld [vmem:[%s13676_s3 + $0x68] sm:$0xff]  ;;  %v2335_v29 = vld [vmem:[%s13676_s3 + $0x60] sm:$0xff]  ;;  %vm1576_vm13 = vweird.f32 %v8457_v3 }
 0x1c8   : > { %14241 = vst [vmem:[#allocation84_spill] sm:$0xff] %v8565_v9  ;;  %v1572_v35 = vmul.f32 0.5, %v1571_v59  ;;  %2735 = vperm.xlu0 %6308, %v8559_v53   ;;  %v1731_v59 = vmul.f32 %v8510_v55, %v1730_v11  ;;  %v1550_v11 = vmul.f32 %v8574_v44, %v8468_v24  ;;  %vm1575_vm14 = vweird.f32 %v8360_v60 }
 0x1c9   : > { %14243 = vst [vmem:[#allocation73_spill] sm:$0xff] %v8568_v32  ;;  %vm8695_vm15 = vmor %vm1575_vm14, %vm1576_vm13  ;;  %vm1736_vm1 = vweird.f32 %v8510_v55  ;;  %v8747_v34 = vmul.f32 0.0051020407, %v7757_v62  ;;  %vm1556_vm4 = vweird.f32 %v8574_v44  ;;  %vm1555_vm5 = vweird.f32 %v8468_v24 }
 0x1ca   : > { %v8476_v30 = vpop.xlane.xlu2 %1061  ;;  %14245 = vst [vmem:[#allocation72_spill] sm:$0xff] %v8571_v45  ;;  %vm1737_vm3 = vmor %vm1735_vm2, %vm1736_vm1  ;;  %vm1725_vm9 = vweird.f32 %v8502_v4  ;;  %vm1545_vm10 = vweird.f32 %v8524_v48  ;;  %vm1705_vm14 = vweird.f32 %v8555_v63 }
 0x1cb   : > { %14223 = vst [vmem:[#allocation66_spill] sm:$0xff] %v8476_v30  ;;  %v8514_v30 = vmul.f32 %v8429_v46, %v8429_v46  ;;  %v8548_v46 = vmul.f32 0.0051020407, %v14237_v18  ;;  %v2353_v18 = vld [vmem:[%s13676_s3 + $0xf0] sm:$0xff]  ;;  %vm1557_vm8 = vmor %vm1555_vm5, %vm1556_vm4 }
 0x1cc   : > { %14247 = vst [vmem:[#allocation62_spill] sm:$0xff] %v8581_v41  ;;  %v2497_v40 = vsub.f32 %v2353_v18, %v2425_v47  ;;  %v8616_v47 = vmul.f32 0.0051020407, %v7692_v5  ;;  %v8634_v5 = vmul.f32 %v8581_v41, %v8581_v41  ;;  %v8638_v18 = vmul.f32 %v8584_v56, %v8584_v56 }
 0x1cd   : > { %14233 = vst [vmem:[#allocation93_spill] sm:$0xff] %v8514_v30  ;;  %v8591_v20 = vmul.f32 %v8548_v46, %v8548_v46  ;;  %v8594_v30 = vmul.f32 0.0051020407, %v14251_v16  ;;  %v8609_v16 = vmul.f32 %v8565_v9, %v8565_v9  ;;  %v8646_v9 = vmul.f32 %v8597_v7, %v8597_v7 }
 0x1ce   : > { %14238 = vst [vmem:[#allocation70_spill] sm:$0xff] %v8548_v46  ;;  %3488 = vperm.xlu1 %6309, %v2498_v6   ;;  %v2408_v6 = vmul.f32 %v8416_v8, %v8172_v13  ;;  %v8620_v13 = vpop.xlane.xlu1 %1009  ;;  %3483 = vperm.xlu2 %6307, %v2497_v40   ;;  %v8630_v8 = vmul.f32 %v8571_v45, %v8571_v45  ;;  %v8649_v46 = vmul.f32 0.0051020407, %v7694_v26  ;;  %v8652_v45 = vmul.f32 0.0051020407, %v7696_v12 }
 0x1cf   : > { %14249 = vst [vmem:[#allocation71_spill] sm:$0xff] %v8584_v56  ;;  %v1268_v40 = vmul.f32 %v8594_v30, %v8594_v30  ;;  %v8655_v41 = vmul.f32 0.0051020407, %v7713_v14  ;;  %v1732_v56 = vmul.f32 0.5, %v1731_v59  ;;  %v8670_v14 = vmul.f32 0.0051020407, %v7715_v38 }
 0x1d0   : > { %14252 = vst [vmem:[#allocation65_spill] sm:$0xff] %v8597_v7  ;;  %v1551_v7 = vmul.f32 %v8574_v44, %v1550_v11  ;;  %v8678_v11 = vmul.f32 %v8649_v46, %v8649_v46  ;;  %v1178_v38 = vmul.f32 0.0051020407, %v8009_v33 }
 0x1d1   : > { %14253 = vst [vmem:[#allocation74_spill] sm:$0xff] %v8609_v16  ;;  %v2479_v16 = vsub.f32 %v2335_v29, %v2407_v0  ;;  %v8688_v29 = vmul.f32 %v8655_v41, %v8655_v41 }
 0x1d2   : > { %v8587_v49 = vpop.xlane.xlu2 %1057  ;;  %14254 = vst [vmem:[#allocation61_spill] sm:$0xff] %v8613_v52  ;;  %v8659_v52 = vmul.f32 %v8616_v47, %v8616_v47  ;;  %v1552_v60 = vmul.f32 0.5, %v1551_v7 }
 0x1d3   : > { %14250 = vst [vmem:[#allocation75_spill] sm:$0xff] %v8587_v49  ;;  %v8605_v49 = vpop.eup %6334 }
 0x1d4   : > { %14255 = vst [vmem:[#allocation115_spill] sm:$0xff] %v8616_v47  ;;  %v8640_v32 = vpop.eup %6336  ;;  %v1720_v26 = vmul.f32 %v8605_v49, %v8502_v4  ;;  %vm1726_vm6 = vweird.f32 %v8605_v49 }
 0x1d5   : > { %14256 = vst [vmem:[#allocation64_spill] sm:$0xff] %v8620_v13  ;;  %v1573_v13 = vsub.f32 1.5, %v1572_v35  ;;  %v2480_v35 = vsub.f32 %v2336_v43, %v2408_v6  ;;  %v8667_v12 = vpop.eup %6338  ;;  %v1540_v59 = vmul.f32 %v8640_v32, %v8524_v48  ;;  %v1196_v6 = vmul.f32 0.0051020407, %v8111_v1  ;;  %vm1727_vm11 = vmor %vm1725_vm9, %vm1726_vm6 }
 0x1d6   : > { %14257 = vst [vmem:[#allocation116_spill] sm:$0xff] %v8646_v9  ;;  %v8665_v9 = vpop.xlane.xlu0 %993  ;;  %3393 = vperm.xlu1 %6309, %v2479_v16   ;;  %v8682_v43 = vmul.f32 %v8652_v45, %v8652_v45  ;;  %v8691_v1 = vmul.f32 0.0051020407, %v7717_v2  ;;  %v1700_v47 = vmul.f32 %v8667_v12, %v8555_v63  ;;  %v2351_v2 = vld [vmem:[%s13676_s3 + $0xe0] sm:$0xff]  ;;  %v8731_v16 = vpop.xlane.xlu1 %1065  ;;  %vm1546_vm7 = vweird.f32 %v8640_v32 }
 0x1d7   : > { %14258 = vst [vmem:[#allocation106_spill] sm:$0xff] %v8649_v46  ;;  %3398 = vperm.xlu0 %6308, %v2480_v35   ;;  %v1574_v0 = vmul.f32 %v8457_v3, %v1573_v13  ;;  %v1733_v13 = vsub.f32 1.5, %v1732_v56  ;;  %v2423_v35 = vmul.f32 %v8471_v37, %v8206_v58  ;;  %v2190_v58 = vld [vmem:[%s13675_s2 + $0x58] sm:$0xff]  ;;  %v8717_v37 = vmul.f32 %v8670_v14, %v8670_v14  ;;  %vm1547_vm12 = vmor %vm1545_vm10, %vm1546_vm7  ;;  %v2203_v63 = vld [vmem:[%s13675_s2 + $0xc0] sm:$0xff] }
 0x1d8   : > { %14259 = vst [vmem:[#allocation96_spill] sm:$0xff] %v8652_v45  ;;  %v1721_v45 = vmul.f32 %v8605_v49, %v1720_v26  ;;  %v1541_v7 = vmul.f32 %v8640_v32, %v1540_v59  ;;  %v1340_v56 = vsub.f32 %v1196_v6, %v1268_v40  ;;  %v8722_v26 = vmul.f32 0.0051020407, %v7734_v25  ;;  %v2206_v25 = vld [vmem:[%s13675_s2 + $0xd8] sm:$0xff] }
 0x1d9   : > { %14260 = vst [vmem:[#allocation109_spill] sm:$0xff] %v8655_v41  ;;  %v1578_v46 = vsel %vm8695_vm15, %v8457_v3, %v1574_v0  ;;  %v8725_v41 = vmul.f32 0.0051020407, %v7736_v50  ;;  %v8728_v3 = vmul.f32 0.0051020407, %v7738_v27  ;;  %v1322_v0 = vsub.f32 %v1178_v38, %v8522_v31 }
 0x1da   : > { %14261 = vst [vmem:[#allocation111_spill] sm:$0xff] %v8670_v14  ;;  %v8701_v33 = vpop.xlane.xlu2 %1049  ;;  %v2495_v14 = vsub.f32 %v2351_v2, %v2423_v35  ;;  %v8734_v59 = vmul.f32 %v2190_v58, %v1578_v46  ;;  %v1734_v40 = vmul.f32 %v8510_v55, %v1733_v13  ;;  %v8741_v50 = vmul.f32 0.0051020407, %v7755_v15 }
 0x1db   : > { %14262 = vst [vmem:[#allocation108_spill] sm:$0xff] %v8691_v1  ;;  %v1553_v27 = vsub.f32 1.5, %v1552_v60  ;;  %v1722_v6 = vmul.f32 0.5, %v1721_v45  ;;  %v1701_v31 = vmul.f32 %v8667_v12, %v1700_v47  ;;  %v1542_v46 = vmul.f32 0.5, %v1541_v7 }
 0x1dc   : > { %14265 = vst [vmem:[#allocation117_spill] sm:$0xff] %v8701_v33  ;;  %v8749_v38 = vadd.f32 1e-05, %v1340_v56  ;;  %2740 = vperm.xlu2 %6307, %v8734_v59   ;;  %v1738_v13 = vsel %vm1737_vm3, %v8510_v55, %v1734_v40  ;;  %v8755_v15 = vmul.f32 %v8691_v1, %v8691_v1  ;;  %v8759_v45 = vmul.f32 %v8722_v26, %v8722_v26  ;;  %v14281_v1 = vld [vmem:[#allocation121_spill] sm:$0xff] }
 0x1dd   : > { %14266 = vst [vmem:[#allocation85_spill] sm:$0xff] %v8722_v26  ;;  %v1194_v47 = vmul.f32 0.0051020407, %v8095_v57  ;;  %v8764_v35 = vmul.f32 %v2206_v25, %v1738_v13  ;;  %v8772_v55 = vmul.f32 %v8728_v3, %v8728_v3  ;;  %v8775_v60 = vmul.f32 0.0051020407, %v7759_v36 }
 0x1de   : > { %14267 = vst [vmem:[#allocation87_spill] sm:$0xff] %v8725_v41  ;;  %v8762_v62 = vpop.xlane.xlu0 %1005  ;;  %v8777_v2 = vadd.f32 1e-05, %v1322_v0  ;;  %v1723_v57 = vsub.f32 1.5, %v1722_v6  ;;  %v1702_v58 = vmul.f32 0.5, %v1701_v31  ;;  %v1554_v7 = vmul.f32 %v8574_v44, %v1553_v27  ;;  %v2188_v27 = vld [vmem:[%s13675_s2 + $0x48] sm:$0xff]  ;;  %v8812_v24 = vpop.xlane.xlu1 %1045 }
 0x1df   : > { %14268 = vst [vmem:[#allocation107_spill] sm:$0xff] %v8728_v3  ;;  %3473 = vperm.xlu0 %6308, %v2495_v14   ;;  %v8768_v14 = vmul.f32 %v8725_v41, %v8725_v41  ;;  %2820 = vperm.xlu1 %6309, %v8764_v35   ;;  %v8784_v56 = vmul.f32 %v8741_v50, %v8741_v50  ;;  %v1543_v36 = vsub.f32 1.5, %v1542_v46  ;;  %6340 = vrsqrt.f32 %v8749_v38  ;;  %v14278_v46 = vld [vmem:[#allocation120_spill] sm:$0xff] }
 0x1e0   : > { %14269 = vst [vmem:[#allocation110_spill] sm:$0xff] %v8741_v50  ;;  %v8788_v40 = vmul.f32 %v8747_v34, %v8747_v34  ;;  %v1177_v25 = vmul.f32 0.0051020407, %v8011_v28  ;;  %v1338_v6 = vsub.f32 %v1194_v47, %v8630_v8  ;;  %v8802_v31 = vmul.f32 %v8775_v60, %v8775_v60 }
 0x1e1   : > { %14270 = vst [vmem:[#allocation97_spill] sm:$0xff] %v8747_v34  ;;  %v8805_v13 = vmul.f32 0.0051020407, %v14278_v46  ;;  %6342 = vrsqrt.f32 %v8777_v2  ;;  %v1703_v28 = vsub.f32 1.5, %v1702_v58  ;;  %v1558_v8 = vsel %vm1557_vm8, %v8574_v44, %v1554_v7  ;;  %v2205_v46 = vld [vmem:[%s13675_s2 + $0xd0] sm:$0xff]  ;;  %v2187_v44 = vld [vmem:[%s13675_s2 + $0x40] sm:$0xff] }
 0x1e2   : > { %14271 = vst [vmem:[#allocation100_spill] sm:$0xff] %v8759_v45  ;;  %v8791_v0 = vpop.xlane.xlu2 %1029  ;;  %v1724_v47 = vmul.f32 %v8605_v49, %v1723_v57  ;;  %v8820_v3 = vmul.f32 0.0051020407, %v14281_v1  ;;  %v8825_v4 = vmul.f32 %v2188_v27, %v1558_v8  ;;  %v1544_v58 = vmul.f32 %v8640_v32, %v1543_v36  ;;  %v14283_v7 = vld [vmem:[#allocation34_spill] sm:$0xff] }
 0x1e3   : > { %14272 = vst [vmem:[#allocation101_spill] sm:$0xff] %v8762_v62  ;;  %v1321_v57 = vsub.f32 %v1177_v25, %v8536_v61  ;;  %v8834_v1 = vadd.f32 1e-05, %v1338_v6  ;;  %v1193_v48 = vmul.f32 0.0051020407, %v14283_v7  ;;  %v14284_v27 = vld [vmem:[#allocation122_spill] sm:$0xff]  ;;  %vm1706_vm13 = vweird.f32 %v8667_v12 }
 0x1e4   : > { %14273 = vst [vmem:[#allocation98_spill] sm:$0xff] %v8768_v14  ;;  %v1728_v26 = vsel %vm1727_vm11, %v8605_v49, %v1724_v47  ;;  %v8841_v8 = vmul.f32 0.0051020407, %v14284_v27  ;;  %v14286_v61 = vld [vmem:[#allocation123_spill] sm:$0xff]  ;;  %v1704_v47 = vmul.f32 %v8667_v12, %v1703_v28  ;;  %v8861_v34 = vmul.f32 %v8805_v13, %v8805_v13  ;;  %vm8879_vm15 = vmor %vm1705_vm14, %vm1706_vm13 }
 0x1e5   : > { %14274 = vst [vmem:[#allocation86_spill] sm:$0xff] %v8772_v55  ;;  %v8838_v41 = vpop.eup %6340  ;;  %v8845_v36 = vmul.f32 %v2205_v46, %v1728_v26  ;;  %v8849_v25 = vmul.f32 0.0051020407, %v14286_v61  ;;  %v14288_v6 = vld [vmem:[#allocation27_spill] sm:$0xff]  ;;  %v14290_v26 = vld [vmem:[#allocation124_spill] sm:$0xff]  ;;  %6344 = vrsqrt.f32 %v8834_v1  ;;  %v1337_v28 = vsub.f32 %v1193_v48, %v8634_v5  ;;  %v14296_v5 = vld [vmem:[#allocation2_spill] sm:$0xff] }
 0x1e6   : > { %14275 = vst [vmem:[#allocation77_spill] sm:$0xff] %v8775_v60  ;;  %v1548_v60 = vsel %vm1547_vm12, %v8640_v32, %v1544_v58  ;;  %v1175_v7 = vmul.f32 0.0051020407, %v14288_v6  ;;  %v8852_v62 = vpop.xlane.xlu0 %1017  ;;  %v8864_v46 = vmul.f32 0.0051020407, %v14290_v26  ;;  %v14292_v32 = vld [vmem:[#allocation125_spill] sm:$0xff]  ;;  %v1708_v6 = vsel %vm8879_vm15, %v8667_v12, %v1704_v47 }
 0x1e7   : > { %14276 = vst [vmem:[#allocation76_spill] sm:$0xff] %v8788_v40  ;;  %2730 = vperm.xlu0 %6308, %v8825_v4   ;;  %v8854_v49 = vmul.f32 %v2187_v44, %v1548_v60  ;;  %v8857_v27 = vpop.eup %6342  ;;  %v8867_v58 = vmul.f32 0.0051020407, %v14292_v32  ;;  %2815 = vperm.xlu2 %6307, %v8845_v36   ;;  %v8871_v60 = vadd.f32 1e-05, %v1321_v57  ;;  %v1710_v44 = vmul.f32 %v8838_v41, %v8749_v38  ;;  %v14298_v26 = vld [vmem:[#allocation38_spill] sm:$0xff] }
 0x1e8   : > { %14277 = vst [vmem:[#allocation49_spill] sm:$0xff] %v8791_v0  ;;  %v8889_v57 = vmul.f32 %v8820_v3, %v8820_v3  ;;  %v8892_v48 = vmul.f32 0.0051020407, %v14296_v5  ;;  %v2424_v32 = vmul.f32 %v8462_v54, %v14298_v26  ;;  %v8903_v0 = vmul.f32 %v8841_v8, %v8841_v8  ;;  %v2352_v12 = vld [vmem:[%s13676_s3 + $0xe8] sm:$0xff] }
 0x1e9   : > { %14279 = vst [vmem:[#allocation50_spill] sm:$0xff] %v8805_v13  ;;  %2725 = vperm.xlu1 %6309, %v8854_v49   ;;  %v8907_v50 = vmul.f32 %v8849_v25, %v8849_v25  ;;  %v14301_v13 = vld [vmem:[#allocation3_spill] sm:$0xff]  ;;  %v8918_v54 = vmul.f32 %v8864_v46, %v8864_v46  ;;  %v8922_v47 = vmul.f32 %v8867_v58, %v8867_v58  ;;  %6346 = vrsqrt.f32 %v8871_v60 }
 0x1ea   : > { %14280 = vst [vmem:[#allocation51_spill] sm:$0xff] %v8812_v24  ;;  %v8910_v5 = vmul.f32 0.0051020407, %v14301_v13  ;;  %v1530_v61 = vmul.f32 %v8857_v27, %v8777_v2  ;;  %v8926_v26 = vmul.f32 %v2203_v63, %v1708_v6  ;;  %v14305_v13 = vld [vmem:[#allocation4_spill] sm:$0xff]  ;;  %v14309_v63 = vld [vmem:[#allocation5_spill] sm:$0xff]  ;;  %vm1716_vm1 = vweird.f32 %v8838_v41 }
 0x1eb   : > { %14282 = vst [vmem:[#allocation78_spill] sm:$0xff] %v8820_v3  ;;  %v1319_v3 = vsub.f32 %v1175_v7, %v8374_v22  ;;  %v8932_v22 = vadd.f32 1e-05, %v1337_v28  ;;  %v1711_v7 = vmul.f32 %v8838_v41, %v1710_v44  ;;  %v8945_v6 = vmul.f32 0.0051020407, %v14309_v63  ;;  %v8950_v44 = vpop.eup %6344 }
 0x1ec   : > { %14285 = vst [vmem:[#allocation67_spill] sm:$0xff] %v8841_v8  ;;  %v2406_v28 = vmul.f32 %v8734_v59, %v8299_v39  ;;  %v14316_v8 = vld [vmem:[#allocation8_spill] sm:$0xff]  ;;  %v2422_v59 = vmul.f32 %v8764_v35, %v8333_v17  ;;  %v1690_v35 = vmul.f32 %v8950_v44, %v8834_v1  ;;  %vm1715_vm2 = vweird.f32 %v8749_v38 }
 0x1ed   : > { %14287 = vst [vmem:[#allocation58_spill] sm:$0xff] %v8849_v25  ;;  %v8929_v25 = vmul.f32 0.0051020407, %v14305_v13  ;;  %v2496_v13 = vsub.f32 %v2352_v12, %v2424_v32  ;;  %v8962_v63 = vadd.f32 1e-05, %v1319_v3  ;;  %v1531_v32 = vmul.f32 %v8857_v27, %v1530_v61  ;;  %v14318_v12 = vld [vmem:[#allocation9_spill] sm:$0xff]  ;;  %vm9071_vm3 = vmor %vm1715_vm2, %vm1716_vm1 }
 0x1ee   : > { %14289 = vst [vmem:[#allocation59_spill] sm:$0xff] %v8852_v62  ;;  %v8899_v62 = vpop.xlane.xlu2 %1025  ;;  %6348 = vrsqrt.f32 %v8932_v22  ;;  %v1712_v3 = vmul.f32 0.5, %v1711_v7  ;;  %v8988_v17 = vmul.f32 %v8945_v6, %v8945_v6  ;;  %v14325_v61 = vld [vmem:[#allocation40_spill] sm:$0xff]  ;;  %vm1536_vm4 = vweird.f32 %v8857_v27 }
 0x1ef   : > { %14291 = vst [vmem:[#allocation119_spill] sm:$0xff] %v8864_v46  ;;  %v8935_v46 = vpop.xlane.xlu1 %1041  ;;  %2805 = vperm.xlu0 %6308, %v8926_v26   ;;  %3478 = vperm.xlu2 %6307, %v2496_v13   ;;  %v2405_v7 = vmul.f32 %v8559_v53, %v14325_v61  ;;  %v8994_v13 = vpop.eup %6346  ;;  %6350 = vrsqrt.f32 %v8962_v63  ;;  %v14330_v53 = vld [vmem:[#allocation23_spill] sm:$0xff]  ;;  %vm1535_vm5 = vweird.f32 %v8777_v2  ;;  %vm1696_vm7 = vweird.f32 %v8950_v44 }
 0x1f0   : > { %14293 = vst [vmem:[#allocation60_spill] sm:$0xff] %v8867_v58  ;;  %v2334_v58 = vld [vmem:[%s13676_s3 + $0x58] sm:$0xff]  ;;  %v1173_v61 = vmul.f32 0.0051020407, %v14330_v53  ;;  %v1713_v53 = vsub.f32 1.5, %v1712_v3  ;;  %v14339_v3 = vld [vmem:[#allocation24_spill] sm:$0xff]  ;;  %vm1537_vm6 = vmor %vm1535_vm5, %vm1536_vm4  ;;  %vm1695_vm8 = vweird.f32 %v8834_v1  ;;  %vm1526_vm10 = vweird.f32 %v8994_v13 }
 0x1f1   : > { %14297 = vst [vmem:[#allocation68_spill] sm:$0xff] %v8892_v48  ;;  %v2478_v39 = vsub.f32 %v2334_v58, %v2406_v28  ;;  %v8984_v58 = vmul.f32 %v8929_v25, %v8929_v25  ;;  %vm1697_vm9 = vmor %vm1695_vm8, %vm1696_vm7  ;;  %vm1525_vm11 = vweird.f32 %v8871_v60  ;;  %vm1685_vm14 = vweird.f32 %v8932_v22 }
 0x1f2   : > { %14299 = vst [vmem:[#allocation69_spill] sm:$0xff] %v8899_v62  ;;  %vm1527_vm13 = vmor %vm1525_vm11, %vm1526_vm10  ;;  %vm1505_vm2 = vweird.f32 %v8962_v63 }
 0x1f3   : > { %14300 = vst [vmem:[#allocation94_spill] sm:$0xff] %v8907_v50  ;;  %v14312_v50 = vld [vmem:[#allocation6_spill] sm:$0xff]  ;;  %3388 = vperm.xlu1 %6309, %v2478_v39   ;;  %v2333_v39 = vld [vmem:[%s13676_s3 + $0x50] sm:$0xff] }
 0x1f4   : > { %14302 = vst [vmem:[#allocation95_spill] sm:$0xff] %v8910_v5  ;;  %v8957_v62 = vmul.f32 0.0051020407, %v14312_v50  ;;  %v14320_v50 = vld [vmem:[#allocation10_spill] sm:$0xff] }
 0x1f5   : > { %14303 = vst [vmem:[#allocation103_spill] sm:$0xff] %v8918_v54  ;;  %v8954_v54 = vmul.f32 %v8910_v5, %v8910_v5  ;;  %v8971_v5 = vmul.f32 0.0051020407, %v14318_v12 }
 0x1f6   : > { %14304 = vst [vmem:[#allocation104_spill] sm:$0xff] %v8922_v47  ;;  %v8942_v47 = vmul.f32 %v8892_v48, %v8892_v48  ;;  %v14314_v48 = vld [vmem:[#allocation7_spill] sm:$0xff]  ;;  %v8998_v28 = vmul.f32 %v8957_v62, %v8957_v62 }
 0x1f7   : > { %14306 = vst [vmem:[#allocation105_spill] sm:$0xff] %v8929_v25 }
 0x1f8   : > { %14307 = vst [vmem:[#allocation112_spill] sm:$0xff] %v8935_v46  ;;  %v8965_v46 = vmul.f32 0.0051020407, %v14316_v8  ;;  %v2350_v8 = vld [vmem:[%s13676_s3 + $0xd8] sm:$0xff] }
 0x1f9   : > { %14308 = vst [vmem:[#allocation113_spill] sm:$0xff] %v8942_v47  ;;  %v8960_v47 = vmul.f32 0.0051020407, %v14314_v48  ;;  %v8977_v48 = vpop.xlane.xlu0 %1053 }
 0x1fa   : > { %14310 = vst [vmem:[#allocation114_spill] sm:$0xff] %v8945_v6  ;;  %v1532_v6 = vmul.f32 0.5, %v1531_v32  ;;  %v2349_v32 = vld [vmem:[%s13676_s3 + $0xd0] sm:$0xff] }
 0x1fb   : > { %14311 = vst [vmem:[#allocation118_spill] sm:$0xff] %v8954_v54  ;;  %v8974_v54 = vmul.f32 0.0051020407, %v14320_v50  ;;  %v9002_v12 = vmul.f32 %v8960_v47, %v8960_v47  ;;  %v14328_v50 = vld [vmem:[#allocation11_spill] sm:$0xff] }
 0x1fc   : > { %14313 = vst [vmem:[#allocation120_spill] sm:$0xff] %v8957_v62  ;;  %v9005_v25 = vmul.f32 0.0051020407, %v14328_v50  ;;  %v2421_v62 = vmul.f32 %v8845_v36, %v8400_v10  ;;  %v9022_v50 = vmul.f32 %v8971_v5, %v8971_v5  ;;  %v14335_v10 = vld [vmem:[#allocation12_spill] sm:$0xff] }
 0x1fd   : > { %14315 = vst [vmem:[#allocation121_spill] sm:$0xff] %v8960_v47  ;;  %v9018_v47 = vmul.f32 %v8965_v46, %v8965_v46  ;;  %v9032_v36 = vmul.f32 0.0051020407, %v14335_v10  ;;  %v9045_v10 = vpop.xlane.xlu1 %1021 }
 0x1fe   : > { %14317 = vst [vmem:[#allocation34_spill] sm:$0xff] %v8965_v46  ;;  %v9037_v46 = vpop.eup %6348 }
 0x1ff   : > { %14319 = vst [vmem:[#allocation122_spill] sm:$0xff] %v8971_v5  ;;  %v14337_v5 = vld [vmem:[#allocation13_spill] sm:$0xff]  ;;  %v9052_v24 = vpop.eup %6350  ;;  %vm1686_vm12 = vweird.f32 %v9037_v46 }
 0x200   : > { %14321 = vst [vmem:[#allocation123_spill] sm:$0xff] %v8974_v54  ;;  %vm1687_vm15 = vmor %vm1685_vm14, %vm1686_vm12  ;;  %vm1506_vm1 = vweird.f32 %v9052_v24 }
 0x201   : > { %14322 = vst [vmem:[#allocation27_spill] sm:$0xff] %v8977_v48 }
 0x202   : > { %14323 = vst [vmem:[#allocation124_spill] sm:$0xff] %v8984_v58  ;;  %v2494_v58 = vsub.f32 %v2350_v8, %v2422_v59  ;;  %v1520_v59 = vmul.f32 %v8994_v13, %v8871_v60  ;;  %v1691_v8 = vmul.f32 %v8950_v44, %v1690_v35  ;;  %v14343_v35 = vld [vmem:[#allocation56_spill] sm:$0xff] }
 0x203   : > { %14324 = vst [vmem:[#allocation125_spill] sm:$0xff] %v8988_v17  ;;  %v14340_v17 = vld [vmem:[#allocation26_spill] sm:$0xff] }
 0x204   : > { %14326 = vst [vmem:[#allocation2_spill] sm:$0xff] %v8998_v28  ;;  %v9014_v28 = vpop.xlane.xlu2 %1085  ;;  %3468 = vperm.xlu0 %6308, %v2494_v58   ;;  %v1317_v58 = vsub.f32 %v1173_v61, %v14343_v35  ;;  %v1680_v61 = vmul.f32 %v9037_v46, %v8932_v22  ;;  %v9078_v35 = vpop.xlane.xlu0 %1037 }
 0x205   : > { %14327 = vst [vmem:[#allocation38_spill] sm:$0xff] %v9002_v12  ;;  %v9026_v12 = vmul.f32 %v8974_v54, %v8974_v54  ;;  %v9040_v54 = vmul.f32 0.0051020407, %v14337_v5  ;;  %v14344_v5 = vld [vmem:[#allocation35_spill] sm:$0xff] }
 0x206   : > { %14329 = vst [vmem:[#allocation3_spill] sm:$0xff] %v9005_v25  ;;  %v1192_v33 = vmul.f32 0.0051020407, %v14344_v5  ;;  %v1500_v5 = vmul.f32 %v9052_v24, %v8962_v63  ;;  %v14382_v63 = vld [vmem:[#allocation74_spill] sm:$0xff] }
 0x207   : > { %14331 = vst [vmem:[#allocation4_spill] sm:$0xff] %v9014_v28  ;;  %v2477_v28 = vsub.f32 %v2333_v39, %v2405_v7  ;;  %v1533_v7 = vsub.f32 1.5, %v1532_v6  ;;  %v2493_v39 = vsub.f32 %v2349_v32, %v2421_v62  ;;  %v9064_v6 = vmul.f32 %v9032_v36, %v9032_v36 }
 0x208   : > { %14332 = vst [vmem:[#allocation5_spill] sm:$0xff] %v9018_v47  ;;  %v9049_v47 = vmul.f32 %v9005_v25, %v9005_v25  ;;  %v1521_v62 = vmul.f32 %v8994_v13, %v1520_v59 }
 0x209   : > { %14333 = vst [vmem:[#allocation6_spill] sm:$0xff] %v9022_v50  ;;  %v1176_v50 = vmul.f32 0.0051020407, %v14340_v17  ;;  %3383 = vperm.xlu2 %6307, %v2477_v28   ;;  %v2331_v17 = vld [vmem:[%s13676_s3 + $0x40] sm:$0xff]  ;;  %v1692_v28 = vmul.f32 0.5, %v1691_v8  ;;  %3463 = vperm.xlu1 %6309, %v2493_v39   ;;  %v2204_v8 = vld [vmem:[%s13675_s2 + $0xc8] sm:$0xff] }
 0x20a   : > { %14334 = vst [vmem:[#allocation7_spill] sm:$0xff] %v9026_v12  ;;  %v1172_v12 = vmul.f32 0.0051020407, %v14339_v3  ;;  %v2403_v3 = vmul.f32 %v8854_v49, %v8397_v23  ;;  %v14348_v49 = vld [vmem:[#allocation25_spill] sm:$0xff]  ;;  %v9090_v39 = vadd.f32 1e-05, %v1317_v58  ;;  %v9105_v58 = vmul.f32 %v9040_v54, %v9040_v54 }
 0x20b   : > { %14336 = vst [vmem:[#allocation8_spill] sm:$0xff] %v9032_v36  ;;  %v1320_v32 = vsub.f32 %v1176_v50, %v8497_v21  ;;  %v14350_v21 = vld [vmem:[#allocation28_spill] sm:$0xff]  ;;  %v1693_v38 = vsub.f32 1.5, %v1692_v28 }
 0x20c   : > { %14338 = vst [vmem:[#allocation9_spill] sm:$0xff] %v9040_v54  ;;  %v1316_v23 = vsub.f32 %v1172_v12, %v8518_v42  ;;  %v2475_v42 = vsub.f32 %v2331_v17, %v2403_v3  ;;  %v1534_v12 = vmul.f32 %v8857_v27, %v1533_v7  ;;  %v1174_v50 = vmul.f32 0.0051020407, %v14350_v21  ;;  %v2186_v17 = vld [vmem:[%s13675_s2 + $0x38] sm:$0xff]  ;;  %v9101_v7 = vpop.xlane.xlu2 %1081 }
 0x20d   : > { %14341 = vst [vmem:[#allocation10_spill] sm:$0xff] %v9045_v10  ;;  %v1714_v10 = vmul.f32 %v8838_v41, %v1713_v53  ;;  %v1171_v53 = vmul.f32 0.0051020407, %v14348_v49  ;;  %v1681_v49 = vmul.f32 %v9037_v46, %v1680_v61  ;;  %v1501_v3 = vmul.f32 %v9052_v24, %v1500_v5 }
 0x20e   : > { %14342 = vst [vmem:[#allocation40_spill] sm:$0xff] %v9049_v47  ;;  %3373 = vperm.xlu0 %6308, %v2475_v42   ;;  %v9107_v2 = vadd.f32 1e-05, %v1316_v23  ;;  %v1538_v61 = vsel %vm1537_vm6, %v8857_v27, %v1534_v12  ;;  %6352 = vrsqrt.f32 %v9090_v39  ;;  %v14354_v23 = vld [vmem:[#allocation93_spill] sm:$0xff]  ;;  %v1694_v42 = vmul.f32 %v8950_v44, %v1693_v38  ;;  %v14356_v12 = vld [vmem:[#allocation14_spill] sm:$0xff] }
 0x20f   : > { %14345 = vst [vmem:[#allocation11_spill] sm:$0xff] %v9064_v6  ;;  %v1718_v59 = vsel %vm9071_vm3, %v8838_v41, %v1714_v10  ;;  %v1336_v41 = vsub.f32 %v1192_v33, %v8638_v18  ;;  %v1522_v10 = vmul.f32 0.5, %v1521_v62  ;;  %v1315_v18 = vsub.f32 %v1171_v53, %v8466_v19  ;;  %v14353_v62 = vld [vmem:[#allocation31_spill] sm:$0xff]  ;;  %v9123_v53 = vpop.xlane.xlu1 %1097  ;;  %v2202_v27 = vld [vmem:[%s13675_s2 + $0xb8] sm:$0xff]  ;;  %vm9246_vm3 = vmor %vm1505_vm2, %vm1506_vm1 }
 0x210   : > { %14349 = vst [vmem:[#allocation23_spill] sm:$0xff] %v9078_v35  ;;  %v9096_v36 = vmul.f32 %v2204_v8, %v1718_v59  ;;  %v9110_v33 = vadd.f32 1e-05, %v1320_v32  ;;  %v1191_v28 = vmul.f32 0.0051020407, %v14353_v62  ;;  %v1318_v59 = vsub.f32 %v1174_v50, %v14354_v23  ;;  %v14360_v62 = vld [vmem:[#allocation30_spill] sm:$0xff] }
 0x211   : > { %14351 = vst [vmem:[#allocation12_spill] sm:$0xff] %v9101_v7  ;;  %v9121_v19 = vadd.f32 1e-05, %v1336_v41  ;;  %v9125_v32 = vmul.f32 %v2186_v17, %v1538_v61  ;;  %v1523_v8 = vsub.f32 1.5, %v1522_v10  ;;  %v1682_v5 = vmul.f32 0.5, %v1681_v49  ;;  %v14359_v41 = vld [vmem:[#allocation29_spill] sm:$0xff] }
 0x212   : > { %14352 = vst [vmem:[#allocation13_spill] sm:$0xff] %v9105_v58  ;;  %2810 = vperm.xlu2 %6307, %v9096_v36   ;;  %v9133_v21 = vmul.f32 0.0051020407, %v14356_v12  ;;  %6354 = vrsqrt.f32 %v9107_v2  ;;  %v9136_v50 = vadd.f32 1e-05, %v1315_v18  ;;  %v1502_v1 = vmul.f32 0.5, %v1501_v3  ;;  %v9149_v18 = vpop.xlane.xlu0 %1033 }
 0x213   : > { %14355 = vst [vmem:[#allocation24_spill] sm:$0xff] %v9123_v53  ;;  %v1188_v17 = vmul.f32 0.0051020407, %v14359_v41  ;;  %2720 = vperm.xlu1 %6309, %v9125_v32   ;;  %6356 = vrsqrt.f32 %v9110_v33  ;;  %v1335_v10 = vsub.f32 %v1191_v28, %v8591_v20  ;;  %v1698_v38 = vsel %vm1697_vm9, %v8950_v44, %v1694_v42  ;;  %v14362_v12 = vld [vmem:[#allocation33_spill] sm:$0xff]  ;;  %v14363_v28 = vld [vmem:[#allocation15_spill] sm:$0xff]  ;;  %v14365_v42 = vld [vmem:[#allocation16_spill] sm:$0xff] }
 0x214   : > { %14357 = vst [vmem:[#allocation26_spill] sm:$0xff] %v9133_v21  ;;  %v9145_v49 = vadd.f32 1e-05, %v1318_v59  ;;  %v1187_v61 = vmul.f32 0.0051020407, %v14360_v62  ;;  %6358 = vrsqrt.f32 %v9121_v19  ;;  %v9151_v23 = vmul.f32 %v2202_v27, %v1698_v38  ;;  %v9156_v20 = vpop.permute.xlu2 %2760  ;;  %v9158_v44 = vpop.eup %6352  ;;  %v14367_v27 = vld [vmem:[#allocation81_spill] sm:$0xff] }
 0x215   : > { %14358 = vst [vmem:[#allocation56_spill] sm:$0xff] %v9136_v50  ;;  %v1189_v41 = vmul.f32 0.0051020407, %v14362_v12  ;;  %v1683_v7 = vsub.f32 1.5, %v1682_v5  ;;  %v1524_v3 = vmul.f32 %v8994_v13, %v1523_v8  ;;  %v9161_v59 = vmul.f32 0.0051020407, %v14363_v28 }
 0x216   : > { %14361 = vst [vmem:[#allocation35_spill] sm:$0xff] %v9149_v18  ;;  %v9164_v62 = vmul.f32 0.0051020407, %v14365_v42  ;;  %6360 = vrsqrt.f32 %v9136_v50  ;;  %v1332_v38 = vsub.f32 %v1188_v17, %v14367_v27  ;;  %2800 = vperm.xlu0 %6308, %v9151_v23   ;;  %v1503_v12 = vsub.f32 1.5, %v1502_v1  ;;  %v2185_v5 = vld [vmem:[%s13675_s2 + $0x30] sm:$0xff]  ;;  %v14369_v17 = vld [vmem:[#allocation17_spill] sm:$0xff] }
 0x217   : > { %14364 = vst [vmem:[#allocation25_spill] sm:$0xff] %v9161_v59  ;;  %v9170_v8 = vadd.f32 1e-05, %v1335_v10  ;;  %v9180_v42 = vmul.f32 %v9133_v21, %v9133_v21  ;;  %v9183_v27 = vmul.f32 0.0051020407, %v14369_v17  ;;  %6362 = vrsqrt.f32 %v9145_v49  ;;  %v14371_v10 = vld [vmem:[#allocation61_spill] sm:$0xff]  ;;  %v9207_v22 = vpop.xlane.xlu1 %1077 }
 0x218   : > { %14366 = vst [vmem:[#allocation28_spill] sm:$0xff] %v9164_v62  ;;  %v9176_v28 = vpop.eup %6354  ;;  %v1331_v60 = vsub.f32 %v1187_v61, %v8578_v51  ;;  %v1333_v53 = vsub.f32 %v1189_v41, %v14371_v10  ;;  %v1528_v54 = vsel %vm1527_vm13, %v8994_v13, %v1524_v3  ;;  %v1684_v21 = vmul.f32 %v9037_v46, %v1683_v7  ;;  %v2201_v17 = vld [vmem:[%s13675_s2 + $0xb0] sm:$0xff]  ;;  %v14391_v58 = vld [vmem:[#allocation21_spill] sm:$0xff] }
 0x219   : > { %14368 = vst [vmem:[#allocation31_spill] sm:$0xff] %v9180_v42  ;;  %v9189_v1 = vpop.eup %6356  ;;  %v1480_v18 = vmul.f32 %v9158_v44, %v9090_v39  ;;  %v9202_v51 = vadd.f32 1e-05, %v1332_v38  ;;  %v14373_v61 = vld [vmem:[#allocation32_spill] sm:$0xff]  ;;  %v9209_v13 = vmul.f32 %v2185_v5, %v1528_v54  ;;  %6364 = vrsqrt.f32 %v9170_v8 }
 0x21a   : > { %14370 = vst [vmem:[#allocation93_spill] sm:$0xff] %v9183_v27  ;;  %v9198_v42 = vpop.eup %6358  ;;  %v1190_v25 = vmul.f32 0.0051020407, %v14373_v61  ;;  %v1688_v7 = vsel %vm1687_vm15, %v9037_v46, %v1684_v21  ;;  %v1504_v41 = vmul.f32 %v9052_v24, %v1503_v12  ;;  %v9219_v38 = vmul.f32 %v9161_v59, %v9161_v59  ;;  %v14378_v59 = vld [vmem:[#allocation18_spill] sm:$0xff] }
 0x21b   : > { %14372 = vst [vmem:[#allocation14_spill] sm:$0xff] %v9202_v51  ;;  %v1470_v10 = vmul.f32 %v9176_v28, %v9107_v2  ;;  %v9223_v61 = vadd.f32 1e-05, %v1331_v60  ;;  %2715 = vperm.xlu2 %6307, %v9209_v13   ;;  %v9226_v54 = vmul.f32 %v2201_v17, %v1688_v7  ;;  %v1510_v46 = vmul.f32 %v9189_v1, %v9110_v33  ;;  %v9252_v7 = vpop.xlane.xlu0 %1093  ;;  %v2348_v17 = vld [vmem:[%s13676_s3 + $0xc8] sm:$0xff] }
 0x21c   : > { %14374 = vst [vmem:[#allocation29_spill] sm:$0xff] %v9207_v22  ;;  %v9215_v3 = vpop.eup %6360  ;;  %v9231_v21 = vadd.f32 1e-05, %v1333_v53  ;;  %v1670_v12 = vmul.f32 %v9198_v42, %v9121_v19  ;;  %v9239_v60 = vmul.f32 %v9164_v62, %v9164_v62  ;;  %6366 = vrsqrt.f32 %v9202_v51  ;;  %v9255_v22 = vpop.permute.xlu2 %2840  ;;  %v14385_v62 = vld [vmem:[#allocation19_spill] sm:$0xff] }
 0x21d   : > { %14375 = vst [vmem:[#allocation30_spill] sm:$0xff] %v9219_v38  ;;  %v9235_v5 = vpop.eup %6362  ;;  %v9242_v38 = vmul.f32 0.0051020407, %v14378_v59  ;;  %v1334_v53 = vsub.f32 %v1190_v25, %v14382_v63  ;;  %2795 = vperm.xlu1 %6309, %v9226_v54   ;;  %v9259_v59 = vmul.f32 %v9183_v27, %v9183_v27  ;;  %v9262_v35 = vmul.f32 0.0051020407, %v14385_v62  ;;  %v2183_v25 = vld [vmem:[%s13675_s2 + $0x20] sm:$0xff] }
 0x21e   : > { %14376 = vst [vmem:[#allocation33_spill] sm:$0xff] %v9223_v61  ;;  %v1481_v55 = vmul.f32 %v9158_v44, %v1480_v18  ;;  %v1508_v6 = vsel %vm9246_vm3, %v9052_v24, %v1504_v41  ;;  %v14387_v63 = vld [vmem:[#allocation20_spill] sm:$0xff]  ;;  %v1471_v40 = vmul.f32 %v9176_v28, %v1470_v10  ;;  %v1460_v27 = vmul.f32 %v9215_v3, %v9136_v50  ;;  %v2332_v10 = vld [vmem:[%s13676_s3 + $0x48] sm:$0xff]  ;;  %v14393_v50 = vld [vmem:[#allocation22_spill] sm:$0xff] }
 0x21f   : > { %14377 = vst [vmem:[#allocation15_spill] sm:$0xff] %v9239_v60  ;;  %6368 = vrsqrt.f32 %v9223_v61  ;;  %v9278_v62 = vpop.eup %6364  ;;  %v1511_v18 = vmul.f32 %v9189_v1, %v1510_v46  ;;  %v1490_v24 = vmul.f32 %v9235_v5, %v9145_v49  ;;  %v1671_v41 = vmul.f32 %v9198_v42, %v1670_v12  ;;  %v14389_v46 = vld [vmem:[#allocation55_spill] sm:$0xff] }
 0x220   : > { %14379 = vst [vmem:[#allocation16_spill] sm:$0xff] %v9242_v38  ;;  %6370 = vrsqrt.f32 %v9231_v21  ;;  %v2420_v14 = vmul.f32 %v9096_v36, %v8594_v30  ;;  %v9301_v12 = vmul.f32 %v9242_v38, %v9242_v38  ;;  %v9304_v48 = vmul.f32 0.0051020407, %v14391_v58  ;;  %v9316_v30 = vpop.xlane.xlu1 %1073 }
 0x221   : > { %14383 = vst [vmem:[#allocation81_spill] sm:$0xff] %v9252_v7  ;;  %v9272_v7 = vmul.f32 0.0051020407, %v14387_v63  ;;  %v9291_v63 = vadd.f32 1e-05, %v1334_v53  ;;  %v9309_v53 = vmul.f32 0.5, %v1481_v55  ;;  %v1491_v60 = vmul.f32 %v9235_v5, %v1490_v24 }
 0x222   : > { %14384 = vst [vmem:[#allocation17_spill] sm:$0xff] %v9259_v59  ;;  %v2404_v59 = vmul.f32 %v8825_v4, %v14389_v46  ;;  %v9307_v45 = vmul.f32 0.0051020407, %v14393_v50  ;;  %v1660_v4 = vmul.f32 %v9278_v62, %v9170_v8  ;;  %v2492_v46 = vsub.f32 %v2348_v17, %v2420_v14  ;;  %v2330_v24 = vld [vmem:[%s13676_s3 + $0x38] sm:$0xff] }
 0x223   : > { %14386 = vst [vmem:[#allocation61_spill] sm:$0xff] %v9262_v35  ;;  %v9293_v35 = vmul.f32 %v2183_v25, %v1508_v6  ;;  %v9311_v6 = vpop.eup %6366  ;;  %v1461_v25 = vmul.f32 %v9215_v3, %v1460_v27  ;;  %v9319_v58 = vmul.f32 0.5, %v1471_v40  ;;  %v1512_v38 = vmul.f32 0.5, %v1511_v18  ;;  %v14403_v18 = vld [vmem:[#allocation90_spill] sm:$0xff] }
 0x224   : > { %14388 = vst [vmem:[#allocation32_spill] sm:$0xff] %v9272_v7  ;;  %v2476_v36 = vsub.f32 %v2332_v10, %v2404_v59  ;;  %v1672_v50 = vmul.f32 0.5, %v1671_v41  ;;  %v9326_v27 = vmul.f32 %v9272_v7, %v9272_v7  ;;  %6372 = vrsqrt.f32 %v9291_v63  ;;  %v14399_v59 = vld [vmem:[#allocation80_spill] sm:$0xff] }
 0x225   : > { %14390 = vst [vmem:[#allocation18_spill] sm:$0xff] %v9301_v12  ;;  %2705 = vperm.xlu0 %6308, %v9293_v35   ;;  %v14397_v12 = vld [vmem:[#allocation37_spill] sm:$0xff]  ;;  %3458 = vperm.xlu1 %6309, %v2492_v46   ;;  %v2402_v14 = vmul.f32 %v9125_v32, %v14399_v59  ;;  %vm1515_vm4 = vweird.f32 %v9110_v33  ;;  %v1630_v41 = vmul.f32 %v9311_v6, %v9202_v51  ;;  %v14400_v10 = vld [vmem:[#allocation36_spill] sm:$0xff]  ;;  %v9345_v32 = vpop.xlane.xlu0 %1089  ;;  %v14402_v46 = vld [vmem:[#allocation102_spill] sm:$0xff]  ;;  %vm1516_vm5 = vweird.f32 %v9189_v1 }
 0x226   : > { %14392 = vst [vmem:[#allocation74_spill] sm:$0xff] %v9304_v48  ;;  %v1206_v55 = vmul.f32 0.0051020407, %v14397_v12  ;;  %3378 = vperm.xlu2 %6307, %v2476_v36   ;;  %v1203_v17 = vmul.f32 0.0051020407, %v14400_v10  ;;  %v9342_v12 = vmul.f32 0.5, %v1461_v25  ;;  %v1661_v36 = vmul.f32 %v9278_v62, %v1660_v4  ;;  %vm9396_vm10 = vmor %vm1515_vm4, %vm1516_vm5 }
 0x227   : > { %14394 = vst [vmem:[#allocation19_spill] sm:$0xff] %v9307_v45  ;;  %v9322_v45 = vpop.eup %6368  ;;  %v2419_v59 = vmul.f32 %v8926_v26, %v14402_v46  ;;  %v2401_v7 = vmul.f32 %v9209_v13, %v14403_v18  ;;  %v1673_v51 = vsub.f32 1.5, %v1672_v50  ;;  %v2347_v25 = vld [vmem:[%s13676_s3 + $0xc0] sm:$0xff]  ;;  %v2329_v4 = vld [vmem:[%s13676_s3 + $0x30] sm:$0xff]  ;;  %v1492_v26 = vmul.f32 0.5, %v1491_v60 }
 0x228   : > { %14395 = vst [vmem:[#allocation20_spill] sm:$0xff] %v9316_v30  ;;  %v9332_v40 = vpop.eup %6370  ;;  %v9351_v30 = vpop.permute.xlu2 %2750  ;;  %v1350_v47 = vsub.f32 %v1206_v55, %v8659_v52  ;;  %v1620_v13 = vmul.f32 %v9322_v45, %v9223_v61  ;;  %v2474_v46 = vsub.f32 %v2330_v24, %v2402_v14  ;;  %v1631_v52 = vmul.f32 %v9311_v6, %v1630_v41  ;;  %v6454_v55 = vld [vmem:[%s13673_s0 + $0xf8] sm:$0xff] }
 0x229   : > { %14396 = vst [vmem:[#allocation55_spill] sm:$0xff] %v9319_v58  ;;  %v1640_v18 = vmul.f32 %v9332_v40, %v9231_v21  ;;  %v3074_v10 = vmul.f32 %v6454_v55, %v9156_v20  ;;  %vm1486_vm6 = vweird.f32 %v9158_v44  ;;  %v2491_v14 = vsub.f32 %v2347_v25, %v2419_v59  ;;  %v9376_v58 = vpop.permute.xlu1 %2755  ;;  %v2570_v41 = vld [vmem:[%s13674_s1 + $0xf8] sm:$0xff]  ;;  %v14408_v25 = vld [vmem:[#allocation62_spill] sm:$0xff] }
 0x22a   : > { %14398 = vst [vmem:[#allocation21_spill] sm:$0xff] %v9326_v27  ;;  %v1513_v27 = vsub.f32 1.5, %v1512_v38  ;;  %v14405_v38 = vld [vmem:[#allocation116_spill] sm:$0xff]  ;;  %v9372_v60 = vpop.eup %6372  ;;  %v2473_v24 = vsub.f32 %v2329_v4, %v2401_v7  ;;  %vm1495_vm7 = vweird.f32 %v9145_v49  ;;  %vm1676_vm8 = vweird.f32 %v9198_v42  ;;  %v14414_v55 = vld [vmem:[#allocation45_spill] sm:$0xff] }
 0x22b   : > { %14401 = vst [vmem:[#allocation22_spill] sm:$0xff] %v9345_v32  ;;  %v1347_v50 = vsub.f32 %v1203_v17, %v14405_v38  ;;  %v1662_v32 = vmul.f32 0.5, %v1661_v36  ;;  %v9383_v17 = vadd.f32 1e-05, %v1350_v47  ;;  %v1674_v36 = vmul.f32 %v9198_v42, %v1673_v51 }
 0x22c   : > { %14404 = vst [vmem:[#allocation37_spill] sm:$0xff] %v9351_v30  ;;  %v14406_v30 = vld [vmem:[#allocation41_spill] sm:$0xff]  ;;  %v1514_v38 = vmul.f32 %v9189_v1, %v1513_v27  ;;  %vm1485_vm9 = vweird.f32 %v9090_v39  ;;  %v1621_v7 = vmul.f32 %v9322_v45, %v1620_v13  ;;  %v1641_v59 = vmul.f32 %v9332_v40, %v1640_v18 }
 0x22d   : > { %v1205_v61 = vmul.f32 0.0051020407, %v14406_v30  ;;  %3368 = vperm.xlu0 %6308, %v2474_v46   ;;  %14407 = vst [vmem:[#allocation80_spill] sm:$0xff] %v9383_v17  ;;  %v1493_v30 = vsub.f32 1.5, %v1492_v26  ;;  %3363 = vperm.xlu1 %6309, %v2473_v24   ;;  %v2417_v4 = vmul.f32 %v9226_v54, %v14408_v25  ;;  %v1650_v51 = vmul.f32 %v9372_v60, %v9291_v63  ;;  %v2345_v26 = vld [vmem:[%s13676_s3 + $0xb0] sm:$0xff]  ;;  %vm9485_vm3 = vmor %vm1485_vm9, %vm1486_vm6 }
 0x22e   : > { %3453 = vperm.xlu2 %6307, %v2491_v14   ;;  %vm1675_vm11 = vweird.f32 %v9121_v19  ;;  %v9403_v27 = vadd.f32 1e-05, %v1347_v50  ;;  %v3218_v54 = vadd.f32 %v3074_v10, %v2570_v41  ;;  %v1663_v18 = vsub.f32 1.5, %v1662_v32  ;;  %v2184_v32 = vld [vmem:[%s13675_s2 + $0x28] sm:$0xff]  ;;  %v9438_v41 = vpop.xlane.xlu0 %1069 }
 0x22f   : > { %vm9411_vm12 = vmor %vm1675_vm11, %vm1676_vm8  ;;  %v1349_v46 = vsub.f32 %v1205_v61, %v8678_v11  ;;  %v1204_v19 = vmul.f32 0.0051020407, %v14414_v55  ;;  %6374 = vrsqrt.f32 %v9383_v17  ;;  %v1518_v10 = vsel %vm9396_vm10, %v9189_v1, %v1514_v38  ;;  %v2200_v11 = vld [vmem:[%s13675_s2 + $0xa8] sm:$0xff]  ;;  %14416 = vst [vmem:[#allocation90_spill] sm:$0xff] %v9438_v41 }
 0x230   : > { %14411 = vst [vmem:[#allocation36_spill] sm:$0xff] %v9403_v27  ;;  %v9417_v50 = vpop.permute.xlu2 %3408  ;;  %v1678_v14 = vsel %vm9411_vm12, %v9198_v42, %v1674_v36  ;;  %vm1496_vm13 = vweird.f32 %v9235_v5  ;;  %v9436_v24 = vmul.f32 0.5, %v1631_v52  ;;  %v1642_v1 = vmul.f32 0.5, %v1641_v59 }
 0x231   : > { %v9433_v61 = vadd.f32 %v9417_v50, %v3218_v54  ;;  %v2489_v38 = vsub.f32 %v2345_v26, %v2417_v4  ;;  %v9440_v25 = vmul.f32 0.5, %v1621_v7  ;;  %v1651_v47 = vmul.f32 %v9372_v60, %v1650_v51  ;;  %v9452_v59 = vpop.permute.xlu1 %2745  ;;  %v6455_v7 = vld [vmem:[%s13673_s0 + $0xf0] sm:$0xff]  ;;  %vm9467_vm15 = vmor %vm1495_vm7, %vm1496_vm13 }
 0x232   : > { %6376 = vrsqrt.f32 %v9403_v27  ;;  %v1494_v42 = vmul.f32 %v9235_v5, %v1493_v30  ;;  %v9445_v36 = vadd.f32 1e-05, %v1349_v46  ;;  %v1348_v54 = vsub.f32 %v1204_v19, %v8682_v43  ;;  %v6456_v19 = vld [vmem:[%s13673_s0 + $0xe0] sm:$0xff] }
 0x233   : > { %14415 = vst [vmem:[#allocation102_spill] sm:$0xff] %v9433_v61  ;;  %v9448_v33 = vmul.f32 %v2184_v32, %v1518_v10  ;;  %v9450_v52 = vmul.f32 %v2200_v11, %v1678_v14  ;;  %vm1666_vm14 = vweird.f32 %v9278_v62  ;;  %v3073_v4 = vmul.f32 %v6455_v7, %v9156_v20  ;;  %v2569_v20 = vld [vmem:[%s13674_s1 + $0xf0] sm:$0xff]  ;;  %v6457_v32 = vld [vmem:[%s13673_s0 + $0xe8] sm:$0xff]  ;;  %v2182_v11 = vld [vmem:[%s13675_s2 + $0x18] sm:$0xff] }
 0x234   : > { %14417 = vst [vmem:[#allocation116_spill] sm:$0xff] %v9445_v36  ;;  %v1664_v30 = vmul.f32 %v9278_v62, %v1663_v18  ;;  %v14418_v51 = vsub.f32 1.5, %v9309_v53  ;;  %vm1665_vm1 = vweird.f32 %v9170_v8  ;;  %v1643_v55 = vsub.f32 1.5, %v1642_v1  ;;  %v2568_v8 = vld [vmem:[%s13674_s1 + $0xe8] sm:$0xff] }
 0x235   : > { %3443 = vperm.xlu0 %6308, %v2489_v38   ;;  %vm1645_vm2 = vweird.f32 %v9231_v21  ;;  %2790 = vperm.xlu1 %6309, %v9450_v52   ;;  %v9479_v49 = vpop.eup %6374  ;;  %v3071_v10 = vmul.f32 %v6456_v19, %v9376_v58  ;;  %v3072_v14 = vmul.f32 %v6457_v32, %v9376_v58  ;;  %v1498_v39 = vsel %vm9467_vm15, %v9235_v5, %v1494_v42  ;;  %vm9508_vm4 = vmor %vm1665_vm1, %vm1666_vm14  ;;  %v2567_v5 = vld [vmem:[%s13674_s1 + $0xe0] sm:$0xff]  ;;  %v14428_v7 = vld [vmem:[#allocation39_spill] sm:$0xff] }
 0x236   : > { %v1484_v43 = vmul.f32 %v9158_v44, %v14418_v51  ;;  %2710 = vperm.xlu2 %6307, %v9448_v33   ;;  %14421 = vst [vmem:[#allocation41_spill] sm:$0xff] %v9479_v49  ;;  %v9512_v38 = vmul.f32 0.5, %v1651_v47  ;;  %vm1646_vm5 = vweird.f32 %v9332_v40  ;;  %6378 = vrsqrt.f32 %v9445_v36  ;;  %v2181_v19 = vld [vmem:[%s13675_s2 + $0x10] sm:$0xff]  ;;  %v14429_v18 = vld [vmem:[#allocation43_spill] sm:$0xff] }
 0x237   : > { %v9516_v58 = vadd.f32 1e-05, %v1348_v54  ;;  %v1209_v51 = vmul.f32 0.0051020407, %v14428_v7  ;;  %v1668_v47 = vsel %vm9508_vm4, %v9278_v62, %v1664_v30  ;;  %v2199_v54 = vld [vmem:[%s13675_s2 + $0xa0] sm:$0xff]  ;;  %v3217_v32 = vadd.f32 %v3073_v4, %v2569_v20  ;;  %v2836_v30 = vpop.permute.xlu0 %2835  ;;  %v2600_v53 = vld [vmem:[%s13674_s1 + $0x1e8] sm:$0xff]  ;;  %vm9571_vm6 = vmor %vm1645_vm2, %vm1646_vm5 }
 0x238   : > { %v9524_v42 = vpop.eup %6376  ;;  %v1488_v26 = vsel %vm9485_vm3, %v9158_v44, %v1484_v43  ;;  %v1810_v7 = vmul.f32 %v9479_v49, %v9383_v17  ;;  %v1208_v13 = vmul.f32 0.0051020407, %v14429_v18  ;;  %v9542_v1 = vmul.f32 %v2182_v11, %v1498_v39  ;;  %v6458_v4 = vld [vmem:[%s13673_s0 + $0x1e8] sm:$0xff]  ;;  %v14430_v39 = vld [vmem:[#allocation53_spill] sm:$0xff] }
 0x239   : > { %14426 = vst [vmem:[#allocation62_spill] sm:$0xff] %v9516_v58  ;;  %v1644_v62 = vmul.f32 %v9332_v40, %v1643_v55  ;;  %v3721_v44 = vadd.f32 %v9417_v50, %v3217_v32  ;;  %v3104_v43 = vmul.f32 %v6458_v4, %v2836_v30  ;;  %v3215_v20 = vadd.f32 %v3071_v10, %v2567_v5  ;;  %v3404_v17 = vpop.permute.xlu1 %3403  ;;  %v9560_v50 = vpop.permute.xlu2 %3483 }
 0x23a   : > { %14427 = vst [vmem:[#allocation45_spill] sm:$0xff] %v9524_v42  ;;  %v3216_v46 = vadd.f32 %v3072_v14, %v2568_v8  ;;  %v1780_v18 = vmul.f32 %v9524_v42, %v9403_v27  ;;  %v1207_v11 = vmul.f32 0.0051020407, %v14430_v39  ;;  %v9556_v55 = vmul.f32 %v2199_v54, %v1668_v47  ;;  %v14435_v54 = vld [vmem:[#allocation44_spill] sm:$0xff] }
 0x23b   : > { %v9558_v41 = vmul.f32 %v2181_v19, %v1488_v26  ;;  %v1353_v32 = vsub.f32 %v1209_v51, %v8688_v29  ;;  %v3719_v61 = vadd.f32 %v3404_v17, %v3215_v20  ;;  %v3248_v10 = vadd.f32 %v3104_v43, %v2600_v53  ;;  %v14436_v51 = vld [vmem:[#allocation47_spill] sm:$0xff]  ;;  %v2197_v26 = vld [vmem:[%s13675_s2 + $0x90] sm:$0xff] }
 0x23c   : > { %v9563_v4 = vadd.f32 %v3404_v17, %v3216_v46  ;;  %v9565_v14 = vpop.eup %6378  ;;  %v1811_v8 = vmul.f32 %v9479_v49, %v1810_v7  ;;  %v1352_v47 = vsub.f32 %v1208_v13, %v8717_v37  ;;  %v1215_v29 = vmul.f32 0.0051020407, %v14435_v54  ;;  %v14437_v53 = vld [vmem:[#allocation72_spill] sm:$0xff] }
 0x23d   : > { %2700 = vperm.xlu0 %6308, %v9542_v1   ;;  %14432 = vst [vmem:[#allocation43_spill] sm:$0xff] %v9565_v14  ;;  %v1218_v17 = vmul.f32 0.0051020407, %v14436_v51  ;;  %2695 = vperm.xlu1 %6309, %v9558_v41   ;;  %v3865_v46 = vmax.f32 %v3721_v44, 0.0  ;;  %v1648_v21 = vsel %vm9571_vm6, %v9332_v40, %v1644_v62  ;;  %v3863_v19 = vmax.f32 %v3719_v61, 0.0  ;;  %v14438_v44 = vld [vmem:[#allocation99_spill] sm:$0xff] }
 0x23e   : > { %14431 = vst [vmem:[#allocation39_spill] sm:$0xff] %v9563_v4  ;;  %2785 = vperm.xlu2 %6307, %v9556_v55   ;;  %v9588_v37 = vadd.f32 %v9560_v50, %v3248_v10  ;;  %v1351_v7 = vsub.f32 %v1207_v11, %v8755_v15  ;;  %v2418_v43 = vmul.f32 %v9151_v23, %v14437_v53  ;;  %v9600_v62 = vadd.f32 1e-05, %v1353_v32  ;;  %v14440_v61 = vld [vmem:[#allocation83_spill] sm:$0xff]  ;;  %v2346_v10 = vld [vmem:[%s13676_s3 + $0xb8] sm:$0xff]  ;;  %v14454_v13 = vld [vmem:[#allocation100_spill] sm:$0xff] }
 0x23f   : > { %v2400_v20 = vmul.f32 %v9448_v33, %v14438_v44  ;;  %v9598_v40 = vmul.f32 %v9304_v48, %v9304_v48  ;;  %v1217_v39 = vmul.f32 0.0051020407, %v14440_v61  ;;  %v2328_v15 = vld [vmem:[%s13676_s3 + $0x28] sm:$0xff]  ;;  %v3993_v23 = vpack.c.bf16 %v3865_v46, %v3863_v19  ;;  %v14460_v48 = vld [vmem:[#allocation33_spill] sm:$0xff] }
 0x240   : > { %v9610_v11 = vmul.f32 %v9524_v42, %v1780_v18  ;;  %6380 = vrsqrt.f32 %v9516_v58  ;;  %v1359_v33 = vsub.f32 %v1215_v29, %v8784_v56  ;;  %v9614_v32 = vmul.f32 %v2197_v26, %v1648_v21  ;;  %v9633_v26 = vpop.permute.xlu0 %2830  ;;  %v14445_v61 = vld [vmem:[#allocation71_spill] sm:$0xff] }
 0x241   : > { %14439 = vst [vmem:[#allocation53_spill] sm:$0xff] %v9598_v40  ;;  %vm1656_vm7 = vweird.f32 %v9372_v60  ;;  %v9617_v5 = vmul.f32 0.5, %v1811_v8  ;;  %v9621_v54 = vmul.f32 %v9565_v14, %v9445_v36  ;;  %v9623_v51 = vadd.f32 1e-05, %v1352_v47  ;;  %4664 = vmatpush.bf16.msra.mxu0 %v3993_v23  ;;  %6281 = vmatpush.bf16.msra.mxu2 %v3993_v23  ;;  %v6459_v8 = vld [vmem:[%s13673_s0 + $0x1e0] sm:$0xff]  ;;  %v9643_v53 = vpop.permute.xlu1 %2825  ;;  %v14447_v23 = vld [vmem:[#allocation48_spill] sm:$0xff] }
 0x242   : > { %v1362_v46 = vsub.f32 %v1218_v17, %v8861_v34  ;;  %vm1476_vm8 = vweird.f32 %v9176_v28  ;;  %v9627_v18 = vadd.f32 1e-05, %v1351_v7  ;;  %v2490_v56 = vsub.f32 %v2346_v10, %v2418_v43  ;;  %v14443_v34 = vld [vmem:[#allocation82_spill] sm:$0xff] }
 0x243   : > { %14441 = vst [vmem:[#allocation44_spill] sm:$0xff] %v9617_v5  ;;  %v3103_v29 = vmul.f32 %v6459_v8, %v2836_v30  ;;  %v2472_v21 = vsub.f32 %v2328_v15, %v2400_v20  ;;  %vm1655_vm9 = vweird.f32 %v9291_v63  ;;  %6382 = vrsqrt.f32 %v9600_v62  ;;  %v2599_v7 = vld [vmem:[%s13674_s1 + $0x1e0] sm:$0xff]  ;;  %v2344_v15 = vld [vmem:[%s13676_s3 + $0xa8] sm:$0xff] }
 0x244   : > { %14442 = vst [vmem:[#allocation47_spill] sm:$0xff] %v9623_v51  ;;  %v1213_v47 = vmul.f32 0.0051020407, %v14443_v34  ;;  %v1361_v17 = vsub.f32 %v1217_v39, %v8889_v57  ;;  %v1216_v19 = vmul.f32 0.0051020407, %v8665_v9  ;;  %vm1475_vm10 = vweird.f32 %v9107_v2  ;;  %v14444_v43 = vld [vmem:[#allocation66_spill] sm:$0xff]  ;;  %vm9730_vm2 = vmor %vm1655_vm9, %vm1656_vm7 }
 0x245   : > { %2775 = vperm.xlu0 %6308, %v9614_v32   ;;  %v9646_v30 = vadd.f32 1e-05, %v1359_v33  ;;  %v1233_v44 = vmul.f32 0.0051020407, %v14444_v43  ;;  %v1234_v20 = vmul.f32 0.0051020407, %v8731_v16  ;;  %3358 = vperm.xlu1 %6309, %v2472_v21   ;;  %v2416_v57 = vmul.f32 %v9450_v52, %v14445_v61  ;;  %v9663_v16 = vpop.permute.xlu2 %2740  ;;  %vm9744_vm3 = vmor %vm1475_vm10, %vm1476_vm8 }
 0x246   : > { %3448 = vperm.xlu2 %6307, %v2490_v56   ;;  %6384 = vrsqrt.f32 %v9623_v51  ;;  %v14446_v9 = vld [vmem:[#allocation42_spill] sm:$0xff]  ;;  %v9656_v10 = vadd.f32 1e-05, %v1362_v46  ;;  %v2399_v33 = vmul.f32 %v9293_v35, %v14447_v23  ;;  %v9665_v56 = vpop.eup %6380  ;;  %v6460_v21 = vld [vmem:[%s13673_s0 + $0x1f0] sm:$0xff]  ;;  %v3247_v34 = vadd.f32 %v3103_v29, %v2599_v7 }
 0x247   : > { %v9654_v39 = vmul.f32 0.0051020407, %v14446_v9  ;;  %14448 = vst [vmem:[#allocation72_spill] sm:$0xff] %v9665_v56  ;;  %v14449_v8 = vld [vmem:[#allocation46_spill] sm:$0xff]  ;;  %v3105_v46 = vmul.f32 %v6460_v21, %v9255_v22  ;;  %vm1636_vm11 = vweird.f32 %v9311_v6  ;;  %v1357_v9 = vsub.f32 %v1213_v47, %v8802_v31  ;;  %v6461_v21 = vld [vmem:[%s13673_s0 + $0x1f8] sm:$0xff]  ;;  %v14451_v31 = vld [vmem:[#allocation40_spill] sm:$0xff] }
 0x248   : > { %v9668_v52 = vmul.f32 0.0051020407, %v14449_v8  ;;  %v2327_v43 = vld [vmem:[%s13676_s3 + $0x20] sm:$0xff]  ;;  %v9681_v23 = vadd.f32 1e-05, %v1361_v17  ;;  %v1360_v8 = vsub.f32 %v1216_v19, %v8903_v0  ;;  %v3106_v29 = vmul.f32 %v6461_v21, %v9255_v22  ;;  %v14452_v47 = vld [vmem:[#allocation15_spill] sm:$0xff] }
 0x249   : > { %v14450_v61 = vld [vmem:[#allocation70_spill] sm:$0xff]  ;;  %vm1466_vm12 = vweird.f32 %v9215_v3  ;;  %6386 = vrsqrt.f32 %v9646_v30  ;;  %v1377_v0 = vsub.f32 %v1233_v44, %v14451_v31  ;;  %v1378_v17 = vsub.f32 %v1234_v20, %v14452_v47  ;;  %v2602_v22 = vld [vmem:[%s13674_s1 + $0x1f8] sm:$0xff]  ;;  %v14457_v47 = vld [vmem:[#allocation55_spill] sm:$0xff] }
 0x24a   : > { %v2415_v35 = vmul.f32 %v9556_v55, %v14450_v61  ;;  %v2343_v7 = vld [vmem:[%s13676_s3 + $0xa0] sm:$0xff]  ;;  %v2601_v55 = vld [vmem:[%s13674_s1 + $0x1f0] sm:$0xff]  ;;  %v2488_v19 = vsub.f32 %v2344_v15, %v2416_v57  ;;  %v9701_v61 = vpop.eup %6382  ;;  %vm1626_vm14 = vweird.f32 %v9322_v45  ;;  %6388 = vrsqrt.f32 %v9656_v10 }
 0x24b   : > { %v14453_v21 = vld [vmem:[#allocation14_spill] sm:$0xff]  ;;  %v2471_v27 = vsub.f32 %v2327_v43, %v2399_v33  ;;  %v14455_v44 = vsub.f32 1.5, %v9512_v38  ;;  %v14456_v57 = vld [vmem:[#allocation56_spill] sm:$0xff]  ;;  %v3751_v15 = vadd.f32 %v9560_v50, %v3247_v34  ;;  %v14458_v42 = vsub.f32 1.5, %v14457_v47  ;;  %v9724_v43 = vpop.permute.xlu0 %2735  ;;  %v3489_v50 = vpop.permute.xlu1 %3488 }
 0x24c   : > { %vm1635_vm13 = vweird.f32 %v14453_v21  ;;  %vm1465_vm15 = vweird.f32 %v14456_v57  ;;  %v2487_v31 = vsub.f32 %v2343_v7, %v2415_v35  ;;  %v3249_v36 = vadd.f32 %v3105_v46, %v2601_v55  ;;  %v9716_v4 = vpop.eup %6384  ;;  %v14467_v55 = vld [vmem:[#allocation37_spill] sm:$0xff]  ;;  %v2325_v2 = vld [vmem:[%s13676_s3 + $0x10] sm:$0xff] }
 0x24d   : > { %v1654_v20 = vmul.f32 %v9372_v60, %v14455_v44  ;;  %3438 = vperm.xlu0 %6308, %v2488_v19   ;;  %v1474_v49 = vmul.f32 %v9176_v28, %v14458_v42  ;;  %14459 = vst [vmem:[#allocation99_spill] sm:$0xff] %v9716_v4  ;;  %vm1625_vm1 = vweird.f32 %v14460_v48  ;;  %v9719_v33 = vadd.f32 1e-05, %v1357_v9  ;;  %v14464_v9 = vld [vmem:[#allocation52_spill] sm:$0xff]  ;;  %v6464_v44 = vld [vmem:[%s13673_s0 + $0xc0] sm:$0xff]  ;;  %v6465_v42 = vld [vmem:[%s13673_s0 + $0xc8] sm:$0xff] }
 0x24e   : > { %6390 = vrsqrt.f32 %v9681_v23  ;;  %v9722_v38 = vadd.f32 1e-05, %v1360_v8  ;;  %v3250_v34 = vadd.f32 %v3106_v29, %v2602_v22  ;;  %v9734_v46 = vadd.f32 1e-05, %v1377_v0  ;;  %3353 = vperm.xlu2 %6307, %v2471_v27   ;;  %3433 = vperm.xlu1 %6309, %v2487_v31   ;;  %v6462_v29 = vld [vmem:[%s13673_s0 + $0xd0] sm:$0xff]  ;;  %v6463_v27 = vld [vmem:[%s13673_s0 + $0xd8] sm:$0xff]  ;;  %vm9819_vm4 = vmor %vm1635_vm13, %vm1636_vm11 }
 0x24f   : > { %14461 = vst [vmem:[#allocation83_spill] sm:$0xff] %v9719_v33  ;;  %v9736_v35 = vadd.f32 1e-05, %v1378_v17  ;;  %v2397_v8 = vmul.f32 %v9558_v41, %v14464_v9  ;;  %v3753_v7 = vadd.f32 %v3489_v50, %v3249_v36  ;;  %v3069_v0 = vmul.f32 %v6462_v29, %v14467_v55  ;;  %v2198_v17 = vld [vmem:[%s13675_s2 + $0x98] sm:$0xff]  ;;  %v9765_v22 = vpop.eup %6386  ;;  %vm9832_vm5 = vmor %vm1465_vm15, %vm1466_vm12  ;;  %v6468_v48 = vld [vmem:[%s13673_s0 + $0x1c0] sm:$0xff] }
 0x250   : > { %v3070_v41 = vmul.f32 %v6463_v27, %v14467_v55  ;;  %v1658_v36 = vsel %vm9730_vm2, %v9372_v60, %v1654_v20  ;;  %v3754_v19 = vadd.f32 %v3489_v50, %v3250_v34  ;;  %v3067_v31 = vmul.f32 %v6464_v44, %v9452_v59  ;;  %v2180_v60 = vld [vmem:[%s13675_s2 + $0x8] sm:$0xff]  ;;  %v2565_v50 = vld [vmem:[%s13674_s1 + $0xd0] sm:$0xff]  ;;  %v9780_v34 = vpop.eup %6388  ;;  %v2566_v55 = vld [vmem:[%s13674_s1 + $0xd8] sm:$0xff] }
 0x251   : > { %v3895_v47 = vmax.f32 %v3751_v15, 0.0  ;;  %v1478_v9 = vsel %vm9744_vm3, %v9176_v28, %v1474_v49  ;;  %v3897_v20 = vmax.f32 %v3753_v7, 0.0  ;;  %v3068_v15 = vmul.f32 %v6465_v42, %v9452_v59  ;;  %v9787_v49 = vpop.permute.xlu2 %2815  ;;  %v2563_v27 = vld [vmem:[%s13674_s1 + $0xc0] sm:$0xff]  ;;  %vm9851_vm6 = vmor %vm1625_vm1, %vm1626_vm14 }
 0x252   : > { %v3896_v63 = vmax.f32 %v9588_v37, 0.0  ;;  %v3898_v28 = vmax.f32 %v3754_v19, 0.0  ;;  %v14468_v29 = vsub.f32 1.5, %v9436_v24  ;;  %v2469_v44 = vsub.f32 %v2325_v2, %v2397_v8  ;;  %v2564_v24 = vld [vmem:[%s13674_s1 + $0xc8] sm:$0xff] }
 0x253   : > { %v9798_v40 = vmul.f32 %v2198_v17, %v1658_v36  ;;  %v14469_v59 = vsub.f32 1.5, %v9342_v12  ;;  %v4009_v19 = vpack.c.bf16 %v3897_v20, %v3895_v47  ;;  %v3213_v51 = vadd.f32 %v3069_v0, %v2565_v50  ;;  %v6466_v36 = vld [vmem:[%s13673_s0 + $0x1d8] sm:$0xff]  ;;  %v14476_v47 = vld [vmem:[#allocation27_spill] sm:$0xff]  ;;  %v3394_v57 = vpop.permute.xlu1 %3393 }
 0x254   : > { %v1634_v7 = vmul.f32 %v9311_v6, %v14468_v29  ;;  %v9806_v42 = vpop.eup %6390  ;;  %v9808_v29 = vmul.f32 %v2180_v60, %v1478_v9  ;;  %v9810_v4 = vpack.c.bf16 %v3898_v28, %v3896_v63  ;;  %v14471_v8 = vsub.f32 1.5, %v9440_v25  ;;  %v6467_v60 = vld [vmem:[%s13673_s0 + $0x1d0] sm:$0xff]  ;;  %v2598_v63 = vld [vmem:[%s13674_s1 + $0x1d8] sm:$0xff] }
 0x255   : > { %v1464_v37 = vmul.f32 %v9215_v3, %v14469_v59  ;;  %6392 = vrsqrt.f32 %v9734_v46  ;;  %v3102_v0 = vmul.f32 %v6466_v36, %v9633_v26  ;;  %3343 = vperm.xlu0 %6308, %v2469_v44   ;;  %v3214_v25 = vadd.f32 %v3070_v41, %v2566_v55  ;;  %4763 = vmatpush.bf16.msra.mxu1 %v4009_v19  ;;  %v2179_v44 = vld [vmem:[%s13675_s2] sm:$0xff] }
 0x256   : > { %14470 = vst [vmem:[#allocation82_spill] sm:$0xff] %v9810_v4  ;;  %v1624_v2 = vmul.f32 %v9322_v45, %v14471_v8  ;;  %v3211_v17 = vadd.f32 %v3067_v31, %v2563_v27  ;;  %v1231_v9 = vmul.f32 0.0051020407, %v14476_v47  ;;  %v3101_v20 = vmul.f32 %v6467_v60, %v9633_v26  ;;  %v3399_v31 = vpop.permute.xlu0 %3398  ;;  %6289 = vmatpush.bf16.msra.mxu3 %v4009_v19  ;;  %v2597_v19 = vld [vmem:[%s13674_s1 + $0x1d0] sm:$0xff]  ;;  %v2195_v8 = vld [vmem:[%s13675_s2 + $0x80] sm:$0xff]  ;;  %v2596_v47 = vld [vmem:[%s13674_s1 + $0x1c8] sm:$0xff] }
 0x257   : > { %v1638_v41 = vsel %vm9819_vm4, %v9311_v6, %v1634_v7  ;;  %v3212_v50 = vadd.f32 %v3068_v15, %v2564_v24  ;;  %6394 = vrsqrt.f32 %v9736_v35  ;;  %2780 = vperm.xlu2 %6307, %v9798_v40   ;;  %2690 = vperm.xlu1 %6309, %v9808_v29   ;;  %v2196_v6 = vld [vmem:[%s13675_s2 + $0x88] sm:$0xff]  ;;  %v3717_v26 = vadd.f32 %v3399_v31, %v3213_v51 }
 0x258   : > { %v9861_v15 = vadd.f32 %v3399_v31, %v3214_v25  ;;  %v3715_v7 = vadd.f32 %v3394_v57, %v3211_v17  ;;  %v3099_v55 = vmul.f32 %v6468_v48, %v9643_v53  ;;  %v1468_v27 = vsel %vm9832_vm5, %v9215_v3, %v1464_v37  ;;  %v6469_v24 = vld [vmem:[%s13673_s0 + $0x1c8] sm:$0xff]  ;;  %v14481_v25 = vld [vmem:[#allocation13_spill] sm:$0xff] }
 0x259   : > { %v1628_v51 = vsel %vm9851_vm6, %v9322_v45, %v1624_v2  ;;  %v9876_v59 = vadd.f32 %v3394_v57, %v3212_v50  ;;  %v3100_v3 = vmul.f32 %v6469_v24, %v9643_v53  ;;  %v3861_v37 = vmax.f32 %v3717_v26, 0.0  ;;  %v2595_v45 = vld [vmem:[%s13674_s1 + $0x1c0] sm:$0xff]  ;;  %v3479_v53 = vpop.permute.xlu2 %3478  ;;  %v14484_v26 = vld [vmem:[#allocation88_spill] sm:$0xff] }
 0x25a   : > { %14479 = vst [vmem:[#allocation66_spill] sm:$0xff] %v9861_v15  ;;  %v3859_v12 = vmax.f32 %v3715_v7, 0.0  ;;  %v3246_v36 = vadd.f32 %v3102_v0, %v2598_v63  ;;  %v1930_v2 = vmul.f32 %v9780_v34, %v9656_v10  ;;  %6396 = vrsqrt.f32 %v9722_v38  ;;  %v14483_v63 = vld [vmem:[#allocation98_spill] sm:$0xff] }
 0x25b   : > { %14480 = vst [vmem:[#allocation71_spill] sm:$0xff] %v9876_v59  ;;  %v1375_v17 = vsub.f32 %v1231_v9, %v14481_v25  ;;  %v9895_v21 = vmul.f32 %v2196_v6, %v1638_v41  ;;  %v9900_v60 = vpop.eup %6392  ;;  %v2251_v0 = vmul.f32 %v2179_v44, %v1468_v27  ;;  %v3245_v31 = vadd.f32 %v3101_v20, %v2597_v19  ;;  %v6470_v20 = vld [vmem:[%s13673_s0 + $0xa8] sm:$0xff]  ;;  %v2241_v59 = vld [vmem:[%s13675_s2 + $0x1f0] sm:$0xff] }
 0x25c   : > { %v9902_v50 = vadd.f32 %v3479_v53, %v3246_v36  ;;  %v3991_v57 = vpack.c.bf16 %v3861_v37, %v3859_v12  ;;  %v1355_v28 = vsub.f32 %v9668_v52, %v14483_v63  ;;  %v1214_v7 = vmul.f32 0.0051020407, %v14484_v26  ;;  %v2560_v37 = vld [vmem:[%s13674_s1 + $0xa8] sm:$0xff] }
 0x25d   : > { %v9907_v9 = vmul.f32 %v2195_v8, %v1628_v51  ;;  %v3243_v41 = vadd.f32 %v3099_v55, %v2595_v45  ;;  %v9909_v6 = vpop.eup %6394  ;;  %v14485_v48 = vsub.f32 %v9654_v39, %v14454_v13  ;;  %v3064_v27 = vmul.f32 %v6470_v20, %v9724_v43  ;;  %2770 = vperm.xlu0 %6308, %v9895_v21   ;;  %v14486_v39 = vld [vmem:[#allocation75_spill] sm:$0xff]  ;;  %v9949_v20 = vpop.permute.xlu1 %2820 }
 0x25e   : > { %14482 = vst [vmem:[#allocation42_spill] sm:$0xff] %v9902_v50  ;;  %v3749_v52 = vadd.f32 %v3479_v53, %v3245_v31  ;;  %v3244_v44 = vadd.f32 %v3100_v3, %v2596_v47  ;;  %4665 = vmatpush.bf16.msra.mxu0 %v3991_v57  ;;  %6398 = vrsqrt.f32 %v9719_v33  ;;  %v1931_v55 = vmul.f32 %v9780_v34, %v1930_v2  ;;  %v3474_v19 = vpop.permute.xlu0 %3473  ;;  %v14487_v3 = vld [vmem:[#allocation54_spill] sm:$0xff]  ;;  %v14489_v53 = vld [vmem:[#allocation76_spill] sm:$0xff] }
 0x25f   : > { %v9914_v24 = vadd.f32 1e-05, %v14485_v48  ;;  %v2080_v13 = vmul.f32 %v9900_v60, %v9734_v46  ;;  %v1232_v51 = vmul.f32 0.0051020407, %v14486_v39  ;;  %6282 = vmatpush.bf16.msra.mxu2 %v3991_v57  ;;  %v9929_v8 = vadd.f32 1e-05, %v1375_v17  ;;  %2685 = vperm.xlu2 %6307, %v2251_v0  }
 0x260   : > { %2765 = vperm.xlu1 %6309, %v9907_v9   ;;  %v2395_v12 = vmul.f32 %v2251_v0, %v14487_v3  ;;  %v3747_v36 = vadd.f32 %v3474_v19, %v3243_v41  ;;  %v9933_v45 = vadd.f32 %v3474_v19, %v3244_v44  ;;  %v9935_v2 = vpop.eup %6396  ;;  %v1900_v25 = vmul.f32 %v9765_v22, %v9646_v30  ;;  %v2323_v17 = vld [vmem:[%s13676_s3] sm:$0xff]  ;;  %v14490_v57 = vld [vmem:[#allocation63_spill] sm:$0xff]  ;;  %v14491_v41 = vld [vmem:[#allocation84_spill] sm:$0xff] }
 0x261   : > { %v1358_v47 = vsub.f32 %v1214_v7, %v14489_v53  ;;  %v1920_v31 = vmul.f32 %v9806_v42, %v9681_v23  ;;  %v2398_v0 = vmul.f32 %v9542_v1, %v14490_v57  ;;  %v3893_v63 = vmax.f32 %v3749_v52, 0.0  ;;  %v14492_v3 = vld [vmem:[#allocation11_spill] sm:$0xff]  ;;  %v2326_v1 = vld [vmem:[%s13676_s3 + $0x18] sm:$0xff] }
 0x262   : > { %14488 = vst [vmem:[#allocation48_spill] sm:$0xff] %v9933_v45  ;;  %v3891_v26 = vmax.f32 %v3747_v36, 0.0  ;;  %v2414_v48 = vmul.f32 %v9798_v40, %v14491_v41  ;;  %v3208_v44 = vadd.f32 %v3064_v27, %v2560_v37  ;;  %v1932_v39 = vmul.f32 0.5, %v1931_v55  ;;  %v2342_v52 = vld [vmem:[%s13676_s3 + $0x98] sm:$0xff]  ;;  %v14494_v41 = vld [vmem:[#allocation91_spill] sm:$0xff] }
 0x263   : > { %v2081_v7 = vmul.f32 %v9900_v60, %v2080_v13  ;;  %v2090_v19 = vmul.f32 %v9909_v6, %v9736_v35  ;;  %v1376_v53 = vsub.f32 %v1232_v51, %v14492_v3  ;;  %v9961_v40 = vpop.permute.xlu2 %3383  ;;  %6400 = vrsqrt.f32 %v9929_v8 }
 0x264   : > { %v2467_v27 = vsub.f32 %v2323_v17, %v2395_v12  ;;  %v9965_v55 = vadd.f32 %v9961_v40, %v3208_v44  ;;  %v4007_v13 = vpack.c.bf16 %v3893_v63, %v3891_v26  ;;  %v9967_v37 = vpop.eup %6398  ;;  %6402 = vrsqrt.f32 %v9627_v18 }
 0x265   : > { %v9970_v51 = vadd.f32 1e-05, %v1355_v28  ;;  %v1901_v36 = vmul.f32 %v9765_v22, %v1900_v25  ;;  %v1910_v57 = vmul.f32 %v9935_v2, %v9722_v38  ;;  %v9976_v3 = vmul.f32 0.0051020407, %v14494_v41 }
 0x266   : > { %14493 = vst [vmem:[#allocation46_spill] sm:$0xff] %v9965_v55  ;;  %v9978_v4 = vadd.f32 1e-05, %v1358_v47  ;;  %3333 = vperm.xlu0 %6308, %v2467_v27   ;;  %v2470_v12 = vsub.f32 %v2326_v1, %v2398_v0  ;;  %v2486_v17 = vsub.f32 %v2342_v52, %v2414_v48  ;;  %4764 = vmatpush.bf16.msra.mxu1 %v4007_v13  ;;  %6404 = vrsqrt.f32 %v9914_v24  ;;  %v14495_v47 = vld [vmem:[#allocation92_spill] sm:$0xff]  ;;  %v14497_v1 = vld [vmem:[#allocation73_spill] sm:$0xff]  ;;  %v14498_v27 = vld [vmem:[#allocation79_spill] sm:$0xff] }
 0x267   : > { %v9982_v63 = vmul.f32 %v9565_v14, %v9621_v54  ;;  %v2082_v28 = vmul.f32 0.5, %v2081_v7  ;;  %v2091_v25 = vmul.f32 %v9909_v6, %v2090_v19  ;;  %6290 = vmatpush.bf16.msra.mxu3 %v4007_v13  ;;  %v1933_v26 = vsub.f32 1.5, %v1932_v39  ;;  %v10000_v39 = vpop.permute.xlu0 %2730 }
 0x268   : > { %v1921_v44 = vmul.f32 %v9806_v42, %v1920_v31  ;;  %v9987_v41 = vadd.f32 1e-05, %v1376_v53  ;;  %3348 = vperm.xlu2 %6307, %v2470_v12   ;;  %3428 = vperm.xlu1 %6309, %v2486_v17   ;;  %v2412_v0 = vmul.f32 %v9895_v21, %v14495_v47  ;;  %6406 = vrsqrt.f32 %v9970_v51  ;;  %v2340_v31 = vld [vmem:[%s13676_s3 + $0x88] sm:$0xff]  ;;  %v14496_v53 = vld [vmem:[#allocation86_spill] sm:$0xff]  ;;  %v2341_v17 = vld [vmem:[%s13676_s3 + $0x90] sm:$0xff] }
 0x269   : > { %v9992_v54 = vmul.f32 0.5, %v1901_v36  ;;  %v1880_v48 = vmul.f32 %v9967_v37, %v9719_v33  ;;  %v1911_v7 = vmul.f32 %v9935_v2, %v1910_v57  ;;  %v10002_v19 = vpop.eup %6400  ;;  %6408 = vrsqrt.f32 %v9978_v4  ;;  %v2339_v47 = vld [vmem:[%s13676_s3 + $0x80] sm:$0xff] }
 0x26a   : > { %v2413_v52 = vmul.f32 %v9614_v32, %v14497_v1  ;;  %v2411_v13 = vmul.f32 %v9907_v9, %v14498_v27  ;;  %v10011_v36 = vpop.eup %6402  ;;  %vm1935_vm7 = vweird.f32 %v9656_v10  ;;  %vm1936_vm8 = vweird.f32 %v9780_v34  ;;  %v10022_v1 = vpop.permute.xlu1 %2725 }
 0x26b   : > { %v2083_v57 = vsub.f32 1.5, %v2082_v28  ;;  %v2092_v12 = vmul.f32 0.5, %v2091_v25  ;;  %v1922_v32 = vmul.f32 0.5, %v1921_v44  ;;  %6410 = vrsqrt.f32 %v9987_v41  ;;  %vm10049_vm11 = vmor %vm1935_vm7, %vm1936_vm8 }
 0x26c   : > { %v2484_v9 = vsub.f32 %v2340_v31, %v2412_v0  ;;  %v1934_v27 = vmul.f32 %v9780_v34, %v1933_v26  ;;  %v10025_v21 = vpop.eup %6404  ;;  %v10029_v25 = vmul.f32 %v9967_v37, %v1880_v48  ;;  %v10031_v50 = vmul.f32 0.5, %v1911_v7  ;;  %v6471_v26 = vld [vmem:[%s13673_s0 + $0xa0] sm:$0xff]  ;;  %v10041_v48 = vpop.permute.xlu2 %2810 }
 0x26d   : > { %14499 = vst [vmem:[#allocation70_spill] sm:$0xff] %v10025_v21  ;;  %v2060_v45 = vmul.f32 %v10002_v19, %v9929_v8  ;;  %vm1925_vm9 = vweird.f32 %v9681_v23  ;;  %vm1926_vm10 = vweird.f32 %v9806_v42  ;;  %v3063_v44 = vmul.f32 %v6471_v26, %v9724_v43  ;;  %v2594_v21 = vld [vmem:[%s13674_s1 + $0x1b8] sm:$0xff] }
 0x26e   : > { %3418 = vperm.xlu0 %6308, %v2484_v9   ;;  %v2485_v0 = vsub.f32 %v2341_v17, %v2413_v52  ;;  %v2483_v31 = vsub.f32 %v2339_v47, %v2411_v13  ;;  %14500 = vst [vmem:[#allocation40_spill] sm:$0xff] %v10041_v48  ;;  %v10043_v7 = vpop.eup %6406  ;;  %vm1916_vm12 = vweird.f32 %v9935_v2  ;;  %vm2086_vm13 = vweird.f32 %v9900_v60  ;;  %v6472_v52 = vld [vmem:[%s13673_s0 + $0xb0] sm:$0xff]  ;;  %v2559_v17 = vld [vmem:[%s13674_s1 + $0xa0] sm:$0xff]  ;;  %vm10152_vm5 = vmor %vm1925_vm9, %vm1926_vm10 }
 0x26f   : > { %v2093_v43 = vsub.f32 1.5, %v2092_v12  ;;  %v3065_v13 = vmul.f32 %v6472_v52, %v9663_v16  ;;  %v2084_v10 = vmul.f32 %v9900_v60, %v2083_v57  ;;  %v10063_v47 = vpop.eup %6408  ;;  %v1923_v9 = vsub.f32 1.5, %v1922_v32  ;;  %v6473_v12 = vld [vmem:[%s13673_s0 + $0xb8] sm:$0xff]  ;;  %v2561_v32 = vld [vmem:[%s13674_s1 + $0xb0] sm:$0xff] }
 0x270   : > { %vm2085_vm14 = vweird.f32 %v9734_v46  ;;  %v3066_v26 = vmul.f32 %v6473_v12, %v9663_v16  ;;  %3423 = vperm.xlu2 %6307, %v2485_v0   ;;  %3413 = vperm.xlu1 %6309, %v2483_v31   ;;  %v1938_v52 = vsel %vm10049_vm11, %v9780_v34, %v1934_v27  ;;  %v2226_v57 = vld [vmem:[%s13675_s2 + $0x178] sm:$0xff]  ;;  %v1913_v14 = vsub.f32 1.5, %v10031_v50  ;;  %v10085_v34 = vpop.permute.xlu0 %2805 }
 0x271   : > { %vm1915_vm15 = vweird.f32 %v9722_v38  ;;  %v2061_v16 = vmul.f32 %v10002_v19, %v2060_v45  ;;  %v14503_v0 = vld [vmem:[#allocation117_spill] sm:$0xff]  ;;  %v10090_v55 = vpop.eup %6410  ;;  %vm10096_vm1 = vmor %vm2085_vm14, %vm2086_vm13  ;;  %vm2095_vm2 = vweird.f32 %v9736_v35  ;;  %vm2096_vm3 = vweird.f32 %v9909_v6 }
 0x272   : > { %v1230_v31 = vmul.f32 0.0051020407, %v14503_v0  ;;  %v14504_v12 = vld [vmem:[#allocation89_spill] sm:$0xff]  ;;  %v3207_v0 = vadd.f32 %v3063_v44, %v2559_v17  ;;  %v10108_v15 = vmul.f32 %v2226_v57, %v1938_v52  ;;  %v2088_v46 = vsel %vm10096_vm1, %v9900_v60, %v2084_v10  ;;  %vm10135_vm4 = vmor %vm2095_vm2, %vm2096_vm3 }
 0x273   : > { %v2396_v28 = vmul.f32 %v9808_v29, %v14504_v12  ;;  %v2562_v27 = vld [vmem:[%s13674_s1 + $0xb8] sm:$0xff]  ;;  %v14507_v29 = vld [vmem:[#allocation51_spill] sm:$0xff]  ;;  %v3209_v48 = vadd.f32 %v3065_v13, %v2561_v32  ;;  %v2094_v33 = vmul.f32 %v9909_v6, %v2093_v43  ;;  %v2070_v60 = vmul.f32 %v10090_v55, %v9987_v41  ;;  %v3389_v43 = vpop.permute.xlu1 %3388  ;;  %vm10200_vm7 = vmor %vm1915_vm15, %vm1916_vm12 }
 0x274   : > { %v10103_v45 = vmul.f32 0.0051020407, %v14507_v29  ;;  %v2324_v12 = vld [vmem:[%s13676_s3 + $0x8] sm:$0xff]  ;;  %v6474_v44 = vld [vmem:[%s13673_s0 + $0x1b8] sm:$0xff]  ;;  %v3711_v52 = vadd.f32 %v9961_v40, %v3207_v0  ;;  %v3210_v57 = vadd.f32 %v3066_v26, %v2562_v27  ;;  %v1924_v29 = vmul.f32 %v9806_v42, %v1923_v9  ;;  %v6475_v9 = vld [vmem:[%s13673_s0 + $0x1b0] sm:$0xff] }
 0x275   : > { %v3098_v17 = vmul.f32 %v6474_v44, %v9949_v20  ;;  %v10125_v10 = vmul.f32 0.5, %v2061_v16  ;;  %v14508_v50 = vld [vmem:[#allocation5_spill] sm:$0xff]  ;;  %v2468_v32 = vsub.f32 %v2324_v12, %v2396_v28  ;;  %v3097_v26 = vmul.f32 %v6475_v9, %v9949_v20  ;;  %v6476_v27 = vld [vmem:[%s13673_s0 + $0x1a0] sm:$0xff]  ;;  %v2593_v12 = vld [vmem:[%s13674_s1 + $0x1b0] sm:$0xff] }
 0x276   : > { %v1374_v13 = vsub.f32 %v1230_v31, %v14508_v50  ;;  %2920 = vperm.xlu0 %6308, %v10108_v15   ;;  %v10144_v16 = vmul.f32 %v2241_v59, %v2088_v46  ;;  %v3713_v31 = vadd.f32 %v3389_v43, %v3209_v48  ;;  %v10146_v28 = vadd.f32 %v3389_v43, %v3210_v57  ;;  %v6477_v59 = vld [vmem:[%s13673_s0 + $0x1a8] sm:$0xff]  ;;  %v2242_v0 = vld [vmem:[%s13675_s2 + $0x1f8] sm:$0xff]  ;;  %v10176_v57 = vpop.permute.xlu2 %2715  ;;  %v14513_v43 = vld [vmem:[#allocation6_spill] sm:$0xff] }
 0x277   : > { %v3095_v20 = vmul.f32 %v6476_v27, %v9787_v49  ;;  %v3096_v48 = vmul.f32 %v6477_v59, %v9787_v49  ;;  %v2098_v23 = vsel %vm10135_vm4, %v9909_v6, %v2094_v33  ;;  %v1914_v46 = vmul.f32 %v9935_v2, %v1913_v14  ;;  %v2225_v6 = vld [vmem:[%s13675_s2 + $0x170] sm:$0xff]  ;;  %v2591_v14 = vld [vmem:[%s13674_s1 + $0x1a0] sm:$0xff] }
 0x278   : > { %vm1905_vm6 = vweird.f32 %v9646_v30  ;;  %v3855_v44 = vmax.f32 %v3711_v52, 0.0  ;;  %3338 = vperm.xlu2 %6307, %v2468_v32   ;;  %2995 = vperm.xlu1 %6309, %v10144_v16   ;;  %v3857_v49 = vmax.f32 %v3713_v31, 0.0  ;;  %v1928_v33 = vsel %vm10152_vm5, %v9806_v42, %v1924_v29  ;;  %v2592_v52 = vld [vmem:[%s13674_s1 + $0x1a8] sm:$0xff]  ;;  %v3469_v9 = vpop.permute.xlu0 %3468 }
 0x279   : > { %v3242_v50 = vadd.f32 %v3098_v17, %v2594_v21  ;;  %v2071_v32 = vmul.f32 %v10090_v55, %v2070_v60  ;;  %v1373_v40 = vsub.f32 %v10103_v45, %v14513_v43  ;;  %v2063_v42 = vsub.f32 1.5, %v10125_v10  ;;  %v14518_v43 = vld [vmem:[#allocation78_spill] sm:$0xff] }
 0x27a   : > { %v10194_v29 = vadd.f32 1e-05, %v1374_v13  ;;  %v10204_v17 = vmul.f32 %v2242_v0, %v2098_v23  ;;  %v3241_v31 = vadd.f32 %v3097_v26, %v2593_v12  ;;  %v3989_v35 = vpack.c.bf16 %v3857_v49, %v3855_v44  ;;  %v2224_v13 = vld [vmem:[%s13675_s2 + $0x168] sm:$0xff]  ;;  %v6478_v26 = vld [vmem:[%s13673_s0 + $0x80] sm:$0xff] }
 0x27b   : > { %v10206_v60 = vadd.f32 %v3469_v9, %v3242_v50  ;;  %v2297_v45 = vmul.f32 %v2225_v6, %v1928_v33  ;;  %v1918_v10 = vsel %vm10200_vm7, %v9935_v2, %v1914_v46  ;;  %v3239_v38 = vadd.f32 %v3095_v20, %v2591_v14  ;;  %v6479_v23 = vld [vmem:[%s13673_s0 + $0x88] sm:$0xff]  ;;  %v6480_v20 = vld [vmem:[%s13673_s0 + $0x90] sm:$0xff]  ;;  %v6481_v46 = vld [vmem:[%s13673_s0 + $0x98] sm:$0xff]  ;;  %v3464_v49 = vpop.permute.xlu1 %3463 }
 0x27c   : > { %v3240_v27 = vadd.f32 %v3096_v48, %v2592_v52  ;;  %vm1906_vm8 = vweird.f32 %v9765_v22  ;;  %v3059_v59 = vmul.f32 %v6478_v26, %v10022_v1  ;;  %v3060_v2 = vmul.f32 %v6479_v23, %v10022_v1  ;;  %4666 = vmatpush.bf16.msra.mxu0 %v3989_v35  ;;  %6283 = vmatpush.bf16.msra.mxu2 %v3989_v35  ;;  %v2555_v1 = vld [vmem:[%s13674_s1 + $0x80] sm:$0xff]  ;;  %v2556_v33 = vld [vmem:[%s13674_s1 + $0x88] sm:$0xff] }
 0x27d   : > { %14516 = vst [vmem:[#allocation15_spill] sm:$0xff] %v10206_v60  ;;  %v3745_v0 = vadd.f32 %v3469_v9, %v3241_v31  ;;  %v2072_v12 = vmul.f32 0.5, %v2071_v32  ;;  %6412 = vrsqrt.f32 %v10194_v29  ;;  %v3061_v48 = vmul.f32 %v6480_v20, %v10000_v39  ;;  %v2558_v32 = vld [vmem:[%s13674_s1 + $0x98] sm:$0xff]  ;;  %vm10262_vm10 = vmor %vm1905_vm6, %vm1906_vm8 }
 0x27e   : > { %v3062_v44 = vmul.f32 %v6481_v46, %v10000_v39  ;;  %v10238_v6 = vadd.f32 1e-05, %v1373_v40  ;;  %3000 = vperm.xlu0 %6308, %v10204_v17   ;;  %v10241_v50 = vmul.f32 %v2224_v13, %v1918_v10  ;;  %v3743_v14 = vadd.f32 %v3464_v49, %v3239_v38  ;;  %v2557_v39 = vld [vmem:[%s13674_s1 + $0x90] sm:$0xff]  ;;  %v2590_v60 = vld [vmem:[%s13674_s1 + $0x198] sm:$0xff] }
 0x27f   : > { %v10243_v52 = vadd.f32 %v3464_v49, %v3240_v27  ;;  %vm2066_vm9 = vweird.f32 %v10002_v19  ;;  %v2441_v40 = vmul.f32 %v2297_v45, %v14518_v43  ;;  %v14519_v9 = vsub.f32 1.5, %v9992_v54 }
 0x280   : > { %v2064_v31 = vmul.f32 %v10002_v19, %v2063_v42  ;;  %2915 = vperm.xlu2 %6307, %v2297_v45   ;;  %v3889_v35 = vmax.f32 %v3745_v0, 0.0  ;;  %2910 = vperm.xlu1 %6309, %v10241_v50   ;;  %v3887_v10 = vmax.f32 %v3743_v14, 0.0  ;;  %v3203_v13 = vadd.f32 %v3059_v59, %v2555_v1  ;;  %v2369_v45 = vld [vmem:[%s13676_s3 + $0x170] sm:$0xff]  ;;  %v3374_v23 = vpop.permute.xlu0 %3373  ;;  %v2239_v1 = vld [vmem:[%s13675_s2 + $0x1e0] sm:$0xff] }
 0x281   : > { %14517 = vst [vmem:[#allocation14_spill] sm:$0xff] %v10243_v52  ;;  %v1904_v21 = vmul.f32 %v9765_v22, %v14519_v9  ;;  %v3204_v38 = vadd.f32 %v3060_v2, %v2556_v33  ;;  %v2073_v54 = vsub.f32 1.5, %v2072_v12  ;;  %vm2065_vm11 = vweird.f32 %v9929_v8  ;;  %v3379_v2 = vpop.permute.xlu2 %3378  ;;  %v14524_v33 = vld [vmem:[#allocation23_spill] sm:$0xff] }
 0x282   : > { %v3205_v26 = vadd.f32 %v3061_v48, %v2557_v39  ;;  %v3206_v42 = vadd.f32 %v3062_v44, %v2558_v32  ;;  %v10271_v59 = vmul.f32 0.5, %v10029_v25  ;;  %vm10275_vm12 = vmor %vm2065_vm11, %vm2066_vm9  ;;  %v3707_v0 = vadd.f32 %v3374_v23, %v3203_v13  ;;  %v2223_v44 = vld [vmem:[%s13675_s2 + $0x160] sm:$0xff] }
 0x283   : > { %v10279_v12 = vadd.f32 %v3374_v23, %v3204_v38  ;;  %v4005_v8 = vpack.c.bf16 %v3889_v35, %v3887_v10  ;;  %v10281_v20 = vpop.eup %6412  ;;  %v1908_v25 = vsel %vm10262_vm10, %v9765_v22, %v1904_v21  ;;  %v2068_v49 = vsel %vm10275_vm12, %v10002_v19, %v2064_v31  ;;  %v6482_v22 = vld [vmem:[%s13673_s0 + $0x188] sm:$0xff] }
 0x284   : > { %v3709_v48 = vadd.f32 %v3379_v2, %v3205_v26  ;;  %v10283_v46 = vadd.f32 %v3379_v2, %v3206_v42  ;;  %6414 = vrsqrt.f32 %v10238_v6  ;;  %v1227_v14 = vmul.f32 0.0051020407, %v14524_v33  ;;  %v2588_v10 = vld [vmem:[%s13674_s1 + $0x188] sm:$0xff] }
 0x285   : > { %v2513_v39 = vsub.f32 %v2369_v45, %v2441_v40  ;;  %v3851_v32 = vmax.f32 %v3707_v0, 0.0  ;;  %4765 = vmatpush.bf16.msra.mxu1 %v4005_v8  ;;  %6291 = vmatpush.bf16.msra.mxu3 %v4005_v8  ;;  %vm2076_vm13 = vweird.f32 %v10090_v55  ;;  %v3092_v19 = vmul.f32 %v6482_v22, %v10085_v34  ;;  %v2240_v0 = vld [vmem:[%s13675_s2 + $0x1e8] sm:$0xff] }
 0x286   : > { %v3853_v43 = vmax.f32 %v3709_v48, 0.0  ;;  %v2074_v9 = vmul.f32 %v10090_v55, %v2073_v54  ;;  %v1890_v21 = vmul.f32 %v10063_v47, %v9978_v4  ;;  %v2050_v40 = vmul.f32 %v10281_v20, %v10194_v29  ;;  %v14532_v33 = vld [vmem:[#allocation47_spill] sm:$0xff] }
 0x287   : > { %3563 = vperm.xlu0 %6308, %v2513_v39   ;;  %v10309_v31 = vmul.f32 %v2223_v44, %v1908_v25  ;;  %v10311_v35 = vmul.f32 %v2239_v1, %v2068_v49  ;;  %v10317_v13 = vmul.f32 0.5, %v9610_v11  ;;  %v14526_v38 = vsub.f32 %v9976_v3, %v14496_v53  ;;  %v14529_v53 = vld [vmem:[#allocation125_spill] sm:$0xff]  ;;  %v14530_v44 = vld [vmem:[#allocation50_spill] sm:$0xff]  ;;  %v14531_v1 = vld [vmem:[#allocation28_spill] sm:$0xff] }
 0x288   : > { %vm2075_vm14 = vweird.f32 %v9987_v41  ;;  %v3987_v54 = vpack.c.bf16 %v3853_v43, %v3851_v32  ;;  %v10327_v42 = vmul.f32 0.5, %v9982_v63  ;;  %v1790_v45 = vmul.f32 %v9665_v56, %v9516_v58  ;;  %v10341_v41 = vpop.permute.xlu1 %2720  ;;  %v14537_v26 = vld [vmem:[#allocation83_spill] sm:$0xff] }
 0x289   : > { %14525 = vst [vmem:[#allocation100_spill] sm:$0xff] %v10317_v13  ;;  %v10322_v27 = vadd.f32 1e-05, %v14526_v38  ;;  %v1840_v11 = vmul.f32 %v9701_v61, %v9600_v62  ;;  %vm10335_vm15 = vmor %vm2075_vm14, %vm2076_vm13  ;;  %2905 = vperm.xlu2 %6307, %v10309_v31   ;;  %2985 = vperm.xlu1 %6309, %v10311_v35   ;;  %v1883_v63 = vsub.f32 1.5, %v10271_v59  ;;  %v1371_v23 = vsub.f32 %v1227_v14, %v14529_v53  ;;  %v10355_v59 = vpop.permute.xlu2 %3453  ;;  %v14533_v14 = vld [vmem:[#allocation99_spill] sm:$0xff] }
 0x28a   : > { %v3236_v30 = vadd.f32 %v3092_v19, %v2588_v10  ;;  %v2078_v2 = vsel %vm10335_vm15, %v10090_v55, %v2074_v9  ;;  %4667 = vmatpush.bf16.msra.mxu0 %v3987_v54  ;;  %6284 = vmatpush.bf16.msra.mxu2 %v3987_v54  ;;  %v10351_v8 = vpop.eup %6414  ;;  %v1891_v48 = vmul.f32 %v10063_v47, %v1890_v21  ;;  %v2370_v19 = vld [vmem:[%s13676_s3 + $0x178] sm:$0xff]  ;;  %v14535_v9 = vld [vmem:[#allocation112_spill] sm:$0xff]  ;;  %vm1886_vm1 = vweird.f32 %v9967_v37 }
 0x28b   : > { %v2051_v25 = vmul.f32 %v10281_v20, %v2050_v40  ;;  %v2442_v49 = vmul.f32 %v10108_v15, %v14530_v44  ;;  %v2458_v55 = vmul.f32 %v10204_v17, %v14531_v1  ;;  %v1830_v39 = vmul.f32 %v14533_v14, %v14532_v33  ;;  %v2386_v15 = vld [vmem:[%s13676_s3 + $0x1f8] sm:$0xff] }
 0x28c   : > { %v1860_v32 = vmul.f32 %v10043_v7, %v9970_v51  ;;  %6416 = vrsqrt.f32 %v10322_v27  ;;  %v10367_v22 = vadd.f32 %v10355_v59, %v3236_v30  ;;  %v1841_v17 = vmul.f32 %v9701_v61, %v1840_v11  ;;  %v10388_v30 = vpop.permute.xlu0 %2800 }
 0x28d   : > { %v1820_v43 = vmul.f32 %v10011_v36, %v9627_v18  ;;  %v1228_v21 = vmul.f32 0.0051020407, %v14535_v9  ;;  %v10379_v40 = vmul.f32 %v2240_v0, %v2078_v2  ;;  %v2040_v10 = vmul.f32 %v10351_v8, %v10238_v6  ;;  %v14536_v0 = vld [vmem:[#allocation70_spill] sm:$0xff] }
 0x28e   : > { %14534 = vst [vmem:[#allocation56_spill] sm:$0xff] %v10367_v22  ;;  %v10384_v38 = vadd.f32 1e-05, %v1371_v23  ;;  %v1884_v54 = vmul.f32 %v9967_v37, %v1883_v63  ;;  %v1892_v3 = vmul.f32 0.5, %v1891_v48  ;;  %v2052_v53 = vmul.f32 0.5, %v2051_v25  ;;  %v2385_v25 = vld [vmem:[%s13676_s3 + $0x1f0] sm:$0xff] }
 0x28f   : > { %2990 = vperm.xlu0 %6308, %v10379_v40   ;;  %v2514_v11 = vsub.f32 %v2370_v19, %v2442_v49  ;;  %v2530_v44 = vsub.f32 %v2386_v15, %v2458_v55  ;;  %v1831_v2 = vmul.f32 %v14533_v14, %v1830_v39  ;;  %v1870_v1 = vmul.f32 %v14536_v0, %v9914_v24  ;;  %v14541_v49 = vld [vmem:[#allocation7_spill] sm:$0xff]  ;;  %v2221_v19 = vld [vmem:[%s13675_s2 + $0x150] sm:$0xff] }
 0x290   : > { %v1861_v9 = vmul.f32 %v10043_v7, %v1860_v32  ;;  %vm1885_vm2 = vweird.f32 %v14537_v26  ;;  %v10397_v63 = vmul.f32 %v9665_v56, %v1790_v45  ;;  %v10399_v48 = vmul.f32 0.5, %v1841_v17 }
 0x291   : > { %vm10403_vm3 = vmor %vm1885_vm2, %vm1886_vm1  ;;  %v1372_v55 = vsub.f32 %v1228_v21, %v14541_v49  ;;  %3568 = vperm.xlu2 %6307, %v2514_v11   ;;  %3648 = vperm.xlu1 %6309, %v2530_v44   ;;  %v10411_v26 = vmul.f32 %v10011_v36, %v1820_v43  ;;  %v2041_v45 = vmul.f32 %v10351_v8, %v2040_v10  ;;  %6418 = vrsqrt.f32 %v10384_v38  ;;  %v10421_v21 = vpop.permute.xlu1 %2795  ;;  %v10423_v11 = vpop.permute.xlu2 %2710  ;;  %v14542_v43 = vld [vmem:[#allocation3_spill] sm:$0xff]  ;;  %v14543_v10 = vld [vmem:[#allocation110_spill] sm:$0xff] }
 0x292   : > { %14538 = vst [vmem:[#allocation55_spill] sm:$0xff] %v10397_v63  ;;  %v10408_v39 = vpop.eup %6416  ;;  %v1888_v32 = vsel %vm10403_vm3, %v9967_v37, %v1884_v54  ;;  %v1893_v15 = vsub.f32 1.5, %v1892_v3  ;;  %v2053_v17 = vsub.f32 1.5, %v2052_v53  ;;  %v2457_v44 = vmul.f32 %v10144_v16, %v14542_v43  ;;  %v6483_v3 = vld [vmem:[%s13673_s0 + $0x180] sm:$0xff]  ;;  %v6484_v43 = vld [vmem:[%s13673_s0 + $0x190] sm:$0xff] }
 0x293   : > { %v2439_v49 = vmul.f32 %v10309_v31, %v14543_v10  ;;  %v10429_v23 = vmul.f32 0.5, %v1831_v2  ;;  %v1871_v37 = vmul.f32 %v14536_v0, %v1870_v1  ;;  %v10432_v54 = vmul.f32 0.5, %v1861_v9  ;;  %v2367_v16 = vld [vmem:[%s13676_s3 + $0x160] sm:$0xff]  ;;  %v14544_v10 = vld [vmem:[#allocation40_spill] sm:$0xff] }
 0x294   : > { %v3091_v53 = vmul.f32 %v6483_v3, %v10085_v34  ;;  %v10446_v31 = vmul.f32 %v10408_v39, %v10322_v27  ;;  %vm1896_vm4 = vweird.f32 %v10063_v47  ;;  %v10449_v2 = vadd.f32 1e-05, %v1372_v55  ;;  %v2587_v34 = vld [vmem:[%s13674_s1 + $0x180] sm:$0xff]  ;;  %v6485_v55 = vld [vmem:[%s13673_s0 + $0x198] sm:$0xff] }
 0x295   : > { %v10454_v1 = vmul.f32 %v2221_v19, %v1888_v32  ;;  %vm1866_vm5 = vweird.f32 %v10043_v7  ;;  %v10457_v9 = vmul.f32 0.5, %v2041_v45  ;;  %vm2056_vm6 = vweird.f32 %v10281_v20  ;;  %v2589_v45 = vld [vmem:[%s13674_s1 + $0x190] sm:$0xff] }
 0x296   : > { %v3093_v3 = vmul.f32 %v6484_v43, %v14544_v10  ;;  %v3094_v22 = vmul.f32 %v6485_v55, %v14544_v10  ;;  %v2529_v32 = vsub.f32 %v2385_v25, %v2457_v44  ;;  %v2511_v19 = vsub.f32 %v2367_v16, %v2439_v49  ;;  %v2368_v10 = vld [vmem:[%s13676_s3 + $0x168] sm:$0xff]  ;;  %v6488_v25 = vld [vmem:[%s13673_s0 + $0x60] sm:$0xff] }
 0x297   : > { %2895 = vperm.xlu0 %6308, %v10454_v1   ;;  %v1894_v43 = vmul.f32 %v10063_v47, %v1893_v15  ;;  %v2054_v52 = vmul.f32 %v10281_v20, %v2053_v17  ;;  %v10477_v58 = vpop.eup %6418  ;;  %v10479_v56 = vmul.f32 0.5, %v1871_v37  ;;  %v1863_v44 = vsub.f32 1.5, %v10432_v54  ;;  %v14547_v15 = vld [vmem:[#allocation49_spill] sm:$0xff]  ;;  %v10494_v37 = vpop.permute.xlu0 %2705 }
 0x298   : > { %vm1865_vm7 = vweird.f32 %v9970_v51  ;;  %vm1895_vm8 = vweird.f32 %v9978_v4  ;;  %v3235_v49 = vadd.f32 %v3091_v53, %v2587_v34  ;;  %vm2045_vm10 = vweird.f32 %v10238_v6  ;;  %v14548_v4 = vld [vmem:[#allocation67_spill] sm:$0xff]  ;;  %v14560_v6 = vld [vmem:[#allocation2_spill] sm:$0xff] }
 0x299   : > { %vm10486_vm9 = vmor %vm1895_vm8, %vm1896_vm4  ;;  %vm2046_vm11 = vweird.f32 %v10351_v8  ;;  %vm2055_vm12 = vweird.f32 %v10194_v29  ;;  %v1225_v17 = vmul.f32 0.0051020407, %v14547_v15  ;;  %3643 = vperm.xlu2 %6307, %v2529_v32   ;;  %3553 = vperm.xlu1 %6309, %v2511_v19   ;;  %v2440_v54 = vmul.f32 %v10241_v50, %v14548_v4  ;;  %v3459_v32 = vpop.permute.xlu1 %3458  ;;  %v10512_v19 = vpop.permute.xlu2 %2785  ;;  %v6489_v53 = vld [vmem:[%s13673_s0 + $0x68] sm:$0xff] }
 0x29a   : > { %vm10500_vm13 = vmor %vm2055_vm12, %vm2056_vm6  ;;  %6420 = vrsqrt.f32 %v10449_v2  ;;  %v3739_v16 = vadd.f32 %v10355_v59, %v3235_v49  ;;  %v3237_v29 = vadd.f32 %v3093_v3, %v2589_v45  ;;  %v3238_v34 = vadd.f32 %v3094_v22, %v2590_v60  ;;  %v2222_v60 = vld [vmem:[%s13675_s2 + $0x158] sm:$0xff]  ;;  %v6486_v22 = vld [vmem:[%s13673_s0 + $0x70] sm:$0xff] }
 0x29b   : > { %v2043_v55 = vsub.f32 1.5, %v10457_v9  ;;  %v2020_v50 = vmul.f32 %v10477_v58, %v10384_v38  ;;  %v1898_v15 = vsel %vm10486_vm9, %v10063_v47, %v1894_v43  ;;  %v2058_v59 = vsel %vm10500_vm13, %v10281_v20, %v2054_v52  ;;  %v6487_v3 = vld [vmem:[%s13673_s0 + $0x78] sm:$0xff]  ;;  %v14552_v52 = vld [vmem:[#allocation38_spill] sm:$0xff]  ;;  %vm10582_vm1 = vmor %vm1865_vm7, %vm1866_vm5 }
 0x29c   : > { %v3057_v9 = vmul.f32 %v6486_v22, %v10341_v41  ;;  %v3058_v47 = vmul.f32 %v6487_v3, %v10341_v41  ;;  %v3741_v45 = vadd.f32 %v3459_v32, %v3237_v29  ;;  %v10531_v43 = vadd.f32 %v3459_v32, %v3238_v34  ;;  %v2238_v49 = vld [vmem:[%s13675_s2 + $0x1d8] sm:$0xff]  ;;  %v2553_v34 = vld [vmem:[%s13674_s1 + $0x70] sm:$0xff]  ;;  %v14553_v32 = vld [vmem:[#allocation35_spill] sm:$0xff] }
 0x29d   : > { %v1369_v20 = vsub.f32 %v1225_v17, %v14552_v52  ;;  %v3055_v4 = vmul.f32 %v6488_v25, %v10176_v57  ;;  %v3056_v41 = vmul.f32 %v6489_v53, %v10176_v57  ;;  %v2512_v29 = vsub.f32 %v2368_v10, %v2440_v54  ;;  %v2554_v17 = vld [vmem:[%s13674_s1 + $0x78] sm:$0xff]  ;;  %v2551_v57 = vld [vmem:[%s13674_s1 + $0x60] sm:$0xff]  ;;  %v2552_v54 = vld [vmem:[%s13674_s1 + $0x68] sm:$0xff] }
 0x29e   : > { %14551 = vst [vmem:[#allocation33_spill] sm:$0xff] %v10531_v43  ;;  %vm1876_vm14 = vweird.f32 %v14536_v0  ;;  %v10553_v22 = vmul.f32 0.0051020407, %v14553_v32  ;;  %v3883_v3 = vmax.f32 %v3739_v16, 0.0  ;;  %v3885_v52 = vmax.f32 %v3741_v45, 0.0  ;;  %v6490_v10 = vld [vmem:[%s13673_s0 + $0x178] sm:$0xff]  ;;  %vm10597_vm2 = vmor %vm2045_vm10, %vm2046_vm11 }
 0x29f   : > { %v10555_v25 = vmul.f32 %v2222_v60, %v1898_v15  ;;  %v3090_v53 = vmul.f32 %v6490_v10, %v10388_v30  ;;  %3558 = vperm.xlu0 %6308, %v2512_v29   ;;  %v10567_v32 = vmul.f32 %v2238_v49, %v2058_v59  ;;  %v2044_v16 = vmul.f32 %v10351_v8, %v2043_v55  ;;  %v2586_v10 = vld [vmem:[%s13674_s1 + $0x178] sm:$0xff] }
 0x2a0   : > { %v1864_v15 = vmul.f32 %v10043_v7, %v1863_v44  ;;  %v10571_v60 = vpop.eup %6420  ;;  %vm1875_vm15 = vweird.f32 %v9914_v24  ;;  %v2021_v45 = vmul.f32 %v10477_v58, %v2020_v50  ;;  %v3201_v43 = vadd.f32 %v3057_v9, %v2553_v34  ;;  %v3369_v50 = vpop.permute.xlu0 %3368 }
 0x2a1   : > { %v3202_v63 = vadd.f32 %v3058_v47, %v2554_v17  ;;  %v4003_v13 = vpack.c.bf16 %v3885_v52, %v3883_v3  ;;  %v10586_v44 = vadd.f32 1e-05, %v1369_v20  ;;  %2900 = vperm.xlu2 %6307, %v10555_v25   ;;  %2980 = vperm.xlu1 %6309, %v10567_v32   ;;  %v3199_v59 = vadd.f32 %v3055_v4, %v2551_v57  ;;  %v14556_v47 = vld [vmem:[#allocation9_spill] sm:$0xff]  ;;  %v6491_v20 = vld [vmem:[%s13673_s0 + $0x170] sm:$0xff]  ;;  %v3364_v17 = vpop.permute.xlu1 %3363  ;;  %v3449_v52 = vpop.permute.xlu2 %3448  ;;  %vm10667_vm3 = vmor %vm1875_vm15, %vm1876_vm14 }
 0x2a2   : > { %v3200_v9 = vadd.f32 %v3056_v41, %v2552_v54  ;;  %v2455_v49 = vmul.f32 %v10311_v35, %v14556_v47  ;;  %v1873_v29 = vsub.f32 1.5, %v10479_v56  ;;  %v3089_v4 = vmul.f32 %v6491_v20, %v10388_v30  ;;  %v2383_v56 = vld [vmem:[%s13676_s3 + $0x1e0] sm:$0xff]  ;;  %v2585_v3 = vld [vmem:[%s13674_s1 + $0x170] sm:$0xff] }
 0x2a3   : > { %v3705_v41 = vadd.f32 %v3369_v50, %v3201_v43  ;;  %v10605_v34 = vadd.f32 %v3369_v50, %v3202_v63  ;;  %4766 = vmatpush.bf16.msra.mxu1 %v4003_v13  ;;  %6292 = vmatpush.bf16.msra.mxu3 %v4003_v13  ;;  %v1370_v35 = vsub.f32 %v10553_v22, %v14560_v6  ;;  %v6492_v63 = vld [vmem:[%s13673_s0 + $0x160] sm:$0xff]  ;;  %v6493_v22 = vld [vmem:[%s13673_s0 + $0x168] sm:$0xff]  ;;  %6422 = vrsqrt.f32 %v10586_v44 }
 0x2a4   : > { %v3234_v57 = vadd.f32 %v3090_v53, %v2586_v10  ;;  %v2048_v30 = vsel %vm10597_vm2, %v10351_v8, %v2044_v16  ;;  %v1868_v13 = vsel %vm10582_vm1, %v10043_v7, %v1864_v15  ;;  %v3087_v43 = vmul.f32 %v6492_v63, %v10421_v21  ;;  %v2237_v8 = vld [vmem:[%s13675_s2 + $0x1d0] sm:$0xff]  ;;  %v2219_v7 = vld [vmem:[%s13675_s2 + $0x140] sm:$0xff]  ;;  %v2584_v50 = vld [vmem:[%s13674_s1 + $0x168] sm:$0xff] }
 0x2a5   : > { %14559 = vst [vmem:[#allocation52_spill] sm:$0xff] %v10605_v34  ;;  %v3088_v54 = vmul.f32 %v6493_v22, %v10421_v21  ;;  %v3703_v53 = vadd.f32 %v3364_v17, %v3199_v59  ;;  %v10629_v10 = vadd.f32 %v3364_v17, %v3200_v9  ;;  %v2022_v16 = vmul.f32 0.5, %v2021_v45  ;;  %v2583_v21 = vld [vmem:[%s13674_s1 + $0x160] sm:$0xff] }
 0x2a6   : > { %v10638_v15 = vadd.f32 %v3449_v52, %v3234_v57  ;;  %v2527_v55 = vsub.f32 %v2383_v56, %v2455_v49  ;;  %v3849_v59 = vmax.f32 %v3705_v41, 0.0  ;;  %v3233_v47 = vadd.f32 %v3089_v4, %v2585_v3  ;;  %v6494_v49 = vld [vmem:[%s13673_s0 + $0x48] sm:$0xff] }
 0x2a7   : > { %14561 = vst [vmem:[#allocation37_spill] sm:$0xff] %v10629_v10  ;;  %v3847_v9 = vmax.f32 %v3703_v53, 0.0  ;;  %v1874_v51 = vmul.f32 %v14536_v0, %v1873_v29  ;;  %v2030_v45 = vmul.f32 %v10571_v60, %v10449_v2  ;;  %v3052_v20 = vmul.f32 %v6494_v49, %v10494_v37  ;;  %v2548_v29 = vld [vmem:[%s13674_s1 + $0x48] sm:$0xff] }
 0x2a8   : > { %14562 = vst [vmem:[#allocation27_spill] sm:$0xff] %v10638_v15  ;;  %v10653_v56 = vmul.f32 %v2237_v8, %v2048_v30  ;;  %3633 = vperm.xlu0 %6308, %v2527_v55   ;;  %v10655_v6 = vmul.f32 %v2219_v7, %v1868_v13  ;;  %v3737_v17 = vadd.f32 %v3449_v52, %v3233_v47  ;;  %v10661_v3 = vmul.f32 0.5, %v10411_v26  ;;  %v14565_v13 = vld [vmem:[#allocation10_spill] sm:$0xff]  ;;  %v3444_v22 = vpop.permute.xlu0 %3443  ;;  %v14567_v8 = vld [vmem:[#allocation57_spill] sm:$0xff] }
 0x2a9   : > { %v3231_v41 = vadd.f32 %v3087_v43, %v2583_v21  ;;  %v3232_v57 = vadd.f32 %v3088_v54, %v2584_v50  ;;  %v3985_v4 = vpack.c.bf16 %v3849_v59, %v3847_v9  ;;  %v1851_v52 = vmul.f32 %v10408_v39, %v10446_v31  ;;  %v2220_v31 = vld [vmem:[%s13675_s2 + $0x148] sm:$0xff]  ;;  %v10689_v55 = vpop.permute.xlu1 %2790  ;;  %v14568_v50 = vld [vmem:[#allocation8_spill] sm:$0xff]  ;;  %v14569_v9 = vld [vmem:[#allocation97_spill] sm:$0xff] }
 0x2aa   : > { %v1223_v63 = vmul.f32 0.0051020407, %v14565_v13  ;;  %v10674_v43 = vadd.f32 1e-05, %v1370_v35  ;;  %2975 = vperm.xlu2 %6307, %v10653_v56   ;;  %2885 = vperm.xlu1 %6309, %v10655_v6   ;;  %v2023_v26 = vsub.f32 1.5, %v2022_v16  ;;  %v1878_v24 = vsel %vm10667_vm3, %v14536_v0, %v1874_v51  ;;  %v10686_v35 = vpop.eup %6422  ;;  %v10691_v16 = vpop.permute.xlu2 %3353  ;;  %v14570_v0 = vld [vmem:[#allocation59_spill] sm:$0xff] }
 0x2ab   : > { %v3735_v54 = vadd.f32 %v3444_v22, %v3231_v41  ;;  %v10678_v53 = vadd.f32 %v3444_v22, %v3232_v57  ;;  %4668 = vmatpush.bf16.msra.mxu0 %v3985_v4  ;;  %6285 = vmatpush.bf16.msra.mxu2 %v3985_v4  ;;  %v1221_v7 = vmul.f32 0.0051020407, %v14567_v8  ;;  %v3196_v21 = vadd.f32 %v3052_v20, %v2548_v29  ;;  %v2384_v4 = vld [vmem:[%s13676_s3 + $0x1e8] sm:$0xff]  ;;  %v2366_v20 = vld [vmem:[%s13676_s3 + $0x158] sm:$0xff]  ;;  %v14571_v29 = vld [vmem:[#allocation118_spill] sm:$0xff] }
 0x2ac   : > { %v2456_v59 = vmul.f32 %v10379_v40, %v14568_v50  ;;  %v2438_v47 = vmul.f32 %v10555_v25, %v14569_v9  ;;  %v1222_v51 = vmul.f32 0.0051020407, %v14570_v0  ;;  %v2031_v49 = vmul.f32 %v10571_v60, %v2030_v45  ;;  %v14573_v45 = vld [vmem:[#allocation69_spill] sm:$0xff]  ;;  %v14574_v9 = vld [vmem:[#allocation94_spill] sm:$0xff] }
 0x2ad   : > { %14566 = vst [vmem:[#allocation13_spill] sm:$0xff] %v10678_v53  ;;  %v3881_v41 = vmax.f32 %v3737_v17, 0.0  ;;  %v3879_v57 = vmax.f32 %v3735_v54, 0.0  ;;  %v1367_v30 = vsub.f32 %v1223_v63, %v14571_v29  ;;  %6424 = vrsqrt.f32 %v10674_v43 }
 0x2ae   : > { %v10708_v40 = vadd.f32 %v10691_v16, %v3196_v21  ;;  %v10710_v25 = vmul.f32 %v2220_v31, %v1878_v24  ;;  %vm2026_vm4 = vweird.f32 %v10477_v58  ;;  %v1224_v17 = vmul.f32 0.0051020407, %v14573_v45  ;;  %v2235_v45 = vld [vmem:[%s13675_s2 + $0x1c0] sm:$0xff] }
 0x2af   : > { %v4001_v13 = vpack.c.bf16 %v3881_v41, %v3879_v57  ;;  %v2024_v22 = vmul.f32 %v10477_v58, %v2023_v26  ;;  %v1852_v54 = vmul.f32 0.5, %v1851_v52  ;;  %v2000_v8 = vmul.f32 %v10686_v35, %v10586_v44  ;;  %v14575_v52 = vld [vmem:[#allocation64_spill] sm:$0xff]  ;;  %v14576_v41 = vld [vmem:[#allocation101_spill] sm:$0xff] }
 0x2b0   : > { %14572 = vst [vmem:[#allocation98_spill] sm:$0xff] %v10708_v40  ;;  %v2528_v50 = vsub.f32 %v2384_v4, %v2456_v59  ;;  %2890 = vperm.xlu0 %6308, %v10710_v25   ;;  %v2510_v63 = vsub.f32 %v2366_v20, %v2438_v47  ;;  %v1365_v24 = vsub.f32 %v1221_v7, %v14574_v9  ;;  %v2032_v31 = vmul.f32 0.5, %v2031_v49  ;;  %v14577_v57 = vld [vmem:[#allocation124_spill] sm:$0xff]  ;;  %v14580_v20 = vld [vmem:[#allocation113_spill] sm:$0xff] }
 0x2b1   : > { %vm2025_vm5 = vweird.f32 %v10384_v38  ;;  %4767 = vmatpush.bf16.msra.mxu1 %v4001_v13  ;;  %6293 = vmatpush.bf16.msra.mxu3 %v4001_v13  ;;  %vm1855_vm6 = vweird.f32 %v10322_v27  ;;  %v1220_v26 = vmul.f32 0.0051020407, %v14575_v52  ;;  %v10725_v59 = vmul.f32 0.0051020407, %v14576_v41  ;;  %v10734_v38 = vpop.permute.xlu0 %2700  ;;  %v14582_v41 = vld [vmem:[#allocation122_spill] sm:$0xff]  ;;  %v2365_v7 = vld [vmem:[%s13676_s3 + $0x150] sm:$0xff] }
 0x2b2   : > { %v1366_v47 = vsub.f32 %v1222_v51, %v14577_v57  ;;  %vm10730_vm7 = vmor %vm2025_vm5, %vm2026_vm4  ;;  %3638 = vperm.xlu2 %6307, %v2528_v50   ;;  %3548 = vperm.xlu1 %6309, %v2510_v63   ;;  %v10737_v4 = vadd.f32 1e-05, %v1367_v30  ;;  %v1368_v29 = vsub.f32 %v1224_v17, %v14580_v20  ;;  %v1853_v50 = vsub.f32 1.5, %v1852_v54  ;;  %v10749_v63 = vpop.permute.xlu1 %2695  ;;  %v10751_v52 = vpop.permute.xlu2 %2780  ;;  %v14581_v30 = vld [vmem:[#allocation77_spill] sm:$0xff]  ;;  %v6495_v54 = vld [vmem:[%s13673_s0 + $0x40] sm:$0xff] }
 0x2b3   : > { %v2028_v51 = vsel %vm10730_vm7, %v10477_v58, %v2024_v22  ;;  %v10746_v13 = vpop.eup %6424  ;;  %v2001_v9 = vmul.f32 %v10686_v35, %v2000_v8  ;;  %v2437_v17 = vmul.f32 %v10454_v1, %v14581_v30  ;;  %v2453_v57 = vmul.f32 %v10653_v56, %v14582_v41  ;;  %v2381_v1 = vld [vmem:[%s13676_s3 + $0x1d0] sm:$0xff]  ;;  %v14583_v56 = vld [vmem:[#allocation103_spill] sm:$0xff]  ;;  %v2547_v41 = vld [vmem:[%s13674_s1 + $0x40] sm:$0xff] }
 0x2b4   : > { %vm1856_vm8 = vweird.f32 %v10408_v39  ;;  %v10758_v58 = vadd.f32 1e-05, %v1365_v24  ;;  %v2033_v22 = vsub.f32 1.5, %v2032_v31  ;;  %v3051_v8 = vmul.f32 %v6495_v54, %v10494_v37  ;;  %v14584_v30 = vld [vmem:[#allocation104_spill] sm:$0xff] }
 0x2b5   : > { %v1364_v20 = vsub.f32 %v1220_v26, %v14583_v56  ;;  %v10773_v31 = vadd.f32 1e-05, %v1366_v47  ;;  %v10778_v37 = vmul.f32 %v2235_v45, %v2028_v51  ;;  %6426 = vrsqrt.f32 %v10737_v4  ;;  %v6496_v26 = vld [vmem:[%s13673_s0 + $0x50] sm:$0xff]  ;;  %vm10815_vm12 = vmor %vm1855_vm6, %vm1856_vm8 }
 0x2b6   : > { %v2010_v54 = vmul.f32 %v10746_v13, %v10674_v43  ;;  %v10783_v0 = vadd.f32 1e-05, %v1368_v29  ;;  %v3053_v47 = vmul.f32 %v6496_v26, %v10423_v11  ;;  %vm1846_vm9 = vweird.f32 %v9701_v61  ;;  %v2549_v45 = vld [vmem:[%s13674_s1 + $0x50] sm:$0xff] }
 0x2b7   : > { %v10790_v56 = vmul.f32 0.5, %v2001_v9  ;;  %v2509_v49 = vsub.f32 %v2365_v7, %v2437_v17  ;;  %v2525_v51 = vsub.f32 %v2381_v1, %v2453_v57  ;;  %v1854_v29 = vmul.f32 %v10408_v39, %v1853_v50  ;;  %v14586_v17 = vld [vmem:[#allocation81_spill] sm:$0xff]  ;;  %v14587_v50 = vld [vmem:[#allocation34_spill] sm:$0xff] }
 0x2b8   : > { %2965 = vperm.xlu0 %6308, %v10778_v37   ;;  %6428 = vrsqrt.f32 %v10758_v58  ;;  %vm2036_vm10 = vweird.f32 %v10571_v60  ;;  %v3195_v24 = vadd.f32 %v3051_v8, %v2547_v41  ;;  %v2034_v26 = vmul.f32 %v10571_v60, %v2033_v22  ;;  %v2382_v41 = vld [vmem:[%s13676_s3 + $0x1d8] sm:$0xff] }
 0x2b9   : > { %vm1845_vm11 = vweird.f32 %v9600_v62  ;;  %v10801_v9 = vadd.f32 1e-05, %v1364_v20  ;;  %6430 = vrsqrt.f32 %v10773_v31  ;;  %v10805_v57 = vmul.f32 0.0051020407, %v14586_v17  ;;  %v10807_v7 = vpop.permute.xlu0 %2775  ;;  %v6498_v17 = vld [vmem:[%s13673_s0 + $0x158] sm:$0xff]  ;;  %v2363_v62 = vld [vmem:[%s13676_s3 + $0x140] sm:$0xff] }
 0x2ba   : > { %3543 = vperm.xlu2 %6307, %v2509_v49   ;;  %3623 = vperm.xlu1 %6309, %v2525_v51   ;;  %v2454_v1 = vmul.f32 %v10567_v32, %v14587_v50  ;;  %vm2035_vm13 = vweird.f32 %v10449_v2  ;;  %v2011_v8 = vmul.f32 %v10746_v13, %v2010_v54  ;;  %v3699_v49 = vadd.f32 %v10691_v16, %v3195_v24  ;;  %v14592_v2 = vld [vmem:[#allocation24_spill] sm:$0xff]  ;;  %v10836_v54 = vpop.permute.xlu1 %3358  ;;  %v10838_v16 = vpop.permute.xlu2 %2685  ;;  %v2218_v22 = vld [vmem:[%s13675_s2 + $0x138] sm:$0xff]  ;;  %vm10911_vm2 = vmor %vm1845_vm11, %vm1846_vm9 }
 0x2bb   : > { %14585 = vst [vmem:[#allocation88_spill] sm:$0xff] %v10801_v9  ;;  %v3197_v20 = vadd.f32 %v3053_v47, %v2549_v45  ;;  %vm10827_vm14 = vmor %vm2035_vm13, %vm2036_vm10  ;;  %v2003_v27 = vsub.f32 1.5, %v10790_v56  ;;  %6432 = vrsqrt.f32 %v10783_v0  ;;  %v10834_v51 = vmul.f32 0.0051020407, %v14592_v2  ;;  %v10843_v47 = vpop.eup %6426  ;;  %v6497_v45 = vld [vmem:[%s13673_s0 + $0x150] sm:$0xff] }
 0x2bc   : > { %14593 = vst [vmem:[#allocation75_spill] sm:$0xff] %v10836_v54  ;;  %v1858_v24 = vsel %vm10815_vm12, %v10408_v39, %v1854_v29  ;;  %v3085_v56 = vmul.f32 %v6497_v45, %v10689_v55  ;;  %v3086_v50 = vmul.f32 %v6498_v17, %v10689_v55  ;;  %v2038_v39 = vsel %vm10827_vm14, %v10571_v60, %v2034_v26  ;;  %v2236_v29 = vld [vmem:[%s13675_s2 + $0x1c8] sm:$0xff]  ;;  %v14595_v45 = vld [vmem:[#allocation53_spill] sm:$0xff]  ;;  %v6499_v55 = vld [vmem:[%s13673_s0 + $0x140] sm:$0xff] }
 0x2bd   : > { %14594 = vst [vmem:[#allocation54_spill] sm:$0xff] %v10838_v16  ;;  %v3701_v2 = vadd.f32 %v10836_v54, %v3197_v20  ;;  %v1385_v21 = vsub.f32 %v10805_v57, %v14595_v45  ;;  %v3083_v20 = vmul.f32 %v6499_v55, %v10512_v19  ;;  %v6500_v60 = vld [vmem:[%s13673_s0 + $0x148] sm:$0xff]  ;;  %v2526_v32 = vsub.f32 %v2382_v41, %v2454_v1  ;;  %v2581_v17 = vld [vmem:[%s13674_s1 + $0x150] sm:$0xff]  ;;  %v2582_v57 = vld [vmem:[%s13674_s1 + $0x158] sm:$0xff] }
 0x2be   : > { %v3084_v26 = vmul.f32 %v6500_v60, %v10512_v19  ;;  %v10879_v45 = vpop.eup %6428  ;;  %vm2006_vm15 = vweird.f32 %v10686_v35  ;;  %v2012_v55 = vmul.f32 0.5, %v2011_v8  ;;  %v3843_v15 = vmax.f32 %v3699_v49, 0.0  ;;  %v2579_v19 = vld [vmem:[%s13674_s1 + $0x140] sm:$0xff]  ;;  %v2580_v1 = vld [vmem:[%s13674_s1 + $0x148] sm:$0xff] }
 0x2bf   : > { %v3845_v53 = vmax.f32 %v3701_v2, 0.0  ;;  %v10888_v41 = vpop.eup %6430  ;;  %v1980_v60 = vmul.f32 %v10843_v47, %v10737_v4  ;;  %v10892_v5 = vmul.f32 %v2236_v29, %v2038_v39  ;;  %v10894_v9 = vmul.f32 %v2218_v22, %v1858_v24  ;;  %v14597_v22 = vld [vmem:[#allocation87_spill] sm:$0xff] }
 0x2c0   : > { %3628 = vperm.xlu0 %6308, %v2526_v32   ;;  %v14596_v8 = vsub.f32 1.5, %v10399_v48  ;;  %v3229_v2 = vadd.f32 %v3085_v56, %v2581_v17  ;;  %v3230_v40 = vadd.f32 %v3086_v50, %v2582_v57  ;;  %v2004_v10 = vmul.f32 %v10686_v35, %v2003_v27  ;;  %v6501_v27 = vld [vmem:[%s13673_s0 + $0x30] sm:$0xff] }
 0x2c1   : > { %v3983_v54 = vpack.c.bf16 %v3845_v53, %v3843_v15  ;;  %v10900_v34 = vpop.eup %6432  ;;  %vm2005_vm1 = vweird.f32 %v10586_v44  ;;  %v3439_v39 = vpop.permute.xlu0 %3438  ;;  %v3227_v24 = vadd.f32 %v3083_v20, %v2579_v19  ;;  %v3228_v29 = vadd.f32 %v3084_v26, %v2580_v1  ;;  %v2545_v57 = vld [vmem:[%s13674_s1 + $0x30] sm:$0xff]  ;;  %v6502_v19 = vld [vmem:[%s13673_s0 + $0x20] sm:$0xff] }
 0x2c2   : > { %v1844_v49 = vmul.f32 %v9701_v61, %v14596_v8  ;;  %2970 = vperm.xlu2 %6307, %v10892_v5   ;;  %2880 = vperm.xlu1 %6309, %v10894_v9   ;;  %v2435_v48 = vmul.f32 %v10655_v6, %v14597_v22  ;;  %v2013_v53 = vsub.f32 1.5, %v2012_v55  ;;  %v3049_v56 = vmul.f32 %v6501_v27, %v10734_v38  ;;  %vm10931_vm4 = vmor %vm2005_vm1, %vm2006_vm15  ;;  %v3434_v17 = vpop.permute.xlu1 %3433  ;;  %v10942_v55 = vpop.permute.xlu2 %3348  ;;  %v2217_v8 = vld [vmem:[%s13675_s2 + $0x130] sm:$0xff] }
 0x2c3   : > { %v3733_v50 = vadd.f32 %v3439_v39, %v3229_v2  ;;  %v10919_v20 = vadd.f32 %v3439_v39, %v3230_v40  ;;  %4669 = vmatpush.bf16.msra.mxu0 %v3983_v54  ;;  %6286 = vmatpush.bf16.msra.mxu2 %v3983_v54  ;;  %vm1826_vm3 = vweird.f32 %v10011_v36  ;;  %v1960_v6 = vmul.f32 %v10879_v45, %v10758_v58  ;;  %v14603_v40 = vld [vmem:[#allocation21_spill] sm:$0xff] }
 0x2c4   : > { %v1386_v54 = vsub.f32 %v10834_v51, %v14603_v40  ;;  %v10937_v32 = vadd.f32 1e-05, %v1385_v21  ;;  %v1848_v44 = vsel %vm10911_vm2, %v9701_v61, %v1844_v49  ;;  %vm1836_vm5 = vweird.f32 %v14533_v14  ;;  %v2233_v61 = vld [vmem:[%s13675_s2 + $0x1b0] sm:$0xff] }
 0x2c5   : > { %14600 = vst [vmem:[#allocation76_spill] sm:$0xff] %v10919_v20  ;;  %v3047_v21 = vmul.f32 %v6502_v19, %v10749_v63  ;;  %v3731_v51 = vadd.f32 %v3434_v17, %v3227_v24  ;;  %v10952_v1 = vadd.f32 %v3434_v17, %v3228_v29  ;;  %v2008_v2 = vsel %vm10931_vm4, %v10686_v35, %v2004_v10  ;;  %v2543_v29 = vld [vmem:[%s13674_s1 + $0x20] sm:$0xff] }
 0x2c6   : > { %vm1825_vm6 = vweird.f32 %v9627_v18  ;;  %v1981_v49 = vmul.f32 %v10843_v47, %v1980_v60  ;;  %vm2016_vm7 = vweird.f32 %v10746_v13  ;;  %v1990_v39 = vmul.f32 %v10900_v34, %v10783_v0  ;;  %v2539_v20 = vld [vmem:[%s13674_s1] sm:$0xff] }
 0x2c7   : > { %14604 = vst [vmem:[#allocation63_spill] sm:$0xff] %v10952_v1  ;;  %v2507_v24 = vsub.f32 %v2363_v62, %v2435_v48  ;;  %vm1835_vm8 = vweird.f32 %v14532_v33  ;;  %v3877_v10 = vmax.f32 %v3733_v50, 0.0  ;;  %v3875_v35 = vmax.f32 %v3731_v51, 0.0  ;;  %v6503_v48 = vld [vmem:[%s13673_s0 + $0x128] sm:$0xff]  ;;  %v2234_v51 = vld [vmem:[%s13675_s2 + $0x1b8] sm:$0xff]  ;;  %vm11052_vm11 = vmor %vm1825_vm6, %vm1826_vm3 }
 0x2c8   : > { %v3193_v22 = vadd.f32 %v3049_v56, %v2545_v57  ;;  %v2014_v15 = vmul.f32 %v10746_v13, %v2013_v53  ;;  %v14605_v60 = vsub.f32 %v10725_v59, %v14584_v30  ;;  %v3080_v62 = vmul.f32 %v6503_v48, %v10807_v7  ;;  %v2576_v59 = vld [vmem:[%s13674_s1 + $0x128] sm:$0xff]  ;;  %v14618_v57 = vld [vmem:[#allocation4_spill] sm:$0xff]  ;;  %vm11068_vm12 = vmor %vm1835_vm8, %vm1836_vm5 }
 0x2c9   : > { %v2289_v26 = vmul.f32 %v2217_v8, %v1848_v44  ;;  %3533 = vperm.xlu0 %6308, %v2507_v24   ;;  %v10982_v40 = vmul.f32 %v2233_v61, %v2008_v2  ;;  %vm2015_vm9 = vweird.f32 %v10674_v43  ;;  %v3191_v53 = vadd.f32 %v3047_v21, %v2543_v29  ;;  %v11005_v44 = vpop.permute.xlu0 %3343  ;;  %v14610_v24 = vld [vmem:[#allocation123_spill] sm:$0xff]  ;;  %v14623_v33 = vld [vmem:[#allocation109_spill] sm:$0xff] }
 0x2ca   : > { %v10976_v27 = vadd.f32 1e-05, %v14605_v60  ;;  %v3697_v56 = vadd.f32 %v10942_v55, %v3193_v22  ;;  %v3999_v50 = vpack.c.bf16 %v3877_v10, %v3875_v35  ;;  %v10990_v30 = vmul.f32 %v10879_v45, %v1960_v6  ;;  %vm10998_vm10 = vmor %vm2015_vm9, %vm2016_vm7  ;;  %v11018_v8 = vpop.permute.xlu1 %2690  ;;  %v11020_v2 = vpop.permute.xlu2 %3423  ;;  %v2364_v48 = vld [vmem:[%s13676_s3 + $0x148] sm:$0xff] }
 0x2cb   : > { %v10994_v17 = vmul.f32 %v10888_v41, %v10773_v31  ;;  %v11002_v43 = vadd.f32 1e-05, %v1386_v54  ;;  %6434 = vrsqrt.f32 %v10937_v32  ;;  %2875 = vperm.xlu2 %6307, %v2289_v26   ;;  %2955 = vperm.xlu1 %6309, %v10982_v40   ;;  %v11008_v6 = vmul.f32 0.5, %v1981_v49  ;;  %14608 = vst [vmem:[#allocation84_spill] sm:$0xff] %v11018_v8  ;;  %v14609_v49 = vld [vmem:[#allocation85_spill] sm:$0xff] }
 0x2cc   : > { %v1991_v19 = vmul.f32 %v10900_v34, %v1990_v39  ;;  %v3695_v21 = vadd.f32 %v11005_v44, %v3191_v53  ;;  %4768 = vmatpush.bf16.msra.mxu1 %v3999_v50  ;;  %6294 = vmatpush.bf16.msra.mxu3 %v3999_v50  ;;  %v2018_v54 = vsel %vm10998_vm10, %v10746_v13, %v2014_v15  ;;  %v14611_v10 = vsub.f32 1.5, %v10661_v3  ;;  %v14612_v13 = vld [vmem:[#allocation39_spill] sm:$0xff] }
 0x2cd   : > { %v3224_v61 = vadd.f32 %v3080_v62, %v2576_v59  ;;  %v2436_v39 = vmul.f32 %v10710_v25, %v14609_v49  ;;  %v2452_v29 = vmul.f32 %v10892_v5, %v14610_v24  ;;  %v3864_v22 = vmax.f32 %v14612_v13, 0.0  ;;  %v2380_v25 = vld [vmem:[%s13676_s3 + $0x1c8] sm:$0xff]  ;;  %v14619_v49 = vld [vmem:[#allocation102_spill] sm:$0xff] }
 0x2ce   : > { %v11029_v35 = vmul.f32 %v10011_v36, %v14611_v10  ;;  %v3841_v15 = vmax.f32 %v3697_v56, 0.0  ;;  %v3839_v60 = vmax.f32 %v3695_v21, 0.0  ;;  %v14613_v62 = vsub.f32 1.5, %v10429_v23  ;;  %v14614_v3 = vld [vmem:[#allocation71_spill] sm:$0xff]  ;;  %v14625_v59 = vld [vmem:[#allocation46_spill] sm:$0xff] }
 0x2cf   : > { %6436 = vrsqrt.f32 %v11002_v43  ;;  %v3860_v53 = vmax.f32 %v14614_v3, 0.0  ;;  %v11044_v50 = vadd.f32 %v11020_v2, %v3224_v61  ;;  %v11046_v56 = vmul.f32 %v2234_v51, %v2018_v54  ;;  %v14622_v54 = vld [vmem:[#allocation66_spill] sm:$0xff] }
 0x2d0   : > { %v1834_v5 = vmul.f32 %v14533_v14, %v14613_v62  ;;  %v11056_v23 = vmul.f32 0.5, %v1991_v19  ;;  %v11059_v21 = vmul.f32 0.0051020407, %v14618_v57  ;;  %v3866_v24 = vmax.f32 %v14619_v49, 0.0  ;;  %v2550_v49 = vld [vmem:[%s13674_s1 + $0x58] sm:$0xff] }
 0x2d1   : > { %14615 = vst [vmem:[#allocation11_spill] sm:$0xff] %v11044_v50  ;;  %v3981_v10 = vpack.c.bf16 %v3841_v15, %v3839_v60  ;;  %v11062_v61 = vpop.eup %6434  ;;  %v3862_v51 = vmax.f32 %v14622_v54, 0.0  ;;  %v2508_v19 = vsub.f32 %v2364_v48, %v2436_v39  ;;  %2960 = vperm.xlu0 %6308, %v11046_v56   ;;  %v2524_v13 = vsub.f32 %v2380_v25, %v2452_v29  ;;  %v6506_v54 = vld [vmem:[%s13673_s0 + $0x120] sm:$0xff] }
 0x2d2   : > { %v1828_v15 = vsel %vm11052_vm11, %v10011_v36, %v11029_v35  ;;  %v11080_v62 = vmul.f32 %v2289_v26, %v14623_v33  ;;  %v1838_v3 = vsel %vm11068_vm12, %v14533_v14, %v1834_v5  ;;  %v11085_v39 = vpack.c.bf16 %v3866_v24, %v3864_v22  ;;  %v6504_v36 = vld [vmem:[%s13673_s0 + $0x58] sm:$0xff]  ;;  %v11093_v35 = vpop.permute.xlu0 %2770  ;;  %v2215_v14 = vld [vmem:[%s13675_s2 + $0x120] sm:$0xff]  ;;  %v2216_v26 = vld [vmem:[%s13675_s2 + $0x128] sm:$0xff]  ;;  %v11140_v33 = vpop.permute.xlu2 %3338 }
 0x2d3   : > { %4670 = vmatpush.bf16.msra.mxu0 %v3981_v10  ;;  %6287 = vmatpush.bf16.msra.mxu2 %v3981_v10  ;;  %vm1995_vm13 = vweird.f32 %v10783_v0  ;;  %vm1996_vm14 = vweird.f32 %v10900_v34  ;;  %v3054_v29 = vmul.f32 %v6504_v36, %v10423_v11  ;;  %v14624_v22 = vld [vmem:[#allocation107_spill] sm:$0xff]  ;;  %v11105_v25 = vpack.c.bf16 %v3862_v51, %v3860_v53  ;;  %v6505_v24 = vld [vmem:[%s13673_s0 + $0x10] sm:$0xff]  ;;  %v14626_v36 = vld [vmem:[#allocation114_spill] sm:$0xff] }
 0x2d4   : > { %3538 = vperm.xlu2 %6307, %v2508_v19   ;;  %3618 = vperm.xlu1 %6309, %v2524_v13   ;;  %v11103_v48 = vmul.f32 %v10894_v9, %v14624_v22  ;;  %v1993_v11 = vsub.f32 1.5, %v11056_v23  ;;  %v11110_v5 = vmul.f32 %v11062_v61, %v10937_v32  ;;  %v3856_v57 = vmax.f32 %v14625_v59, 0.0  ;;  %v2361_v53 = vld [vmem:[%s13676_s3 + $0x130] sm:$0xff]  ;;  %v11126_v23 = vld [vmem:[%s13676_s3 + $0x138] sm:$0xff]  ;;  %v11135_v19 = vpop.permute.xlu1 %2765  ;;  %v2575_v50 = vld [vmem:[%s13674_s1 + $0x120] sm:$0xff] }
 0x2d5   : > { %v3045_v9 = vmul.f32 %v6505_v24, %v11018_v8  ;;  %v11128_v10 = vpop.eup %6436  ;;  %v3858_v18 = vmax.f32 %v10146_v28, 0.0  ;;  %v3079_v51 = vmul.f32 %v6506_v54, %v10807_v7  ;;  %v2541_v13 = vld [vmem:[%s13674_s1 + $0x10] sm:$0xff]  ;;  %v2451_v22 = vmul.f32 %v10778_v37, %v14626_v36  ;;  %v14628_v28 = vld [vmem:[#allocation43_spill] sm:$0xff]  ;;  %v6507_v7 = vld [vmem:[%s13673_s0] sm:$0xff] }
 0x2d6   : > { %v14627_v59 = vsub.f32 1.5, %v10327_v42  ;;  %v3852_v60 = vmax.f32 %v10279_v12, 0.0  ;;  %v3043_v54 = vmul.f32 %v6507_v7, %v10838_v16  ;;  %v2379_v37 = vld [vmem:[%s13676_s3 + $0x1c0] sm:$0xff]  ;;  %v11160_v42 = vmul.f32 %v2215_v14, %v1828_v15  ;;  %v6508_v8 = vld [vmem:[%s13673_s0 + $0x38] sm:$0xff]  ;;  %vm11215_vm2 = vmor %vm1995_vm13, %vm1996_vm14 }
 0x2d7   : > { %v11162_v36 = vmul.f32 %v2216_v26, %v1838_v3  ;;  %v3854_v12 = vmax.f32 %v10283_v46, 0.0  ;;  %v2505_v7 = vsub.f32 %v2361_v53, %v11080_v62  ;;  %v3050_v15 = vmul.f32 %v6508_v8, %v10734_v38  ;;  %v6509_v46 = vld [vmem:[%s13673_s0 + $0x130] sm:$0xff]  ;;  %v2578_v8 = vld [vmem:[%s13674_s1 + $0x138] sm:$0xff] }
 0x2d8   : > { %v11147_v24 = vmul.f32 %v14628_v28, %v14627_v59  ;;  %v3198_v59 = vadd.f32 %v3054_v29, %v2550_v49  ;;  %v3081_v3 = vmul.f32 %v6509_v46, %v10751_v52  ;;  %v6510_v29 = vld [vmem:[%s13673_s0 + $0x138] sm:$0xff]  ;;  %v3189_v14 = vadd.f32 %v3045_v9, %v2541_v13  ;;  %v2577_v38 = vld [vmem:[%s13674_s1 + $0x130] sm:$0xff] }
 0x2d9   : > { %v3082_v62 = vmul.f32 %v6510_v29, %v10751_v52  ;;  %vm1806_vm15 = vweird.f32 %v14628_v28  ;;  %v3223_v26 = vadd.f32 %v3079_v51, %v2575_v50  ;;  %v2523_v49 = vsub.f32 %v2379_v37, %v2451_v22  ;;  %2865 = vperm.xlu0 %6308, %v11160_v42   ;;  %v14629_v52 = vld [vmem:[#allocation52_spill] sm:$0xff]  ;;  %v6511_v50 = vld [vmem:[%s13673_s0 + $0x28] sm:$0xff]  ;;  %v2546_v13 = vld [vmem:[%s13674_s1 + $0x38] sm:$0xff] }
 0x2da   : > { %v1994_v53 = vmul.f32 %v10900_v34, %v1993_v11  ;;  %v11192_v46 = vpack.c.bf16 %v3858_v18, %v3856_v57  ;;  %v3850_v9 = vmax.f32 %v14629_v52, 0.0  ;;  %v3048_v51 = vmul.f32 %v6511_v50, %v10749_v63  ;;  %v14630_v29 = vld [vmem:[#allocation116_spill] sm:$0xff]  ;;  %v14631_v11 = vld [vmem:[#allocation37_spill] sm:$0xff]  ;;  %v14632_v18 = vld [vmem:[#allocation75_spill] sm:$0xff]  ;;  %v11207_v16 = vpop.permute.xlu0 %3333 }
 0x2db   : > { %v3693_v22 = vadd.f32 %v11140_v33, %v3189_v14  ;;  %v3187_v37 = vadd.f32 %v3043_v54, %v2539_v20  ;;  %vm1805_vm1 = vweird.f32 %v14630_v29  ;;  %v3848_v57 = vmax.f32 %v14631_v11, 0.0  ;;  %v14635_v54 = vld [vmem:[#allocation98_spill] sm:$0xff] }
 0x2dc   : > { %v3702_v1 = vadd.f32 %v14632_v18, %v3198_v59  ;;  %v3727_v52 = vadd.f32 %v11020_v2, %v3223_v26  ;;  %3613 = vperm.xlu2 %6307, %v2523_v49   ;;  %3523 = vperm.xlu1 %6309, %v2505_v7   ;;  %v11209_v63 = vpack.c.bf16 %v3854_v12, %v3852_v60  ;;  %v3844_v14 = vmax.f32 %v14635_v54, 0.0  ;;  %v2544_v2 = vld [vmem:[%s13674_s1 + $0x28] sm:$0xff]  ;;  %v6512_v12 = vld [vmem:[%s13673_s0 + $0x110] sm:$0xff]  ;;  %v6513_v49 = vld [vmem:[%s13673_s0 + $0x118] sm:$0xff]  ;;  %v3429_v11 = vpop.permute.xlu1 %3428  ;;  %v11232_v18 = vpop.permute.xlu2 %2915 }
 0x2dd   : > { %v3691_v59 = vadd.f32 %v11207_v16, %v3187_v37  ;;  %v3225_v26 = vadd.f32 %v3081_v3, %v2577_v38  ;;  %v3226_v7 = vadd.f32 %v3082_v62, %v2578_v8  ;;  %v3194_v60 = vadd.f32 %v3050_v15, %v2546_v13  ;;  %v2232_v13 = vld [vmem:[%s13675_s2 + $0x1a8] sm:$0xff]  ;;  %vm11291_vm5 = vmor %vm1805_vm1, %vm1806_vm15 }
 0x2de   : > { %v3077_v0 = vmul.f32 %v6512_v12, %v11093_v35  ;;  %v3078_v50 = vmul.f32 %v6513_v49, %v11093_v35  ;;  %v1998_v3 = vsel %vm11215_vm2, %v10900_v34, %v1994_v53  ;;  %v3837_v15 = vmax.f32 %v3693_v22, 0.0  ;;  %v6514_v35 = vld [vmem:[%s13673_s0 + $0x100] sm:$0xff]  ;;  %v2573_v34 = vld [vmem:[%s13674_s1 + $0x110] sm:$0xff]  ;;  %v2574_v53 = vld [vmem:[%s13674_s1 + $0x118] sm:$0xff] }
 0x2df   : > { %v3835_v62 = vmax.f32 %v3691_v59, 0.0  ;;  %v3729_v38 = vadd.f32 %v3429_v11, %v3225_v26  ;;  %v11237_v8 = vadd.f32 %v3429_v11, %v3226_v7  ;;  %v3846_v37 = vmax.f32 %v3702_v1, 0.0  ;;  %v14636_v22 = vld [vmem:[#allocation41_spill] sm:$0xff]  ;;  %v6515_v1 = vld [vmem:[%s13673_s0 + $0x108] sm:$0xff] }
 0x2e0   : > { %v3192_v54 = vadd.f32 %v3048_v51, %v2544_v2  ;;  %v3871_v12 = vmax.f32 %v3727_v52, 0.0  ;;  %v3075_v49 = vmul.f32 %v6514_v35, %v11135_v19  ;;  %vm1816_vm3 = vweird.f32 %v14636_v22  ;;  %v2571_v2 = vld [vmem:[%s13674_s1 + $0x100] sm:$0xff] }
 0x2e1   : > { %v3076_v51 = vmul.f32 %v6515_v1, %v11135_v19  ;;  %v3873_v52 = vmax.f32 %v3729_v38, 0.0  ;;  %v3979_v20 = vpack.c.bf16 %v3837_v15, %v3835_v62  ;;  %v11260_v59 = vpack.c.bf16 %v3850_v9, %v3848_v57  ;;  %v2572_v19 = vld [vmem:[%s13674_s1 + $0x108] sm:$0xff]  ;;  %v14639_v38 = vld [vmem:[#allocation121_spill] sm:$0xff]  ;;  %v14640_v57 = vld [vmem:[#allocation88_spill] sm:$0xff] }
 0x2e2   : > { %v3696_v26 = vadd.f32 %v11005_v44, %v3192_v54  ;;  %v14637_v7 = vsub.f32 %v11126_v23, %v11103_v48  ;;  %v11266_v11 = vmul.f32 %v2232_v13, %v1998_v3  ;;  %v14638_v15 = vsub.f32 1.5, %v11008_v6  ;;  %v3419_v6 = vpop.permute.xlu0 %3418 }
 0x2e3   : > { %v2449_v9 = vmul.f32 %v10982_v40, %v14639_v38  ;;  %vm1986_vm4 = vweird.f32 %v10843_v47  ;;  %4671 = vmatpush.bf16.msra.mxu0 %v3979_v20  ;;  %6288 = vmatpush.bf16.msra.mxu2 %v3979_v20  ;;  %v3221_v44 = vadd.f32 %v3077_v0, %v2573_v34  ;;  %v3222_v48 = vadd.f32 %v3078_v50, %v2574_v53  ;;  %v2377_v0 = vld [vmem:[%s13676_s3 + $0x1b0] sm:$0xff]  ;;  %v14646_v50 = vld [vmem:[#allocation17_spill] sm:$0xff]  ;;  %v14651_v40 = vld [vmem:[#allocation19_spill] sm:$0xff] }
 0x2e4   : > { %3528 = vperm.xlu0 %6308, %v14637_v7   ;;  %v1984_v62 = vmul.f32 %v10843_v47, %v14638_v15  ;;  %v3997_v23 = vpack.c.bf16 %v3873_v52, %v3871_v12  ;;  %6438 = vrsqrt.f32 %v14640_v57  ;;  %v3698_v3 = vadd.f32 %v10942_v55, %v3194_v60  ;;  %2870 = vperm.xlu2 %6307, %v11162_v36   ;;  %v3414_v12 = vpop.permute.xlu1 %3413  ;;  %v11312_v35 = vpop.permute.xlu2 %2905  ;;  %v14647_v7 = vld [vmem:[#allocation44_spill] sm:$0xff]  ;;  %v14649_v38 = vld [vmem:[#allocation61_spill] sm:$0xff] }
 0x2e5   : > { %2950 = vperm.xlu1 %6309, %v11266_v11   ;;  %v3219_v13 = vadd.f32 %v3075_v49, %v2571_v2  ;;  %v11281_v54 = vpack.c.bf16 %v3846_v37, %v3844_v14  ;;  %vm1985_vm6 = vweird.f32 %v10737_v4  ;;  %v3725_v55 = vadd.f32 %v3419_v6, %v3221_v44 }
 0x2e6   : > { %v11296_v60 = vadd.f32 %v3419_v6, %v3222_v48  ;;  %4769 = vmatpush.bf16.msra.mxu1 %v3997_v23  ;;  %6295 = vmatpush.bf16.msra.mxu3 %v3997_v23  ;;  %v3220_v14 = vadd.f32 %v3076_v51, %v2572_v19  ;;  %6440 = vrsqrt.f32 %v10976_v27  ;;  %vm11304_vm7 = vmor %vm1985_vm6, %vm1986_vm4  ;;  %v2161_v4 = vmul.f32 %v11062_v61, %v11110_v5  ;;  %v2213_v5 = vld [vmem:[%s13675_s2 + $0x110] sm:$0xff] }
 0x2e7   : > { %v1383_v37 = vsub.f32 %v11059_v21, %v14646_v50  ;;  %v1808_v49 = vsel %vm11291_vm5, %v14628_v28, %v11147_v24  ;;  %v3840_v34 = vmax.f32 %v3696_v26, 0.0  ;;  %v3723_v53 = vadd.f32 %v3414_v12, %v3219_v13  ;;  %v2231_v21 = vld [vmem:[%s13675_s2 + $0x1a0] sm:$0xff]  ;;  %v14650_v48 = vld [vmem:[#allocation80_spill] sm:$0xff] }
 0x2e8   : > { %14643 = vst [vmem:[#allocation91_spill] sm:$0xff] %v11296_v60  ;;  %v11318_v1 = vadd.f32 %v3414_v12, %v3220_v14  ;;  %v1988_v51 = vsel %vm11304_vm7, %v10843_v47, %v1984_v62  ;;  %v1962_v52 = vmul.f32 0.5, %v10990_v30  ;;  %v1971_v28 = vmul.f32 %v10888_v41, %v10994_v17  ;;  %v14652_v14 = vld [vmem:[#allocation100_spill] sm:$0xff] }
 0x2e9   : > { %v2170_v24 = vmul.f32 %v11128_v10, %v11002_v43  ;;  %v2521_v20 = vsub.f32 %v2377_v0, %v2449_v9  ;;  %v3842_v2 = vmax.f32 %v3698_v3, 0.0  ;;  %v3869_v47 = vmax.f32 %v3725_v55, 0.0 }
 0x2ea   : > { %v3867_v26 = vmax.f32 %v3723_v53, 0.0  ;;  %v14648_v19 = vsub.f32 1.5, %v14647_v7  ;;  %v11338_v62 = vpop.eup %6438  ;;  %v11342_v30 = vmul.f32 %v14649_v38, %v14649_v38  ;;  %v2162_v44 = vmul.f32 0.5, %v2161_v4  ;;  %v14655_v4 = vld [vmem:[#allocation55_spill] sm:$0xff]  ;;  %v2921_v12 = vpop.permute.xlu0 %2920 }
 0x2eb   : > { %v11344_v17 = vmul.f32 %v2231_v21, %v1988_v51  ;;  %v11346_v9 = vmul.f32 %v2213_v5, %v1808_v49  ;;  %vm1815_vm8 = vweird.f32 %v14650_v48  ;;  %v11349_v23 = vadd.f32 1e-05, %v1383_v37  ;;  %v2634_v49 = vld [vmem:[%s13674_s1 + $0x2f8] sm:$0xff] }
 0x2ec   : > { %v1814_v15 = vmul.f32 %v14636_v22, %v14648_v19  ;;  %3603 = vperm.xlu0 %6308, %v2521_v20   ;;  %v3995_v3 = vpack.c.bf16 %v3869_v47, %v3867_v26  ;;  %v11351_v6 = vpack.c.bf16 %v3842_v2, %v3840_v34  ;;  %v11353_v13 = vpop.eup %6440  ;;  %v11357_v55 = vmul.f32 %v14651_v40, %v14651_v40  ;;  %vm11362_vm9 = vmor %vm1815_vm8, %vm1816_vm3  ;;  %v6516_v51 = vld [vmem:[%s13673_s0 + $0x2f8] sm:$0xff]  ;;  %v11394_v20 = vpop.permute.xlu2 %3568  ;;  %v14656_v2 = vld [vmem:[#allocation120_spill] sm:$0xff] }
 0x2ed   : > { %v11367_v50 = vmul.f32 0.5, %v14655_v4  ;;  %v11369_v37 = vmul.f32 0.5, %v1971_v28  ;;  %2945 = vperm.xlu2 %6307, %v11344_v17   ;;  %2855 = vperm.xlu1 %6309, %v11346_v9   ;;  %v1963_v34 = vsub.f32 1.5, %v1962_v52  ;;  %v2171_v53 = vmul.f32 %v11128_v10, %v2170_v24  ;;  %v2214_v28 = vld [vmem:[%s13675_s2 + $0x118] sm:$0xff]  ;;  %v11392_v24 = vpop.permute.xlu1 %2995  ;;  %v14657_v26 = vld [vmem:[#allocation111_spill] sm:$0xff] }
 0x2ee   : > { %v3138_v21 = vmul.f32 %v6516_v51, %v2921_v12  ;;  %4770 = vmatpush.bf16.msra.mxu1 %v3995_v3  ;;  %6296 = vmatpush.bf16.msra.mxu3 %v3995_v3  ;;  %v1818_v5 = vsel %vm11362_vm9, %v14636_v22, %v1814_v15  ;;  %vm1966_vm10 = vweird.f32 %v10879_v45  ;;  %v2163_v52 = vsub.f32 1.5, %v2162_v44  ;;  %v2378_v44 = vld [vmem:[%s13676_s3 + $0x1b8] sm:$0xff]  ;;  %v14659_v3 = vld [vmem:[#allocation22_spill] sm:$0xff] }
 0x2ef   : > { %v2450_v47 = vmul.f32 %v11046_v56, %v14656_v2  ;;  %v2432_v22 = vmul.f32 %v11162_v36, %v14657_v26  ;;  %v1950_v7 = vmul.f32 %v11338_v62, %v14640_v57  ;;  %v1940_v19 = vmul.f32 %v11353_v13, %v10976_v27  ;;  %v2360_v56 = vld [vmem:[%s13676_s3 + $0x128] sm:$0xff]  ;;  %v14658_v36 = vld [vmem:[#allocation29_spill] sm:$0xff] }
 0x2f0   : > { %6442 = vrsqrt.f32 %v11349_v23  ;;  %v3282_v15 = vadd.f32 %v3138_v21, %v2634_v49  ;;  %v11414_v48 = vmul.f32 0.0051020407, %v14658_v36  ;;  %v1240_v29 = vmul.f32 0.0051020407, %v14659_v3  ;;  %v6517_v49 = vld [vmem:[%s13673_s0 + $0x3e8] sm:$0xff] }
 0x2f1   : > { %v11417_v4 = vmul.f32 %v2214_v28, %v1818_v5  ;;  %v2172_v51 = vmul.f32 0.5, %v2171_v53  ;;  %v3168_v21 = vmul.f32 %v6517_v49, %v11392_v24  ;;  %vm2166_vm11 = vweird.f32 %v11062_v61  ;;  %v2664_v53 = vld [vmem:[%s13674_s1 + $0x3e8] sm:$0xff]  ;;  %v2359_v49 = vld [vmem:[%s13676_s3 + $0x120] sm:$0xff] }
 0x2f2   : > { %5159 = vmatpush.bf16.msrb.mxu1 %v11085_v39  ;;  %v1973_v39 = vsub.f32 1.5, %v11369_v37  ;;  %v11425_v2 = vadd.f32 %v11394_v20, %v3282_v15  ;;  %v1964_v37 = vmul.f32 %v10879_v45, %v1963_v34  ;;  %v2522_v26 = vsub.f32 %v2378_v44, %v2450_v47  ;;  %v6518_v15 = vld [vmem:[%s13673_s0 + $0x2f0] sm:$0xff] }
 0x2f3   : > { %v2504_v5 = vsub.f32 %v2360_v56, %v2432_v22  ;;  %v2164_v28 = vmul.f32 %v11062_v61, %v2163_v52  ;;  %vm1965_vm12 = vweird.f32 %v10758_v58  ;;  %v1951_v34 = vmul.f32 %v11338_v62, %v1950_v7  ;;  %v2633_v52 = vld [vmem:[%s13674_s1 + $0x2f0] sm:$0xff] }
 0x2f4   : > { %2860 = vperm.xlu0 %6308, %v11417_v4   ;;  %v3137_v47 = vmul.f32 %v6518_v15, %v2921_v12  ;;  %vm11443_vm13 = vmor %vm1965_vm12, %vm1966_vm10  ;;  %v11448_v22 = vmul.f32 %v11353_v13, %v1940_v19  ;;  %vm1975_vm14 = vweird.f32 %v10773_v31  ;;  %vm2165_vm15 = vweird.f32 %v10937_v32  ;;  %v11456_v12 = vpop.permute.xlu0 %3000  ;;  %v2229_v56 = vld [vmem:[%s13675_s2 + $0x190] sm:$0xff]  ;;  %v14665_v15 = vld [vmem:[#allocation45_spill] sm:$0xff] }
 0x2f5   : > { %v1384_v58 = vsub.f32 %v1240_v29, %v11357_v55  ;;  %3608 = vperm.xlu2 %6307, %v2522_v26   ;;  %3518 = vperm.xlu1 %6309, %v2504_v5   ;;  %vm1976_vm1 = vweird.f32 %v10888_v41  ;;  %v2173_v32 = vsub.f32 1.5, %v2172_v51  ;;  %vm11468_vm2 = vmor %vm2165_vm15, %vm2166_vm11  ;;  %v3312_v19 = vadd.f32 %v3168_v21, %v2664_v53  ;;  %v11480_v29 = vpop.permute.xlu2 %3643  ;;  %v11482_v51 = vpop.permute.xlu1 %2910  ;;  %v2540_v31 = vld [vmem:[%s13674_s1 + $0x8] sm:$0xff] }
 0x2f6   : > { %5160 = vmatpush.bf16.msrb.mxu1 %v11105_v25  ;;  %v11463_v7 = vpop.eup %6442  ;;  %v1968_v44 = vsel %vm11443_vm13, %v10879_v45, %v1964_v37  ;;  %v1381_v3 = vsub.f32 %v11414_v48, %v11342_v30  ;;  %v14664_v45 = vld [vmem:[#allocation108_spill] sm:$0xff]  ;;  %v2168_v37 = vsel %vm11468_vm2, %v11062_v61, %v2164_v28  ;;  %v1974_v30 = vmul.f32 %v10888_v41, %v1973_v39  ;;  %v6519_v48 = vld [vmem:[%s13673_s0 + $0x2e0] sm:$0xff]  ;;  %v5974_v39 = vld [vmem:[%s11461_s9 + $0x168] sm:$0xf] }
 0x2f7   : > { %v2431_v21 = vmul.f32 %v11160_v42, %v14664_v45  ;;  %v3135_v26 = vmul.f32 %v6519_v48, %v11232_v18  ;;  %v3281_v53 = vadd.f32 %v3137_v47, %v2633_v52  ;;  %v11503_v42 = vadd.f32 %v11480_v29, %v3312_v19  ;;  %v2249_v61 = vld [vmem:[%s13675_s2 + $0x230] sm:$0xff]  ;;  %v6238_v28 = vld [vmem:[%s11461_s9 + $0x178] sm:$0xf0]  ;;  %v2632_v47 = vld [vmem:[%s13674_s1 + $0x2e8] sm:$0xff] }
 0x2f8   : > { %vm1786_vm3 = vweird.f32 %v14665_v15  ;;  %v2140_v25 = vmul.f32 %v11463_v7, %v11349_v23  ;;  %v11513_v55 = vadd.f32 1e-05, %v1384_v58  ;;  %v11515_v45 = vmul.f32 %v2229_v56, %v1968_v44  ;;  %v14667_v44 = vld [vmem:[#allocation36_spill] sm:$0xff]  ;;  %vm11535_vm7 = vmor %vm1975_vm14, %vm1976_vm1 }
 0x2f9   : > { %v11523_v52 = vor.u32 %v6238_v28, %v5974_v39  ;;  %v11525_v19 = vmul.f32 0.5, %v1951_v34  ;;  %vm2175_vm4 = vweird.f32 %v11002_v43  ;;  %vm2176_vm5 = vweird.f32 %v11128_v10  ;;  %v6521_v34 = vld [vmem:[%s13673_s0 + $0x8] sm:$0xff] }
 0x2fa   : > { %5161 = vmatpush.bf16.msrb.mxu1 %v11192_v46  ;;  %v6520_v46 = vld [vmem:[%s13673_s0 + $0x2e8] sm:$0xff]  ;;  %v2174_v58 = vmul.f32 %v11128_v10, %v2173_v32  ;;  %vm1785_vm6 = vweird.f32 %v14667_v44  ;;  %v11539_v48 = vadd.f32 1e-05, %v1381_v3  ;;  %v2503_v32 = vsub.f32 %v2359_v49, %v2431_v21  ;;  %v2230_v49 = vld [vmem:[%s13675_s2 + $0x198] sm:$0xff]  ;;  %vm11564_vm8 = vmor %vm2175_vm4, %vm2176_vm5 }
 0x2fb   : > { %v3136_v5 = vmul.f32 %v6520_v46, %v11232_v18  ;;  %v2631_v18 = vld [vmem:[%s13674_s1 + $0x2e0] sm:$0xff]  ;;  %14666 = vst [vmem:[#allocation92_spill] sm:$0xff] %v11523_v52  ;;  %v11547_v28 = vmul.f32 %v2249_v61, %v2168_v37  ;;  %v3785_v3 = vadd.f32 %v11394_v20, %v3281_v53  ;;  %v1978_v60 = vsel %vm11535_vm7, %v10888_v41, %v1974_v30  ;;  %v14673_v41 = vld [vmem:[#allocation12_spill] sm:$0xff]  ;;  %v6522_v37 = vld [vmem:[%s13673_s0 + $0x18] sm:$0xff] }
 0x2fc   : > { %v14670_v46 = vld [vmem:[#allocation54_spill] sm:$0xff]  ;;  %2935 = vperm.xlu0 %6308, %v11515_v45   ;;  %v3279_v36 = vadd.f32 %v3135_v26, %v2631_v18  ;;  %4717 = vmatmul.bf16.vlgmr.msra.gmra.mxu2 %v11523_v52  ;;  %v11569_v20 = vmul.f32 %v11463_v7, %v2140_v25  ;;  %6444 = vrsqrt.f32 %v11513_v55  ;;  %v11573_v21 = vmul.f32 0.0051020407, %v14673_v41  ;;  %v14674_v30 = vld [vmem:[#allocation84_spill] sm:$0xff]  ;;  %v3564_v43 = vpop.permute.xlu0 %3563  ;;  %v2250_v18 = vld [vmem:[%s13675_s2 + $0x238] sm:$0xff] }
 0x2fd   : > { %v3044_v39 = vmul.f32 %v6521_v34, %v14670_v46  ;;  %v3280_v0 = vadd.f32 %v3136_v5, %v2632_v47  ;;  %v3046_v26 = vmul.f32 %v6522_v37, %v14674_v30  ;;  %3513 = vperm.xlu2 %6307, %v2503_v32   ;;  %3035 = vperm.xlu1 %6309, %v11547_v28   ;;  %v2542_v5 = vld [vmem:[%s13674_s1 + $0x18] sm:$0xff]  ;;  %v14675_v47 = vsub.f32 1.5, %v14652_v14  ;;  %v6523_v46 = vld [vmem:[%s13673_s0 + $0x3e0] sm:$0xff]  ;;  %v14676_v14 = vld [vmem:[#allocation68_spill] sm:$0xff] }
 0x2fe   : > { %5162 = vmatpush.bf16.msrb.mxu1 %v11209_v63  ;;  %v3783_v53 = vadd.f32 %v3564_v43, %v3279_v36  ;;  %v2178_v25 = vsel %vm11564_vm8, %v11128_v10, %v2174_v58  ;;  %v11598_v36 = vpop.permute.xlu2 %2900  ;;  %v11600_v10 = vpop.permute.xlu1 %2985  ;;  %v11603_v58 = vmul.f32 %v2230_v49, %v1978_v60  ;;  %v2448_v32 = vmul.f32 %v11266_v11, %v14676_v14  ;;  %v2376_v37 = vld [vmem:[%s13676_s3 + $0x1a8] sm:$0xff]  ;;  %v6524_v11 = vld [vmem:[%s13673_s0 + $0x3f0] sm:$0xff]  ;;  %v5976_v49 = vld [vmem:[%s11461_s9 + $0x17c] sm:$0xf0] }
 0x2ff   : > { %v3784_v61 = vadd.f32 %v3564_v43, %v3280_v0  ;;  %v11592_v56 = vmul.f32 %v14665_v15, %v14675_v47  ;;  %v3188_v34 = vadd.f32 %v3044_v39, %v2540_v31  ;;  %v3167_v0 = vmul.f32 %v6523_v46, %v11392_v24  ;;  %v2663_v24 = vld [vmem:[%s13674_s1 + $0x3e0] sm:$0xff]  ;;  %v14677_v43 = vld [vmem:[#allocation72_spill] sm:$0xff]  ;;  %v2666_v14 = vld [vmem:[%s13674_s1 + $0x3f8] sm:$0xff] }
 0x300   : > { %v3929_v39 = vmax.f32 %v3785_v3, 0.0  ;;  %v3930_v31 = vmax.f32 %v11425_v2, 0.0  ;;  %v3927_v63 = vmax.f32 %v3783_v53, 0.0  ;;  %v3190_v30 = vadd.f32 %v3046_v26, %v2542_v5  ;;  %v6236_v3 = vld [vmem:[%s11461_s9 + $0x16c] sm:$0xf]  ;;  %v6525_v53 = vld [vmem:[%s13673_s0 + $0x3f8] sm:$0xff]  ;;  %vm11651_vm11 = vmor %vm1785_vm6, %vm1786_vm3 }
 0x301   : > { %v3928_v41 = vmax.f32 %v3784_v61, 0.0  ;;  %v3169_v60 = vmul.f32 %v6524_v11, %v11456_v12  ;;  %v11619_v2 = vmul.f32 %v2250_v18, %v2178_v25  ;;  %vm1796_vm9 = vweird.f32 %v14677_v43  ;;  %v2665_v46 = vld [vmem:[%s13674_s1 + $0x3f0] sm:$0xff]  ;;  %v14684_v44 = vld [vmem:[#allocation18_spill] sm:$0xff]  ;;  %v5934_v52 = vld [vmem:[%s11461_s9 + $0x118] sm:$0xf] }
 0x302   : > { %5163 = vmatpush.bf16.msrb.mxu1 %v11260_v59  ;;  %v3692_v59 = vadd.f32 %v11207_v16, %v3188_v34  ;;  %v3170_v26 = vmul.f32 %v6525_v53, %v11456_v12  ;;  %v4025_v16 = vpack.c.bf16 %v3929_v39, %v3927_v63  ;;  %v11630_v61 = vor.u32 %v6236_v3, %v5976_v49  ;;  %v11632_v47 = vpop.eup %6444  ;;  %v14683_v39 = vld [vmem:[#allocation90_spill] sm:$0xff]  ;;  %v5994_v3 = vld [vmem:[%s11461_s9 + $0x190] sm:$0xf] }
 0x303   : > { %v11628_v5 = vpack.c.bf16 %v3930_v31, %v3928_v41  ;;  %vm1956_vm10 = vweird.f32 %v11338_v62  ;;  %v11636_v25 = vmul.f32 0.5, %v11448_v22  ;;  %v3694_v18 = vadd.f32 %v11140_v33, %v3190_v30  ;;  %v14681_v22 = vld [vmem:[#allocation62_spill] sm:$0xff]  ;;  %v14685_v53 = vld [vmem:[#allocation48_spill] sm:$0xff] }
 0x304   : > { %14678 = vst [vmem:[#allocation86_spill] sm:$0xff] %v11630_v61  ;;  %v3311_v34 = vadd.f32 %v3167_v0, %v2663_v24  ;;  %3040 = vperm.xlu0 %6308, %v11619_v2   ;;  %v2520_v12 = vsub.f32 %v2376_v37, %v2448_v32  ;;  %vm1795_vm12 = vweird.f32 %v14681_v22  ;;  %6446 = vrsqrt.f32 %v11539_v48  ;;  %v14682_v0 = vld [vmem:[#allocation20_spill] sm:$0xff]  ;;  %4862 = vmatpush.bf16.msrb.mxu2 %v4025_v16  ;;  %v11670_v41 = vpop.permute.xlu0 %2990  ;;  %v2211_v30 = vld [vmem:[%s13675_s2 + $0x100] sm:$0xff] }
 0x305   : > { %v11659_v32 = vmul.f32 0.0051020407, %v14682_v0  ;;  %v11662_v31 = vmul.f32 0.0051020407, %v14683_v39  ;;  %4816 = vmatmul.bf16.vlgmr.msra.gmra.mxu3 %v11630_v61  ;;  %vm1955_vm13 = vweird.f32 %v14640_v57  ;;  %v1382_v24 = vsub.f32 %v11573_v21, %v14684_v44  ;;  %2940 = vperm.xlu2 %6307, %v11603_v58   ;;  %v6243_v49 = vld [vmem:[%s11461_s9 + $0x1a0] sm:$0xf0]  ;;  %vm11739_vm14 = vmor %vm1795_vm12, %vm1796_vm9 }
 0x306   : > { %5164 = vmatpush.bf16.msrb.mxu1 %v11281_v54  ;;  %v1953_v54 = vsub.f32 1.5, %v11525_v19  ;;  %v3836_v63 = vmax.f32 %v3692_v59, 0.0  ;;  %v3815_v19 = vadd.f32 %v11480_v29, %v3311_v34  ;;  %3598 = vperm.xlu1 %6309, %v2520_v12   ;;  %v1788_v37 = vsel %vm11651_vm11, %v14665_v15, %v11592_v56  ;;  %v11687_v12 = vpop.permute.xlu2 %2975  ;;  %v3649_v15 = vpop.permute.xlu1 %3648  ;;  %v14686_v56 = vld [vmem:[#allocation95_spill] sm:$0xff]  ;;  %vm11757_vm1 = vmor %vm1955_vm13, %vm1956_vm10 }
 0x307   : > { %v11680_v11 = vmul.f32 0.5, %v11569_v20  ;;  %v2150_v29 = vmul.f32 %v11632_v47, %v11513_v55  ;;  %v3313_v21 = vadd.f32 %v3169_v60, %v2665_v46  ;;  %v3314_v59 = vadd.f32 %v3170_v26, %v2666_v14  ;;  %v14687_v20 = vld [vmem:[#allocation106_spill] sm:$0xff] }
 0x308   : > { %v3892_v16 = vmax.f32 %v14685_v53, 0.0  ;;  %v3838_v34 = vmax.f32 %v3694_v18, 0.0  ;;  %v2447_v33 = vmul.f32 %v11344_v17, %v14686_v56  ;;  %v2429_v0 = vmul.f32 %v11346_v9, %v14687_v20  ;;  %v2375_v26 = vld [vmem:[%s13676_s3 + $0x1a0] sm:$0xff]  ;;  %v2357_v18 = vld [vmem:[%s13676_s3 + $0x110] sm:$0xff]  ;;  %v6526_v17 = vld [vmem:[%s13673_s0 + $0x2c8] sm:$0xff] }
 0x309   : > { %v3817_v39 = vadd.f32 %v3649_v15, %v3313_v21  ;;  %v3818_v44 = vadd.f32 %v3649_v15, %v3314_v59  ;;  %v11694_v60 = vmul.f32 %v2211_v30, %v1788_v37  ;;  %v11702_v46 = vor.u32 %v6243_v49, %v5994_v3  ;;  %v6527_v3 = vld [vmem:[%s13673_s0 + $0x3d8] sm:$0xff] }
 0x30a   : > { %5165 = vmatpush.bf16.msrb.mxu1 %v11351_v6  ;;  %v3132_v9 = vmul.f32 %v6526_v17, %v11312_v35  ;;  %v3959_v6 = vmax.f32 %v3815_v19, 0.0  ;;  %v3980_v14 = vpack.c.bf16 %v3838_v34, %v3836_v63  ;;  %v14689_v37 = vsub.f32 1.5, %v11367_v50  ;;  %v11713_v21 = vpop.eup %6446  ;;  %v2662_v19 = vld [vmem:[%s13674_s1 + $0x3d8] sm:$0xff] }
 0x30b   : > { %14688 = vst [vmem:[#allocation73_spill] sm:$0xff] %v11702_v46  ;;  %v3960_v59 = vmax.f32 %v11503_v42, 0.0  ;;  %v3166_v49 = vmul.f32 %v6527_v3, %v11670_v41  ;;  %v3961_v53 = vmax.f32 %v3817_v39, 0.0  ;;  %v3962_v15 = vmax.f32 %v3818_v44, 0.0  ;;  %v2628_v42 = vld [vmem:[%s13674_s1 + $0x2c8] sm:$0xff]  ;;  %v14690_v39 = vld [vmem:[#allocation42_spill] sm:$0xff] }
 0x30c   : > { %v11711_v30 = vmul.f32 %v14677_v43, %v14689_v37  ;;  %v11720_v56 = vadd.f32 1e-05, %v1382_v24  ;;  %2845 = vperm.xlu0 %6308, %v11694_v60   ;;  %v2519_v50 = vsub.f32 %v2375_v26, %v2447_v33  ;;  %v2501_v63 = vsub.f32 %v2357_v18, %v2429_v0  ;;  %4722 = vmatmul.bf16.gmra.mxu2 %v11702_v46  ;;  %v14695_v26 = vld [vmem:[#allocation30_spill] sm:$0xff] }
 0x30d   : > { %v1954_v34 = vmul.f32 %v11338_v62, %v1953_v54  ;;  %v1943_v20 = vsub.f32 1.5, %v11636_v25  ;;  %v3894_v24 = vmax.f32 %v14690_v39, 0.0  ;;  %v11732_v44 = vpack.c.bf16 %v3962_v15, %v3960_v59  ;;  %v14694_v25 = vld [vmem:[#allocation31_spill] sm:$0xff]  ;;  %v2627_v15 = vld [vmem:[%s13674_s1 + $0x2c0] sm:$0xff]  ;;  %v2630_v39 = vld [vmem:[%s13674_s1 + $0x2d8] sm:$0xff] }
 0x30e   : > { %5166 = vmatpush.bf16.msrb.mxu1 %v3980_v14  ;;  %v4041_v17 = vpack.c.bf16 %v3961_v53, %v3959_v6  ;;  %vm1945_vm15 = vweird.f32 %v10976_v27  ;;  %v2143_v54 = vsub.f32 1.5, %v11680_v11  ;;  %v1380_v0 = vsub.f32 %v11659_v32, %v14694_v25  ;;  %3593 = vperm.xlu2 %6307, %v2519_v50   ;;  %v11749_v6 = vpop.permute.xlu0 %2895  ;;  %v14696_v14 = vld [vmem:[#allocation115_spill] sm:$0xff]  ;;  %v6528_v32 = vld [vmem:[%s13673_s0 + $0x2c0] sm:$0xff]  ;;  %v11772_v53 = vpop.permute.xlu2 %3638  ;;  %v6530_v50 = vld [vmem:[%s13673_s0 + $0x2d8] sm:$0xff] }
 0x30f   : > { %14691 = vst [vmem:[#allocation79_spill] sm:$0xff] %v11732_v44  ;;  %v1379_v18 = vsub.f32 %v11662_v31, %v14695_v26  ;;  %3503 = vperm.xlu1 %6309, %v2501_v63   ;;  %v2430_v22 = vmul.f32 %v11417_v4, %v14696_v14  ;;  %v3131_v31 = vmul.f32 %v6528_v32, %v11312_v35  ;;  %v2358_v4 = vld [vmem:[%s13676_s3 + $0x118] sm:$0xff]  ;;  %6448 = vrsqrt.f32 %v11720_v56  ;;  %v3554_v35 = vpop.permute.xlu1 %3553  ;;  %v5996_v32 = vld [vmem:[%s11461_s9 + $0x1a4] sm:$0xf0]  ;;  %v2227_v27 = vld [vmem:[%s13675_s2 + $0x180] sm:$0xff] }
 0x310   : > { %4961 = vmatpush.bf16.msrb.mxu3 %v4041_v17  ;;  %v3310_v11 = vadd.f32 %v3166_v49, %v2662_v19  ;;  %v3276_v59 = vadd.f32 %v3132_v9, %v2628_v42  ;;  %v11768_v3 = vpack.c.bf16 %v3894_v24, %v3892_v16  ;;  %v2151_v57 = vmul.f32 %v11632_v47, %v2150_v29  ;;  %v6529_v29 = vld [vmem:[%s13673_s0 + $0x2d0] sm:$0xff]  ;;  %v6531_v17 = vld [vmem:[%s13673_s0 + $0x2a8] sm:$0xff]  ;;  %v2682_v44 = vld [vmem:[%s13674_s1 + $0x478] sm:$0xff] }
 0x311   : > { %v1798_v9 = vsel %vm11739_vm14, %v14677_v43, %v11711_v30  ;;  %v1958_v16 = vsel %vm11757_vm1, %v11338_v62, %v1954_v34  ;;  %v3133_v49 = vmul.f32 %v6529_v29, %v11482_v51  ;;  %v3134_v63 = vmul.f32 %v6530_v50, %v11482_v51  ;;  %v2212_v62 = vld [vmem:[%s13675_s2 + $0x108] sm:$0xff]  ;;  %v2629_v34 = vld [vmem:[%s13674_s1 + $0x2d0] sm:$0xff] }
 0x312   : > { %v11793_v19 = vadd.f32 %v11772_v53, %v3310_v11  ;;  %v11795_v43 = vadd.f32 %v3554_v35, %v3276_v59  ;;  %v2228_v30 = vld [vmem:[%s13675_s2 + $0x188] sm:$0xff]  ;;  %vm2146_vm2 = vweird.f32 %v11463_v7  ;;  %v2120_v42 = vmul.f32 %v11713_v21, %v11539_v48  ;;  %v5794_v11 = vld [vmem:[%s11461_s9] sm:$0xf] }
 0x313   : > { %v2502_v51 = vsub.f32 %v2358_v4, %v2430_v22  ;;  %v2144_v24 = vmul.f32 %v11463_v7, %v2143_v54  ;;  %vm1946_vm3 = vweird.f32 %v11353_v13  ;;  %vm2145_vm4 = vweird.f32 %v11349_v23  ;;  %v2624_v54 = vld [vmem:[%s13674_s1 + $0x2a8] sm:$0xff]  ;;  %v6241_v23 = vld [vmem:[%s11461_s9 + $0x194] sm:$0xf] }
 0x314   : > { %v3128_v33 = vmul.f32 %v6531_v17, %v11749_v6  ;;  %v3275_v25 = vadd.f32 %v3131_v31, %v2627_v15  ;;  %v2152_v26 = vmul.f32 0.5, %v2151_v57  ;;  %v11819_v14 = vmul.f32 %v2212_v62, %v1798_v9  ;;  %vm11831_vm5 = vmor %vm2145_vm4, %vm2146_vm2  ;;  %v2659_v17 = vld [vmem:[%s13674_s1 + $0x3c0] sm:$0xff] }
 0x315   : > { %3508 = vperm.xlu0 %6308, %v2502_v51   ;;  %v11821_v22 = vmul.f32 %v2228_v30, %v1958_v16  ;;  %v1944_v37 = vmul.f32 %v11353_v13, %v1943_v20  ;;  %v3277_v59 = vadd.f32 %v3133_v49, %v2629_v34  ;;  %v3278_v4 = vadd.f32 %v3134_v63, %v2630_v39  ;;  %v11837_v15 = vpop.eup %6448  ;;  %vm11853_vm6 = vmor %vm1945_vm15, %vm1946_vm3  ;;  %v2661_v51 = vld [vmem:[%s13674_s1 + $0x3d0] sm:$0xff]  ;;  %v6248_v49 = vld [vmem:[%s11461_s9 + $0x1c8] sm:$0xf0] }
 0x316   : > { %v3779_v31 = vadd.f32 %v3554_v35, %v3275_v25  ;;  %v11835_v57 = vor.u32 %v6241_v23, %v5996_v32  ;;  %v2121_v9 = vmul.f32 %v11713_v21, %v2120_v42  ;;  %v11840_v16 = vadd.f32 1e-05, %v1380_v0  ;;  %2850 = vperm.xlu2 %6307, %v11819_v14   ;;  %v3559_v29 = vpop.permute.xlu0 %3558  ;;  %v6532_v0 = vld [vmem:[%s13673_s0 + $0x3d0] sm:$0xff]  ;;  %v11877_v34 = vpop.permute.xlu2 %3543  ;;  %v14704_v25 = vld [vmem:[#allocation58_spill] sm:$0xff] }
 0x317   : > { %v11842_v20 = vadd.f32 1e-05, %v1379_v18  ;;  %2930 = vperm.xlu1 %6309, %v11821_v22   ;;  %v2148_v35 = vsel %vm11831_vm5, %v11463_v7, %v2144_v24  ;;  %v3165_v18 = vmul.f32 %v6532_v0, %v11670_v41  ;;  %v3781_v50 = vadd.f32 %v3559_v29, %v3277_v59  ;;  %v2247_v7 = vld [vmem:[%s13675_s2 + $0x220] sm:$0xff]  ;;  %v11879_v39 = vpop.permute.xlu1 %2980  ;;  %v6193_v59 = vld [vmem:[%s11461_s9 + $0x10] sm:$0xf0] }
 0x318   : > { %14701 = vst [vmem:[#allocation117_spill] sm:$0xff] %v11835_v57  ;;  %v11861_v63 = vadd.f32 %v3559_v29, %v3278_v4  ;;  %v3272_v62 = vadd.f32 %v3128_v33, %v2624_v54  ;;  %4821 = vmatmul.bf16.gmra.mxu3 %v11835_v57  ;;  %v2153_v30 = vsub.f32 1.5, %v2152_v26  ;;  %v6533_v41 = vld [vmem:[%s13673_s0 + $0x3c0] sm:$0xff]  ;;  %v1948_v24 = vsel %vm11853_vm6, %v11353_v13, %v1944_v37  ;;  %v2373_v33 = vld [vmem:[%s13676_s3 + $0x190] sm:$0xff]  ;;  %v6534_v54 = vld [vmem:[%s13673_s0 + $0x3c8] sm:$0xff] }
 0x319   : > { %v3163_v42 = vmul.f32 %v6533_v41, %v11600_v10  ;;  %v2445_v26 = vmul.f32 %v11515_v45, %v14704_v25  ;;  %v3164_v23 = vmul.f32 %v6534_v54, %v11600_v10  ;;  %v3923_v13 = vmax.f32 %v3779_v31, 0.0  ;;  %v2660_v10 = vld [vmem:[%s13674_s1 + $0x3c8] sm:$0xff]  ;;  %v6014_v29 = vld [vmem:[%s11461_s9 + $0x1b8] sm:$0xf]  ;;  %v6191_v54 = vld [vmem:[%s11461_s9 + $0x4] sm:$0xf] }
 0x31a   : > { %v3925_v37 = vmax.f32 %v3781_v50, 0.0  ;;  %v11897_v32 = vadd.f32 %v11877_v34, %v3272_v62  ;;  %vm2156_vm7 = vweird.f32 %v11632_v47  ;;  %v2130_v4 = vmul.f32 %v11837_v15, %v11720_v56 }
 0x31b   : > { %v11904_v45 = vmul.f32 %v2247_v7, %v2148_v35  ;;  %v11909_v31 = vor.u32 %v6193_v59, %v5794_v11  ;;  %6450 = vrsqrt.f32 %v11842_v20  ;;  %v3309_v0 = vadd.f32 %v3165_v18, %v2661_v51  ;;  %v5796_v11 = vld [vmem:[%s11461_s9 + $0x14] sm:$0xf0] }
 0x31c   : > { %v4023_v50 = vpack.c.bf16 %v3925_v37, %v3923_v13  ;;  %v11914_v62 = vor.u32 %v6248_v49, %v6014_v29  ;;  %v2122_v41 = vmul.f32 0.5, %v2121_v9  ;;  %v2154_v25 = vmul.f32 %v11632_v47, %v2153_v30  ;;  %v6535_v37 = vld [vmem:[%s13673_s0 + $0x2a0] sm:$0xff] }
 0x31d   : > { %3025 = vperm.xlu0 %6308, %v11904_v45   ;;  %v11918_v35 = vmul.f32 %v2227_v27, %v1948_v24  ;;  %v2517_v7 = vsub.f32 %v2373_v33, %v2445_v26  ;;  %4672 = vmatmul.bf16.vlgmr.msra.gmra.mxu0 %v11909_v31  ;;  %v3813_v59 = vadd.f32 %v11772_v53, %v3309_v0  ;;  %v14707_v27 = vld [vmem:[#allocation105_spill] sm:$0xff]  ;;  %vm2155_vm8 = vweird.f32 %v11513_v55  ;;  %v14710_v26 = vld [vmem:[#allocation32_spill] sm:$0xff]  ;;  %v2248_v0 = vld [vmem:[%s13675_s2 + $0x228] sm:$0xff] }
 0x31e   : > { %14705 = vst [vmem:[#allocation89_spill] sm:$0xff] %v11914_v62  ;;  %4863 = vmatpush.bf16.msrb.mxu2 %v4023_v50  ;;  %v3307_v57 = vadd.f32 %v3163_v42, %v2659_v17  ;;  %v3308_v18 = vadd.f32 %v3164_v23, %v2660_v10  ;;  %v11924_v51 = vor.u32 %v6191_v54, %v5796_v11  ;;  %v3634_v30 = vpop.permute.xlu0 %3633  ;;  %6452 = vrsqrt.f32 %v11840_v16  ;;  %v2374_v42 = vld [vmem:[%s13676_s3 + $0x198] sm:$0xff]  ;;  %vm11941_vm9 = vmor %vm2155_vm8, %vm2156_vm7  ;;  %v11945_v55 = vpop.permute.xlu2 %2970  ;;  %v6016_v54 = vld [vmem:[%s11461_s9 + $0x1cc] sm:$0xf0] }
 0x31f   : > { %v2131_v9 = vmul.f32 %v11837_v15, %v2130_v4  ;;  %2925 = vperm.xlu2 %6307, %v11918_v35   ;;  %3583 = vperm.xlu1 %6309, %v2517_v7   ;;  %v2446_v24 = vmul.f32 %v11603_v58, %v14707_v27  ;;  %v2123_v17 = vsub.f32 1.5, %v2122_v41  ;;  %v2466_v23 = vmul.f32 %v11619_v2, %v14710_v26  ;;  %v2394_v2 = vld [vmem:[%s13676_s3 + $0x238] sm:$0xff]  ;;  %v2623_v41 = vld [vmem:[%s13674_s1 + $0x2a0] sm:$0xff] }
 0x320   : > { %14706 = vst [vmem:[#allocation51_spill] sm:$0xff] %v11924_v51  ;;  %v3811_v33 = vadd.f32 %v3634_v30, %v3307_v57  ;;  %v11932_v53 = vadd.f32 %v3634_v30, %v3308_v18  ;;  %4727 = vmatmul.bf16.gmra.mxu2 %v11914_v62  ;;  %4771 = vmatmul.bf16.vlgmr.msra.gmra.mxu1 %v11924_v51  ;;  %v11947_v57 = vpop.permute.xlu1 %2885  ;;  %v3957_v10 = vmax.f32 %v3813_v59, 0.0  ;;  %v6246_v7 = vld [vmem:[%s11461_s9 + $0x1bc] sm:$0xf]  ;;  %vm2125_vm10 = vweird.f32 %v11539_v48 }
 0x321   : > { %v11951_v13 = vpop.eup %6450  ;;  %v3127_v4 = vmul.f32 %v6535_v37, %v11749_v6  ;;  %v2158_v49 = vsel %vm11941_vm9, %v11632_v47, %v2154_v25  ;;  %v2132_v50 = vmul.f32 0.5, %v2131_v9  ;;  %v2518_v6 = vsub.f32 %v2374_v42, %v2446_v24  ;;  %v6536_v47 = vld [vmem:[%s13673_s0 + $0x2b0] sm:$0xff]  ;;  %v6537_v11 = vld [vmem:[%s13673_s0 + $0x2b8] sm:$0xff] }
 0x322   : > { %v3955_v29 = vmax.f32 %v3811_v33, 0.0  ;;  %v3129_v25 = vmul.f32 %v6536_v47, %v11598_v36  ;;  %v3130_v59 = vmul.f32 %v6537_v11, %v11598_v36  ;;  %v11979_v9 = vor.u32 %v6246_v7, %v6016_v54  ;;  %v2625_v33 = vld [vmem:[%s13674_s1 + $0x2b0] sm:$0xff]  ;;  %v2626_v42 = vld [vmem:[%s13674_s1 + $0x2b8] sm:$0xff]  ;;  %v5814_v54 = vld [vmem:[%s11461_s9 + $0x28] sm:$0xf] }
 0x323   : > { %v2100_v30 = vmul.f32 %v11951_v13, %v11842_v20  ;;  %v11983_v27 = vmul.f32 %v2248_v0, %v2158_v49  ;;  %v2538_v24 = vsub.f32 %v2394_v2, %v2466_v23  ;;  %vm2126_vm11 = vweird.f32 %v11713_v21  ;;  %v14713_v49 = vld [vmem:[#allocation74_spill] sm:$0xff]  ;;  %v2393_v7 = vld [vmem:[%s13676_s3 + $0x230] sm:$0xff]  ;;  %v6198_v47 = vld [vmem:[%s11461_s9 + $0x38] sm:$0xf0] }
 0x324   : > { %v4039_v18 = vpack.c.bf16 %v3957_v10, %v3955_v29  ;;  %14711 = vst [vmem:[#allocation5_spill] sm:$0xff] %v11979_v9  ;;  %v11991_v58 = vpop.eup %6452  ;;  %v3271_v36 = vadd.f32 %v3127_v4, %v2623_v41  ;;  %v2124_v26 = vmul.f32 %v11713_v21, %v2123_v17  ;;  %v2133_v23 = vsub.f32 1.5, %v2132_v50  ;;  %v2355_v10 = vld [vmem:[%s13676_s3 + $0x100] sm:$0xff]  ;;  %v14712_v29 = vld [vmem:[#allocation65_spill] sm:$0xff]  ;;  %vm12019_vm13 = vmor %vm2125_vm10, %vm2126_vm11 }
 0x325   : > { %3588 = vperm.xlu0 %6308, %v2518_v6   ;;  %vm2135_vm12 = vweird.f32 %v11720_v56  ;;  %v2427_v4 = vmul.f32 %v11694_v60, %v14712_v29  ;;  %v2465_v0 = vmul.f32 %v11547_v28, %v14713_v49  ;;  %v14714_v17 = vld [vmem:[#allocation14_spill] sm:$0xff]  ;;  %v3273_v41 = vadd.f32 %v3129_v25, %v2625_v33  ;;  %v6253_v29 = vld [vmem:[%s11461_s9 + $0x1f0] sm:$0xf0]  ;;  %v6538_v49 = vld [vmem:[%s13673_s0 + $0x3a8] sm:$0xff] }
 0x326   : > { %4962 = vmatpush.bf16.msrb.mxu3 %v4039_v18  ;;  %v11998_v37 = vpop.permute.xlu0 %2890  ;;  %v3888_v2 = vmax.f32 %v14714_v17, 0.0  ;;  %v3775_v50 = vadd.f32 %v11877_v34, %v3271_v36  ;;  %v3274_v6 = vadd.f32 %v3130_v59, %v2626_v42  ;;  %vm2136_vm14 = vweird.f32 %v11837_v15  ;;  %v12027_v25 = vpop.permute.xlu2 %2875  ;;  %v14718_v18 = vld [vmem:[#allocation15_spill] sm:$0xff]  ;;  %v6034_v36 = vld [vmem:[%s11461_s9 + $0x1e0] sm:$0xf] }
 0x327   : > { %3030 = vperm.xlu2 %6307, %v11983_v27   ;;  %3688 = vperm.xlu1 %6309, %v2538_v24   ;;  %v2110_v60 = vmul.f32 %v11991_v58, %v11840_v16  ;;  %v2101_v34 = vmul.f32 %v11951_v13, %v2100_v30  ;;  %v12029_v59 = vor.u32 %v6198_v47, %v5814_v54  ;;  %v3890_v24 = vmax.f32 %v14718_v18, 0.0  ;;  %v2245_v30 = vld [vmem:[%s13675_s2 + $0x210] sm:$0xff]  ;;  %v5816_v18 = vld [vmem:[%s11461_s9 + $0x3c] sm:$0xf0]  ;;  %vm12072_vm15 = vmor %vm2135_vm12, %vm2136_vm14 }
 0x328   : > { %4826 = vmatmul.bf16.gmra.mxu3 %v11979_v9  ;;  %v3549_v11 = vpop.permute.xlu1 %3548  ;;  %v2128_v42 = vsel %vm12019_vm13, %v11713_v21, %v2124_v26  ;;  %v3160_v17 = vmul.f32 %v6538_v49, %v11687_v12  ;;  %v2537_v54 = vsub.f32 %v2393_v7, %v2465_v0  ;;  %v3919_v47 = vmax.f32 %v3775_v50, 0.0  ;;  %v6539_v21 = vld [vmem:[%s13673_s0 + $0x298] sm:$0xff]  ;;  %v6540_v56 = vld [vmem:[%s13673_s0 + $0x3a0] sm:$0xff] }
 0x329   : > { %14717 = vst [vmem:[#allocation6_spill] sm:$0xff] %v12029_v59  ;;  %v3777_v48 = vadd.f32 %v3549_v11, %v3273_v41  ;;  %v12032_v33 = vadd.f32 %v3549_v11, %v3274_v6  ;;  %v2499_v41 = vsub.f32 %v2355_v10, %v2427_v4  ;;  %v2134_v6 = vmul.f32 %v11837_v15, %v2133_v23  ;;  %v6196_v11 = vld [vmem:[%s11461_s9 + $0x2c] sm:$0xf]  ;;  %v2622_v23 = vld [vmem:[%s13674_s1 + $0x298] sm:$0xff] }
 0x32a   : > { %v3126_v26 = vmul.f32 %v6539_v21, %v11998_v37  ;;  %v12053_v9 = vpack.c.bf16 %v3890_v24, %v3888_v2  ;;  %v2102_v61 = vmul.f32 0.5, %v2101_v34  ;;  %v12055_v51 = vmul.f32 %v2245_v30, %v2128_v42  ;;  %v2656_v10 = vld [vmem:[%s13674_s1 + $0x3a8] sm:$0xff] }
 0x32b   : > { %v3921_v28 = vmax.f32 %v3777_v48, 0.0  ;;  %v12064_v4 = vor.u32 %v6253_v29, %v6034_v36  ;;  %v12066_v0 = vor.u32 %v6196_v11, %v5816_v18  ;;  %v2111_v7 = vmul.f32 %v11991_v58, %v2110_v60  ;;  %v2246_v60 = vld [vmem:[%s13675_s2 + $0x218] sm:$0xff] }
 0x32c   : > { %v2138_v24 = vsel %vm12072_vm15, %v11837_v15, %v2134_v6  ;;  %v3159_v48 = vmul.f32 %v6540_v56, %v11687_v12  ;;  %v3270_v42 = vadd.f32 %v3126_v26, %v2622_v23  ;;  %v3304_v30 = vadd.f32 %v3160_v17, %v2656_v10  ;;  %v2655_v15 = vld [vmem:[%s13674_s1 + $0x3a0] sm:$0xff]  ;;  %v6541_v6 = vld [vmem:[%s13673_s0 + $0x3b0] sm:$0xff]  ;;  %v2658_v18 = vld [vmem:[%s13674_s1 + $0x3b8] sm:$0xff] }
 0x32d   : > { %3493 = vperm.xlu0 %6308, %v2499_v41   ;;  %4677 = vmatmul.bf16.gmra.mxu0 %v12029_v59  ;;  %14719 = vst [vmem:[#allocation78_spill] sm:$0xff] %v12064_v4  ;;  %v4021_v50 = vpack.c.bf16 %v3921_v28, %v3919_v47  ;;  %v2103_v36 = vsub.f32 1.5, %v2102_v61  ;;  %v14723_v41 = vld [vmem:[#allocation96_spill] sm:$0xff]  ;;  %v3161_v61 = vmul.f32 %v6541_v6, %v11879_v39  ;;  %v6542_v47 = vld [vmem:[%s13673_s0 + $0x3b8] sm:$0xff]  ;;  %v2372_v28 = vld [vmem:[%s13676_s3 + $0x188] sm:$0xff]  ;;  %v2112_v23 = vmul.f32 0.5, %v2111_v7 }
 0x32e   : > { %14720 = vst [vmem:[#allocation23_spill] sm:$0xff] %v12066_v0  ;;  %v12077_v34 = vpop.permute.xlu0 %2965  ;;  %v12091_v29 = vpop.permute.xlu2 %3538  ;;  %v2428_v12 = vmul.f32 %v11819_v14, %v14723_v41  ;;  %v3162_v21 = vmul.f32 %v6542_v47, %v11879_v39  ;;  %v12120_v11 = vmul.f32 %v2246_v60, %v2138_v24  ;;  %v2657_v39 = vld [vmem:[%s13674_s1 + $0x3b0] sm:$0xff]  ;;  %vm2106_vm1 = vweird.f32 %v11951_v13  ;;  %v6036_v60 = vld [vmem:[%s11461_s9 + $0x1f4] sm:$0xf0] }
 0x32f   : > { %3683 = vperm.xlu2 %6307, %v2537_v54   ;;  %3015 = vperm.xlu1 %6309, %v12055_v51   ;;  %v14724_v54 = vld [vmem:[#allocation119_spill] sm:$0xff]  ;;  %v12110_v26 = vadd.f32 %v12091_v29, %v3270_v42  ;;  %v3303_v10 = vadd.f32 %v3159_v48, %v2655_v15  ;;  %v2104_v2 = vmul.f32 %v11951_v13, %v2103_v36  ;;  %vm2105_vm2 = vweird.f32 %v11842_v20  ;;  %v14726_v6 = vld [vmem:[#allocation93_spill] sm:$0xff] }
 0x330   : > { %4864 = vmatpush.bf16.msrb.mxu2 %v4021_v50  ;;  %4776 = vmatmul.bf16.gmra.mxu1 %v12066_v0  ;;  %v3624_v49 = vpop.permute.xlu1 %3623  ;;  %v2444_v17 = vmul.f32 %v11821_v22, %v14724_v54  ;;  %v2356_v22 = vld [vmem:[%s13676_s3 + $0x108] sm:$0xff]  ;;  %v3305_v54 = vadd.f32 %v3161_v61, %v2657_v39  ;;  %v3306_v7 = vadd.f32 %v3162_v21, %v2658_v18  ;;  %vm12147_vm3 = vmor %vm2105_vm2, %vm2106_vm1  ;;  %v6544_v61 = vld [vmem:[%s13673_s0 + $0x290] sm:$0xff]  ;;  %vm2116_vm4 = vweird.f32 %v11991_v58 }
 0x331   : > { %4732 = vmatmul.bf16.gmra.mxu2 %v12064_v4  ;;  %v12112_v14 = vadd.f32 %v3624_v49, %v3304_v30  ;;  %v6543_v50 = vld [vmem:[%s13673_s0 + $0x388] sm:$0xff]  ;;  %v2500_v56 = vsub.f32 %v2356_v22, %v2428_v12  ;;  %v6251_v30 = vld [vmem:[%s11461_s9 + $0x1e4] sm:$0xf]  ;;  %v3807_v41 = vadd.f32 %v3624_v49, %v3303_v10  ;;  %v2463_v12 = vmul.f32 %v11904_v45, %v14726_v6 }
 0x332   : > { %v3156_v24 = vmul.f32 %v6543_v50, %v12077_v34  ;;  %v2516_v42 = vsub.f32 %v2372_v28, %v2444_v17  ;;  %v2652_v48 = vld [vmem:[%s13674_s1 + $0x388] sm:$0xff]  ;;  %v12140_v36 = vor.u32 %v6251_v30, %v6036_v60  ;;  %v2113_v17 = vsub.f32 1.5, %v2112_v23  ;;  %v2391_v45 = vld [vmem:[%s13676_s3 + $0x220] sm:$0xff]  ;;  %v2621_v28 = vld [vmem:[%s13674_s1 + $0x290] sm:$0xff] }
 0x333   : > { %v3125_v47 = vmul.f32 %v6544_v61, %v11998_v37  ;;  %v2371_v22 = vld [vmem:[%s13676_s3 + $0x180] sm:$0xff]  ;;  %v14729_v23 = vld [vmem:[#allocation60_spill] sm:$0xff]  ;;  %v6546_v30 = vld [vmem:[%s13673_s0 + $0x288] sm:$0xff]  ;;  %vm2115_vm5 = vweird.f32 %v11840_v16  ;;  %vm4609_vm7 = vcmask 523264  }
 0x334   : > { %14725 = vst [vmem:[#allocation125_spill] sm:$0xff] %v12140_v36  ;;  %v3300_v18 = vadd.f32 %v3156_v24, %v2652_v48  ;;  %v2443_v10 = vmul.f32 %v11918_v35, %v14729_v23  ;;  %v2619_v50 = vld [vmem:[%s13674_s1 + $0x280] sm:$0xff]  ;;  %v3124_v60 = vmul.f32 %v6546_v30, %v11947_v57  ;;  %v5834_v48 = vld [vmem:[%s11461_s9 + $0x50] sm:$0xf]  ;;  %v2620_v6 = vld [vmem:[%s13674_s1 + $0x288] sm:$0xff] }
 0x335   : > { %3020 = vperm.xlu0 %6308, %v12120_v11   ;;  %v6545_v24 = vld [vmem:[%s13673_s0 + $0x280] sm:$0xff]  ;;  %v6054_v61 = vld [vmem:[%s11461_s9 + $0x208] sm:$0xf]  ;;  %v6258_v23 = vld [vmem:[%s11461_s9 + $0x218] sm:$0xf0] }
 0x336   : > { %v3629_v15 = vpop.permute.xlu0 %3628  ;;  %v12169_v39 = vpop.permute.xlu2 %3613  ;;  %v3123_v35 = vmul.f32 %v6545_v24, %v11947_v57  ;;  %v2114_v57 = vmul.f32 %v11991_v58, %v2113_v17  ;;  %v6201_v24 = vld [vmem:[%s11461_s9 + $0x54] sm:$0xf]  ;;  %v5836_v30 = vld [vmem:[%s11461_s9 + $0x64] sm:$0xf0]  ;;  %v3268_v17 = vadd.f32 %v3124_v60, %v2620_v6  ;;  %vm12215_vm6 = vmor %vm2115_vm5, %vm2116_vm4 }
 0x337   : > { %3498 = vperm.xlu2 %6307, %v2500_v56   ;;  %3578 = vperm.xlu1 %6309, %v2516_v42   ;;  %v3809_v20 = vadd.f32 %v3629_v15, %v3305_v54  ;;  %v12155_v21 = vadd.f32 %v3629_v15, %v3306_v7  ;;  %v2108_v56 = vsel %vm12147_vm3, %v11951_v13, %v2104_v2  ;;  %v2243_v42 = vld [vmem:[%s13675_s2 + $0x200] sm:$0xff]  ;;  %v3951_v54 = vmax.f32 %v3807_v41, 0.0 }
 0x338   : > { %4831 = vmatmul.bf16.gmra.mxu3 %v12140_v36  ;;  %v12167_v37 = vpop.permute.xlu1 %2880  ;;  %v6203_v13 = vld [vmem:[%s11461_s9 + $0x60] sm:$0xf0]  ;;  %v12193_v2 = vadd.f32 %v12169_v39, %v3300_v18  ;;  %v2535_v15 = vsub.f32 %v2391_v45, %v2463_v12  ;;  %v3269_v41 = vadd.f32 %v3125_v47, %v2621_v28  ;;  %v2515_v18 = vsub.f32 %v2371_v22, %v2443_v10  ;;  %v14735_v47 = vld [vmem:[#allocation33_spill] sm:$0xff] }
 0x339   : > { %v3953_v7 = vmax.f32 %v3809_v20, 0.0  ;;  %v12198_v49 = vor.u32 %v6203_v13, %v5834_v48  ;;  %v2315_v12 = vmul.f32 %v2243_v42, %v2108_v56  ;;  %v12206_v45 = vor.u32 %v6258_v23, %v6054_v61  ;;  %v14736_v42 = vld [vmem:[#allocation56_spill] sm:$0xff]  ;;  %v6547_v6 = vld [vmem:[%s13673_s0 + $0x380] sm:$0xff] }
 0x33a   : > { %v3773_v48 = vadd.f32 %v12091_v29, %v3269_v41  ;;  %v3267_v13 = vadd.f32 %v3123_v35, %v2619_v50  ;;  %v12211_v36 = vor.u32 %v6201_v24, %v5836_v30  ;;  %v3886_v22 = vmax.f32 %v14735_v47, 0.0  ;;  %v2244_v50 = vld [vmem:[%s13675_s2 + $0x208] sm:$0xff]  ;;  %v6223_v4 = vld [vmem:[%s11461_s9 + $0x100] sm:$0xf0] }
 0x33b   : > { %14730 = vst [vmem:[#allocation50_spill] sm:$0xff] %v12198_v49  ;;  %v4037_v20 = vpack.c.bf16 %v3953_v7, %v3951_v54  ;;  %v2118_v29 = vsel %vm12215_vm6, %v11991_v58, %v2114_v57  ;;  %v3884_v35 = vmax.f32 %v14736_v42, 0.0  ;;  %v2464_v7 = vmul.f32 %v11983_v27, %v14651_v40  ;;  %v2392_v41 = vld [vmem:[%s13676_s3 + $0x228] sm:$0xff]  ;;  %v2390_v40 = vld [vmem:[%s13676_s3 + $0x218] sm:$0xff]  ;;  %v2651_v27 = vld [vmem:[%s13674_s1 + $0x380] sm:$0xff] }
 0x33c   : > { %14731 = vst [vmem:[#allocation28_spill] sm:$0xff] %v12206_v45  ;;  %v3155_v61 = vmul.f32 %v6547_v6, %v12077_v34  ;;  %v3917_v23 = vmax.f32 %v3773_v48, 0.0  ;;  %v6548_v34 = vld [vmem:[%s13673_s0 + $0x390] sm:$0xff]  ;;  %v6549_v48 = vld [vmem:[%s13673_s0 + $0x398] sm:$0xff] }
 0x33d   : > { %3673 = vperm.xlu0 %6308, %v2535_v15   ;;  %4682 = vmatmul.bf16.gmra.mxu0 %v12198_v49  ;;  %14732 = vst [vmem:[#allocation47_spill] sm:$0xff] %v12211_v36  ;;  %v14737_v15 = vld [vmem:[#allocation16_spill] sm:$0xff]  ;;  %v12256_v24 = vpack.c.bf16 %v3886_v22, %v3884_v35  ;;  %v3157_v30 = vmul.f32 %v6548_v34, %v11945_v55  ;;  %v5854_v6 = vld [vmem:[%s11461_s9 + $0x78] sm:$0xf] }
 0x33e   : > { %4963 = vmatpush.bf16.msrb.mxu3 %v4037_v20  ;;  %v3534_v28 = vpop.permute.xlu0 %3533  ;;  %v12232_v54 = vpop.permute.xlu2 %2870  ;;  %v2462_v58 = vmul.f32 %v12120_v11, %v14737_v15  ;;  %v12252_v11 = vmul.f32 %v2244_v50, %v2118_v29  ;;  %v6256_v20 = vld [vmem:[%s11461_s9 + $0x20c] sm:$0xf]  ;;  %v2536_v47 = vsub.f32 %v2392_v41, %v2464_v7  ;;  %v3299_v29 = vadd.f32 %v3155_v61, %v2651_v27  ;;  %v14739_v50 = vld [vmem:[#allocation25_spill] sm:$0xff]  ;;  %v2389_v27 = vld [vmem:[%s13676_s3 + $0x210] sm:$0xff] }
 0x33f   : > { %3573 = vperm.xlu2 %6307, %v2515_v18   ;;  %3005 = vperm.xlu1 %6309, %v2315_v12   ;;  %v3771_v10 = vadd.f32 %v3534_v28, %v3267_v13  ;;  %v12220_v56 = vadd.f32 %v3534_v28, %v3268_v17  ;;  %v6056_v18 = vld [vmem:[%s11461_s9 + $0x21c] sm:$0xf0]  ;;  %v3158_v13 = vmul.f32 %v6549_v48, %v11945_v55  ;;  %v2653_v28 = vld [vmem:[%s13674_s1 + $0x390] sm:$0xff]  ;;  %v6208_v61 = vld [vmem:[%s11461_s9 + $0x88] sm:$0xf0] }
 0x340   : > { %4781 = vmatmul.bf16.gmra.mxu1 %v12211_v36  ;;  %v12230_v60 = vpop.permute.xlu1 %2955  ;;  %v12266_v16 = vor.u32 %v6256_v20, %v6056_v18  ;;  %v2534_v22 = vsub.f32 %v2390_v40, %v2462_v58  ;;  %v2459_v42 = vmul.f32 %v2315_v12, %v14739_v50  ;;  %v3803_v35 = vadd.f32 %v12169_v39, %v3299_v29  ;;  %v2387_v58 = vld [vmem:[%s13676_s3 + $0x200] sm:$0xff]  ;;  %v6074_v20 = vld [vmem:[%s11461_s9 + $0x230] sm:$0xf]  ;;  %v14741_v34 = vld [vmem:[#allocation13_spill] sm:$0xff] }
 0x341   : > { %4737 = vmatmul.bf16.gmra.mxu2 %v12206_v45  ;;  %v3915_v57 = vmax.f32 %v3771_v10, 0.0  ;;  %v2654_v10 = vld [vmem:[%s13674_s1 + $0x398] sm:$0xff]  ;;  %v3301_v7 = vadd.f32 %v3157_v30, %v2653_v28  ;;  %v2461_v12 = vmul.f32 %v12055_v51, %v14649_v38  ;;  %v12289_v41 = vor.u32 %v6208_v61, %v5854_v6  ;;  %v6263_v18 = vld [vmem:[%s11461_s9 + $0x240] sm:$0xf0]  ;;  %v2616_v29 = vld [vmem:[%s13674_s1 + $0x268] sm:$0xff] }
 0x342   : > { %14738 = vst [vmem:[#allocation99_spill] sm:$0xff] %v12266_v16  ;;  %v3302_v15 = vadd.f32 %v3158_v13, %v2654_v10  ;;  %v3880_v30 = vmax.f32 %v14741_v34, 0.0  ;;  %v2531_v48 = vsub.f32 %v2387_v58, %v2459_v42  ;;  %v6550_v13 = vld [vmem:[%s13673_s0 + $0x268] sm:$0xff]  ;;  %v3947_v51 = vmax.f32 %v3803_v35, 0.0  ;;  %v6206_v28 = vld [vmem:[%s11461_s9 + $0x7c] sm:$0xf] }
 0x343   : > { %v4019_v17 = vpack.c.bf16 %v3917_v23, %v3915_v57  ;;  %14740 = vst [vmem:[#allocation112_spill] sm:$0xff] %v12289_v41  ;;  %v3120_v38 = vmul.f32 %v6550_v13, %v12027_v25  ;;  %v2533_v10 = vsub.f32 %v2389_v27, %v2461_v12  ;;  %v2650_v50 = vld [vmem:[%s13674_s1 + $0x378] sm:$0xff]  ;;  %v12315_v42 = vor.u32 %v6263_v18, %v6074_v20  ;;  %v5856_v35 = vld [vmem:[%s11461_s9 + $0x8c] sm:$0xf0]  ;;  %v6552_v61 = vld [vmem:[%s13673_s0 + $0x260] sm:$0xff] }
 0x344   : > { %v12319_v6 = vor.u32 %v6206_v28, %v5856_v35  ;;  %v2615_v18 = vld [vmem:[%s13674_s1 + $0x260] sm:$0xff]  ;;  %v6261_v28 = vld [vmem:[%s11461_s9 + $0x234] sm:$0xf]  ;;  %v5914_v45 = vld [vmem:[%s11461_s9 + $0xf0] sm:$0xf] }
 0x345   : > { %3010 = vperm.xlu0 %6308, %v12252_v11   ;;  %4865 = vmatpush.bf16.msrb.mxu2 %v4019_v17  ;;  %v6551_v17 = vld [vmem:[%s13673_s0 + $0x378] sm:$0xff]  ;;  %14742 = vst [vmem:[#allocation70_spill] sm:$0xff] %v12315_v42  ;;  %v14745_v13 = vld [vmem:[#allocation26_spill] sm:$0xff] }
 0x346   : > { %v12275_v55 = vpop.permute.xlu0 %2960  ;;  %14744 = vst [vmem:[#allocation83_spill] sm:$0xff] %v12319_v6 }
 0x347   : > { %3678 = vperm.xlu2 %6307, %v2536_v47   ;;  %3668 = vperm.xlu1 %6309, %v2534_v22   ;;  %v12285_v57 = vpop.permute.xlu2 %2945  ;;  %v3154_v47 = vmul.f32 %v6551_v17, %v12275_v55 }
 0x348   : > { %4836 = vmatmul.bf16.gmra.mxu3 %v12266_v16  ;;  %v3619_v23 = vpop.permute.xlu1 %3618 }
 0x349   : > { %v3805_v39 = vadd.f32 %v3619_v23, %v3301_v7  ;;  %v12291_v40 = vadd.f32 %v3619_v23, %v3302_v15  ;;  %v14743_v7 = vld [vmem:[#allocation27_spill] sm:$0xff]  ;;  %v3119_v23 = vmul.f32 %v6552_v61, %v12027_v25  ;;  %v3298_v27 = vadd.f32 %v3154_v47, %v2650_v50  ;;  %v2618_v50 = vld [vmem:[%s13674_s1 + $0x278] sm:$0xff] }
 0x34a   : > { %v3882_v15 = vmax.f32 %v14743_v7, 0.0  ;;  %v2460_v25 = vmul.f32 %v12252_v11, %v14745_v13  ;;  %v2388_v11 = vld [vmem:[%s13676_s3 + $0x208] sm:$0xff] }
 0x34b   : > { %v3949_v22 = vmax.f32 %v3805_v39, 0.0  ;;  %v3264_v39 = vadd.f32 %v3120_v38, %v2616_v29  ;;  %v6553_v38 = vld [vmem:[%s13673_s0 + $0x270] sm:$0xff]  ;;  %v3263_v35 = vadd.f32 %v3119_v23, %v2615_v18  ;;  %v6555_v7 = vld [vmem:[%s13673_s0 + $0x248] sm:$0xff] }
 0x34c   : > { %v12328_v20 = vpack.c.bf16 %v3882_v15, %v3880_v30  ;;  %v6554_v30 = vld [vmem:[%s13673_s0 + $0x278] sm:$0xff]  ;;  %v2617_v29 = vld [vmem:[%s13674_s1 + $0x270] sm:$0xff]  ;;  %v2612_v13 = vld [vmem:[%s13674_s1 + $0x248] sm:$0xff] }
 0x34d   : > { %3653 = vperm.xlu0 %6308, %v2531_v48   ;;  %4687 = vmatmul.bf16.gmra.mxu0 %v12289_v41  ;;  %v4035_v58 = vpack.c.bf16 %v3949_v22, %v3947_v51  ;;  %v3121_v51 = vmul.f32 %v6553_v38, %v12167_v37  ;;  %v3122_v17 = vmul.f32 %v6554_v30, %v12167_v37  ;;  %v6556_v18 = vld [vmem:[%s13673_s0 + $0x370] sm:$0xff] }
 0x34e   : > { %v12325_v12 = vpop.permute.xlu0 %2865  ;;  %v3153_v38 = vmul.f32 %v6556_v18, %v12275_v55  ;;  %v2648_v18 = vld [vmem:[%s13674_s1 + $0x368] sm:$0xff] }
 0x34f   : > { %3663 = vperm.xlu2 %6307, %v2533_v10   ;;  %4964 = vmatpush.bf16.msrb.mxu3 %v4035_v58  ;;  %v3609_v48 = vpop.permute.xlu2 %3608  ;;  %v6076_v10 = vld [vmem:[%s11461_s9 + $0x244] sm:$0xf0]  ;;  %v3116_v15 = vmul.f32 %v6555_v7, %v12325_v12  ;;  %v2532_v58 = vsub.f32 %v2388_v11, %v2460_v25  ;;  %v6213_v25 = vld [vmem:[%s11461_s9 + $0xb0] sm:$0xf0] }
 0x350   : > { %4786 = vmatmul.bf16.gmra.mxu1 %v12319_v6  ;;  %v3524_v34 = vpop.permute.xlu1 %3523  ;;  %v12346_v22 = vadd.f32 %v3609_v48, %v3298_v27  ;;  %v12359_v37 = vor.u32 %v6261_v28, %v6076_v10  ;;  %v3266_v27 = vadd.f32 %v3122_v17, %v2618_v50 }
 0x351   : > { %4742 = vmatmul.bf16.gmra.mxu2 %v12315_v42  ;;  %v12344_v47 = vadd.f32 %v3524_v34, %v3264_v39  ;;  %v3767_v61 = vadd.f32 %v3524_v34, %v3263_v35  ;;  %v3265_v39 = vadd.f32 %v3121_v51, %v2617_v29  ;;  %v5874_v34 = vld [vmem:[%s11461_s9 + $0xa0] sm:$0xf]  ;;  %v2649_v51 = vld [vmem:[%s13674_s1 + $0x370] sm:$0xff]  ;;  %v3260_v10 = vadd.f32 %v3116_v15, %v2612_v13  ;;  %v6558_v35 = vld [vmem:[%s13673_s0 + $0x368] sm:$0xff] }
 0x352   : > { %14746 = vst [vmem:[#allocation7_spill] sm:$0xff] %v12359_v37  ;;  %v12382_v55 = vor.u32 %v6213_v25, %v5874_v34  ;;  %v6557_v29 = vld [vmem:[%s13673_s0 + $0x360] sm:$0xff]  ;;  %v3152_v7 = vmul.f32 %v6558_v35, %v12230_v60  ;;  %v3297_v34 = vadd.f32 %v3153_v38, %v2649_v51 }
 0x353   : > { %v3151_v50 = vmul.f32 %v6557_v29, %v12230_v60  ;;  %v2647_v13 = vld [vmem:[%s13674_s1 + $0x360] sm:$0xff] }
 0x354   : > { %14747 = vst [vmem:[#allocation3_spill] sm:$0xff] %v12382_v55  ;;  %v6211_v29 = vld [vmem:[%s11461_s9 + $0xa4] sm:$0xf]  ;;  %v3296_v35 = vadd.f32 %v3152_v7, %v2648_v18  ;;  %v6266_v18 = vld [vmem:[%s11461_s9 + $0x25c] sm:$0xf] }
 0x355   : > { %v6114_v42 = vld [vmem:[%s11461_s9 + $0x280] sm:$0xf] }
 0x356   : > { %v3529_v23 = vpop.permute.xlu0 %3528 }
 0x357   : > { %3658 = vperm.xlu2 %6307, %v2532_v58   ;;  %v3769_v30 = vadd.f32 %v3529_v23, %v3265_v39  ;;  %v12372_v28 = vadd.f32 %v3529_v23, %v3266_v27  ;;  %v3514_v11 = vpop.permute.xlu2 %3513  ;;  %v3911_v58 = vmax.f32 %v3767_v61, 0.0  ;;  %v6094_v27 = vld [vmem:[%s11461_s9 + $0x258] sm:$0xf]  ;;  %v6268_v23 = vld [vmem:[%s11461_s9 + $0x268] sm:$0xf0] }
 0x358   : > { %4841 = vmatmul.bf16.gmra.mxu3 %v12359_v37  ;;  %v12380_v17 = vpop.permute.xlu1 %2950  ;;  %v12394_v15 = vadd.f32 %v3514_v11, %v3260_v10  ;;  %v5876_v37 = vld [vmem:[%s11461_s9 + $0xb4] sm:$0xf0]  ;;  %v12405_v60 = vor.u32 %v6268_v23, %v6094_v27  ;;  %v3295_v10 = vadd.f32 %v3151_v50, %v2647_v13 }
 0x359   : > { %v3913_v39 = vmax.f32 %v3769_v30, 0.0  ;;  %v12407_v61 = vor.u32 %v6211_v29, %v5876_v37  ;;  %v3801_v30 = vadd.f32 %v3609_v48, %v3297_v34  ;;  %v6559_v48 = vld [vmem:[%s13673_s0 + $0x240] sm:$0xff]  ;;  %v6561_v27 = vld [vmem:[%s13673_s0 + $0x258] sm:$0xff]  ;;  %v6096_v34 = vld [vmem:[%s11461_s9 + $0x26c] sm:$0xf0] }
 0x35a   : > { %14748 = vst [vmem:[#allocation110_spill] sm:$0xff] %v12405_v60  ;;  %v3115_v37 = vmul.f32 %v6559_v48, %v12325_v12  ;;  %v3118_v23 = vmul.f32 %v6561_v27, %v12232_v54  ;;  %v2614_v29 = vld [vmem:[%s13674_s1 + $0x258] sm:$0xff] }
 0x35b   : > { %v4017_v25 = vpack.c.bf16 %v3913_v39, %v3911_v58  ;;  %14749 = vst [vmem:[#allocation40_spill] sm:$0xff] %v12407_v61  ;;  %v3945_v50 = vmax.f32 %v3801_v30, 0.0  ;;  %v6560_v58 = vld [vmem:[%s13673_s0 + $0x250] sm:$0xff]  ;;  %v12447_v30 = vor.u32 %v6266_v18, %v6096_v34 }
 0x35c   : > { %v3117_v39 = vmul.f32 %v6560_v58, %v12232_v54  ;;  %v2644_v54 = vld [vmem:[%s13674_s1 + $0x348] sm:$0xff]  ;;  %v3262_v27 = vadd.f32 %v3118_v23, %v2614_v29 }
 0x35d   : > { %4692 = vmatmul.bf16.gmra.mxu0 %v12382_v55  ;;  %4866 = vmatpush.bf16.msrb.mxu2 %v4017_v25  ;;  %v2613_v25 = vld [vmem:[%s13674_s1 + $0x250] sm:$0xff]  ;;  %14750 = vst [vmem:[#allocation49_spill] sm:$0xff] %v12447_v30  ;;  %v6216_v29 = vld [vmem:[%s11461_s9 + $0xcc] sm:$0xf] }
 0x35e   : > { %v3604_v16 = vpop.permute.xlu0 %3603  ;;  %v3261_v58 = vadd.f32 %v3117_v39, %v2613_v25  ;;  %v6273_v39 = vld [vmem:[%s11461_s9 + $0x290] sm:$0xf0] }
 0x35f   : > { %v3799_v6 = vadd.f32 %v3604_v16, %v3295_v10  ;;  %v12409_v36 = vadd.f32 %v3604_v16, %v3296_v35  ;;  %v12414_v51 = vpop.permute.xlu2 %2940  ;;  %v2611_v16 = vld [vmem:[%s13674_s1 + $0x240] sm:$0xff]  ;;  %v14751_v35 = vld [vmem:[#allocation63_spill] sm:$0xff] }
 0x360   : > { %4791 = vmatmul.bf16.gmra.mxu1 %v12407_v61  ;;  %v12412_v38 = vpop.permute.xlu1 %2855  ;;  %v3259_v10 = vadd.f32 %v3115_v37, %v2611_v16  ;;  %v3876_v48 = vmax.f32 %v14751_v35, 0.0  ;;  %v14752_v61 = vld [vmem:[#allocation76_spill] sm:$0xff]  ;;  %v5894_v35 = vld [vmem:[%s11461_s9 + $0xc8] sm:$0xf] }
 0x361   : > { %4747 = vmatmul.bf16.gmra.mxu2 %v12405_v60  ;;  %v3943_v7 = vmax.f32 %v3799_v6, 0.0  ;;  %v6562_v6 = vld [vmem:[%s13673_s0 + $0x348] sm:$0xff]  ;;  %v3878_v0 = vmax.f32 %v14752_v61, 0.0  ;;  %v6218_v60 = vld [vmem:[%s11461_s9 + $0xd8] sm:$0xf0]  ;;  %v12467_v61 = vor.u32 %v6273_v39, %v6114_v42  ;;  %v6563_v42 = vld [vmem:[%s13673_s0 + $0x340] sm:$0xff] }
 0x362   : > { %v3148_v12 = vmul.f32 %v6562_v6, %v12285_v57  ;;  %v6271_v39 = vld [vmem:[%s11461_s9 + $0x284] sm:$0xf] }
 0x363   : > { %v4033_v13 = vpack.c.bf16 %v3945_v50, %v3943_v7  ;;  %v3763_v7 = vadd.f32 %v3514_v11, %v3259_v10  ;;  %v12461_v11 = vor.u32 %v6218_v60, %v5894_v35  ;;  %v12464_v23 = vpack.c.bf16 %v3878_v0, %v3876_v48  ;;  %14754 = vst [vmem:[#allocation38_spill] sm:$0xff] %v12467_v61 }
 0x364   : > { %v3292_v6 = vadd.f32 %v3148_v12, %v2644_v54  ;;  %v5896_v54 = vld [vmem:[%s11461_s9 + $0xdc] sm:$0xf0]  ;;  %v3147_v48 = vmul.f32 %v6563_v42, %v12285_v57  ;;  %v2645_v57 = vld [vmem:[%s13674_s1 + $0x350] sm:$0xff] }
 0x365   : > { %4965 = vmatpush.bf16.msrb.mxu3 %v4033_v13  ;;  %14753 = vst [vmem:[#allocation67_spill] sm:$0xff] %v12461_v11  ;;  %v3907_v12 = vmax.f32 %v3763_v7, 0.0  ;;  %v2643_v7 = vld [vmem:[%s13674_s1 + $0x340] sm:$0xff] }
 0x366   : > { %v12450_v50 = vpop.permute.xlu0 %2860 }
 0x368   : > { %4846 = vmatmul.bf16.gmra.mxu3 %v12447_v30  ;;  %v3519_v18 = vpop.permute.xlu1 %3518  ;;  %v3594_v37 = vpop.permute.xlu2 %3593 }
 0x369   : > { %v3765_v16 = vadd.f32 %v3519_v18, %v3261_v58  ;;  %v12454_v13 = vadd.f32 %v3519_v18, %v3262_v27  ;;  %v12456_v34 = vadd.f32 %v3594_v37, %v3292_v6  ;;  %v12471_v58 = vor.u32 %v6216_v29, %v5896_v54  ;;  %v6564_v6 = vld [vmem:[%s13673_s0 + $0x350] sm:$0xff] }
 0x36a   : > { %v3149_v18 = vmul.f32 %v6564_v6, %v12380_v17  ;;  %v3291_v29 = vadd.f32 %v3147_v48, %v2643_v7  ;;  %v6134_v48 = vld [vmem:[%s11461_s9 + $0x2a8] sm:$0xf]  ;;  %v12516_v7 = vor.u32 %v6223_v4, %v5914_v45  ;;  %v6221_v4 = vld [vmem:[%s11461_s9 + $0xf4] sm:$0xf]  ;;  %v3874_v45 = vmax.f32 %v11237_v8, 0.0  ;;  %v2607_v8 = vld [vmem:[%s13674_s1 + $0x220] sm:$0xff] }
 0x36b   : > { %v3909_v25 = vmax.f32 %v3765_v16, 0.0  ;;  %14755 = vst [vmem:[#allocation35_spill] sm:$0xff] %v12471_v58  ;;  %v6565_v16 = vld [vmem:[%s13673_s0 + $0x358] sm:$0xff] }
 0x36c   : > { %v3150_v35 = vmul.f32 %v6565_v16, %v12380_v17  ;;  %v3795_v17 = vadd.f32 %v3594_v37, %v3291_v29  ;;  %v3293_v42 = vadd.f32 %v3149_v18, %v2645_v57  ;;  %14757 = vst [vmem:[#allocation2_spill] sm:$0xff] %v12516_v7  ;;  %v6566_v37 = vld [vmem:[%s13673_s0 + $0x228] sm:$0xff] }
 0x36d   : > { %4697 = vmatmul.bf16.gmra.mxu0 %v12461_v11  ;;  %v4015_v10 = vpack.c.bf16 %v3909_v25, %v3907_v12  ;;  %v2646_v12 = vld [vmem:[%s13674_s1 + $0x358] sm:$0xff]  ;;  %v3112_v18 = vmul.f32 %v6566_v37, %v12412_v38 }
 0x36e   : > { %v12473_v27 = vpop.permute.xlu0 %2935  ;;  %v6116_v25 = vld [vmem:[%s11461_s9 + $0x294] sm:$0xf0]  ;;  %v3294_v6 = vadd.f32 %v3150_v35, %v2646_v12  ;;  %v3939_v35 = vmax.f32 %v3795_v17, 0.0  ;;  %v6567_v17 = vld [vmem:[%s13673_s0 + $0x220] sm:$0xff]  ;;  %v6226_v11 = vld [vmem:[%s11461_s9 + $0x11c] sm:$0xf] }
 0x36f   : > { %4867 = vmatpush.bf16.msrb.mxu2 %v4015_v10  ;;  %v12504_v54 = vor.u32 %v6271_v39, %v6116_v25  ;;  %v6278_v39 = vld [vmem:[%s11461_s9 + $0x2b8] sm:$0xf0] }
 0x370   : > { %4796 = vmatmul.bf16.gmra.mxu1 %v12471_v58  ;;  %v12476_v0 = vpop.permute.xlu2 %2850  ;;  %v12478_v60 = vpop.permute.xlu1 %3035  ;;  %v12527_v12 = vor.u32 %v6278_v39, %v6134_v48  ;;  %v14760_v48 = vld [vmem:[#allocation11_spill] sm:$0xff] }
 0x371   : > { %4752 = vmatmul.bf16.gmra.mxu2 %v12467_v61  ;;  %14756 = vst [vmem:[#allocation9_spill] sm:$0xff] %v12504_v54  ;;  %v3872_v39 = vmax.f32 %v14760_v48, 0.0  ;;  %v6276_v48 = vld [vmem:[%s11461_s9 + $0x2ac] sm:$0xf] }
 0x372   : > { %14758 = vst [vmem:[#allocation10_spill] sm:$0xff] %v12527_v12 }
 0x376   : > { %v12506_v10 = vpop.permute.xlu0 %3040 }
 0x378   : > { %4851 = vmatmul.bf16.gmra.mxu3 %v12504_v54  ;;  %v3599_v30 = vpop.permute.xlu1 %3598  ;;  %v6136_v54 = vld [vmem:[%s11461_s9 + $0x2bc] sm:$0xf0] }
 0x379   : > { %v12509_v16 = vpop.permute.xlu2 %2925  ;;  %v3797_v58 = vadd.f32 %v3599_v30, %v3293_v42  ;;  %v12511_v61 = vadd.f32 %v3599_v30, %v3294_v6  ;;  %v2608_v30 = vld [vmem:[%s13674_s1 + $0x228] sm:$0xff]  ;;  %v12561_v46 = vor.u32 %v6276_v48, %v6136_v54 }
 0x37a   : > { %v5916_v42 = vld [vmem:[%s11461_s9 + $0x104] sm:$0xf0]  ;;  %v3256_v6 = vadd.f32 %v3112_v18, %v2608_v30 }
 0x37b   : > { %v3941_v57 = vmax.f32 %v3797_v58, 0.0  ;;  %v3111_v58 = vmul.f32 %v6567_v17, %v12412_v38  ;;  %v12538_v37 = vor.u32 %v6221_v4, %v5916_v42  ;;  %v6568_v38 = vld [vmem:[%s13673_s0 + $0x230] sm:$0xff]  ;;  %v12557_v42 = vpack.c.bf16 %v3874_v45, %v3872_v39  ;;  %14762 = vst [vmem:[#allocation97_spill] sm:$0xff] %v12561_v46  ;;  %v14764_v39 = vld [vmem:[#allocation91_spill] sm:$0xff] }
 0x37c   : > { %v3113_v18 = vmul.f32 %v6568_v38, %v12450_v50  ;;  %v2609_v4 = vld [vmem:[%s13674_s1 + $0x230] sm:$0xff] }
 0x37d   : > { %4702 = vmatmul.bf16.gmra.mxu0 %v12516_v7  ;;  %v4031_v25 = vpack.c.bf16 %v3941_v57, %v3939_v35  ;;  %14759 = vst [vmem:[#allocation57_spill] sm:$0xff] %v12538_v37  ;;  %v3255_v17 = vadd.f32 %v3111_v58, %v2607_v8  ;;  %v6228_v7 = vld [vmem:[%s11461_s9 + $0x128] sm:$0xf0]  ;;  %v3870_v8 = vmax.f32 %v14764_v39, 0.0  ;;  %v6570_v39 = vld [vmem:[%s13673_s0 + $0x320] sm:$0xff] }
 0x37e   : > { %v12531_v29 = vpop.permute.xlu0 %2845  ;;  %14761 = vst [vmem:[#allocation8_spill] sm:$0xff] %v12557_v42  ;;  %v3257_v62 = vadd.f32 %v3113_v18, %v2609_v4  ;;  %v12572_v58 = vor.u32 %v6228_v7, %v5934_v52  ;;  %v2640_v7 = vld [vmem:[%s13674_s1 + $0x328] sm:$0xff] }
 0x37f   : > { %4966 = vmatpush.bf16.msrb.mxu3 %v4031_v25  ;;  %v4718_v25 = vpop.f32.mrf.mxu2 }
 0x380   : > { %4801 = vmatmul.bf16.gmra.mxu1 %v12538_v37  ;;  %14763 = vst [vmem:[#allocation59_spill] sm:$0xff] %v12572_v58 }
 0x381   : > { %v3504_v35 = vpop.permute.xlu1 %3503  ;;  %v12544_v57 = vpop.permute.xlu2 %3030  ;;  %4757 = vmatmul.bf16.gmra.mxu2 %v12527_v12 }
 0x382   : > { %v12551_v30 = vadd.f32 %v3504_v35, %v3256_v6  ;;  %v3759_v12 = vadd.f32 %v3504_v35, %v3255_v17  ;;  %v3868_v6 = vmax.f32 %v11318_v1, 0.0 }
 0x384   : > { %v3903_v54 = vmax.f32 %v3759_v12, 0.0  ;;  %v12584_v52 = vpack.c.bf16 %v3870_v8, %v3868_v6  ;;  %v5936_v12 = vld [vmem:[%s11461_s9 + $0x12c] sm:$0xf0]  ;;  %v6571_v8 = vld [vmem:[%s13673_s0 + $0x460] sm:$0xff] }
 0x386   : > { %14767 = vst [vmem:[#allocation94_spill] sm:$0xff] %v12584_v52 }
 0x387   : > { %v12563_v38 = vpop.permute.xlu0 %3508  ;;  %v12575_v18 = vpop.f32.mrf.mxu2 }
 0x388   : > { %v3761_v37 = vadd.f32 %v12563_v38, %v3257_v62  ;;  %4856 = vmatmul.bf16.gmra.mxu3 %v12561_v46  ;;  %14765 = vst [vmem:[#allocation118_spill] sm:$0xff] %v12575_v18  ;;  %v4817_v4 = vpop.f32.mrf.mxu3  ;;  %v6569_v62 = vld [vmem:[%s13673_s0 + $0x328] sm:$0xff]  ;;  %v2641_v18 = vld [vmem:[%s13674_s1 + $0x330] sm:$0xff] }
 0x389   : > { %v12570_v45 = vpop.permute.xlu1 %2930  ;;  %v3684_v1 = vpop.permute.xlu2 %3683  ;;  %v12577_v17 = vadd.f32 %v4817_v4, %v4718_v25  ;;  %v3144_v48 = vmul.f32 %v6569_v62, %v12473_v27  ;;  %v2639_v4 = vld [vmem:[%s13674_s1 + $0x320] sm:$0xff] }
 0x38a   : > { %v3905_v35 = vmax.f32 %v3761_v37, 0.0  ;;  %v12591_v37 = vor.u32 %v6226_v11, %v5936_v12  ;;  %v6574_v12 = vld [vmem:[%s13673_s0 + $0x338] sm:$0xff] }
 0x38b   : > { %14766 = vst [vmem:[#allocation69_spill] sm:$0xff] %v12577_v17  ;;  %v3288_v6 = vadd.f32 %v3144_v48, %v2640_v7  ;;  %v6573_v48 = vld [vmem:[%s13673_s0 + $0x330] sm:$0xff] }
 0x38c   : > { %v4013_v46 = vpack.c.bf16 %v3905_v35, %v3903_v54  ;;  %14768 = vst [vmem:[#allocation64_spill] sm:$0xff] %v12591_v37  ;;  %v3143_v54 = vmul.f32 %v6570_v39, %v12473_v27  ;;  %v3183_v35 = vmul.f32 %v6571_v8, %v12478_v60  ;;  %v3926_v27 = vmax.f32 %v11861_v63, 0.0  ;;  %v2680_v63 = vld [vmem:[%s13674_s1 + $0x468] sm:$0xff] }
 0x38d   : > { %4707 = vmatmul.bf16.gmra.mxu0 %v12572_v58  ;;  %v3145_v7 = vmul.f32 %v6573_v48, %v12414_v51  ;;  %v3146_v39 = vmul.f32 %v6574_v12, %v12414_v51  ;;  %v2642_v51 = vld [vmem:[%s13674_s1 + $0x338] sm:$0xff]  ;;  %v3924_v12 = vmax.f32 %v11795_v43, 0.0  ;;  %v2681_v43 = vld [vmem:[%s13674_s1 + $0x470] sm:$0xff] }
 0x38e   : > { %4868 = vmatpush.bf16.msrb.mxu2 %v4013_v46  ;;  %v6572_v46 = vld [vmem:[%s13673_s0 + $0x468] sm:$0xff]  ;;  %v3287_v58 = vadd.f32 %v3143_v54, %v2639_v4 }
 0x38f   : > { %v12593_v25 = vpop.permute.xlu0 %3025  ;;  %v3184_v11 = vmul.f32 %v6572_v46, %v12478_v60  ;;  %v2679_v60 = vld [vmem:[%s13674_s1 + $0x460] sm:$0xff]  ;;  %v4723_v46 = vpop.f32.mrf.mxu2  ;;  %v3289_v52 = vadd.f32 %v3145_v7, %v2641_v18  ;;  %v3290_v59 = vadd.f32 %v3146_v39, %v2642_v51  ;;  %v12653_v42 = vpack.c.bf16 %v3926_v27, %v3924_v12 }
 0x390   : > { %4806 = vmatmul.bf16.gmra.mxu1 %v12591_v37  ;;  %v12628_v48 = vpop.f32.mrf.mxu3  ;;  %v6576_v37 = vld [vmem:[%s13673_s0 + $0x478] sm:$0xff]  ;;  %v3327_v55 = vadd.f32 %v3183_v35, %v2679_v60  ;;  %v2605_v60 = vld [vmem:[%s13674_s1 + $0x210] sm:$0xff]  ;;  %v3916_v7 = vmax.f32 %v12220_v56, 0.0  ;;  %v5954_v51 = vld [vmem:[%s11461_s9 + $0x140] sm:$0xf] }
 0x391   : > { %v3584_v62 = vpop.permute.xlu1 %3583  ;;  %14769 = vst [vmem:[#allocation101_spill] sm:$0xff] %v12628_v48  ;;  %v3186_v48 = vmul.f32 %v6576_v37, %v12506_v10  ;;  %v3328_v41 = vadd.f32 %v3184_v11, %v2680_v63  ;;  %v12645_v49 = vpop.permute.xlu2 %3498  ;;  %v6577_v37 = vld [vmem:[%s13673_s0 + $0x210] sm:$0xff] }
 0x392   : > { %v12625_v8 = vadd.f32 %v3584_v62, %v3288_v6  ;;  %v6575_v6 = vld [vmem:[%s13673_s0 + $0x470] sm:$0xff]  ;;  %v3109_v54 = vmul.f32 %v6577_v37, %v12476_v0  ;;  %v3831_v35 = vadd.f32 %v3684_v1, %v3327_v55 }
 0x393   : > { %v3185_v17 = vmul.f32 %v6575_v6, %v12506_v10  ;;  %v3791_v6 = vadd.f32 %v3584_v62, %v3287_v58  ;;  %v3920_v10 = vmax.f32 %v11897_v32, 0.0  ;;  %v3832_v11 = vadd.f32 %v3684_v1, %v3328_v41  ;;  %v6578_v41 = vld [vmem:[%s13673_s0 + $0x238] sm:$0xff]  ;;  %v6579_v1 = vld [vmem:[%s13673_s0 + $0x200] sm:$0xff] }
 0x394   : > { %v3330_v27 = vadd.f32 %v3186_v48, %v2682_v44  ;;  %v3922_v32 = vmax.f32 %v12032_v33, 0.0  ;;  %v3114_v55 = vmul.f32 %v6578_v41, %v12450_v50  ;;  %v2603_v44 = vld [vmem:[%s13674_s1 + $0x200] sm:$0xff]  ;;  %v6233_v50 = vld [vmem:[%s11461_s9 + $0x150] sm:$0xf0]  ;;  %v3975_v12 = vmax.f32 %v3831_v35, 0.0 }
 0x395   : > { %v3329_v62 = vadd.f32 %v3185_v17, %v2681_v43  ;;  %v3935_v33 = vmax.f32 %v3791_v6, 0.0  ;;  %v3976_v43 = vmax.f32 %v3832_v11, 0.0  ;;  %v3253_v37 = vadd.f32 %v3109_v54, %v2605_v60 }
 0x396   : > { %v12682_v41 = vor.u32 %v6233_v50, %v5954_v51 }
 0x397   : > { %v3589_v4 = vpop.permute.xlu0 %3588  ;;  %v12678_v63 = vpop.f32.mrf.mxu2  ;;  %v3757_v35 = vadd.f32 %v12645_v49, %v3253_v37  ;;  %v2606_v37 = vld [vmem:[%s13674_s1 + $0x218] sm:$0xff] }
 0x398   : > { %v3793_v58 = vadd.f32 %v3589_v4, %v3289_v52  ;;  %v12663_v18 = vadd.f32 %v3589_v4, %v3290_v59  ;;  %v3107_v59 = vmul.f32 %v6579_v1, %v12531_v29  ;;  %14770 = vst [vmem:[#allocation124_spill] sm:$0xff] %v12678_v63  ;;  %v2610_v1 = vld [vmem:[%s13674_s1 + $0x238] sm:$0xff]  ;;  %v12694_v63 = vpack.c.bf16 %v3922_v32, %v3920_v10  ;;  %v2604_v10 = vld [vmem:[%s13674_s1 + $0x208] sm:$0xff] }
 0x399   : > { %v3689_v17 = vpop.permute.xlu1 %3688 }
 0x39a   : > { %v3937_v52 = vmax.f32 %v3793_v58, 0.0  ;;  %v3833_v56 = vadd.f32 %v3689_v17, %v3329_v62  ;;  %v3834_v39 = vadd.f32 %v3689_v17, %v3330_v27  ;;  %v4673_v48 = vpop.f32.mrf.mxu0  ;;  %v3918_v17 = vmax.f32 %v12110_v26, 0.0 }
 0x39b   : > { %v4822_v4 = vpop.f32.mrf.mxu3  ;;  %v3251_v11 = vadd.f32 %v3107_v59, %v2603_v44  ;;  %v12702_v59 = vpop.permute.xlu2 %3573 }
 0x39c   : > { %v3977_v6 = vmax.f32 %v3833_v56, 0.0  ;;  %v3978_v58 = vmax.f32 %v3834_v39, 0.0  ;;  %v4029_v62 = vpack.c.bf16 %v3937_v52, %v3935_v33  ;;  %v12687_v27 = vadd.f32 %v4822_v4, %v4723_v46  ;;  %v6231_v56 = vld [vmem:[%s11461_s9 + $0x144] sm:$0xf]  ;;  %v5956_v39 = vld [vmem:[%s11461_s9 + $0x154] sm:$0xf0] }
 0x39d   : > { %v4772_v54 = vpop.f32.mrf.mxu1  ;;  %4712 = vmatmul.bf16.gmra.mxu0 %v12682_v41  ;;  %v6580_v46 = vld [vmem:[%s13673_s0 + $0x208] sm:$0xff]  ;;  %v3258_v33 = vadd.f32 %v3114_v55, %v2610_v1  ;;  %v12704_v52 = vor.u32 %v6231_v56, %v5956_v39  ;;  %v3910_v55 = vmax.f32 %v12454_v13, 0.0  ;;  %v3901_v1 = vmax.f32 %v3757_v35, 0.0 }
 0x39e   : > { %14771 = vst [vmem:[#allocation113_spill] sm:$0xff] %v12687_v27  ;;  %v4050_v60 = vpack.c.bf16 %v3978_v58, %v3976_v43  ;;  %4967 = vmatpush.bf16.msrb.mxu3 %v4029_v62  ;;  %v4049_v51 = vpack.c.bf16 %v3977_v6, %v3975_v12  ;;  %v12692_v50 = vadd.f32 %v4772_v54, %v4673_v48  ;;  %v3914_v48 = vmax.f32 %v12372_v28, 0.0  ;;  %v5802_v58 = vld [vmem:[%s11461_s9 + $0x8] sm:$0xf]  ;;  %v6194_v62 = vld [vmem:[%s11461_s9 + $0x18] sm:$0xf0] }
 0x39f   : > { %v3108_v26 = vmul.f32 %v6580_v46, %v12531_v29  ;;  %v3494_v44 = vpop.permute.xlu0 %3493  ;;  %14772 = vst [vmem:[#allocation77_spill] sm:$0xff] %v12704_v52  ;;  %v12706_v43 = vpack.c.bf16 %v3918_v17, %v3916_v7  ;;  %v3912_v29 = vmax.f32 %v12344_v47, 0.0  ;;  %v6581_v7 = vld [vmem:[%s13673_s0 + $0x218] sm:$0xff]  ;;  %v3762_v28 = vadd.f32 %v12563_v38, %v3258_v33  ;;  %v6582_v47 = vld [vmem:[%s13673_s0 + $0x300] sm:$0xff] }
 0x3a0   : > { %v3755_v32 = vadd.f32 %v3494_v44, %v3251_v11  ;;  %5064 = vmatpush.bf16.msrb.mxu0 %v4049_v51  ;;  %5559 = vmatpush.bf16.msra.mxu1 %v4050_v60  ;;  %v3110_v12 = vmul.f32 %v6581_v7, %v12476_v0  ;;  %v3139_v13 = vmul.f32 %v6582_v47, %v12509_v16  ;;  %v2635_v38 = vld [vmem:[%s13674_s1 + $0x300] sm:$0xff]  ;;  %v3908_v54 = vmax.f32 %v12394_v15, 0.0  ;;  %v6583_v60 = vld [vmem:[%s13673_s0 + $0x310] sm:$0xff] }
 0x3a1   : > { %v12722_v4 = vpop.permute.xlu1 %3015  ;;  %4811 = vmatmul.bf16.gmra.mxu1 %v12704_v52  ;;  %v3252_v17 = vadd.f32 %v3108_v26, %v2604_v10  ;;  %v3141_v35 = vmul.f32 %v6583_v60, %v12570_v45  ;;  %v12743_v39 = vpack.c.bf16 %v3914_v48, %v3912_v29  ;;  %v3906_v46 = vmax.f32 %v3762_v28, 0.0  ;;  %v2637_v15 = vld [vmem:[%s13674_s1 + $0x310] sm:$0xff]  ;;  %v5804_v52 = vld [vmem:[%s11461_s9 + $0x1c] sm:$0xf0] }
 0x3a2   : > { %v3899_v6 = vmax.f32 %v3755_v32, 0.0  ;;  %v12731_v0 = vpop.f32.mrf.mxu0  ;;  %v3254_v33 = vadd.f32 %v3110_v12, %v2606_v37  ;;  %v12745_v7 = vor.u32 %v6194_v62, %v5802_v58  ;;  %v3283_v10 = vadd.f32 %v3139_v13, %v2635_v38  ;;  %v14776_v37 = vld [vmem:[#allocation82_spill] sm:$0xff]  ;;  %v6587_v38 = vld [vmem:[%s13673_s0 + $0x448] sm:$0xff] }
 0x3a3   : > { %v4728_v11 = vpop.f32.mrf.mxu2  ;;  %v12741_v56 = vpop.f32.mrf.mxu3  ;;  %v3756_v32 = vadd.f32 %v3494_v44, %v3252_v17  ;;  %v12752_v47 = vpack.c.bf16 %v3910_v55, %v3908_v54  ;;  %v3904_v48 = vmax.f32 %v12551_v30, 0.0  ;;  %v6584_v44 = vld [vmem:[%s13673_s0 + $0x450] sm:$0xff]  ;;  %v6585_v55 = vld [vmem:[%s13673_s0 + $0x458] sm:$0xff]  ;;  %v6586_v30 = vld [vmem:[%s13673_s0 + $0x440] sm:$0xff]  ;;  %v3285_v58 = vadd.f32 %v3141_v35, %v2637_v15 }
 0x3a4   : > { %v4011_v51 = vpack.c.bf16 %v3901_v1, %v3899_v6  ;;  %14773 = vst [vmem:[#allocation122_spill] sm:$0xff] %v12741_v56  ;;  %v3956_v1 = vmax.f32 %v11932_v53, 0.0  ;;  %v3181_v29 = vmul.f32 %v6584_v44, %v12544_v57  ;;  %v3758_v12 = vadd.f32 %v12645_v49, %v3254_v33  ;;  %v2677_v49 = vld [vmem:[%s13674_s1 + $0x450] sm:$0xff]  ;;  %v2678_v54 = vld [vmem:[%s13674_s1 + $0x458] sm:$0xff]  ;;  %v3679_v60 = vpop.permute.xlu2 %3678 }
 0x3a5   : > { %14774 = vst [vmem:[#allocation103_spill] sm:$0xff] %v12745_v7  ;;  %v12750_v26 = vpop.f32.mrf.mxu1  ;;  %v3182_v53 = vmul.f32 %v6585_v55, %v12544_v57  ;;  %v3179_v13 = vmul.f32 %v6586_v30, %v12593_v25  ;;  %v3787_v6 = vadd.f32 %v12702_v59, %v3283_v10  ;;  %v3958_v62 = vmax.f32 %v11793_v19, 0.0  ;;  %v2675_v19 = vld [vmem:[%s13674_s1 + $0x440] sm:$0xff]  ;;  %v2676_v10 = vld [vmem:[%s13674_s1 + $0x448] sm:$0xff] }
 0x3a6   : > { %14775 = vst [vmem:[#allocation104_spill] sm:$0xff] %v12750_v26  ;;  %4869 = vmatpush.bf16.msrb.mxu2 %v4011_v51  ;;  %v3180_v57 = vmul.f32 %v6587_v38, %v12593_v25  ;;  %v3900_v17 = vmax.f32 %v3756_v32, 0.0  ;;  %v12790_v35 = vpack.c.bf16 %v3906_v46, %v3904_v48  ;;  %v3952_v33 = vmax.f32 %v12112_v14, 0.0 }
 0x3a7   : > { %v12761_v28 = vpop.permute.xlu0 %3020  ;;  %v3954_v25 = vmax.f32 %v12155_v21, 0.0  ;;  %v3948_v32 = vmax.f32 %v12193_v2, 0.0  ;;  %v3902_v55 = vmax.f32 %v3758_v12, 0.0  ;;  %v3325_v46 = vadd.f32 %v3181_v29, %v2677_v49 }
 0x3a8   : > { %v12803_v48 = vpack.c.bf16 %v3958_v62, %v3956_v1  ;;  %v3931_v21 = vmax.f32 %v3787_v6, 0.0  ;;  %v3326_v30 = vadd.f32 %v3182_v53, %v2678_v54  ;;  %v3323_v38 = vadd.f32 %v3179_v13, %v2675_v19  ;;  %v6588_v13 = vld [vmem:[%s13673_s0 + $0x308] sm:$0xff] }
 0x3a9   : > { %4870 = vmatmul.bf16.vlgmr.msrb.gmra.mxu2 %v12745_v7  ;;  %v12785_v51 = vpop.permute.xlu1 %3578  ;;  %v3829_v27 = vadd.f32 %v3679_v60, %v3325_v46  ;;  %v3324_v7 = vadd.f32 %v3180_v57, %v2676_v10  ;;  %v12809_v12 = vpack.c.bf16 %v3902_v55, %v3900_v17  ;;  %v12813_v1 = vpack.c.bf16 %v3954_v25, %v3952_v33  ;;  %v2636_v57 = vld [vmem:[%s13674_s1 + $0x308] sm:$0xff]  ;;  %v6199_v55 = vld [vmem:[%s11461_s9 + $0x40] sm:$0xf0] }
 0x3aa   : > { %5258 = vmatpush.bf16.msra.mxu2 %v14776_v37  ;;  %v3789_v15 = vadd.f32 %v12785_v51, %v3285_v58  ;;  %v4678_v44 = vpop.f32.mrf.mxu0  ;;  %v3950_v37 = vmax.f32 %v12291_v40, 0.0  ;;  %v6192_v58 = vld [vmem:[%s11461_s9 + $0xc] sm:$0xf]  ;;  %v3830_v29 = vadd.f32 %v3679_v60, %v3326_v30  ;;  %v3944_v53 = vmax.f32 %v12409_v36, 0.0  ;;  %v2638_v36 = vld [vmem:[%s13674_s1 + $0x318] sm:$0xff]  ;;  %v6590_v60 = vld [vmem:[%s13673_s0 + $0x420] sm:$0xff] }
 0x3ab   : > { %v12801_v14 = vpop.f32.mrf.mxu2  ;;  %v4827_v56 = vpop.f32.mrf.mxu3  ;;  %v3140_v6 = vmul.f32 %v6588_v13, %v12509_v16  ;;  %v3946_v16 = vmax.f32 %v12346_v22, 0.0  ;;  %v3175_v19 = vmul.f32 %v6590_v60, %v12722_v4  ;;  %v2671_v22 = vld [vmem:[%s13674_s1 + $0x420] sm:$0xff]  ;;  %v3942_v46 = vmax.f32 %v12511_v61, 0.0 }
 0x3ac   : > { %v3933_v2 = vmax.f32 %v3789_v15, 0.0  ;;  %v12807_v26 = vadd.f32 %v4827_v56, %v4728_v11  ;;  %v12821_v11 = vor.u32 %v6192_v58, %v5804_v52  ;;  %v12823_v56 = vpack.c.bf16 %v3950_v37, %v3948_v32  ;;  %v5822_v32 = vld [vmem:[%s11461_s9 + $0x30] sm:$0xf]  ;;  %v3664_v30 = vpop.permute.xlu2 %3663 }
 0x3ad   : > { %v4777_v40 = vpop.f32.mrf.mxu1  ;;  %v3973_v15 = vmax.f32 %v3829_v27, 0.0  ;;  %v3974_v10 = vmax.f32 %v3830_v29, 0.0  ;;  %v12872_v13 = vor.u32 %v6199_v55, %v5822_v32 }
 0x3ae   : > { %5259 = vmatpush.bf16.msra.mxu2 %v11768_v3  ;;  %v4027_v3 = vpack.c.bf16 %v3933_v2, %v3931_v21  ;;  %v12811_v49 = vadd.f32 %v4777_v40, %v4678_v44  ;;  %v3284_v21 = vadd.f32 %v3140_v6, %v2636_v57  ;;  %v12859_v2 = vpack.c.bf16 %v3946_v16, %v3944_v53  ;;  %v2673_v6 = vld [vmem:[%s13674_s1 + $0x430] sm:$0xff] }
 0x3af   : > { %v3674_v62 = vpop.permute.xlu0 %3673  ;;  %v3940_v57 = vmax.f32 %v12456_v34, 0.0  ;;  %v6594_v34 = vld [vmem:[%s13673_s0 + $0x410] sm:$0xff] }
 0x3b0   : > { %v3827_v17 = vadd.f32 %v3674_v62, %v3323_v38  ;;  %v3828_v54 = vadd.f32 %v3674_v62, %v3324_v7  ;;  %4968 = vmatpush.bf16.msrb.mxu3 %v4027_v3  ;;  %v6591_v7 = vld [vmem:[%s13673_s0 + $0x428] sm:$0xff]  ;;  %v3319_v3 = vadd.f32 %v3175_v19, %v2671_v22  ;;  %v6596_v22 = vld [vmem:[%s13673_s0 + $0x400] sm:$0xff] }
 0x3b1   : > { %v3176_v33 = vmul.f32 %v6591_v7, %v12722_v4  ;;  %v3006_v25 = vpop.permute.xlu1 %3005  ;;  %5167 = vmatmul.bf16.vlgmr.msrb.gmra.mxu1 %v11909_v31  ;;  %v6593_v31 = vld [vmem:[%s13673_s0 + $0x438] sm:$0xff] }
 0x3b2   : > { %5260 = vmatpush.bf16.msra.mxu2 %v12053_v9  ;;  %v6589_v9 = vld [vmem:[%s13673_s0 + $0x318] sm:$0xff]  ;;  %v3971_v44 = vmax.f32 %v3827_v17, 0.0  ;;  %v3972_v37 = vmax.f32 %v3828_v54, 0.0  ;;  %v12854_v4 = vpop.f32.mrf.mxu0  ;;  %v3178_v61 = vmul.f32 %v6593_v31, %v12761_v28  ;;  %v3823_v54 = vadd.f32 %v3664_v30, %v3319_v3 }
 0x3b3   : > { %v3142_v52 = vmul.f32 %v6589_v9, %v12570_v45  ;;  %v2672_v45 = vld [vmem:[%s13674_s1 + $0x428] sm:$0xff]  ;;  %4969 = vmatmul.bf16.vlgmr.msrb.gmra.mxu3 %v12821_v11  ;;  %v2669_v9 = vld [vmem:[%s13674_s1 + $0x410] sm:$0xff] }
 0x3b4   : > { %5357 = vmatpush.bf16.msra.mxu3 %v11628_v5  ;;  %v6592_v5 = vld [vmem:[%s13673_s0 + $0x430] sm:$0xff]  ;;  %v4047_v38 = vpack.c.bf16 %v3973_v15, %v3971_v44  ;;  %v4048_v58 = vpack.c.bf16 %v3974_v10, %v3972_v37  ;;  %v4733_v40 = vpop.f32.mrf.mxu2  ;;  %v3320_v53 = vadd.f32 %v3176_v33, %v2672_v45  ;;  %v3936_v33 = vmax.f32 %v12625_v8, 0.0 }
 0x3b5   : > { %v3177_v27 = vmul.f32 %v6592_v5, %v12761_v28  ;;  %v3286_v29 = vadd.f32 %v3142_v52, %v2638_v36  ;;  %v2674_v28 = vld [vmem:[%s13674_s1 + $0x438] sm:$0xff]  ;;  %v12880_v62 = vpop.f32.mrf.mxu1  ;;  %v3938_v36 = vmax.f32 %v12663_v18, 0.0  ;;  %v3171_v45 = vmul.f32 %v6596_v22, %v3006_v25 }
 0x3b6   : > { %5261 = vmatpush.bf16.msra.mxu2 %v12256_v24  ;;  %v12869_v24 = vpop.f32.mrf.mxu3  ;;  %5065 = vmatpush.bf16.msrb.mxu0 %v4047_v38  ;;  %v3824_v16 = vadd.f32 %v3664_v30, %v3320_v53  ;;  %v2670_v52 = vld [vmem:[%s13674_s1 + $0x418] sm:$0xff]  ;;  %v3322_v7 = vadd.f32 %v3178_v61, %v2674_v28  ;;  %v12908_v10 = vpack.c.bf16 %v3942_v46, %v3940_v57 }
 0x3b7   : > { %5560 = vmatpush.bf16.msra.mxu1 %v4048_v58  ;;  %v3790_v17 = vadd.f32 %v12785_v51, %v3286_v29  ;;  %v3011_v60 = vpop.permute.xlu0 %3010  ;;  %v3321_v19 = vadd.f32 %v3177_v27, %v2673_v6  ;;  %v12918_v46 = vpack.c.bf16 %v3938_v36, %v3936_v33  ;;  %v3967_v27 = vmax.f32 %v3823_v54, 0.0  ;;  %v5824_v58 = vld [vmem:[%s11461_s9 + $0x44] sm:$0xf0]  ;;  %v3659_v6 = vpop.permute.xlu2 %3658 }
 0x3b8   : > { %5358 = vmatpush.bf16.msra.mxu3 %v12653_v42  ;;  %v3788_v42 = vadd.f32 %v12702_v59, %v3284_v21  ;;  %v3173_v18 = vmul.f32 %v6594_v34, %v3011_v60  ;;  %v6595_v59 = vld [vmem:[%s13673_s0 + $0x418] sm:$0xff]  ;;  %v2667_v21 = vld [vmem:[%s13674_s1 + $0x400] sm:$0xff]  ;;  %v3968_v31 = vmax.f32 %v3824_v16, 0.0 }
 0x3b9   : > { %v3174_v51 = vmul.f32 %v6595_v59, %v3011_v60  ;;  %4875 = vmatmul.bf16.gmra.mxu2 %v12872_v13  ;;  %v3669_v15 = vpop.permute.xlu1 %3668  ;;  %v3934_v5 = vmax.f32 %v3790_v17, 0.0  ;;  %v3315_v28 = vadd.f32 %v3171_v45, %v2667_v21  ;;  %v14777_v60 = vld [vmem:[#allocation8_spill] sm:$0xff]  ;;  %v5842_v59 = vld [vmem:[%s11461_s9 + $0x58] sm:$0xf] }
 0x3ba   : > { %5262 = vmatpush.bf16.msra.mxu2 %v12328_v20  ;;  %v6597_v20 = vld [vmem:[%s13673_s0 + $0x408] sm:$0xff]  ;;  %v3317_v8 = vadd.f32 %v3173_v18, %v2669_v9  ;;  %v3825_v37 = vadd.f32 %v3669_v15, %v3321_v19  ;;  %v3826_v55 = vadd.f32 %v3669_v15, %v3322_v7  ;;  %v4683_v30 = vpop.f32.mrf.mxu0  ;;  %v3932_v53 = vmax.f32 %v3788_v42, 0.0  ;;  %v5810_v19 = vld [vmem:[%s11461_s9 + $0x10] sm:$0xf] }
 0x3bb   : > { %v3172_v32 = vmul.f32 %v6597_v20, %v3006_v25  ;;  %v3318_v44 = vadd.f32 %v3174_v51, %v2670_v52  ;;  %v2668_v25 = vld [vmem:[%s13674_s1 + $0x408] sm:$0xff]  ;;  %v6195_v20 = vld [vmem:[%s11461_s9 + $0x20] sm:$0xf0] }
 0x3bc   : > { %5359 = vmatpush.bf16.msra.mxu3 %v12694_v63  ;;  %v6197_v63 = vld [vmem:[%s11461_s9 + $0x34] sm:$0xf]  ;;  %v3969_v61 = vmax.f32 %v3825_v37, 0.0  ;;  %v3970_v38 = vmax.f32 %v3826_v55, 0.0  ;;  %v12921_v29 = vpop.f32.mrf.mxu2  ;;  %v3821_v9 = vadd.f32 %v3659_v6, %v3317_v8  ;;  %v6204_v51 = vld [vmem:[%s11461_s9 + $0x68] sm:$0xf0] }
 0x3bd   : > { %v3316_v57 = vadd.f32 %v3172_v32, %v2668_v25  ;;  %v3822_v54 = vadd.f32 %v3659_v6, %v3318_v44  ;;  %v12927_v42 = vor.u32 %v6197_v63, %v5824_v58  ;;  %v14778_v32 = vld [vmem:[#allocation6_spill] sm:$0xff]  ;;  %v12946_v21 = vor.u32 %v6204_v51, %v5842_v59  ;;  %v6202_v63 = vld [vmem:[%s11461_s9 + $0x5c] sm:$0xf]  ;;  %v6209_v6 = vld [vmem:[%s11461_s9 + $0x90] sm:$0xf0] }
 0x3be   : > { %5263 = vmatpush.bf16.msra.mxu2 %v12464_v23  ;;  %v4832_v3 = vpop.f32.mrf.mxu3  ;;  %v4782_v23 = vpop.f32.mrf.mxu1  ;;  %v4046_v36 = vpack.c.bf16 %v3970_v38, %v3968_v31  ;;  %v4045_v16 = vpack.c.bf16 %v3969_v61, %v3967_v27  ;;  %v3965_v45 = vmax.f32 %v3821_v9, 0.0  ;;  %v14779_v8 = vld [vmem:[#allocation94_spill] sm:$0xff]  ;;  %v12948_v25 = vor.u32 %v6195_v20, %v5810_v19  ;;  %v5844_v27 = vld [vmem:[%s11461_s9 + $0x6c] sm:$0xf0]  ;;  %v5882_v19 = vld [vmem:[%s11461_s9 + $0xa8] sm:$0xf] }
 0x3bf   : > { %v12924_v17 = vadd.f32 %v4832_v3, %v4733_v40  ;;  %v3654_v52 = vpop.permute.xlu0 %3653  ;;  %v12929_v34 = vadd.f32 %v4782_v23, %v4683_v30  ;;  %v3966_v7 = vmax.f32 %v3822_v54, 0.0  ;;  %v6207_v9 = vld [vmem:[%s11461_s9 + $0x84] sm:$0xf] }
 0x3c0   : > { %5360 = vmatpush.bf16.msra.mxu3 %v12706_v43  ;;  %v12931_v43 = vpack.c.bf16 %v3934_v5, %v3932_v53  ;;  %v3819_v40 = vadd.f32 %v3654_v52, %v3315_v28  ;;  %v3820_v18 = vadd.f32 %v3654_v52, %v3316_v57  ;;  %5066 = vmatpush.bf16.msrb.mxu0 %v4045_v16  ;;  %v14780_v5 = vld [vmem:[#allocation79_spill] sm:$0xff]  ;;  %v5830_v28 = vld [vmem:[%s11461_s9 + $0x38] sm:$0xf]  ;;  %v14782_v57 = vld [vmem:[#allocation50_spill] sm:$0xff] }
 0x3c1   : > { %5561 = vmatpush.bf16.msra.mxu1 %v4046_v36  ;;  %v12968_v53 = vor.u32 %v6202_v63, %v5844_v27  ;;  %v5864_v52 = vld [vmem:[%s11461_s9 + $0x94] sm:$0xf0] }
 0x3c2   : > { %5264 = vmatpush.bf16.msra.mxu2 %v14777_v60  ;;  %v3963_v33 = vmax.f32 %v3819_v40, 0.0  ;;  %v3964_v22 = vmax.f32 %v3820_v18, 0.0  ;;  %5172 = vmatmul.bf16.gmra.mxu1 %v14778_v32  ;;  %v12939_v15 = vpop.f32.mrf.mxu0 }
 0x3c3   : > { %4974 = vmatmul.bf16.gmra.mxu3 %v12927_v42 }
 0x3c4   : > { %5361 = vmatpush.bf16.msra.mxu3 %v12743_v39  ;;  %v4044_v44 = vpack.c.bf16 %v3966_v7, %v3964_v22  ;;  %v4043_v37 = vpack.c.bf16 %v3965_v45, %v3963_v33  ;;  %v4738_v39 = vpop.f32.mrf.mxu2  ;;  %v6214_v7 = vld [vmem:[%s11461_s9 + $0xb8] sm:$0xf0]  ;;  %v5850_v33 = vld [vmem:[%s11461_s9 + $0x60] sm:$0xf]  ;;  %v14787_v22 = vld [vmem:[#allocation112_spill] sm:$0xff] }
 0x3c6   : > { %5265 = vmatpush.bf16.msra.mxu2 %v14779_v8  ;;  %v12943_v55 = vpop.f32.mrf.mxu3  ;;  %v12950_v30 = vpop.f32.mrf.mxu1  ;;  %5067 = vmatpush.bf16.msrb.mxu0 %v4043_v37  ;;  %v6212_v37 = vld [vmem:[%s11461_s9 + $0xac] sm:$0xf] }
 0x3c7   : > { %5562 = vmatpush.bf16.msra.mxu1 %v4044_v44 }
 0x3c8   : > { %5362 = vmatpush.bf16.msra.mxu3 %v12752_v47 }
 0x3c9   : > { %4880 = vmatmul.bf16.gmra.mxu2 %v12946_v21  ;;  %6152 = vmatmul.msk.bf16.vlgmr.msrb.gmra.mxu0 %vm4609_vm7, %v12948_v25 }
 0x3ca   : > { %5456 = vmatpush.bf16.msra.mxu0 %v14780_v5  ;;  %v4688_v47 = vpop.f32.mrf.mxu0 }
 0x3cc   : > { %5363 = vmatpush.bf16.msra.mxu3 %v12790_v35  ;;  %v12960_v31 = vpop.f32.mrf.mxu2  ;;  %v5862_v35 = vld [vmem:[%s11461_s9 + $0x80] sm:$0xf] }
 0x3cd   : > { %14781 = vst [vmem:[#allocation81_spill] sm:$0xff] %v12960_v31  ;;  %v6240_v31 = vld [vmem:[%s11461_s9 + $0x188] sm:$0xf0] }
 0x3ce   : > { %5457 = vmatpush.bf16.msra.mxu0 %v12803_v48  ;;  %v4837_v61 = vpop.f32.mrf.mxu3  ;;  %v4787_v58 = vpop.f32.mrf.mxu1  ;;  %v6200_v48 = vld [vmem:[%s11461_s9 + $0x48] sm:$0xf0] }
 0x3cf   : > { %v12962_v38 = vadd.f32 %v4837_v61, %v4738_v39  ;;  %v12965_v3 = vadd.f32 %v4787_v58, %v4688_v47  ;;  %v12983_v54 = vor.u32 %v6200_v48, %v5830_v28  ;;  %v5884_v39 = vld [vmem:[%s11461_s9 + $0xbc] sm:$0xf0]  ;;  %v5870_v28 = vld [vmem:[%s11461_s9 + $0x88] sm:$0xf]  ;;  %v6210_v48 = vld [vmem:[%s11461_s9 + $0x98] sm:$0xf0] }
 0x3d0   : > { %5364 = vmatpush.bf16.msra.mxu3 %v12809_v12  ;;  %v13031_v58 = vor.u32 %v6212_v37, %v5884_v39  ;;  %v5922_v39 = vld [vmem:[%s11461_s9 + $0xf8] sm:$0xf] }
 0x3d2   : > { %5458 = vmatpush.bf16.msra.mxu0 %v12813_v1  ;;  %5177 = vmatmul.bf16.gmra.mxu1 %v14782_v57  ;;  %v12975_v23 = vpop.f32.mrf.mxu0  ;;  %v12981_v1 = vor.u32 %v6209_v6, %v5862_v35  ;;  %14792 = vst [vmem:[#allocation71_spill] sm:$0xff] %v13031_v58  ;;  %v5902_v35 = vld [vmem:[%s11461_s9 + $0xd0] sm:$0xf]  ;;  %v6219_v6 = vld [vmem:[%s11461_s9 + $0xe0] sm:$0xf0]  ;;  %v14793_v57 = vld [vmem:[#allocation3_spill] sm:$0xff] }
 0x3d3   : > { %4979 = vmatmul.bf16.gmra.mxu3 %v12968_v53 }
 0x3d4   : > { %v4743_v12 = vpop.f32.mrf.mxu2 }
 0x3d6   : > { %5459 = vmatpush.bf16.msra.mxu0 %v12823_v56  ;;  %v12979_v36 = vpop.f32.mrf.mxu3  ;;  %v12985_v16 = vpop.f32.mrf.mxu1 }
 0x3d7   : > { %14783 = vst [vmem:[#allocation34_spill] sm:$0xff] %v12979_v36 }
 0x3d9   : > { %4885 = vmatmul.bf16.gmra.mxu2 %v12981_v1  ;;  %6153 = vmatmul.msk.bf16.gmra.mxu0 %vm4609_vm7, %v12983_v54 }
 0x3da   : > { %5460 = vmatpush.bf16.msra.mxu0 %v12859_v2  ;;  %v4693_v56 = vpop.f32.mrf.mxu0  ;;  %v13001_v2 = vor.u32 %v6207_v9, %v5864_v52  ;;  %v13043_v9 = vor.u32 %v6219_v6, %v5902_v35  ;;  %v13045_v52 = vor.u32 %v6210_v48, %v5870_v28  ;;  %v6215_v35 = vld [vmem:[%s11461_s9 + $0xc0] sm:$0xf0]  ;;  %v14799_v28 = vld [vmem:[#allocation67_spill] sm:$0xff] }
 0x3dc   : > { %v12994_v60 = vpop.f32.mrf.mxu2  ;;  %14786 = vst [vmem:[#allocation87_spill] sm:$0xff] %v13001_v2 }
 0x3dd   : > { %14784 = vst [vmem:[#allocation24_spill] sm:$0xff] %v12994_v60 }
 0x3de   : > { %5461 = vmatpush.bf16.msra.mxu0 %v12908_v10  ;;  %v4842_v40 = vpop.f32.mrf.mxu3  ;;  %v4792_v59 = vpop.f32.mrf.mxu1  ;;  %v6205_v10 = vld [vmem:[%s11461_s9 + $0x70] sm:$0xf0]  ;;  %14795 = vst [vmem:[#allocation102_spill] sm:$0xff] %v13043_v9 }
 0x3df   : > { %v12996_v18 = vadd.f32 %v4842_v40, %v4743_v12  ;;  %v12998_v51 = vadd.f32 %v4792_v59, %v4693_v56  ;;  %v13016_v8 = vor.u32 %v6205_v10, %v5850_v33  ;;  %v5904_v33 = vld [vmem:[%s11461_s9 + $0xe4] sm:$0xf0] }
 0x3e1   : > { %14785 = vst [vmem:[#allocation53_spill] sm:$0xff] %v12996_v18  ;;  %v5970_v18 = vld [vmem:[%s11461_s9 + $0x150] sm:$0xf] }
 0x3e2   : > { %5462 = vmatpush.bf16.msra.mxu0 %v12918_v46  ;;  %5182 = vmatmul.bf16.gmra.mxu1 %v14787_v22  ;;  %v13008_v45 = vpop.f32.mrf.mxu0  ;;  %v13014_v46 = vor.u32 %v6214_v7, %v5882_v19  ;;  %v6217_v7 = vld [vmem:[%s11461_s9 + $0xd4] sm:$0xf] }
 0x3e3   : > { %4984 = vmatmul.bf16.gmra.mxu3 %v13001_v2 }
 0x3e4   : > { %v4748_v20 = vpop.f32.mrf.mxu2  ;;  %14789 = vst [vmem:[#allocation85_spill] sm:$0xff] %v13014_v46 }
 0x3e6   : > { %5463 = vmatpush.bf16.msra.mxu0 %v12931_v43  ;;  %v13012_v32 = vpop.f32.mrf.mxu3  ;;  %v13018_v44 = vpop.f32.mrf.mxu1 }
 0x3e7   : > { %14788 = vst [vmem:[#allocation21_spill] sm:$0xff] %v13012_v32  ;;  %v5964_v32 = vld [vmem:[%s11461_s9 + $0x15c] sm:$0xf0] }
 0x3e9   : > { %4890 = vmatmul.bf16.gmra.mxu2 %v13014_v46  ;;  %6154 = vmatmul.msk.bf16.gmra.mxu0 %vm4609_vm7, %v13016_v8  ;;  %v14825_v46 = vld [vmem:[#allocation73_spill] sm:$0xff] }
 0x3ea   : > { %v4698_v43 = vpop.f32.mrf.mxu0 }
 0x3ec   : > { %v13027_v27 = vpop.f32.mrf.mxu2 }
 0x3ed   : > { %14791 = vst [vmem:[#allocation39_spill] sm:$0xff] %v13027_v27  ;;  %v14804_v27 = vld [vmem:[#allocation2_spill] sm:$0xff] }
 0x3ee   : > { %v4847_v5 = vpop.f32.mrf.mxu3  ;;  %v4797_v63 = vpop.f32.mrf.mxu1 }
 0x3ef   : > { %v13025_v47 = vadd.f32 %v4847_v5, %v4748_v20  ;;  %v13029_v61 = vadd.f32 %v4797_v63, %v4698_v43  ;;  %v13056_v20 = vor.u32 %v6217_v7, %v5904_v33  ;;  %v6224_v5 = vld [vmem:[%s11461_s9 + $0x108] sm:$0xf0]  ;;  %v5890_v63 = vld [vmem:[%s11461_s9 + $0xb0] sm:$0xf] }
 0x3f1   : > { %14790 = vst [vmem:[#allocation123_spill] sm:$0xff] %v13025_v47  ;;  %v14809_v47 = vld [vmem:[#allocation59_spill] sm:$0xff] }
 0x3f2   : > { %5187 = vmatmul.bf16.gmra.mxu1 %v14793_v57  ;;  %v13038_v12 = vpop.f32.mrf.mxu0  ;;  %14797 = vst [vmem:[#allocation109_spill] sm:$0xff] %v13056_v20 }
 0x3f3   : > { %4989 = vmatmul.bf16.gmra.mxu3 %v13031_v58  ;;  %v6232_v58 = vld [vmem:[%s11461_s9 + $0x14c] sm:$0xf] }
 0x3f4   : > { %v4753_v59 = vpop.f32.mrf.mxu2 }
 0x3f6   : > { %v13041_v56 = vpop.f32.mrf.mxu3  ;;  %v13047_v40 = vpop.f32.mrf.mxu1 }
 0x3f7   : > { %14794 = vst [vmem:[#allocation4_spill] sm:$0xff] %v13041_v56  ;;  %v6220_v56 = vld [vmem:[%s11461_s9 + $0xe8] sm:$0xf0] }
 0x3f9   : > { %4895 = vmatmul.bf16.gmra.mxu2 %v13043_v9  ;;  %6155 = vmatmul.msk.bf16.gmra.mxu0 %vm4609_vm7, %v13045_v52 }
 0x3fa   : > { %v4703_v19 = vpop.f32.mrf.mxu0 }
 0x3fc   : > { %v13064_v6 = vpop.f32.mrf.mxu2 }
 0x3fd   : > { %14798 = vst [vmem:[#allocation107_spill] sm:$0xff] %v13064_v6 }
 0x3fe   : > { %v4852_v10 = vpop.f32.mrf.mxu3  ;;  %v4802_v43 = vpop.f32.mrf.mxu1 }
 0x3ff   : > { %v13054_v22 = vadd.f32 %v4852_v10, %v4753_v59  ;;  %v13058_v37 = vadd.f32 %v4802_v43, %v4703_v19  ;;  %v13072_v59 = vor.u32 %v6224_v5, %v5922_v39  ;;  %v13074_v19 = vor.u32 %v6215_v35, %v5890_v63  ;;  %v6222_v10 = vld [vmem:[%s11461_s9 + $0xfc] sm:$0xf]  ;;  %v5924_v43 = vld [vmem:[%s11461_s9 + $0x10c] sm:$0xf0]  ;;  %v5942_v35 = vld [vmem:[%s11461_s9 + $0x120] sm:$0xf] }
 0x400   : > { %v13085_v39 = vor.u32 %v6222_v10, %v5924_v43 }
 0x401   : > { %14796 = vst [vmem:[#allocation66_spill] sm:$0xff] %v13054_v22  ;;  %v6229_v22 = vld [vmem:[%s11461_s9 + $0x130] sm:$0xf0] }
 0x402   : > { %5192 = vmatmul.bf16.gmra.mxu1 %v14799_v28  ;;  %v13067_v48 = vpop.f32.mrf.mxu0  ;;  %14801 = vst [vmem:[#allocation114_spill] sm:$0xff] %v13072_v59 }
 0x403   : > { %4994 = vmatmul.bf16.gmra.mxu3 %v13056_v20  ;;  %14803 = vst [vmem:[#allocation52_spill] sm:$0xff] %v13085_v39  ;;  %v5910_v20 = vld [vmem:[%s11461_s9 + $0xd8] sm:$0xf] }
 0x404   : > { %v4758_v28 = vpop.f32.mrf.mxu2  ;;  %v13097_v10 = vor.u32 %v6220_v56, %v5910_v20  ;;  %v5962_v56 = vld [vmem:[%s11461_s9 + $0x148] sm:$0xf] }
 0x406   : > { %v13070_v57 = vpop.f32.mrf.mxu3  ;;  %v13076_v7 = vpop.f32.mrf.mxu1  ;;  %14806 = vst [vmem:[#allocation37_spill] sm:$0xff] %v13097_v10 }
 0x407   : > { %14800 = vst [vmem:[#allocation46_spill] sm:$0xff] %v13070_v57 }
 0x409   : > { %4900 = vmatmul.bf16.gmra.mxu2 %v13072_v59  ;;  %6156 = vmatmul.msk.bf16.gmra.mxu0 %vm4609_vm7, %v13074_v19  ;;  %v5930_v59 = vld [vmem:[%s11461_s9 + $0x100] sm:$0xf] }
 0x40a   : > { %v4708_v33 = vpop.f32.mrf.mxu0 }
 0x40c   : > { %v13113_v20 = vpop.f32.mrf.mxu2 }
 0x40d   : > { %14808 = vst [vmem:[#allocation98_spill] sm:$0xff] %v13113_v20 }
 0x40e   : > { %v4857_v6 = vpop.f32.mrf.mxu3  ;;  %v4807_v5 = vpop.f32.mrf.mxu1 }
 0x40f   : > { %v13083_v57 = vadd.f32 %v4857_v6, %v4758_v28  ;;  %v13087_v63 = vadd.f32 %v4807_v5, %v4708_v33  ;;  %v13095_v6 = vor.u32 %v6229_v22, %v5942_v35  ;;  %v6227_v28 = vld [vmem:[%s11461_s9 + $0x124] sm:$0xf]  ;;  %v6234_v35 = vld [vmem:[%s11461_s9 + $0x158] sm:$0xf0] }
 0x411   : > { %14802 = vst [vmem:[#allocation43_spill] sm:$0xff] %v13083_v57 }
 0x412   : > { %5197 = vmatmul.bf16.gmra.mxu1 %v14804_v27  ;;  %14805 = vst [vmem:[#allocation116_spill] sm:$0xff] %v13095_v6  ;;  %v13099_v43 = vpop.f32.mrf.mxu0  ;;  %v5944_v27 = vld [vmem:[%s11461_s9 + $0x134] sm:$0xf0] }
 0x413   : > { %4999 = vmatmul.bf16.gmra.mxu3 %v13085_v39  ;;  %v13108_v5 = vor.u32 %v6227_v28, %v5944_v27  ;;  %v13120_v28 = vor.u32 %v6234_v35, %v5962_v56  ;;  %v5950_v56 = vld [vmem:[%s11461_s9 + $0x128] sm:$0xf]  ;;  %v6230_v35 = vld [vmem:[%s11461_s9 + $0x138] sm:$0xf0] }
 0x415   : > { %14807 = vst [vmem:[#allocation75_spill] sm:$0xff] %v13108_v5 }
 0x416   : > { %v13101_v33 = vpop.f32.mrf.mxu1  ;;  %14810 = vst [vmem:[#allocation41_spill] sm:$0xff] %v13120_v28  ;;  %v13129_v20 = vpop.f32.mrf.mxu3 }
 0x417   : > { %14812 = vst [vmem:[#allocation88_spill] sm:$0xff] %v13129_v20 }
 0x419   : > { %4905 = vmatmul.bf16.gmra.mxu2 %v13095_v6  ;;  %6157 = vmatmul.msk.bf16.gmra.mxu0 %vm4609_vm7, %v13097_v10  ;;  %v6225_v6 = vld [vmem:[%s11461_s9 + $0x110] sm:$0xf0] }
 0x41a   : > { %v4713_v57 = vpop.f32.mrf.mxu0  ;;  %v13122_v27 = vor.u32 %v6225_v6, %v5930_v59  ;;  %v5982_v59 = vld [vmem:[%s11461_s9 + $0x170] sm:$0xf]  ;;  %v6239_v6 = vld [vmem:[%s11461_s9 + $0x180] sm:$0xf0] }
 0x41b   : > { %v13143_v20 = vor.u32 %v6239_v6, %v5982_v59  ;;  %v14820_v10 = vld [vmem:[#allocation92_spill] sm:$0xff] }
 0x41c   : > { %14811 = vst [vmem:[#allocation121_spill] sm:$0xff] %v13122_v27 }
 0x41d   : > { %14815 = vst [vmem:[#allocation61_spill] sm:$0xff] %v13143_v20 }
 0x41e   : > { %v4812_v39 = vpop.f32.mrf.mxu1 }
 0x41f   : > { %v13110_v22 = vadd.f32 %v4812_v39, %v4713_v57 }
 0x422   : > { %5202 = vmatmul.bf16.gmra.mxu1 %v14809_v47  ;;  %v13133_v47 = vor.u32 %v6232_v58, %v5964_v32  ;;  %v13145_v32 = vor.u32 %v6230_v35, %v5950_v56  ;;  %v13154_v60 = vpop.f32.mrf.mxu0  ;;  %v6002_v56 = vld [vmem:[%s11461_s9 + $0x198] sm:$0xf]  ;;  %v6244_v35 = vld [vmem:[%s11461_s9 + $0x1a8] sm:$0xf0] }
 0x423   : > { %5004 = vmatmul.bf16.gmra.mxu3 %v13108_v5  ;;  %v13168_v36 = vor.u32 %v6244_v35, %v6002_v56 }
 0x424   : > { %14813 = vst [vmem:[#allocation17_spill] sm:$0xff] %v13133_v47 }
 0x425   : > { %14816 = vst [vmem:[#allocation80_spill] sm:$0xff] %v13145_v32 }
 0x426   : > { %v13124_v57 = vpop.f32.mrf.mxu1  ;;  %14821 = vst [vmem:[#allocation120_spill] sm:$0xff] %v13168_v36 }
 0x429   : > { %4910 = vmatmul.bf16.gmra.mxu2 %v13120_v28  ;;  %6158 = vmatmul.msk.bf16.gmra.mxu0 %vm4609_vm7, %v13122_v27  ;;  %v6237_v27 = vld [vmem:[%s11461_s9 + $0x174] sm:$0xf] }
 0x42c   : > { %v4871_v39 = vpop.f32.mrf.mxu2 }
 0x42e   : > { %v13135_v5 = vpop.f32.mrf.mxu1 }
 0x42f   : > { %14814 = vst [vmem:[#allocation44_spill] sm:$0xff] %v13135_v5 }
 0x432   : > { %5207 = vmatmul.bf16.gmra.mxu1 %v12682_v41 }
 0x433   : > { %5009 = vmatmul.bf16.gmra.mxu3 %v13133_v47  ;;  %v5984_v47 = vld [vmem:[%s11461_s9 + $0x184] sm:$0xf0] }
 0x434   : > { %v4873_v28 = vpop.f32.mrf.mxu2  ;;  %v13156_v59 = vor.u32 %v6237_v27, %v5984_v47 }
 0x436   : > { %v4970_v58 = vpop.f32.mrf.mxu3  ;;  %v13147_v5 = vpop.f32.mrf.mxu1  ;;  %14818 = vst [vmem:[#allocation100_spill] sm:$0xff] %v13156_v59 }
 0x437   : > { %14817 = vst [vmem:[#allocation19_spill] sm:$0xff] %v13147_v5  ;;  %v6235_v5 = vld [vmem:[%s11461_s9 + $0x160] sm:$0xf0] }
 0x438   : > { %v13170_v27 = vor.u32 %v6235_v5, %v5970_v18 }
 0x439   : > { %4915 = vmatmul.bf16.gmra.mxu2 %v13143_v20  ;;  %6159 = vmatmul.msk.bf16.gmra.mxu0 %vm4609_vm7, %v13145_v32  ;;  %v4872_v20 = vadd.f32 %v4871_v39, %v12692_v50 }
 0x43b   : > { %v4971_v2 = vadd.f32 %v4970_v58, %v4872_v20  ;;  %v6242_v58 = vld [vmem:[%s11461_s9 + $0x19c] sm:$0xf] }
 0x43c   : > { %v4876_v41 = vpop.f32.mrf.mxu2 }
 0x43e   : > { %v4972_v9 = vpop.f32.mrf.mxu3 }
 0x43f   : > { %v13158_v6 = vpop.f32.mrf.mxu1 }
 0x440   : > { %14819 = vst [vmem:[#allocation55_spill] sm:$0xff] %v13158_v6 }
 0x442   : > { %5212 = vmatmul.bf16.gmra.mxu1 %v14820_v10 }
 0x443   : > { %5014 = vmatmul.bf16.gmra.mxu3 %v13156_v59  ;;  %v14823_v59 = vld [vmem:[#allocation104_spill] sm:$0xff] }
 0x444   : > { %v4878_v32 = vpop.f32.mrf.mxu2  ;;  %v4775_v20 = vadd.f32 %v14823_v59, %v12731_v0  ;;  %v6022_v59 = vld [vmem:[%s11461_s9 + $0x1c0] sm:$0xf] }
 0x446   : > { %v5069_v10 = vpop.f32.mrf.mxu0  ;;  %v4975_v47 = vpop.f32.mrf.mxu3  ;;  %v4874_v18 = vadd.f32 %v4873_v28, %v4775_v20  ;;  %v4877_v28 = vadd.f32 %v4876_v41, %v12811_v49  ;;  %v4780_v49 = vadd.f32 %v12880_v62, %v12854_v4  ;;  %v6024_v41 = vld [vmem:[%s11461_s9 + $0x1d4] sm:$0xf0]  ;;  %v6042_v62 = vld [vmem:[%s11461_s9 + $0x1e8] sm:$0xf] }
 0x447   : > { %v5070_v50 = vadd.f32 %v5069_v10, %v4971_v2  ;;  %v13177_v39 = vpop.f32.mrf.mxu1  ;;  %v6004_v2 = vld [vmem:[%s11461_s9 + $0x1ac] sm:$0xf0] }
 0x448   : > { %14822 = vst [vmem:[#allocation111_spill] sm:$0xff] %v13177_v39  ;;  %v4973_v56 = vadd.f32 %v4972_v9, %v4874_v18  ;;  %v13187_v6 = vor.u32 %v6242_v58, %v6004_v2  ;;  %v4976_v20 = vadd.f32 %v4975_v47, %v4877_v28 }
 0x449   : > { %5654 = vst [vmem:[%s13175_s23] sm:$0xff] %v5070_v50  ;;  %4920 = vmatmul.bf16.gmra.mxu2 %v13168_v36  ;;  %6160 = vmatmul.msk.bf16.gmra.mxu0 %vm4609_vm7, %v13170_v27  ;;  %v6249_v50 = vld [vmem:[%s11461_s9 + $0x1d0] sm:$0xf0]  ;;  %v5990_v36 = vld [vmem:[%s11461_s9 + $0x178] sm:$0xf] }
 0x44a   : > { %14824 = vst [vmem:[#allocation29_spill] sm:$0xff] %v13187_v6  ;;  %v13199_v18 = vor.u32 %v6249_v50, %v6022_v59  ;;  %v13201_v58 = vor.u32 %v6240_v31, %v5990_v36  ;;  %v4879_v31 = vadd.f32 %v4878_v32, %v4780_v49 }
 0x44c   : > { %v4881_v5 = vpop.f32.mrf.mxu2 }
 0x44d   : > { %v4882_v32 = vadd.f32 %v4881_v5, %v12929_v34  ;;  %v4785_v34 = vadd.f32 %v12950_v30, %v12939_v15  ;;  %v6062_v30 = vld [vmem:[%s11461_s9 + $0x210] sm:$0xf] }
 0x44e   : > { %v5071_v35 = vpop.f32.mrf.mxu0  ;;  %v4977_v10 = vpop.f32.mrf.mxu3 }
 0x44f   : > { %v5072_v39 = vadd.f32 %v5071_v35, %v4973_v56  ;;  %v13189_v0 = vpop.f32.mrf.mxu1  ;;  %v4978_v47 = vadd.f32 %v4977_v10, %v4879_v31 }
 0x451   : > { %5656 = vst [vmem:[%s13175_s23 + $0x10] sm:$0xff] %v5072_v39 }
 0x452   : > { %5217 = vmatmul.bf16.gmra.mxu1 %v14825_v46  ;;  %v6247_v46 = vld [vmem:[%s11461_s9 + $0x1c4] sm:$0xf] }
 0x453   : > { %5019 = vmatmul.bf16.gmra.mxu3 %v13187_v6  ;;  %v14828_v6 = vld [vmem:[#allocation89_spill] sm:$0xff] }
 0x454   : > { %v4883_v9 = vpop.f32.mrf.mxu2 }
 0x456   : > { %v5074_v39 = vpop.f32.mrf.mxu0  ;;  %v4980_v2 = vpop.f32.mrf.mxu3 }
 0x457   : > { %v5075_v56 = vadd.f32 %v5074_v39, %v4976_v20  ;;  %v13203_v35 = vpop.f32.mrf.mxu1  ;;  %v13213_v20 = vor.u32 %v6247_v46, %v6024_v41  ;;  %v6254_v39 = vld [vmem:[%s11461_s9 + $0x1f8] sm:$0xf0]  ;;  %v4981_v49 = vadd.f32 %v4980_v2, %v4882_v32  ;;  %v6252_v2 = vld [vmem:[%s11461_s9 + $0x1ec] sm:$0xf] }
 0x458   : > { %14826 = vst [vmem:[#allocation22_spill] sm:$0xff] %v13203_v35  ;;  %v6245_v35 = vld [vmem:[%s11461_s9 + $0x1b0] sm:$0xf0]  ;;  %v13225_v31 = vor.u32 %v6254_v39, %v6042_v62 }
 0x459   : > { %5658 = vst [vmem:[%s13175_s23 + $0x20] sm:$0xff] %v5075_v56  ;;  %4925 = vmatmul.bf16.gmra.mxu2 %v13199_v18  ;;  %6161 = vmatmul.msk.bf16.gmra.mxu0 %vm4609_vm7, %v13201_v58  ;;  %v6010_v56 = vld [vmem:[%s11461_s9 + $0x1a0] sm:$0xf] }
 0x45a   : > { %14827 = vst [vmem:[#allocation108_spill] sm:$0xff] %v13213_v20  ;;  %v13227_v46 = vor.u32 %v6245_v35, %v6010_v56  ;;  %v6044_v35 = vld [vmem:[%s11461_s9 + $0x1fc] sm:$0xf0] }
 0x45c   : > { %v4886_v36 = vpop.f32.mrf.mxu2 }
 0x45e   : > { %v5076_v59 = vpop.f32.mrf.mxu0  ;;  %v4982_v50 = vpop.f32.mrf.mxu3 }
 0x45f   : > { %v5077_v28 = vadd.f32 %v5076_v59, %v4978_v47  ;;  %v13215_v4 = vpop.f32.mrf.mxu1 }
 0x461   : > { %5660 = vst [vmem:[%s13175_s23 + $0x30] sm:$0xff] %v5077_v28 }
 0x462   : > { %5222 = vmatmul.bf16.gmra.mxu1 %v14828_v6  ;;  %v4884_v6 = vadd.f32 %v4883_v9, %v4785_v34  ;;  %v4887_v9 = vadd.f32 %v4886_v36, %v12965_v3  ;;  %v4790_v3 = vadd.f32 %v12985_v16, %v12975_v23  ;;  %v6082_v16 = vld [vmem:[%s11461_s9 + $0x238] sm:$0xf] }
 0x463   : > { %5024 = vmatmul.bf16.gmra.mxu3 %v13213_v20  ;;  %v14831_v20 = vld [vmem:[#allocation78_spill] sm:$0xff] }
 0x464   : > { %v4888_v10 = vpop.f32.mrf.mxu2  ;;  %v4983_v62 = vadd.f32 %v4982_v50, %v4884_v6 }
 0x465   : > { %v4889_v36 = vadd.f32 %v4888_v10, %v4790_v3 }
 0x466   : > { %v5079_v41 = vpop.f32.mrf.mxu0  ;;  %v4985_v47 = vpop.f32.mrf.mxu3 }
 0x467   : > { %v5080_v59 = vadd.f32 %v5079_v41, %v4981_v49  ;;  %v13229_v28 = vpop.f32.mrf.mxu1  ;;  %v13239_v49 = vor.u32 %v6252_v2, %v6044_v35  ;;  %v6259_v41 = vld [vmem:[%s11461_s9 + $0x220] sm:$0xf0]  ;;  %v4986_v34 = vadd.f32 %v4985_v47, %v4887_v9  ;;  %v6257_v47 = vld [vmem:[%s11461_s9 + $0x214] sm:$0xf] }
 0x468   : > { %14829 = vst [vmem:[#allocation45_spill] sm:$0xff] %v13229_v28  ;;  %v6250_v28 = vld [vmem:[%s11461_s9 + $0x1d8] sm:$0xf0]  ;;  %v13251_v6 = vor.u32 %v6259_v41, %v6062_v30 }
 0x469   : > { %5662 = vst [vmem:[%s13175_s23 + $0x40] sm:$0xff] %v5080_v59  ;;  %4930 = vmatmul.bf16.gmra.mxu2 %v13225_v31  ;;  %6162 = vmatmul.msk.bf16.gmra.mxu0 %vm4609_vm7, %v13227_v46  ;;  %v6030_v59 = vld [vmem:[%s11461_s9 + $0x1c8] sm:$0xf] }
 0x46a   : > { %14830 = vst [vmem:[#allocation36_spill] sm:$0xff] %v13239_v49  ;;  %v13253_v2 = vor.u32 %v6250_v28, %v6030_v59  ;;  %v6064_v28 = vld [vmem:[%s11461_s9 + $0x224] sm:$0xf0] }
 0x46c   : > { %v4891_v5 = vpop.f32.mrf.mxu2 }
 0x46d   : > { %v4892_v10 = vadd.f32 %v4891_v5, %v12998_v51  ;;  %v4795_v51 = vadd.f32 %v13018_v44, %v13008_v45  ;;  %v6102_v44 = vld [vmem:[%s11461_s9 + $0x260] sm:$0xf] }
 0x46e   : > { %v5081_v39 = vpop.f32.mrf.mxu0  ;;  %v4987_v56 = vpop.f32.mrf.mxu3 }
 0x46f   : > { %v5082_v32 = vadd.f32 %v5081_v39, %v4983_v62  ;;  %v13241_v15 = vpop.f32.mrf.mxu1  ;;  %v4988_v30 = vadd.f32 %v4987_v56, %v4889_v36 }
 0x471   : > { %5664 = vst [vmem:[%s13175_s23 + $0x50] sm:$0xff] %v5082_v32 }
 0x472   : > { %5227 = vmatmul.bf16.gmra.mxu1 %v14831_v20 }
 0x473   : > { %5029 = vmatmul.bf16.gmra.mxu3 %v13239_v49  ;;  %v14834_v49 = vld [vmem:[#allocation28_spill] sm:$0xff] }
 0x474   : > { %v4893_v50 = vpop.f32.mrf.mxu2 }
 0x475   : > { %v4894_v5 = vadd.f32 %v4893_v50, %v4795_v51 }
 0x476   : > { %v5084_v35 = vpop.f32.mrf.mxu0  ;;  %v4990_v62 = vpop.f32.mrf.mxu3 }
 0x477   : > { %v5085_v39 = vadd.f32 %v5084_v35, %v4986_v34  ;;  %v13255_v32 = vpop.f32.mrf.mxu1  ;;  %v13265_v34 = vor.u32 %v6257_v47, %v6064_v28  ;;  %v6264_v35 = vld [vmem:[%s11461_s9 + $0x248] sm:$0xf0]  ;;  %v4991_v3 = vadd.f32 %v4990_v62, %v4892_v10  ;;  %v6262_v62 = vld [vmem:[%s11461_s9 + $0x23c] sm:$0xf] }
 0x478   : > { %14832 = vst [vmem:[#allocation54_spill] sm:$0xff] %v13255_v32  ;;  %v6255_v32 = vld [vmem:[%s11461_s9 + $0x200] sm:$0xf0]  ;;  %v13277_v36 = vor.u32 %v6264_v35, %v6082_v16 }
 0x479   : > { %5666 = vst [vmem:[%s13175_s23 + $0x60] sm:$0xff] %v5085_v39  ;;  %4935 = vmatmul.bf16.gmra.mxu2 %v13251_v6  ;;  %6163 = vmatmul.msk.bf16.gmra.mxu0 %vm4609_vm7, %v13253_v2  ;;  %v6050_v39 = vld [vmem:[%s11461_s9 + $0x1f0] sm:$0xf] }
 0x47a   : > { %14833 = vst [vmem:[#allocation12_spill] sm:$0xff] %v13265_v34  ;;  %v13279_v47 = vor.u32 %v6255_v32, %v6050_v39  ;;  %v6084_v32 = vld [vmem:[%s11461_s9 + $0x24c] sm:$0xf0] }
 0x47c   : > { %v4896_v20 = vpop.f32.mrf.mxu2 }
 0x47d   : > { %v4897_v50 = vadd.f32 %v4896_v20, %v13029_v61  ;;  %v4800_v61 = vadd.f32 %v13047_v40, %v13038_v12  ;;  %v6122_v40 = vld [vmem:[%s11461_s9 + $0x288] sm:$0xf] }
 0x47e   : > { %v5086_v41 = vpop.f32.mrf.mxu0  ;;  %v4992_v59 = vpop.f32.mrf.mxu3 }
 0x47f   : > { %v5087_v9 = vadd.f32 %v5086_v41, %v4988_v30  ;;  %v13267_v23 = vpop.f32.mrf.mxu1  ;;  %v4993_v16 = vadd.f32 %v4992_v59, %v4894_v5 }
 0x481   : > { %5668 = vst [vmem:[%s13175_s23 + $0x70] sm:$0xff] %v5087_v9 }
 0x482   : > { %5232 = vmatmul.bf16.gmra.mxu1 %v14834_v49 }
 0x483   : > { %5034 = vmatmul.bf16.gmra.mxu3 %v13265_v34  ;;  %v14837_v34 = vld [vmem:[#allocation70_spill] sm:$0xff] }
 0x484   : > { %v4898_v56 = vpop.f32.mrf.mxu2 }
 0x485   : > { %v4899_v20 = vadd.f32 %v4898_v56, %v4800_v61 }
 0x486   : > { %v5089_v28 = vpop.f32.mrf.mxu0  ;;  %v4995_v30 = vpop.f32.mrf.mxu3 }
 0x487   : > { %v5090_v41 = vadd.f32 %v5089_v28, %v4991_v3  ;;  %v13281_v9 = vpop.f32.mrf.mxu1  ;;  %v13291_v3 = vor.u32 %v6262_v62, %v6084_v32  ;;  %v6269_v28 = vld [vmem:[%s11461_s9 + $0x270] sm:$0xf0]  ;;  %v4996_v51 = vadd.f32 %v4995_v30, %v4897_v50  ;;  %v6267_v30 = vld [vmem:[%s11461_s9 + $0x264] sm:$0xf] }
 0x488   : > { %14835 = vst [vmem:[#allocation84_spill] sm:$0xff] %v13281_v9  ;;  %v6260_v9 = vld [vmem:[%s11461_s9 + $0x228] sm:$0xf0]  ;;  %v13303_v5 = vor.u32 %v6269_v28, %v6102_v44 }
 0x489   : > { %5670 = vst [vmem:[%s13175_s23 + $0x80] sm:$0xff] %v5090_v41  ;;  %4940 = vmatmul.bf16.gmra.mxu2 %v13277_v36  ;;  %6164 = vmatmul.msk.bf16.gmra.mxu0 %vm4609_vm7, %v13279_v47  ;;  %v6070_v41 = vld [vmem:[%s11461_s9 + $0x218] sm:$0xf] }
 0x48a   : > { %14836 = vst [vmem:[#allocation68_spill] sm:$0xff] %v13291_v3  ;;  %v13305_v62 = vor.u32 %v6260_v9, %v6070_v41  ;;  %v6104_v9 = vld [vmem:[%s11461_s9 + $0x274] sm:$0xf0] }
 0x48c   : > { %v4901_v49 = vpop.f32.mrf.mxu2 }
 0x48d   : > { %v4902_v56 = vadd.f32 %v4901_v49, %v13058_v37  ;;  %v4805_v37 = vadd.f32 %v13076_v7, %v13067_v48  ;;  %v6142_v7 = vld [vmem:[%s11461_s9 + $0x2b0] sm:$0xf] }
 0x48e   : > { %v5091_v35 = vpop.f32.mrf.mxu0  ;;  %v4997_v39 = vpop.f32.mrf.mxu3 }
 0x48f   : > { %v5092_v10 = vadd.f32 %v5091_v35, %v4993_v16  ;;  %v13293_v45 = vpop.f32.mrf.mxu1  ;;  %v4998_v44 = vadd.f32 %v4997_v39, %v4899_v20 }
 0x491   : > { %5672 = vst [vmem:[%s13175_s23 + $0x90] sm:$0xff] %v5092_v10 }
 0x492   : > { %5237 = vmatmul.bf16.gmra.mxu1 %v14837_v34 }
 0x493   : > { %5039 = vmatmul.bf16.gmra.mxu3 %v13291_v3  ;;  %v14840_v3 = vld [vmem:[#allocation110_spill] sm:$0xff] }
 0x494   : > { %v4903_v59 = vpop.f32.mrf.mxu2 }
 0x495   : > { %v4904_v49 = vadd.f32 %v4903_v59, %v4805_v37 }
 0x496   : > { %v5094_v32 = vpop.f32.mrf.mxu0  ;;  %v5000_v16 = vpop.f32.mrf.mxu3 }
 0x497   : > { %v5095_v35 = vadd.f32 %v5094_v32, %v4996_v51  ;;  %v13307_v10 = vpop.f32.mrf.mxu1  ;;  %v13317_v51 = vor.u32 %v6267_v30, %v6104_v9  ;;  %v6274_v32 = vld [vmem:[%s11461_s9 + $0x298] sm:$0xf0]  ;;  %v5001_v61 = vadd.f32 %v5000_v16, %v4902_v56  ;;  %v6272_v16 = vld [vmem:[%s11461_s9 + $0x28c] sm:$0xf] }
 0x498   : > { %14838 = vst [vmem:[#allocation72_spill] sm:$0xff] %v13307_v10  ;;  %v6265_v10 = vld [vmem:[%s11461_s9 + $0x250] sm:$0xf0]  ;;  %v13329_v20 = vor.u32 %v6274_v32, %v6122_v40 }
 0x499   : > { %5674 = vst [vmem:[%s13175_s23 + $0xa0] sm:$0xff] %v5095_v35  ;;  %4945 = vmatmul.bf16.gmra.mxu2 %v13303_v5  ;;  %6165 = vmatmul.msk.bf16.gmra.mxu0 %vm4609_vm7, %v13305_v62  ;;  %v6090_v35 = vld [vmem:[%s11461_s9 + $0x240] sm:$0xf] }
 0x49a   : > { %14839 = vst [vmem:[#allocation62_spill] sm:$0xff] %v13317_v51  ;;  %v13331_v30 = vor.u32 %v6265_v10, %v6090_v35  ;;  %v6124_v10 = vld [vmem:[%s11461_s9 + $0x29c] sm:$0xf0] }
 0x49c   : > { %v4906_v34 = vpop.f32.mrf.mxu2 }
 0x49d   : > { %v4907_v59 = vadd.f32 %v4906_v34, %v13087_v63  ;;  %v4810_v63 = vadd.f32 %v13101_v33, %v13099_v43  ;;  %v6130_v43 = vld [vmem:[%s11461_s9 + $0x290] sm:$0xf]  ;;  %v6275_v33 = vld [vmem:[%s11461_s9 + $0x2a0] sm:$0xf0] }
 0x49e   : > { %v5096_v28 = vpop.f32.mrf.mxu0  ;;  %v5002_v41 = vpop.f32.mrf.mxu3 }
 0x49f   : > { %v5097_v50 = vadd.f32 %v5096_v28, %v4998_v44  ;;  %v13319_v12 = vpop.f32.mrf.mxu1  ;;  %v5003_v40 = vadd.f32 %v5002_v41, %v4904_v49 }
 0x4a1   : > { %5676 = vst [vmem:[%s13175_s23 + $0xb0] sm:$0xff] %v5097_v50 }
 0x4a2   : > { %5242 = vmatmul.bf16.gmra.mxu1 %v14840_v3 }
 0x4a3   : > { %5044 = vmatmul.bf16.gmra.mxu3 %v13317_v51  ;;  %v14842_v51 = vld [vmem:[#allocation38_spill] sm:$0xff] }
 0x4a4   : > { %v4908_v39 = vpop.f32.mrf.mxu2 }
 0x4a5   : > { %v4909_v34 = vadd.f32 %v4908_v39, %v4810_v63 }
 0x4a6   : > { %v5099_v9 = vpop.f32.mrf.mxu0  ;;  %v5005_v44 = vpop.f32.mrf.mxu3 }
 0x4a7   : > { %v5100_v28 = vadd.f32 %v5099_v9, %v5001_v61  ;;  %v13333_v50 = vpop.f32.mrf.mxu1  ;;  %v13343_v61 = vor.u32 %v6272_v16, %v6124_v10  ;;  %v6279_v9 = vld [vmem:[%s11461_s9 + $0x2c0] sm:$0xf0]  ;;  %v5006_v37 = vadd.f32 %v5005_v44, %v4907_v59  ;;  %v6277_v44 = vld [vmem:[%s11461_s9 + $0x2b4] sm:$0xf] }
 0x4a8   : > { %14841 = vst [vmem:[#allocation20_spill] sm:$0xff] %v13333_v50  ;;  %v6270_v50 = vld [vmem:[%s11461_s9 + $0x278] sm:$0xf0]  ;;  %v13355_v49 = vor.u32 %v6279_v9, %v6142_v7 }
 0x4a9   : > { %5678 = vst [vmem:[%s13175_s23 + $0xc0] sm:$0xff] %v5100_v28  ;;  %4950 = vmatmul.bf16.gmra.mxu2 %v13329_v20  ;;  %6166 = vmatmul.msk.bf16.gmra.mxu0 %vm4609_vm7, %v13331_v30  ;;  %v6110_v28 = vld [vmem:[%s11461_s9 + $0x268] sm:$0xf] }
 0x4aa   : > { %v13357_v16 = vor.u32 %v6270_v50, %v6110_v28  ;;  %v6144_v50 = vld [vmem:[%s11461_s9 + $0x2c4] sm:$0xf0] }
 0x4ac   : > { %v4911_v3 = vpop.f32.mrf.mxu2 }
 0x4ae   : > { %v5101_v32 = vpop.f32.mrf.mxu0  ;;  %v5007_v35 = vpop.f32.mrf.mxu3 }
 0x4af   : > { %v5102_v56 = vadd.f32 %v5101_v32, %v5003_v40  ;;  %v13345_v48 = vpop.f32.mrf.mxu1  ;;  %v5008_v7 = vadd.f32 %v5007_v35, %v4909_v34  ;;  %v13379_v35 = vor.u32 %v6275_v33, %v6130_v43 }
 0x4b1   : > { %5680 = vst [vmem:[%s13175_s23 + $0xd0] sm:$0xff] %v5102_v56 }
 0x4b2   : > { %5247 = vmatmul.bf16.gmra.mxu1 %v14842_v51 }
 0x4b3   : > { %5049 = vmatmul.bf16.gmra.mxu3 %v13343_v61 }
 0x4b4   : > { %v4913_v41 = vpop.f32.mrf.mxu2 }
 0x4b6   : > { %v5104_v10 = vpop.f32.mrf.mxu0  ;;  %v5010_v40 = vpop.f32.mrf.mxu3 }
 0x4b7   : > { %v5105_v32 = vadd.f32 %v5104_v10, %v5006_v37  ;;  %v13359_v56 = vpop.f32.mrf.mxu1  ;;  %v13369_v37 = vor.u32 %v6277_v44, %v6144_v50 }
 0x4b8   : > { %14843 = vst [vmem:[#allocation90_spill] sm:$0xff] %v13359_v56  ;;  %v4912_v56 = vadd.f32 %v4911_v3, %v13110_v22  ;;  %v14846_v22 = vld [vmem:[#allocation51_spill] sm:$0xff] }
 0x4b9   : > { %5682 = vst [vmem:[%s13175_s23 + $0xe0] sm:$0xff] %v5105_v32  ;;  %4955 = vmatmul.bf16.gmra.mxu2 %v13355_v49  ;;  %6167 = vmatmul.msk.bf16.gmra.mxu0 %vm4609_vm7, %v13357_v16  ;;  %v14844_v32 = vld [vmem:[#allocation10_spill] sm:$0xff] }
 0x4ba   : > { %v5011_v63 = vadd.f32 %v5010_v40, %v4912_v56 }
 0x4bc   : > { %v4916_v51 = vpop.f32.mrf.mxu2 }
 0x4be   : > { %v5106_v9 = vpop.f32.mrf.mxu0  ;;  %v5012_v28 = vpop.f32.mrf.mxu3 }
 0x4bf   : > { %v5107_v59 = vadd.f32 %v5106_v9, %v5008_v7  ;;  %v13371_v10 = vpop.f32.mrf.mxu1  ;;  %v4815_v9 = vadd.f32 %v13124_v57, %v13154_v60  ;;  %v14848_v60 = vld [vmem:[#allocation69_spill] sm:$0xff] }
 0x4c0   : > { %v4917_v57 = vadd.f32 %v4916_v51, %v14848_v60 }
 0x4c1   : > { %5684 = vst [vmem:[%s13175_s23 + $0xf0] sm:$0xff] %v5107_v59  ;;  %v4914_v3 = vadd.f32 %v4913_v41, %v4815_v9 }
 0x4c2   : > { %5252 = vmatmul.bf16.gmra.mxu1 %v14844_v32 }
 0x4c3   : > { %5054 = vmatmul.bf16.gmra.mxu3 %v13369_v37  ;;  %v5013_v56 = vadd.f32 %v5012_v28, %v4914_v3 }
 0x4c4   : > { %v4918_v39 = vpop.f32.mrf.mxu2 }
 0x4c6   : > { %v5109_v34 = vpop.f32.mrf.mxu0  ;;  %v5015_v44 = vpop.f32.mrf.mxu3 }
 0x4c7   : > { %v5110_v50 = vadd.f32 %v5109_v34, %v5011_v63  ;;  %v13381_v7 = vpop.f32.mrf.mxu1  ;;  %v6150_v63 = vld [vmem:[%s11461_s9 + $0x2b8] sm:$0xf]  ;;  %v6280_v34 = vld [vmem:[%s11461_s9 + $0x2c8] sm:$0xf0]  ;;  %v5016_v41 = vadd.f32 %v5015_v44, %v4917_v57 }
 0x4c8   : > { %14845 = vst [vmem:[#allocation18_spill] sm:$0xff] %v13381_v7  ;;  %v13398_v9 = vor.u32 %v6280_v34, %v6150_v63 }
 0x4c9   : > { %5686 = vst [vmem:[%s13175_s23 + $0x100] sm:$0xff] %v5110_v50  ;;  %6168 = vmatmul.msk.bf16.gmra.mxu0 %vm4609_vm7, %v13379_v35  ;;  %5266 = vmatmul.bf16.vlgmr.msra.gmra.mxu2 %v14846_v22  ;;  %v14849_v50 = vld [vmem:[#allocation103_spill] sm:$0xff] }
 0x4cc   : > { %v4921_v40 = vpop.f32.mrf.mxu2 }
 0x4ce   : > { %v5111_v59 = vpop.f32.mrf.mxu0  ;;  %v5017_v43 = vpop.f32.mrf.mxu3 }
 0x4cf   : > { %v5112_v33 = vadd.f32 %v5111_v59, %v5013_v56  ;;  %v13389_v32 = vpop.f32.mrf.mxu1 }
 0x4d0   : > { %14847 = vst [vmem:[#allocation48_spill] sm:$0xff] %v13389_v32  ;;  %v14851_v32 = vld [vmem:[#allocation101_spill] sm:$0xff] }
 0x4d1   : > { %5688 = vst [vmem:[%s13175_s23 + $0x110] sm:$0xff] %v5112_v33  ;;  %v14850_v33 = vld [vmem:[#allocation118_spill] sm:$0xff] }
 0x4d2   : > { %6170 = vmatmul.msk.bf16.vlgmr.msra.gmra.mxu1 %vm4609_vm7, %v12948_v25  ;;  %v4820_v7 = vadd.f32 %v14851_v32, %v14850_v33  ;;  %v14852_v25 = vld [vmem:[#allocation23_spill] sm:$0xff]  ;;  %v14853_v32 = vld [vmem:[#allocation113_spill] sm:$0xff] }
 0x4d3   : > { %5365 = vmatmul.bf16.vlgmr.msra.gmra.mxu3 %v14849_v50 }
 0x4d4   : > { %v4923_v22 = vpop.f32.mrf.mxu2  ;;  %v4919_v51 = vadd.f32 %v4918_v39, %v4820_v7 }
 0x4d6   : > { %v5114_v28 = vpop.f32.mrf.mxu0  ;;  %v5020_v3 = vpop.f32.mrf.mxu3  ;;  %v5018_v44 = vadd.f32 %v5017_v43, %v4919_v51  ;;  %v14855_v51 = vld [vmem:[#allocation122_spill] sm:$0xff] }
 0x4d7   : > { %v5115_v56 = vadd.f32 %v5114_v28, %v5016_v41  ;;  %v13400_v59 = vpop.f32.mrf.mxu1  ;;  %v4922_v41 = vadd.f32 %v4921_v40, %v14853_v32 }
 0x4d9   : > { %5690 = vst [vmem:[%s13175_s23 + $0x120] sm:$0xff] %v5115_v56  ;;  %6169 = vmatmul.msk.bf16.gmra.mxu0 %vm4609_vm7, %v13398_v9  ;;  %5271 = vmatmul.bf16.gmra.mxu2 %v14852_v25  ;;  %v5021_v56 = vadd.f32 %v5020_v3, %v4922_v41  ;;  %v14854_v25 = vld [vmem:[#allocation124_spill] sm:$0xff] }
 0x4dc   : > { %v4926_v60 = vpop.f32.mrf.mxu2 }
 0x4de   : > { %v5116_v63 = vpop.f32.mrf.mxu0  ;;  %v5022_v34 = vpop.f32.mrf.mxu3 }
 0x4df   : > { %v5117_v57 = vadd.f32 %v5116_v63, %v5018_v44  ;;  %v13408_v50 = vpop.f32.mrf.mxu1  ;;  %v4825_v44 = vadd.f32 %v14855_v51, %v14854_v25  ;;  %v14856_v63 = vld [vmem:[#allocation47_spill] sm:$0xff]  ;;  %v4830_v51 = vadd.f32 %v12869_v24, %v12801_v14 }
 0x4e1   : > { %5692 = vst [vmem:[%s13175_s23 + $0x130] sm:$0xff] %v5117_v57 }
 0x4e2   : > { %6171 = vmatmul.msk.bf16.gmra.mxu1 %vm4609_vm7, %v12983_v54  ;;  %v4924_v54 = vadd.f32 %v4923_v22, %v4825_v44  ;;  %v14857_v44 = vld [vmem:[#allocation83_spill] sm:$0xff] }
 0x4e3   : > { %5370 = vmatmul.bf16.gmra.mxu3 %v12872_v13 }
 0x4e4   : > { %v4928_v28 = vpop.f32.mrf.mxu2  ;;  %v5023_v57 = vadd.f32 %v5022_v34, %v4924_v54 }
 0x4e6   : > { %v5119_v39 = vpop.f32.mrf.mxu0  ;;  %v5025_v7 = vpop.f32.mrf.mxu3 }
 0x4e7   : > { %v5120_v43 = vadd.f32 %v5119_v39, %v5021_v56  ;;  %v13415_v33 = vpop.f32.mrf.mxu1  ;;  %v4927_v56 = vadd.f32 %v4926_v60, %v12807_v26 }
 0x4e9   : > { %5694 = vst [vmem:[%s13175_s23 + $0x140] sm:$0xff] %v5120_v43  ;;  %5276 = vmatmul.bf16.gmra.mxu2 %v14856_v63  ;;  %5464 = vmatmul.bf16.vlgmr.msra.gmra.mxu0 %v12821_v11  ;;  %v5026_v43 = vadd.f32 %v5025_v7, %v4927_v56  ;;  %v14858_v56 = vld [vmem:[#allocation40_spill] sm:$0xff] }
 0x4ec   : > { %v4931_v40 = vpop.f32.mrf.mxu2 }
 0x4ed   : > { %v4932_v14 = vadd.f32 %v4931_v40, %v12924_v17 }
 0x4ee   : > { %v5121_v13 = vpop.f32.mrf.mxu0  ;;  %v5027_v3 = vpop.f32.mrf.mxu3 }
 0x4ef   : > { %v5122_v32 = vadd.f32 %v5121_v13, %v5023_v57  ;;  %v13422_v41 = vpop.f32.mrf.mxu1 }
 0x4f1   : > { %5696 = vst [vmem:[%s13175_s23 + $0x150] sm:$0xff] %v5122_v32  ;;  %v4835_v32 = vadd.f32 %v12943_v55, %v12921_v29  ;;  %v14859_v55 = vld [vmem:[#allocation85_spill] sm:$0xff] }
 0x4f2   : > { %6172 = vmatmul.msk.bf16.gmra.mxu1 %vm4609_vm7, %v13016_v8  ;;  %v4929_v8 = vadd.f32 %v4928_v28, %v4830_v51 }
 0x4f3   : > { %5375 = vmatmul.bf16.gmra.mxu3 %v12946_v21 }
 0x4f4   : > { %v4933_v39 = vpop.f32.mrf.mxu2  ;;  %v5028_v60 = vadd.f32 %v5027_v3, %v4929_v8 }
 0x4f6   : > { %v5124_v11 = vpop.f32.mrf.mxu0  ;;  %v5030_v22 = vpop.f32.mrf.mxu3 }
 0x4f7   : > { %v5125_v34 = vadd.f32 %v5124_v11, %v5026_v43  ;;  %v13429_v25 = vpop.f32.mrf.mxu1  ;;  %v5031_v57 = vadd.f32 %v5030_v22, %v4932_v14  ;;  %v14863_v14 = vld [vmem:[#allocation87_spill] sm:$0xff] }
 0x4f9   : > { %5698 = vst [vmem:[%s13175_s23 + $0x160] sm:$0xff] %v5125_v34  ;;  %5281 = vmatmul.bf16.gmra.mxu2 %v14857_v44  ;;  %5469 = vmatmul.bf16.gmra.mxu0 %v12927_v42 }
 0x4fc   : > { %v4936_v26 = vpop.f32.mrf.mxu2 }
 0x4fd   : > { %v4937_v29 = vadd.f32 %v4936_v26, %v12962_v38 }
 0x4fe   : > { %v5126_v21 = vpop.f32.mrf.mxu0  ;;  %v5032_v7 = vpop.f32.mrf.mxu3 }
 0x4ff   : > { %v5127_v63 = vadd.f32 %v5126_v21, %v5028_v60  ;;  %v13436_v54 = vpop.f32.mrf.mxu1  ;;  %v14860_v60 = vld [vmem:[#allocation81_spill] sm:$0xff]  ;;  %v14861_v21 = vld [vmem:[#allocation34_spill] sm:$0xff] }
 0x501   : > { %5700 = vst [vmem:[%s13175_s23 + $0x170] sm:$0xff] %v5127_v63  ;;  %v14862_v63 = vld [vmem:[#allocation35_spill] sm:$0xff] }
 0x502   : > { %6173 = vmatmul.msk.bf16.gmra.mxu1 %vm4609_vm7, %v13045_v52  ;;  %v4934_v52 = vadd.f32 %v4933_v39, %v4835_v32  ;;  %v14864_v32 = vld [vmem:[#allocation37_spill] sm:$0xff] }
 0x503   : > { %5380 = vmatmul.bf16.gmra.mxu3 %v12981_v1 }
 0x504   : > { %v4938_v24 = vpop.f32.mrf.mxu2  ;;  %v5033_v40 = vadd.f32 %v5032_v7, %v4934_v52  ;;  %v4840_v7 = vadd.f32 %v14861_v21, %v14860_v60  ;;  %v14869_v60 = vld [vmem:[#allocation57_spill] sm:$0xff]  ;;  %v14870_v21 = vld [vmem:[#allocation71_spill] sm:$0xff] }
 0x506   : > { %v5129_v42 = vpop.f32.mrf.mxu0  ;;  %v5035_v28 = vpop.f32.mrf.mxu3 }
 0x507   : > { %v5130_v13 = vadd.f32 %v5129_v42, %v5031_v57  ;;  %v13443_v3 = vpop.f32.mrf.mxu1  ;;  %v5036_v51 = vadd.f32 %v5035_v28, %v4937_v29 }
 0x509   : > { %5702 = vst [vmem:[%s13175_s23 + $0x180] sm:$0xff] %v5130_v13  ;;  %5286 = vmatmul.bf16.gmra.mxu2 %v14858_v56  ;;  %5474 = vmatmul.bf16.gmra.mxu0 %v12968_v53  ;;  %v14865_v56 = vld [vmem:[#allocation53_spill] sm:$0xff] }
 0x50c   : > { %v4941_v17 = vpop.f32.mrf.mxu2 }
 0x50d   : > { %v4942_v52 = vadd.f32 %v4941_v17, %v14865_v56  ;;  %v14873_v56 = vld [vmem:[#allocation114_spill] sm:$0xff] }
 0x50e   : > { %v5131_v1 = vpop.f32.mrf.mxu0  ;;  %v5037_v43 = vpop.f32.mrf.mxu3 }
 0x50f   : > { %v5132_v11 = vadd.f32 %v5131_v1, %v5033_v40  ;;  %v13450_v22 = vpop.f32.mrf.mxu1  ;;  %v14866_v40 = vld [vmem:[#allocation102_spill] sm:$0xff] }
 0x511   : > { %5704 = vst [vmem:[%s13175_s23 + $0x190] sm:$0xff] %v5132_v11 }
 0x512   : > { %6174 = vmatmul.msk.bf16.gmra.mxu1 %vm4609_vm7, %v13074_v19  ;;  %v4939_v19 = vadd.f32 %v4938_v24, %v4840_v7 }
 0x513   : > { %5385 = vmatmul.bf16.gmra.mxu3 %v14859_v55 }
 0x514   : > { %v4943_v34 = vpop.f32.mrf.mxu2  ;;  %v5038_v26 = vadd.f32 %v5037_v43, %v4939_v19 }
 0x516   : > { %v5134_v53 = vpop.f32.mrf.mxu0  ;;  %v5040_v39 = vpop.f32.mrf.mxu3 }
 0x517   : > { %v5135_v44 = vadd.f32 %v5134_v53, %v5036_v51  ;;  %v13457_v8 = vpop.f32.mrf.mxu1  ;;  %v5041_v11 = vadd.f32 %v5040_v39, %v4942_v52  ;;  %v14867_v51 = vld [vmem:[#allocation24_spill] sm:$0xff]  ;;  %v14868_v53 = vld [vmem:[#allocation21_spill] sm:$0xff] }
 0x519   : > { %5706 = vst [vmem:[%s13175_s23 + $0x1a0] sm:$0xff] %v5135_v44  ;;  %5291 = vmatmul.bf16.gmra.mxu2 %v14862_v63  ;;  %5479 = vmatmul.bf16.gmra.mxu0 %v14863_v14  ;;  %v4845_v44 = vadd.f32 %v14868_v53, %v14867_v51  ;;  %v14875_v51 = vld [vmem:[#allocation4_spill] sm:$0xff] }
 0x51b   : > { %v4944_v7 = vadd.f32 %v4943_v34, %v4845_v44  ;;  %v14876_v44 = vld [vmem:[#allocation64_spill] sm:$0xff] }
 0x51c   : > { %v4946_v38 = vpop.f32.mrf.mxu2 }
 0x51e   : > { %v5136_v57 = vpop.f32.mrf.mxu0  ;;  %v5042_v42 = vpop.f32.mrf.mxu3 }
 0x51f   : > { %v5137_v28 = vadd.f32 %v5136_v57, %v5038_v26  ;;  %v13464_v13 = vpop.f32.mrf.mxu1  ;;  %v5043_v63 = vadd.f32 %v5042_v42, %v4944_v7  ;;  %v14871_v57 = vld [vmem:[#allocation121_spill] sm:$0xff] }
 0x521   : > { %5708 = vst [vmem:[%s13175_s23 + $0x1b0] sm:$0xff] %v5137_v28  ;;  %v14872_v28 = vld [vmem:[#allocation123_spill] sm:$0xff] }
 0x522   : > { %6175 = vmatmul.msk.bf16.gmra.mxu1 %vm4609_vm7, %v14864_v32  ;;  %v4947_v32 = vadd.f32 %v4946_v38, %v14872_v28  ;;  %v14879_v28 = vld [vmem:[#allocation66_spill] sm:$0xff] }
 0x523   : > { %5390 = vmatmul.bf16.gmra.mxu3 %v14866_v40 }
 0x524   : > { %v4948_v1 = vpop.f32.mrf.mxu2 }
 0x526   : > { %v5139_v24 = vpop.f32.mrf.mxu0  ;;  %v5045_v29 = vpop.f32.mrf.mxu3 }
 0x527   : > { %v5140_v43 = vadd.f32 %v5139_v24, %v5041_v11  ;;  %v13471_v55 = vpop.f32.mrf.mxu1  ;;  %v5046_v40 = vadd.f32 %v5045_v29, %v4947_v32 }
 0x529   : > { %5710 = vst [vmem:[%s13175_s23 + $0x1c0] sm:$0xff] %v5140_v43  ;;  %5296 = vmatmul.bf16.gmra.mxu2 %v14869_v60  ;;  %5484 = vmatmul.bf16.gmra.mxu0 %v14870_v21  ;;  %v14874_v43 = vld [vmem:[#allocation39_spill] sm:$0xff]  ;;  %v14877_v60 = vld [vmem:[#allocation109_spill] sm:$0xff] }
 0x52a   : > { %v4850_v53 = vadd.f32 %v14875_v51, %v14874_v43  ;;  %v14881_v51 = vld [vmem:[#allocation107_spill] sm:$0xff] }
 0x52c   : > { %v4951_v17 = vpop.f32.mrf.mxu2  ;;  %v4949_v21 = vadd.f32 %v4948_v1, %v4850_v53  ;;  %v14882_v53 = vld [vmem:[#allocation46_spill] sm:$0xff] }
 0x52d   : > { %v4952_v32 = vadd.f32 %v4951_v17, %v14879_v28 }
 0x52e   : > { %v5141_v14 = vpop.f32.mrf.mxu0  ;;  %v5047_v39 = vpop.f32.mrf.mxu3 }
 0x52f   : > { %v5142_v19 = vadd.f32 %v5141_v14, %v5043_v63  ;;  %v13478_v26 = vpop.f32.mrf.mxu1  ;;  %v5048_v7 = vadd.f32 %v5047_v39, %v4949_v21  ;;  %v14884_v21 = vld [vmem:[#allocation52_spill] sm:$0xff] }
 0x531   : > { %5712 = vst [vmem:[%s13175_s23 + $0x1d0] sm:$0xff] %v5142_v19 }
 0x532   : > { %6176 = vmatmul.msk.bf16.gmra.mxu1 %vm4609_vm7, %v14871_v57  ;;  %v14878_v57 = vld [vmem:[#allocation80_spill] sm:$0xff] }
 0x533   : > { %5395 = vmatmul.bf16.gmra.mxu3 %v14873_v56  ;;  %v14880_v56 = vld [vmem:[#allocation116_spill] sm:$0xff] }
 0x534   : > { %v4953_v52 = vpop.f32.mrf.mxu2 }
 0x536   : > { %v5144_v34 = vpop.f32.mrf.mxu0  ;;  %v5050_v11 = vpop.f32.mrf.mxu3 }
 0x537   : > { %v5145_v42 = vadd.f32 %v5144_v34, %v5046_v40  ;;  %v13485_v24 = vpop.f32.mrf.mxu1  ;;  %v5051_v34 = vadd.f32 %v5050_v11, %v4952_v32  ;;  %v14885_v32 = vld [vmem:[#allocation43_spill] sm:$0xff] }
 0x539   : > { %5714 = vst [vmem:[%s13175_s23 + $0x1e0] sm:$0xff] %v5145_v42  ;;  %5301 = vmatmul.bf16.gmra.mxu2 %v14876_v44  ;;  %5489 = vmatmul.bf16.gmra.mxu0 %v14877_v60  ;;  %v4855_v44 = vadd.f32 %v14882_v53, %v14881_v51  ;;  %v14883_v60 = vld [vmem:[#allocation77_spill] sm:$0xff] }
 0x53c   : > { %v4956_v38 = vpop.f32.mrf.mxu2 }
 0x53e   : > { %v5146_v63 = vpop.f32.mrf.mxu0  ;;  %v5052_v29 = vpop.f32.mrf.mxu3 }
 0x53f   : > { %v5147_v14 = vadd.f32 %v5146_v63, %v5048_v7  ;;  %v13492_v19 = vpop.f32.mrf.mxu1  ;;  %v4954_v7 = vadd.f32 %v4953_v52, %v4855_v44  ;;  %v14887_v44 = vld [vmem:[#allocation98_spill] sm:$0xff] }
 0x541   : > { %5716 = vst [vmem:[%s13175_s23 + $0x1f0] sm:$0xff] %v5147_v14  ;;  %v5053_v63 = vadd.f32 %v5052_v29, %v4954_v7  ;;  %v14889_v7 = vld [vmem:[#allocation86_spill] sm:$0xff] }
 0x542   : > { %6177 = vmatmul.msk.bf16.gmra.mxu1 %vm4609_vm7, %v14878_v57 }
 0x543   : > { %5400 = vmatmul.bf16.gmra.mxu3 %v14880_v56  ;;  %v4957_v56 = vadd.f32 %v4956_v38, %v14885_v32 }
 0x544   : > { %v4958_v40 = vpop.f32.mrf.mxu2 }
 0x546   : > { %v5149_v1 = vpop.f32.mrf.mxu0  ;;  %v5055_v42 = vpop.f32.mrf.mxu3 }
 0x547   : > { %v5150_v39 = vadd.f32 %v5149_v1, %v5051_v34  ;;  %v13499_v43 = vpop.f32.mrf.mxu1  ;;  %v14886_v34 = vld [vmem:[#allocation41_spill] sm:$0xff] }
 0x549   : > { %5718 = vst [vmem:[%s13175_s23 + $0x200] sm:$0xff] %v5150_v39  ;;  %5306 = vmatmul.bf16.gmra.mxu2 %v14883_v60  ;;  %5494 = vmatmul.bf16.gmra.mxu0 %v14884_v21  ;;  %v5056_v39 = vadd.f32 %v5055_v42, %v4957_v56  ;;  %v14888_v60 = vld [vmem:[#allocation88_spill] sm:$0xff] }
 0x54a   : > { %v4860_v21 = vadd.f32 %v14888_v60, %v14887_v44  ;;  %v14891_v56 = vld [vmem:[#allocation44_spill] sm:$0xff] }
 0x54c   : > { %v5267_v17 = vpop.f32.mrf.mxu2 }
 0x54e   : > { %v5151_v14 = vpop.f32.mrf.mxu0  ;;  %v5057_v11 = vpop.f32.mrf.mxu3 }
 0x54f   : > { %v5152_v57 = vadd.f32 %v5151_v14, %v5053_v63  ;;  %v5564_v28 = vpop.f32.mrf.mxu1  ;;  %v14890_v63 = vld [vmem:[#allocation75_spill] sm:$0xff] }
 0x551   : > { %5720 = vst [vmem:[%s13175_s23 + $0x210] sm:$0xff] %v5152_v57 }
 0x552   : > { %6178 = vmatmul.msk.bf16.gmra.mxu1 %vm4609_vm7, %v13170_v27  ;;  %v4959_v27 = vadd.f32 %v4958_v40, %v4860_v21 }
 0x553   : > { %5405 = vmatmul.bf16.gmra.mxu3 %v14886_v34 }
 0x554   : > { %v5269_v1 = vpop.f32.mrf.mxu2  ;;  %v5058_v38 = vadd.f32 %v5057_v11, %v4959_v27  ;;  %v14894_v27 = vld [vmem:[#allocation17_spill] sm:$0xff] }
 0x556   : > { %v5154_v51 = vpop.f32.mrf.mxu0  ;;  %v5366_v52 = vpop.f32.mrf.mxu3 }
 0x557   : > { %v5155_v53 = vadd.f32 %v5154_v51, %v5056_v39  ;;  %v5566_v29 = vpop.f32.mrf.mxu1  ;;  %v5268_v39 = vadd.f32 %v5267_v17, %v14891_v56  ;;  %v14892_v51 = vld [vmem:[#allocation61_spill] sm:$0xff] }
 0x559   : > { %5722 = vst [vmem:[%s13175_s23 + $0x220] sm:$0xff] %v5155_v53  ;;  %5311 = vmatmul.bf16.gmra.mxu2 %v14889_v7  ;;  %5499 = vmatmul.bf16.gmra.mxu0 %v14890_v63  ;;  %v5367_v44 = vadd.f32 %v5366_v52, %v5268_v39  ;;  %v14893_v63 = vld [vmem:[#allocation117_spill] sm:$0xff] }
 0x55c   : > { %v5272_v14 = vpop.f32.mrf.mxu2 }
 0x55e   : > { %v5156_v57 = vpop.f32.mrf.mxu0  ;;  %v5368_v32 = vpop.f32.mrf.mxu3 }
 0x55f   : > { %v5157_v34 = vadd.f32 %v5156_v57, %v5058_v38  ;;  %v5569_v42 = vpop.f32.mrf.mxu1  ;;  %v14895_v38 = vld [vmem:[#allocation19_spill] sm:$0xff] }
 0x560   : > { %v5270_v57 = vadd.f32 %v5269_v1, %v14895_v38 }
 0x561   : > { %5724 = vst [vmem:[%s13175_s23 + $0x230] sm:$0xff] %v5157_v34 }
 0x562   : > { %6179 = vmatmul.msk.bf16.gmra.mxu1 %vm4609_vm7, %v13201_v58  ;;  %v5369_v17 = vadd.f32 %v5368_v32, %v5270_v57  ;;  %v14898_v57 = vld [vmem:[#allocation5_spill] sm:$0xff] }
 0x563   : > { %5410 = vmatmul.bf16.gmra.mxu3 %v14892_v51 }
 0x564   : > { %v5274_v53 = vpop.f32.mrf.mxu2 }
 0x566   : > { %v5465_v60 = vpop.f32.mrf.mxu0  ;;  %v5371_v7 = vpop.f32.mrf.mxu3 }
 0x567   : > { %v5466_v40 = vadd.f32 %v5465_v60, %v5367_v44  ;;  %v5571_v11 = vpop.f32.mrf.mxu1  ;;  %v14897_v60 = vld [vmem:[#allocation120_spill] sm:$0xff] }
 0x569   : > { %v5565_v21 = vadd.f32 %v5564_v28, %v5466_v40  ;;  %5316 = vmatmul.bf16.gmra.mxu2 %v14893_v63  ;;  %5504 = vmatmul.bf16.gmra.mxu0 %v14894_v27  ;;  %v14896_v28 = vld [vmem:[#allocation55_spill] sm:$0xff] }
 0x56a   : > { %v5273_v44 = vadd.f32 %v5272_v14, %v14896_v28 }
 0x56b   : > { %5655 = vst.msk [vmem:[%s13175_s23 + $0x8] sm:$0xff] %vm378_vm0, %v5565_v21 }
 0x56c   : > { %v5277_v58 = vpop.f32.mrf.mxu2  ;;  %v5372_v40 = vadd.f32 %v5371_v7, %v5273_v44 }
 0x56e   : > { %v5467_v34 = vpop.f32.mrf.mxu0  ;;  %v5373_v56 = vpop.f32.mrf.mxu3 }
 0x56f   : > { %v5468_v51 = vadd.f32 %v5467_v34, %v5369_v17  ;;  %v5574_v52 = vpop.f32.mrf.mxu1  ;;  %v14900_v17 = vld [vmem:[#allocation111_spill] sm:$0xff] }
 0x571   : > { %v5567_v39 = vadd.f32 %v5566_v29, %v5468_v51  ;;  %v14899_v29 = vld [vmem:[#allocation100_spill] sm:$0xff] }
 0x572   : > { %6180 = vmatmul.msk.bf16.gmra.mxu1 %vm4609_vm7, %v13227_v46  ;;  %v5275_v46 = vadd.f32 %v5274_v53, %v14900_v17 }
 0x573   : > { %5657 = vst.msk [vmem:[%s13175_s23 + $0x18] sm:$0xff] %vm378_vm0, %v5567_v39  ;;  %5415 = vmatmul.bf16.gmra.mxu3 %v14897_v60 }
 0x574   : > { %v5279_v1 = vpop.f32.mrf.mxu2  ;;  %v5374_v34 = vadd.f32 %v5373_v56, %v5275_v46 }
 0x576   : > { %v5470_v21 = vpop.f32.mrf.mxu0  ;;  %v5376_v63 = vpop.f32.mrf.mxu3 }
 0x577   : > { %v5471_v32 = vadd.f32 %v5470_v21, %v5372_v40  ;;  %v5576_v27 = vpop.f32.mrf.mxu1 }
 0x579   : > { %v5570_v38 = vadd.f32 %v5569_v42, %v5471_v32  ;;  %5321 = vmatmul.bf16.gmra.mxu2 %v14898_v57  ;;  %5509 = vmatmul.bf16.gmra.mxu0 %v14899_v29  ;;  %v5278_v42 = vadd.f32 %v5277_v58, %v13189_v0  ;;  %v14901_v57 = vld [vmem:[#allocation125_spill] sm:$0xff]  ;;  %v14903_v29 = vld [vmem:[#allocation22_spill] sm:$0xff] }
 0x57b   : > { %5659 = vst.msk [vmem:[%s13175_s23 + $0x28] sm:$0xff] %vm378_vm0, %v5570_v38  ;;  %v5377_v60 = vadd.f32 %v5376_v63, %v5278_v42 }
 0x57c   : > { %v5282_v14 = vpop.f32.mrf.mxu2 }
 0x57e   : > { %v5472_v51 = vpop.f32.mrf.mxu0  ;;  %v5378_v39 = vpop.f32.mrf.mxu3 }
 0x57f   : > { %v5473_v28 = vadd.f32 %v5472_v51, %v5374_v34  ;;  %v5579_v7 = vpop.f32.mrf.mxu1 }
 0x581   : > { %v5572_v44 = vadd.f32 %v5571_v11, %v5473_v28  ;;  %v14902_v11 = vld [vmem:[#allocation29_spill] sm:$0xff] }
 0x582   : > { %6181 = vmatmul.msk.bf16.gmra.mxu1 %vm4609_vm7, %v13253_v2  ;;  %v5280_v2 = vadd.f32 %v5279_v1, %v14903_v29 }
 0x583   : > { %5661 = vst.msk [vmem:[%s13175_s23 + $0x38] sm:$0xff] %vm378_vm0, %v5572_v44  ;;  %5420 = vmatmul.bf16.gmra.mxu3 %v13199_v18 }
 0x584   : > { %v5284_v53 = vpop.f32.mrf.mxu2  ;;  %v5379_v58 = vadd.f32 %v5378_v39, %v5280_v2 }
 0x586   : > { %v5475_v40 = vpop.f32.mrf.mxu0  ;;  %v5381_v21 = vpop.f32.mrf.mxu3 }
 0x587   : > { %v5476_v56 = vadd.f32 %v5475_v40, %v5377_v60  ;;  %v5581_v32 = vpop.f32.mrf.mxu1  ;;  %v14904_v40 = vld [vmem:[#allocation99_spill] sm:$0xff] }
 0x589   : > { %v5575_v38 = vadd.f32 %v5574_v52, %v5476_v56  ;;  %5326 = vmatmul.bf16.gmra.mxu2 %v14901_v57  ;;  %5514 = vmatmul.bf16.gmra.mxu0 %v14902_v11  ;;  %v5283_v52 = vadd.f32 %v5282_v14, %v13215_v4  ;;  %v14906_v56 = vld [vmem:[#allocation45_spill] sm:$0xff] }
 0x58b   : > { %5663 = vst.msk [vmem:[%s13175_s23 + $0x48] sm:$0xff] %vm378_vm0, %v5575_v38  ;;  %v5382_v51 = vadd.f32 %v5381_v21, %v5283_v52  ;;  %v14909_v52 = vld [vmem:[#allocation54_spill] sm:$0xff] }
 0x58c   : > { %v5287_v0 = vpop.f32.mrf.mxu2 }
 0x58e   : > { %v5477_v17 = vpop.f32.mrf.mxu0  ;;  %v5383_v18 = vpop.f32.mrf.mxu3 }
 0x58f   : > { %v5478_v46 = vadd.f32 %v5477_v17, %v5379_v58  ;;  %v5584_v63 = vpop.f32.mrf.mxu1 }
 0x591   : > { %v5577_v34 = vadd.f32 %v5576_v27, %v5478_v46  ;;  %v14905_v27 = vld [vmem:[#allocation108_spill] sm:$0xff] }
 0x592   : > { %6182 = vmatmul.msk.bf16.gmra.mxu1 %vm4609_vm7, %v13279_v47  ;;  %v5285_v47 = vadd.f32 %v5284_v53, %v14906_v56 }
 0x593   : > { %5665 = vst.msk [vmem:[%s13175_s23 + $0x58] sm:$0xff] %vm378_vm0, %v5577_v34  ;;  %5425 = vmatmul.bf16.gmra.mxu3 %v13225_v31  ;;  %v14907_v34 = vld [vmem:[#allocation7_spill] sm:$0xff] }
 0x594   : > { %v5289_v1 = vpop.f32.mrf.mxu2  ;;  %v5384_v14 = vadd.f32 %v5383_v18, %v5285_v47 }
 0x596   : > { %v5480_v28 = vpop.f32.mrf.mxu0  ;;  %v5386_v44 = vpop.f32.mrf.mxu3 }
 0x597   : > { %v5481_v39 = vadd.f32 %v5480_v28, %v5382_v51  ;;  %v5586_v42 = vpop.f32.mrf.mxu1 }
 0x599   : > { %v5580_v60 = vadd.f32 %v5579_v7, %v5481_v39  ;;  %5331 = vmatmul.bf16.gmra.mxu2 %v14904_v40  ;;  %5519 = vmatmul.bf16.gmra.mxu0 %v14905_v27  ;;  %v5288_v7 = vadd.f32 %v5287_v0, %v13241_v15 }
 0x59b   : > { %5667 = vst.msk [vmem:[%s13175_s23 + $0x68] sm:$0xff] %vm378_vm0, %v5580_v60  ;;  %v5387_v29 = vadd.f32 %v5386_v44, %v5288_v7 }
 0x59c   : > { %v5292_v4 = vpop.f32.mrf.mxu2 }
 0x59e   : > { %v5482_v38 = vpop.f32.mrf.mxu0  ;;  %v5388_v31 = vpop.f32.mrf.mxu3 }
 0x59f   : > { %v5483_v57 = vadd.f32 %v5482_v38, %v5384_v14  ;;  %v5589_v21 = vpop.f32.mrf.mxu1  ;;  %v14910_v38 = vld [vmem:[#allocation49_spill] sm:$0xff] }
 0x5a1   : > { %v5582_v11 = vadd.f32 %v5581_v32, %v5483_v57  ;;  %v14908_v32 = vld [vmem:[#allocation36_spill] sm:$0xff] }
 0x5a2   : > { %6183 = vmatmul.msk.bf16.gmra.mxu1 %vm4609_vm7, %v13305_v62  ;;  %v5290_v62 = vadd.f32 %v5289_v1, %v14909_v52  ;;  %v14913_v52 = vld [vmem:[#allocation9_spill] sm:$0xff] }
 0x5a3   : > { %5669 = vst.msk [vmem:[%s13175_s23 + $0x78] sm:$0xff] %vm378_vm0, %v5582_v11  ;;  %5430 = vmatmul.bf16.gmra.mxu3 %v13251_v6 }
 0x5a4   : > { %v5294_v53 = vpop.f32.mrf.mxu2  ;;  %v5389_v0 = vadd.f32 %v5388_v31, %v5290_v62  ;;  %v14912_v31 = vld [vmem:[#allocation84_spill] sm:$0xff] }
 0x5a5   : > { %v14915_v62 = vld [vmem:[#allocation72_spill] sm:$0xff] }
 0x5a6   : > { %v5485_v2 = vpop.f32.mrf.mxu0  ;;  %v5391_v58 = vpop.f32.mrf.mxu3 }
 0x5a7   : > { %v5486_v17 = vadd.f32 %v5485_v2, %v5387_v29  ;;  %v5591_v18 = vpop.f32.mrf.mxu1 }
 0x5a9   : > { %v5585_v46 = vadd.f32 %v5584_v63, %v5486_v17  ;;  %5336 = vmatmul.bf16.gmra.mxu2 %v14907_v34  ;;  %5524 = vmatmul.bf16.gmra.mxu0 %v14908_v32  ;;  %v5293_v63 = vadd.f32 %v5292_v4, %v13267_v23 }
 0x5ab   : > { %5671 = vst.msk [vmem:[%s13175_s23 + $0x88] sm:$0xff] %vm378_vm0, %v5585_v46  ;;  %v5392_v60 = vadd.f32 %v5391_v58, %v5293_v63 }
 0x5ac   : > { %v5297_v15 = vpop.f32.mrf.mxu2 }
 0x5ae   : > { %v5487_v51 = vpop.f32.mrf.mxu0  ;;  %v5393_v6 = vpop.f32.mrf.mxu3 }
 0x5af   : > { %v5488_v28 = vadd.f32 %v5487_v51, %v5389_v0  ;;  %v5594_v44 = vpop.f32.mrf.mxu1 }
 0x5b1   : > { %v5587_v39 = vadd.f32 %v5586_v42, %v5488_v28  ;;  %v14911_v42 = vld [vmem:[#allocation12_spill] sm:$0xff] }
 0x5b2   : > { %6184 = vmatmul.msk.bf16.gmra.mxu1 %vm4609_vm7, %v13331_v30  ;;  %v5295_v30 = vadd.f32 %v5294_v53, %v14912_v31 }
 0x5b3   : > { %5673 = vst.msk [vmem:[%s13175_s23 + $0x98] sm:$0xff] %vm378_vm0, %v5587_v39  ;;  %5435 = vmatmul.bf16.gmra.mxu3 %v13277_v36 }
 0x5b4   : > { %v5299_v1 = vpop.f32.mrf.mxu2  ;;  %v5394_v4 = vadd.f32 %v5393_v6, %v5295_v30 }
 0x5b6   : > { %v5490_v40 = vpop.f32.mrf.mxu0  ;;  %v5396_v27 = vpop.f32.mrf.mxu3 }
 0x5b7   : > { %v5491_v56 = vadd.f32 %v5490_v40, %v5392_v60  ;;  %v5596_v47 = vpop.f32.mrf.mxu1 }
 0x5b9   : > { %v5590_v14 = vadd.f32 %v5589_v21, %v5491_v56  ;;  %5341 = vmatmul.bf16.gmra.mxu2 %v14910_v38  ;;  %5529 = vmatmul.bf16.gmra.mxu0 %v14911_v42  ;;  %v5298_v21 = vadd.f32 %v5297_v15, %v13293_v45  ;;  %v14918_v38 = vld [vmem:[#allocation20_spill] sm:$0xff] }
 0x5bb   : > { %5675 = vst.msk [vmem:[%s13175_s23 + $0xa8] sm:$0xff] %vm378_vm0, %v5590_v14  ;;  %v5397_v2 = vadd.f32 %v5396_v27, %v5298_v21  ;;  %v14916_v14 = vld [vmem:[#allocation97_spill] sm:$0xff] }
 0x5bc   : > { %v5302_v23 = vpop.f32.mrf.mxu2 }
 0x5be   : > { %v5492_v57 = vpop.f32.mrf.mxu0  ;;  %v5398_v36 = vpop.f32.mrf.mxu3 }
 0x5bf   : > { %v5493_v11 = vadd.f32 %v5492_v57, %v5394_v4  ;;  %v5599_v7 = vpop.f32.mrf.mxu1 }
 0x5c1   : > { %v5592_v29 = vadd.f32 %v5591_v18, %v5493_v11  ;;  %v14914_v18 = vld [vmem:[#allocation68_spill] sm:$0xff] }
 0x5c2   : > { %6185 = vmatmul.msk.bf16.gmra.mxu1 %vm4609_vm7, %v13357_v16  ;;  %v5300_v16 = vadd.f32 %v5299_v1, %v14915_v62 }
 0x5c3   : > { %5677 = vst.msk [vmem:[%s13175_s23 + $0xb8] sm:$0xff] %vm378_vm0, %v5592_v29  ;;  %5440 = vmatmul.bf16.gmra.mxu3 %v13303_v5 }
 0x5c4   : > { %v5304_v53 = vpop.f32.mrf.mxu2  ;;  %v5399_v15 = vadd.f32 %v5398_v36, %v5300_v16 }
 0x5c6   : > { %v5495_v58 = vpop.f32.mrf.mxu0  ;;  %v5401_v17 = vpop.f32.mrf.mxu3 }
 0x5c7   : > { %v5496_v46 = vadd.f32 %v5495_v58, %v5397_v2  ;;  %v5601_v34 = vpop.f32.mrf.mxu1  ;;  %v14919_v58 = vld [vmem:[#allocation90_spill] sm:$0xff] }
 0x5c9   : > { %v5595_v32 = vadd.f32 %v5594_v44, %v5496_v46  ;;  %5346 = vmatmul.bf16.gmra.mxu2 %v14913_v52  ;;  %5534 = vmatmul.bf16.gmra.mxu0 %v14914_v18  ;;  %v5303_v44 = vadd.f32 %v5302_v23, %v13319_v12 }
 0x5cb   : > { %5679 = vst.msk [vmem:[%s13175_s23 + $0xc8] sm:$0xff] %vm378_vm0, %v5595_v32  ;;  %v5402_v63 = vadd.f32 %v5401_v17, %v5303_v44 }
 0x5cc   : > { %v5307_v45 = vpop.f32.mrf.mxu2 }
 0x5cd   : > { %v5308_v57 = vadd.f32 %v5307_v45, %v13345_v48 }
 0x5ce   : > { %v5497_v0 = vpop.f32.mrf.mxu0  ;;  %v5403_v5 = vpop.f32.mrf.mxu3 }
 0x5cf   : > { %v5498_v51 = vadd.f32 %v5497_v0, %v5399_v15  ;;  %v5604_v6 = vpop.f32.mrf.mxu1 }
 0x5d1   : > { %v5597_v28 = vadd.f32 %v5596_v47, %v5498_v51  ;;  %v14917_v47 = vld [vmem:[#allocation62_spill] sm:$0xff] }
 0x5d2   : > { %6186 = vmatmul.msk.bf16.gmra.mxu1 %vm4609_vm7, %v13379_v35  ;;  %v5305_v35 = vadd.f32 %v5304_v53, %v14918_v38  ;;  %v14920_v51 = vld [vmem:[#allocation18_spill] sm:$0xff] }
 0x5d3   : > { %5681 = vst.msk [vmem:[%s13175_s23 + $0xd8] sm:$0xff] %vm378_vm0, %v5597_v28  ;;  %5445 = vmatmul.bf16.gmra.mxu3 %v13329_v20 }
 0x5d4   : > { %v5309_v39 = vpop.f32.mrf.mxu2  ;;  %v5404_v42 = vadd.f32 %v5403_v5, %v5305_v35 }
 0x5d5   : > { %v5310_v17 = vadd.f32 %v5309_v39, %v14919_v58 }
 0x5d6   : > { %v5500_v1 = vpop.f32.mrf.mxu0  ;;  %v5406_v60 = vpop.f32.mrf.mxu3 }
 0x5d7   : > { %v5501_v40 = vadd.f32 %v5500_v1, %v5402_v63  ;;  %v5606_v27 = vpop.f32.mrf.mxu1  ;;  %v5407_v11 = vadd.f32 %v5406_v60, %v5308_v57 }
 0x5d9   : > { %v5600_v56 = vadd.f32 %v5599_v7, %v5501_v40  ;;  %5351 = vmatmul.bf16.gmra.mxu2 %v14916_v14  ;;  %5539 = vmatmul.bf16.gmra.mxu0 %v14917_v47  ;;  %v14921_v40 = vld [vmem:[#allocation48_spill] sm:$0xff] }
 0x5db   : > { %5683 = vst.msk [vmem:[%s13175_s23 + $0xe8] sm:$0xff] %vm378_vm0, %v5600_v56 }
 0x5dc   : > { %v5312_v12 = vpop.f32.mrf.mxu2 }
 0x5dd   : > { %v5313_v18 = vadd.f32 %v5312_v12, %v13371_v10 }
 0x5de   : > { %v5502_v31 = vpop.f32.mrf.mxu0  ;;  %v5408_v20 = vpop.f32.mrf.mxu3 }
 0x5df   : > { %v5503_v30 = vadd.f32 %v5502_v31, %v5404_v42  ;;  %v5609_v23 = vpop.f32.mrf.mxu1  ;;  %v5409_v48 = vadd.f32 %v5408_v20, %v5310_v17 }
 0x5e1   : > { %v5602_v4 = vadd.f32 %v5601_v34, %v5503_v30 }
 0x5e2   : > { %6187 = vmatmul.msk.bf16.gmra.mxu1 %vm4609_vm7, %v13398_v9 }
 0x5e3   : > { %5685 = vst.msk [vmem:[%s13175_s23 + $0xf8] sm:$0xff] %vm378_vm0, %v5602_v4  ;;  %5450 = vmatmul.bf16.gmra.mxu3 %v13355_v49 }
 0x5e4   : > { %v5314_v36 = vpop.f32.mrf.mxu2 }
 0x5e6   : > { %v5505_v7 = vpop.f32.mrf.mxu0  ;;  %v5411_v29 = vpop.f32.mrf.mxu3 }
 0x5e7   : > { %v5506_v21 = vadd.f32 %v5505_v7, %v5407_v11  ;;  %v5611_v53 = vpop.f32.mrf.mxu1  ;;  %v5412_v16 = vadd.f32 %v5411_v29, %v5313_v18 }
 0x5e9   : > { %v5605_v2 = vadd.f32 %v5604_v6, %v5506_v21  ;;  %5544 = vmatmul.bf16.gmra.mxu0 %v13343_v61  ;;  %v5315_v6 = vadd.f32 %v5314_v36, %v14920_v51 }
 0x5eb   : > { %5687 = vst.msk [vmem:[%s13175_s23 + $0x108] sm:$0xff] %vm378_vm0, %v5605_v2 }
 0x5ec   : > { %v5317_v9 = vpop.f32.mrf.mxu2 }
 0x5ee   : > { %v5507_v46 = vpop.f32.mrf.mxu0  ;;  %v5413_v34 = vpop.f32.mrf.mxu3 }
 0x5ef   : > { %v5508_v49 = vadd.f32 %v5507_v46, %v5409_v48  ;;  %v5614_v32 = vpop.f32.mrf.mxu1  ;;  %v5414_v44 = vadd.f32 %v5413_v34, %v5315_v6 }
 0x5f1   : > { %v5607_v52 = vadd.f32 %v5606_v27, %v5508_v49  ;;  %v5318_v27 = vadd.f32 %v5317_v9, %v14921_v40 }
 0x5f3   : > { %5689 = vst.msk [vmem:[%s13175_s23 + $0x118] sm:$0xff] %vm378_vm0, %v5607_v52 }
 0x5f4   : > { %v5319_v62 = vpop.f32.mrf.mxu2 }
 0x5f5   : > { %v5320_v42 = vadd.f32 %v5319_v62, %v13400_v59 }
 0x5f6   : > { %v5510_v45 = vpop.f32.mrf.mxu0  ;;  %v5416_v61 = vpop.f32.mrf.mxu3 }
 0x5f7   : > { %v5511_v15 = vadd.f32 %v5510_v45, %v5412_v16  ;;  %v5616_v0 = vpop.f32.mrf.mxu1  ;;  %v5417_v14 = vadd.f32 %v5416_v61, %v5318_v27 }
 0x5f9   : > { %v5610_v5 = vadd.f32 %v5609_v23, %v5511_v15  ;;  %5549 = vmatmul.bf16.gmra.mxu0 %v13369_v37 }
 0x5fb   : > { %5691 = vst.msk [vmem:[%s13175_s23 + $0x128] sm:$0xff] %vm378_vm0, %v5610_v5 }
 0x5fc   : > { %v5322_v28 = vpop.f32.mrf.mxu2 }
 0x5fd   : > { %v5323_v11 = vadd.f32 %v5322_v28, %v13408_v50 }
 0x5fe   : > { %v5512_v10 = vpop.f32.mrf.mxu0  ;;  %v5418_v39 = vpop.f32.mrf.mxu3 }
 0x5ff   : > { %v5513_v63 = vadd.f32 %v5512_v10, %v5414_v44  ;;  %v5619_v1 = vpop.f32.mrf.mxu1  ;;  %v5419_v20 = vadd.f32 %v5418_v39, %v5320_v42 }
 0x601   : > { %v5612_v60 = vadd.f32 %v5611_v53, %v5513_v63 }
 0x603   : > { %5693 = vst.msk [vmem:[%s13175_s23 + $0x138] sm:$0xff] %vm378_vm0, %v5612_v60 }
 0x604   : > { %v5324_v56 = vpop.f32.mrf.mxu2 }
 0x605   : > { %v5325_v58 = vadd.f32 %v5324_v56, %v13415_v33 }
 0x606   : > { %v5515_v37 = vpop.f32.mrf.mxu0  ;;  %v5421_v47 = vpop.f32.mrf.mxu3 }
 0x607   : > { %v5516_v38 = vadd.f32 %v5515_v37, %v5417_v14  ;;  %v5621_v35 = vpop.f32.mrf.mxu1  ;;  %v5422_v29 = vadd.f32 %v5421_v47, %v5323_v11 }
 0x609   : > { %v5615_v12 = vadd.f32 %v5614_v32, %v5516_v38 }
 0x60b   : > { %5695 = vst.msk [vmem:[%s13175_s23 + $0x148] sm:$0xff] %vm378_vm0, %v5615_v12 }
 0x60c   : > { %v5327_v31 = vpop.f32.mrf.mxu2 }
 0x60d   : > { %v5328_v32 = vadd.f32 %v5327_v31, %v13422_v41 }
 0x60e   : > { %v5517_v30 = vpop.f32.mrf.mxu0  ;;  %v5423_v23 = vpop.f32.mrf.mxu3 }
 0x60f   : > { %v5518_v4 = vadd.f32 %v5517_v30, %v5419_v20  ;;  %v5624_v36 = vpop.f32.mrf.mxu1  ;;  %v5424_v9 = vadd.f32 %v5423_v23, %v5325_v58 }
 0x611   : > { %v5617_v57 = vadd.f32 %v5616_v0, %v5518_v4 }
 0x613   : > { %5697 = vst.msk [vmem:[%s13175_s23 + $0x158] sm:$0xff] %vm378_vm0, %v5617_v57 }
 0x614   : > { %v5329_v7 = vpop.f32.mrf.mxu2 }
 0x615   : > { %v5330_v15 = vadd.f32 %v5329_v7, %v13429_v25 }
 0x616   : > { %v5520_v21 = vpop.f32.mrf.mxu0  ;;  %v5426_v53 = vpop.f32.mrf.mxu3 }
 0x617   : > { %v5521_v59 = vadd.f32 %v5520_v21, %v5422_v29  ;;  %v5626_v17 = vpop.f32.mrf.mxu1  ;;  %v5427_v52 = vadd.f32 %v5426_v53, %v5328_v32 }
 0x619   : > { %v5620_v2 = vadd.f32 %v5619_v1, %v5521_v59 }
 0x61b   : > { %5699 = vst.msk [vmem:[%s13175_s23 + $0x168] sm:$0xff] %vm378_vm0, %v5620_v2 }
 0x61c   : > { %v5332_v48 = vpop.f32.mrf.mxu2 }
 0x61d   : > { %v5333_v10 = vadd.f32 %v5332_v48, %v13436_v54 }
 0x61e   : > { %v5522_v46 = vpop.f32.mrf.mxu0  ;;  %v5428_v34 = vpop.f32.mrf.mxu3 }
 0x61f   : > { %v5523_v50 = vadd.f32 %v5522_v46, %v5424_v9  ;;  %v5629_v18 = vpop.f32.mrf.mxu1  ;;  %v5429_v0 = vadd.f32 %v5428_v34, %v5330_v15 }
 0x621   : > { %v5622_v49 = vadd.f32 %v5621_v35, %v5523_v50 }
 0x623   : > { %5701 = vst.msk [vmem:[%s13175_s23 + $0x178] sm:$0xff] %vm378_vm0, %v5622_v49 }
 0x624   : > { %v5334_v45 = vpop.f32.mrf.mxu2 }
 0x625   : > { %v5335_v27 = vadd.f32 %v5334_v45, %v13443_v3 }
 0x626   : > { %v5525_v62 = vpop.f32.mrf.mxu0  ;;  %v5431_v16 = vpop.f32.mrf.mxu3 }
 0x627   : > { %v5526_v33 = vadd.f32 %v5525_v62, %v5427_v52  ;;  %v5631_v41 = vpop.f32.mrf.mxu1  ;;  %v5432_v39 = vadd.f32 %v5431_v16, %v5333_v10 }
 0x629   : > { %v5625_v61 = vadd.f32 %v5624_v36, %v5526_v33 }
 0x62b   : > { %5703 = vst.msk [vmem:[%s13175_s23 + $0x188] sm:$0xff] %vm378_vm0, %v5625_v61 }
 0x62c   : > { %v5337_v44 = vpop.f32.mrf.mxu2 }
 0x62d   : > { %v5338_v35 = vadd.f32 %v5337_v44, %v13450_v22 }
 0x62e   : > { %v5527_v5 = vpop.f32.mrf.mxu0  ;;  %v5433_v51 = vpop.f32.mrf.mxu3 }
 0x62f   : > { %v5528_v6 = vadd.f32 %v5527_v5, %v5429_v0  ;;  %v5634_v40 = vpop.f32.mrf.mxu1  ;;  %v5434_v14 = vadd.f32 %v5433_v51, %v5335_v27 }
 0x631   : > { %v5627_v28 = vadd.f32 %v5626_v17, %v5528_v6 }
 0x633   : > { %5705 = vst.msk [vmem:[%s13175_s23 + $0x198] sm:$0xff] %vm378_vm0, %v5627_v28 }
 0x634   : > { %v5339_v56 = vpop.f32.mrf.mxu2 }
 0x635   : > { %v5340_v4 = vadd.f32 %v5339_v56, %v13457_v8 }
 0x636   : > { %v5530_v63 = vpop.f32.mrf.mxu0  ;;  %v5436_v1 = vpop.f32.mrf.mxu3 }
 0x637   : > { %v5531_v60 = vadd.f32 %v5530_v63, %v5432_v39  ;;  %v5636_v12 = vpop.f32.mrf.mxu1  ;;  %v5437_v42 = vadd.f32 %v5436_v1, %v5338_v35 }
 0x639   : > { %v5630_v25 = vadd.f32 %v5629_v18, %v5531_v60 }
 0x63b   : > { %5707 = vst.msk [vmem:[%s13175_s23 + $0x1a8] sm:$0xff] %vm378_vm0, %v5630_v25 }
 0x63c   : > { %v5342_v31 = vpop.f32.mrf.mxu2 }
 0x63d   : > { %v5343_v53 = vadd.f32 %v5342_v31, %v13464_v13 }
 0x63e   : > { %v5532_v37 = vpop.f32.mrf.mxu0  ;;  %v5438_v47 = vpop.f32.mrf.mxu3 }
 0x63f   : > { %v5533_v38 = vadd.f32 %v5532_v37, %v5434_v14  ;;  %v5439_v57 = vadd.f32 %v5438_v47, %v5340_v4  ;;  %v5639_v11 = vpop.f32.mrf.mxu1 }
 0x641   : > { %v5632_v54 = vadd.f32 %v5631_v41, %v5533_v38 }
 0x643   : > { %5709 = vst.msk [vmem:[%s13175_s23 + $0x1b8] sm:$0xff] %vm378_vm0, %v5632_v54 }
 0x644   : > { %v5344_v22 = vpop.f32.mrf.mxu2 }
 0x645   : > { %v5345_v48 = vadd.f32 %v5344_v22, %v13471_v55 }
 0x646   : > { %v5535_v20 = vpop.f32.mrf.mxu0  ;;  %v5441_v3 = vpop.f32.mrf.mxu3 }
 0x647   : > { %v5536_v30 = vadd.f32 %v5535_v20, %v5437_v42  ;;  %v5442_v59 = vadd.f32 %v5441_v3, %v5343_v53  ;;  %v5641_v17 = vpop.f32.mrf.mxu1 }
 0x649   : > { %v5635_v23 = vadd.f32 %v5634_v40, %v5536_v30 }
 0x64b   : > { %5711 = vst.msk [vmem:[%s13175_s23 + $0x1c8] sm:$0xff] %vm378_vm0, %v5635_v23 }
 0x64c   : > { %v5347_v9 = vpop.f32.mrf.mxu2 }
 0x64d   : > { %v5348_v52 = vadd.f32 %v5347_v9, %v13478_v26 }
 0x64e   : > { %v5537_v36 = vpop.f32.mrf.mxu0  ;;  %v5443_v21 = vpop.f32.mrf.mxu3 }
 0x64f   : > { %v5538_v7 = vadd.f32 %v5537_v36, %v5439_v57  ;;  %v5444_v34 = vadd.f32 %v5443_v21, %v5345_v48  ;;  %v5644_v13 = vpop.f32.mrf.mxu1 }
 0x651   : > { %v5637_v29 = vadd.f32 %v5636_v12, %v5538_v7 }
 0x653   : > { %5713 = vst.msk [vmem:[%s13175_s23 + $0x1d8] sm:$0xff] %vm378_vm0, %v5637_v29 }
 0x654   : > { %v5349_v18 = vpop.f32.mrf.mxu2 }
 0x655   : > { %v5350_v61 = vadd.f32 %v5349_v18, %v13485_v24 }
 0x656   : > { %v5540_v2 = vpop.f32.mrf.mxu0  ;;  %v5446_v46 = vpop.f32.mrf.mxu3 }
 0x657   : > { %v5541_v58 = vadd.f32 %v5540_v2, %v5442_v59  ;;  %v5447_v62 = vadd.f32 %v5446_v46, %v5348_v52  ;;  %v5646_v15 = vpop.f32.mrf.mxu1 }
 0x659   : > { %v5640_v8 = vadd.f32 %v5639_v11, %v5541_v58 }
 0x65b   : > { %5715 = vst.msk [vmem:[%s13175_s23 + $0x1e8] sm:$0xff] %vm378_vm0, %v5640_v8 }
 0x65c   : > { %v5352_v5 = vpop.f32.mrf.mxu2 }
 0x65d   : > { %v5353_v28 = vadd.f32 %v5352_v5, %v13492_v19 }
 0x65e   : > { %v5542_v50 = vpop.f32.mrf.mxu0  ;;  %v5448_v16 = vpop.f32.mrf.mxu3 }
 0x65f   : > { %v5543_v49 = vadd.f32 %v5542_v50, %v5444_v34  ;;  %v5449_v0 = vadd.f32 %v5448_v16, %v5350_v61  ;;  %v5649_v39 = vpop.f32.mrf.mxu1 }
 0x661   : > { %v5642_v32 = vadd.f32 %v5641_v17, %v5543_v49 }
 0x663   : > { %5717 = vst.msk [vmem:[%s13175_s23 + $0x1f8] sm:$0xff] %vm378_vm0, %v5642_v32 }
 0x664   : > { %v5354_v24 = vpop.f32.mrf.mxu2 }
 0x665   : > { %v5355_v25 = vadd.f32 %v5354_v24, %v13499_v43 }
 0x666   : > { %v5545_v33 = vpop.f32.mrf.mxu0  ;;  %v5451_v26 = vpop.f32.mrf.mxu3 }
 0x667   : > { %v5546_v45 = vadd.f32 %v5545_v33, %v5447_v62  ;;  %v5452_v44 = vadd.f32 %v5451_v26, %v5353_v28  ;;  %v5651_v14 = vpop.f32.mrf.mxu1 }
 0x669   : > { %v5645_v55 = vadd.f32 %v5644_v13, %v5546_v45 }
 0x66b   : > { %5719 = vst.msk [vmem:[%s13175_s23 + $0x208] sm:$0xff] %vm378_vm0, %v5645_v55 }
 0x66e   : > { %v5547_v51 = vpop.f32.mrf.mxu0  ;;  %v5453_v60 = vpop.f32.mrf.mxu3 }
 0x66f   : > { %v5548_v6 = vadd.f32 %v5547_v51, %v5449_v0  ;;  %v5454_v40 = vadd.f32 %v5453_v60, %v5355_v25 }
 0x671   : > { %v5647_v41 = vadd.f32 %v5646_v15, %v5548_v6 }
 0x673   : > { %5721 = vst.msk [vmem:[%s13175_s23 + $0x218] sm:$0xff] %vm378_vm0, %v5647_v41 }
 0x676   : > { %v5550_v10 = vpop.f32.mrf.mxu0 }
 0x677   : > { %v5551_v63 = vadd.f32 %v5550_v10, %v5452_v44 }
 0x679   : > { %v5650_v1 = vadd.f32 %v5649_v39, %v5551_v63 }
 0x67b   : > { %5723 = vst.msk [vmem:[%s13175_s23 + $0x228] sm:$0xff] %vm378_vm0, %v5650_v1 }
 0x67e   : > { %v5552_v27 = vpop.f32.mrf.mxu0 }
 0x67f   : > { %v5553_v56 = vadd.f32 %v5552_v27, %v5454_v40 }
 0x681   : > { %v5652_v37 = vadd.f32 %v5651_v14, %v5553_v56 }
 0x683   : > { %5725 = vst.msk [vmem:[%s13175_s23 + $0x238] sm:$0xff] %vm378_vm0, %v5652_v37 }
 0x684 PF: > { %s15_s18 = sadd.s32 1, %s6604_s18  }
 0x685   : > { %p12_p4 = scmp.ge.s32.totalorder %s15_s18, 4  }
 0x687   :  { %14 = sbr.rel (!%p12_p4) target bundleno = 1 (0x1), region = 70 }

</bundles_post_ra>
